<compile_context>
chip_gen: v6e
topology: v6e:2x2x1
jax: 0.10.0
libtpu: 0.0.40
codegen_flags: <defaults>
</compile_context>

<pallas_src>
import numpy as np
import jax
import jax.numpy as jnp
from jax.experimental import pallas as pl
from jax.experimental.pallas import tpu as pltpu


# ----------------------------- Pallas kernel -------------------------------

def bottleneck_kernel(xt_ref, xc_ref, xb_ref,
                      w1_ref, s1_ref, b1_ref,
                      w2_ref, s2_ref, b2_ref,
                      w3_ref, s3_ref, b3_ref,
                      out_ref, acc_ref):
    TH, W, C_in = xc_ref.shape
    C_mid = w1_ref.shape[1]
    C_out = w3_ref.shape[1]
    i = pl.program_id(1)
    last = pl.num_programs(1) - 1

    # Halo-extended input tile (TH+2, W, C_in); bf16 for the MXU.
    x_ext = jnp.concatenate(
        [xt_ref[...].astype(jnp.bfloat16),
         xc_ref[...].astype(jnp.bfloat16),
         xb_ref[...].astype(jnp.bfloat16)], axis=0)

    # ---- conv1 (1x1) + bn1 + relu on all TH+2 rows (halo recompute) ----
    h1 = jnp.dot(x_ext.reshape((TH + 2) * W, C_in), w1_ref[...],
                 preferred_element_type=jnp.float32)
    h1 = jnp.maximum(h1 * s1_ref[...] + b1_ref[...], 0.0)
    h1 = h1.reshape(TH + 2, W, C_mid)

    # conv2 zero-pads its *input* (h1): zero the halo rows that fall off the
    # image (top row of first tile, bottom row of last tile).
    row = jax.lax.broadcasted_iota(jnp.int32, (TH + 2, 1, 1), 0)
    keep = jnp.logical_and(jnp.logical_or(row != 0, i > 0),
                           jnp.logical_or(row != TH + 1, i < last))
    h1 = jnp.where(keep, h1, 0.0)

    # ---- conv2 (3x3, grouped -> block-diagonal dense) + bn2 + relu ----
    # W-direction taps via XLU roll (non-negative shifts only) + boundary-
    # column masks (no padded scratch).
    col = jax.lax.broadcasted_iota(jnp.int32, (1, W, 1), 1)
    h1_c = h1.astype(jnp.bfloat16)
    # value from column j-1  (rotate right by 1, zero the wrapped column 0)
    h1_l = jnp.where(col > 0, pltpu.roll(h1, shift=1, axis=1),
                     0.0).astype(jnp.bfloat16)
    # value from column j+1  (rotate right by W-1 == rotate left by 1,
    # zero the wrapped column W-1)
    h1_r = jnp.where(col < W - 1, pltpu.roll(h1, shift=W - 1, axis=1),
                     0.0).astype(jnp.bfloat16)
    shifted = (h1_l, h1_c, h1_r)

    for ky in range(3):
        for kx in range(3):
            win = shifted[kx][ky:ky + TH].reshape(TH * W, C_mid)
            tap = jnp.dot(win, w2_ref[ky * 3 + kx],
                          preferred_element_type=jnp.float32)
            if ky == 0 and kx == 0:
                acc_ref[...] = tap
            else:
                acc_ref[...] += tap

    h2 = jnp.maximum(acc_ref[...] * s2_ref[...] + b2_ref[...], 0.0)

    # ---- conv3 (1x1) + bn3 + residual add + relu ----
    h3 = jnp.dot(h2.astype(jnp.bfloat16), w3_ref[...],
                 preferred_element_type=jnp.float32)
    h3 = h3 * s3_ref[...] + b3_ref[...]
    res = xc_ref[...].reshape(TH * W, C_out)            # identity residual (f32)
    out_ref[...] = jnp.maximum(h3 + res, 0.0).reshape(TH, W, C_out)


# ------------------------------- wrapper ------------------------------------

def _fold_bn(gamma, beta, mean, var, eps=1e-5):
    scale = gamma / jnp.sqrt(var + eps)
    bias = beta - mean * scale
    return scale, bias


def _grouped_to_blockdiag(w2, num_group):
    """PyTorch grouped conv weight (C_mid, C_mid//G, 3, 3) -> (9, C_mid, C_mid)
    block-diagonal per-tap dense matrices laid out (c_in, c_out)."""
    c_mid = w2.shape[0]
    gs = c_mid // num_group
    w = w2.reshape(num_group, gs, gs, 3, 3)          # (g, o_l, i_l, ky, kx)
    w = jnp.transpose(w, (3, 4, 0, 2, 1))            # (ky, kx, g, i_l, o_l)
    w = w.reshape(9, num_group, gs, gs)
    dense = jnp.zeros((9, c_mid, c_mid), jnp.float32)
    for g in range(num_group):
        dense = dense.at[:, g * gs:(g + 1) * gs, g * gs:(g + 1) * gs].set(w[:, g])
    return dense


def bottleneck_pallas(x_nhwc, w1, w2, w3, bn1, bn2, bn3, num_group, tile_h=16):
    """x_nhwc: (N, H, W, C_in) f32.  Weights in PyTorch OIHW layout."""
    x = x_nhwc.astype(jnp.float32)
    N, H, W, C_in = x.shape
    C_mid = w1.shape[0]
    C_out = w3.shape[0]
    assert C_in == C_out, "identity-residual path requires C_in == C_out"
    TH = min(tile_h, H)
    assert H % TH == 0, "tile_h must divide H"
    n_tiles = H // TH

    # 1x1 conv weights as (c_in, c_out) bf16 matrices; grouped 3x3 as
    # block-diagonal dense per-tap bf16 matrices.
    w1m = jnp.transpose(w1[:, :, 0, 0], (1, 0)).astype(jnp.bfloat16)   # (C_in, C_mid)
    w3m = jnp.transpose(w3[:, :, 0, 0], (1, 0)).astype(jnp.bfloat16)   # (C_mid, C_out)
    w2d = _grouped_to_blockdiag(w2, num_group).astype(jnp.bfloat16)    # (9, C_mid, C_mid)

    s1, b1 = _fold_bn(*bn1)
    s2, b2 = _fold_bn(*bn2)
    s3, b3 = _fold_bn(*bn3)
    s1, b1 = s1.reshape(1, C_mid), b1.reshape(1, C_mid)
    s2, b2 = s2.reshape(1, C_mid), b2.reshape(1, C_mid)
    s3, b3 = s3.reshape(1, C_out), b3.reshape(1, C_out)

    # Row-tile index maps.  Halo rows are 1-row blocks whose H index is the
    # clamped neighbor row; out-of-image halos are zero-masked in the kernel.
    def top_map(n, i):
        return (n, jnp.maximum(i * TH - 1, 0), 0, 0)

    def center_map(n, i):
        return (n, i, 0, 0)

    def bottom_map(n, i):
        return (n, jnp.minimum(i * TH + TH, H - 1), 0, 0)

    def const2(n, i):
        return (0, 0)

    def const3(n, i):
        return (0, 0, 0)

    in_specs = [
        pl.BlockSpec((None, 1, W, C_in), top_map),       # top halo row of x
        pl.BlockSpec((None, TH, W, C_in), center_map),   # center rows of x
        pl.BlockSpec((None, 1, W, C_in), bottom_map),    # bottom halo row of x
        pl.BlockSpec((C_in, C_mid), const2),             # w1
        pl.BlockSpec((1, C_mid), const2),                # bn1 scale
        pl.BlockSpec((1, C_mid), const2),                # bn1 bias
        pl.BlockSpec((9, C_mid, C_mid), const3),         # w2 (block-diag taps)
        pl.BlockSpec((1, C_mid), const2),                # bn2 scale
        pl.BlockSpec((1, C_mid), const2),                # bn2 bias
        pl.BlockSpec((C_mid, C_out), const2),            # w3
        pl.BlockSpec((1, C_out), const2),                # bn3 scale
        pl.BlockSpec((1, C_out), const2),                # bn3 bias
    ]
    out_spec = pl.BlockSpec((None, TH, W, C_out), center_map)

    out = pl.pallas_call(
        bottleneck_kernel,
        out_shape=jax.ShapeDtypeStruct((N, H, W, C_out), jnp.float32),
        grid=(N, n_tiles),
        in_specs=in_specs,
        out_specs=out_spec,
        scratch_shapes=[pltpu.VMEM((TH * W, C_mid), jnp.float32)],
        compiler_params=pltpu.CompilerParams(
            dimension_semantics=("parallel", "parallel"),
            vmem_limit_bytes=32 * 1024 * 1024),
    )(x, x, x, w1m, s1, b1, w2d, s2, b2, w3m, s3, b3)
    return out


# -------------------------- pure-JAX reference -------------------------------

def _conv_nhwc(x, w, stride=1, padding=0, groups=1):
    return jax.lax.conv_general_dilated(
        x, w, window_strides=(stride, stride),
        padding=((padding, padding), (padding, padding)),
        dimension_numbers=('NHWC', 'OIHW', 'NHWC'),
        feature_group_count=groups,
        precision=jax.lax.Precision.HIGHEST)


def _bn_eval_nhwc(y, p, eps=1e-5):
    g, b, m, v = p
    scale = g / jnp.sqrt(v + eps)
    bias = b - m * scale
    return y * scale[None, None, None, :] + bias[None, None, None, :]


def bottleneck_ref(x, w1, w2, w3, bn1, bn2, bn3, num_group):
    out = jax.nn.relu(_bn_eval_nhwc(_conv_nhwc(x, w1), bn1))
    out = jax.nn.relu(_bn_eval_nhwc(
        _conv_nhwc(out, w2, padding=1, groups=num_group), bn2))
    out = _bn_eval_nhwc(_conv_nhwc(out, w3), bn3)
    return jax.nn.relu(out + x)


# ---------------------------------- main -------------------------------------

if __name__ == "__main__":
    key = jax.random.PRNGKey(0)
    keys = jax.random.split(key, 16)

    # Identity-residual Bottleneck at lane-dense widths (ResNeXt-50 stage-1):
    # inplanes = planes*4 = 256, C_mid = planes*2 = 128, C_out = 256, G = 32.
    N, H, W = 2, 32, 32
    planes = 64
    num_group = 32
    inplanes = planes * 4          # 256 (stride=1 / identity-residual path)
    C_mid = planes * 2             # 128
    C_out = planes * 4             # 256

    x = jax.random.normal(keys[0], (N, H, W, inplanes), jnp.float32)

    w1 = jax.random.normal(keys[1], (C_mid, inplanes, 1, 1), jnp.float32) * 0.1
    w2 = jax.random.normal(keys[2], (C_mid, C_mid // num_group, 3, 3),
                           jnp.float32) * 0.1
    w3 = jax.random.normal(keys[3], (C_out, C_mid, 1, 1), jnp.float32) * 0.1

    def make_bn(c, k0, k1, k2, k3):
        gamma = jax.random.uniform(keys[k0], (c,), jnp.float32, 0.5, 1.5)
        beta = jax.random.normal(keys[k1], (c,), jnp.float32) * 0.1
        mean = jax.random.normal(keys[k2], (c,), jnp.float32) * 0.1
        var = jax.random.uniform(keys[k3], (c,), jnp.float32, 0.5, 1.5)
        return (gamma, beta, mean, var)

    bn1 = make_bn(C_mid, 4, 5, 6, 7)
    bn2 = make_bn(C_mid, 8, 9, 10, 11)
    bn3 = make_bn(C_out, 12, 13, 14, 15)

    out = bottleneck_pallas(x, w1, w2, w3, bn1, bn2, bn3, num_group, tile_h=16)
    out = jax.block_until_ready(out)

    ref = jax.block_until_ready(
        bottleneck_ref(x, w1, w2, w3, bn1, bn2, bn3, num_group))

    # Tolerance reflects bf16 MXU matmuls vs. the f32 HIGHEST-precision reference.
    np.testing.assert_allclose(np.asarray(out), np.asarray(ref),
                               rtol=5e-2, atol=5e-2)
    print("KERNEL_OK")
</pallas_src>

<mosaic_0001>
module attributes {stable_mosaic.version = 11 : i64} {
  func.func @bottleneck_kernel(%arg0: i32, %arg1: i32, %arg2: memref<1x1x32x256xf32, #tpu.memory_space<vmem>>, %arg3: memref<1x16x32x256xf32, #tpu.memory_space<vmem>>, %arg4: memref<1x1x32x256xf32, #tpu.memory_space<vmem>>, %arg5: memref<256x128xbf16, #tpu.memory_space<vmem>>, %arg6: memref<1x128xf32, #tpu.memory_space<vmem>>, %arg7: memref<1x128xf32, #tpu.memory_space<vmem>>, %arg8: memref<9x128x128xbf16, #tpu.memory_space<vmem>>, %arg9: memref<1x128xf32, #tpu.memory_space<vmem>>, %arg10: memref<1x128xf32, #tpu.memory_space<vmem>>, %arg11: memref<128x256xbf16, #tpu.memory_space<vmem>>, %arg12: memref<1x256xf32, #tpu.memory_space<vmem>>, %arg13: memref<1x256xf32, #tpu.memory_space<vmem>>, %arg14: memref<1x16x32x256xf32, #tpu.memory_space<vmem>>, %arg15: memref<512x128xf32, #tpu.memory_space<vmem>>) attributes {dimension_semantics = [#tpu.dimension_semantics<parallel>, #tpu.dimension_semantics<parallel>], iteration_bounds = array<i64: 2, 2>, scalar_prefetch = 0 : i64, scratch_operands = 1 : i64, tpu.core_type = #tpu.core_type<tc>, window_params = [{transform_indices = @transform_0, window_bounds = array<i64: 1, 1, 32, 256>}, {transform_indices = @transform_1, window_bounds = array<i64: 1, 16, 32, 256>}, {transform_indices = @transform_2, window_bounds = array<i64: 1, 1, 32, 256>}, {pipeline_mode = #tpu.pipeline_mode<synchronous>, transform_indices = @transform_3, window_bounds = array<i64: 256, 128>}, {pipeline_mode = #tpu.pipeline_mode<synchronous>, transform_indices = @transform_4, window_bounds = array<i64: 1, 128>}, {pipeline_mode = #tpu.pipeline_mode<synchronous>, transform_indices = @transform_5, window_bounds = array<i64: 1, 128>}, {pipeline_mode = #tpu.pipeline_mode<synchronous>, transform_indices = @transform_6, window_bounds = array<i64: 9, 128, 128>}, {pipeline_mode = #tpu.pipeline_mode<synchronous>, transform_indices = @transform_7, window_bounds = array<i64: 1, 128>}, {pipeline_mode = #tpu.pipeline_mode<synchronous>, transform_indices = @transform_8, window_bounds = array<i64: 1, 128>}, {pipeline_mode = #tpu.pipeline_mode<synchronous>, transform_indices = @transform_9, window_bounds = array<i64: 128, 256>}, {pipeline_mode = #tpu.pipeline_mode<synchronous>, transform_indices = @transform_10, window_bounds = array<i64: 1, 256>}, {pipeline_mode = #tpu.pipeline_mode<synchronous>, transform_indices = @transform_11, window_bounds = array<i64: 1, 256>}, {transform_indices = @transform_12, window_bounds = array<i64: 1, 16, 32, 256>}]} {
    %c0 = arith.constant 0 : index
    %c0_0 = arith.constant 0 : index
    %c0_1 = arith.constant 0 : index
    %c0_2 = arith.constant 0 : index
    %0 = vector.load %arg2[%c0, %c0_0, %c0_1, %c0_2] : memref<1x1x32x256xf32, #tpu.memory_space<vmem>>, vector<1x1x32x256xf32>
    %1 = vector.shape_cast %0 : vector<1x1x32x256xf32> to vector<1x32x256xf32>
    %2 = arith.truncf %1 : vector<1x32x256xf32> to vector<1x32x256xbf16>
    %c0_3 = arith.constant 0 : index
    %c0_4 = arith.constant 0 : index
    %c0_5 = arith.constant 0 : index
    %c0_6 = arith.constant 0 : index
    %3 = vector.load %arg3[%c0_3, %c0_4, %c0_5, %c0_6] : memref<1x16x32x256xf32, #tpu.memory_space<vmem>>, vector<1x16x32x256xf32>
    %4 = vector.shape_cast %3 : vector<1x16x32x256xf32> to vector<16x32x256xf32>
    %5 = arith.truncf %4 : vector<16x32x256xf32> to vector<16x32x256xbf16>
    %c0_7 = arith.constant 0 : index
    %c0_8 = arith.constant 0 : index
    %c0_9 = arith.constant 0 : index
    %c0_10 = arith.constant 0 : index
    %6 = vector.load %arg4[%c0_7, %c0_8, %c0_9, %c0_10] : memref<1x1x32x256xf32, #tpu.memory_space<vmem>>, vector<1x1x32x256xf32>
    %7 = vector.shape_cast %6 : vector<1x1x32x256xf32> to vector<1x32x256xf32>
    %8 = arith.truncf %7 : vector<1x32x256xf32> to vector<1x32x256xbf16>
    %9 = tpu.concatenate %2, %5, %8 in 0 : vector<1x32x256xbf16>, vector<16x32x256xbf16>, vector<1x32x256xbf16> -> vector<18x32x256xbf16>
    %10 = vector.shape_cast %9 : vector<18x32x256xbf16> to vector<576x256xbf16>
    %c0_11 = arith.constant 0 : index
    %c0_12 = arith.constant 0 : index
    %11 = vector.load %arg5[%c0_11, %c0_12] : memref<256x128xbf16, #tpu.memory_space<vmem>>, vector<256x128xbf16>
    %cst = arith.constant dense<0.000000e+00> : vector<576x128xf32>
    %12 = tpu.matmul %10, %11, %cst {dimension_numbers = #tpu.dot_dimension_numbers<[1], [0], [0], [1], [0, 0, 1, 1], [], []>} : vector<576x256xbf16>, vector<256x128xbf16>, vector<576x128xf32> -> vector<576x128xf32>
    %c0_13 = arith.constant 0 : index
    %c0_14 = arith.constant 0 : index
    %13 = vector.load %arg6[%c0_13, %c0_14] : memref<1x128xf32, #tpu.memory_space<vmem>>, vector<1x128xf32>
    %14 = vector.broadcast %13 : vector<1x128xf32> to vector<576x128xf32>
    %15 = arith.mulf %12, %14 : vector<576x128xf32>
    %c0_15 = arith.constant 0 : index
    %c0_16 = arith.constant 0 : index
    %16 = vector.load %arg7[%c0_15, %c0_16] : memref<1x128xf32, #tpu.memory_space<vmem>>, vector<1x128xf32>
    %17 = vector.broadcast %16 : vector<1x128xf32> to vector<576x128xf32>
    %18 = arith.addf %15, %17 : vector<576x128xf32>
    %cst_17 = arith.constant 0.000000e+00 : f32
    %19 = vector.broadcast %cst_17 : f32 to vector<576x128xf32>
    %20 = arith.maximumf %18, %19 : vector<576x128xf32>
    %21 = vector.shape_cast %20 : vector<576x128xf32> to vector<18x32x128xf32>
    %22 = tpu.iota {dimensions = array<i32: 0>} : vector<18x1x1xi32>
    %c0_i32 = arith.constant 0 : i32
    %23 = vector.broadcast %c0_i32 : i32 to vector<18x1x1xi32>
    %24 = arith.cmpi ne, %22, %23 : vector<18x1x1xi32>
    %c0_i32_18 = arith.constant 0 : i32
    %25 = arith.cmpi sgt, %arg1, %c0_i32_18 : i32
    %26 = vector.broadcast %25 : i1 to vector<18x1x1xi1>
    %27 = arith.ori %24, %26 : vector<18x1x1xi1>
    %c17_i32 = arith.constant 17 : i32
    %28 = vector.broadcast %c17_i32 : i32 to vector<18x1x1xi32>
    %29 = arith.cmpi ne, %22, %28 : vector<18x1x1xi32>
    %c1_i32 = arith.constant 1 : i32
    %30 = arith.cmpi slt, %arg1, %c1_i32 : i32
    %31 = vector.broadcast %30 : i1 to vector<18x1x1xi1>
    %32 = arith.ori %29, %31 : vector<18x1x1xi1>
    %33 = arith.andi %27, %32 : vector<18x1x1xi1>
    %cst_19 = arith.constant 0.000000e+00 : f32
    %34 = vector.shape_cast %33 : vector<18x1x1xi1> to vector<18x1x1xi1>
    %35 = vector.broadcast %34 : vector<18x1x1xi1> to vector<18x32x128xi1>
    %36 = vector.broadcast %cst_19 : f32 to vector<18x32x128xf32>
    %37 = arith.select %35, %21, %36 : vector<18x32x128xi1>, vector<18x32x128xf32>
    %38 = tpu.iota {dimensions = array<i32: 1>} : vector<1x32x1xi32>
    %39 = arith.truncf %37 : vector<18x32x128xf32> to vector<18x32x128xbf16>
    %c0_i32_20 = arith.constant 0 : i32
    %40 = vector.broadcast %c0_i32_20 : i32 to vector<1x32x1xi32>
    %41 = arith.cmpi sgt, %38, %40 : vector<1x32x1xi32>
    %c1_i32_21 = arith.constant 1 : i32
    %42 = tpu.dynamic_rotate %37 by %c1_i32_21 dim 1 : vector<18x32x128xf32>, i32 -> vector<18x32x128xf32>
    %cst_22 = arith.constant 0.000000e+00 : f32
    %43 = vector.shape_cast %41 : vector<1x32x1xi1> to vector<1x32x1xi1>
    %44 = vector.broadcast %43 : vector<1x32x1xi1> to vector<18x32x128xi1>
    %45 = vector.broadcast %cst_22 : f32 to vector<18x32x128xf32>
    %46 = arith.select %44, %42, %45 : vector<18x32x128xi1>, vector<18x32x128xf32>
    %47 = arith.truncf %46 : vector<18x32x128xf32> to vector<18x32x128xbf16>
    %c31_i32 = arith.constant 31 : i32
    %48 = vector.broadcast %c31_i32 : i32 to vector<1x32x1xi32>
    %49 = arith.cmpi slt, %38, %48 : vector<1x32x1xi32>
    %c31_i32_23 = arith.constant 31 : i32
    %50 = tpu.dynamic_rotate %37 by %c31_i32_23 dim 1 : vector<18x32x128xf32>, i32 -> vector<18x32x128xf32>
    %cst_24 = arith.constant 0.000000e+00 : f32
    %51 = vector.shape_cast %49 : vector<1x32x1xi1> to vector<1x32x1xi1>
    %52 = vector.broadcast %51 : vector<1x32x1xi1> to vector<18x32x128xi1>
    %53 = vector.broadcast %cst_24 : f32 to vector<18x32x128xf32>
    %54 = arith.select %52, %50, %53 : vector<18x32x128xi1>, vector<18x32x128xf32>
    %55 = arith.truncf %54 : vector<18x32x128xf32> to vector<18x32x128xbf16>
    %56 = vector.extract_strided_slice %47 {offsets = [0, 0, 0], sizes = [16, 32, 128], strides = [1, 1, 1]} : vector<18x32x128xbf16> to vector<16x32x128xbf16>
    %57 = vector.shape_cast %56 : vector<16x32x128xbf16> to vector<512x128xbf16>
    %c0_25 = arith.constant 0 : index
    %c0_26 = arith.constant 0 : index
    %c0_27 = arith.constant 0 : index
    %58 = vector.load %arg8[%c0_25, %c0_26, %c0_27] : memref<9x128x128xbf16, #tpu.memory_space<vmem>>, vector<1x128x128xbf16>
    %59 = vector.shape_cast %58 : vector<1x128x128xbf16> to vector<128x128xbf16>
    %cst_28 = arith.constant dense<0.000000e+00> : vector<512x128xf32>
    %60 = tpu.matmul %57, %59, %cst_28 {dimension_numbers = #tpu.dot_dimension_numbers<[1], [0], [0], [1], [0, 0, 1, 1], [], []>} : vector<512x128xbf16>, vector<128x128xbf16>, vector<512x128xf32> -> vector<512x128xf32>
    %c0_29 = arith.constant 0 : index
    %c0_30 = arith.constant 0 : index
    %61 = vector.load %arg15[%c0_29, %c0_30] : memref<512x128xf32, #tpu.memory_space<vmem>>, vector<512x128xf32>
    tpu.vector_store %arg15[%c0_29, %c0_30], %60 {strides = array<i32>} : memref<512x128xf32, #tpu.memory_space<vmem>>, vector<512x128xf32>,
    %62 = vector.extract_strided_slice %39 {offsets = [0, 0, 0], sizes = [16, 32, 128], strides = [1, 1, 1]} : vector<18x32x128xbf16> to vector<16x32x128xbf16>
    %63 = vector.shape_cast %62 : vector<16x32x128xbf16> to vector<512x128xbf16>
    %c1 = arith.constant 1 : index
    %c0_31 = arith.constant 0 : index
    %c0_32 = arith.constant 0 : index
    %64 = vector.load %arg8[%c1, %c0_31, %c0_32] : memref<9x128x128xbf16, #tpu.memory_space<vmem>>, vector<1x128x128xbf16>
    %65 = vector.shape_cast %64 : vector<1x128x128xbf16> to vector<128x128xbf16>
    %cst_33 = arith.constant dense<0.000000e+00> : vector<512x128xf32>
    %66 = tpu.matmul %63, %65, %cst_33 {dimension_numbers = #tpu.dot_dimension_numbers<[1], [0], [0], [1], [0, 0, 1, 1], [], []>} : vector<512x128xbf16>, vector<128x128xbf16>, vector<512x128xf32> -> vector<512x128xf32>
    %c0_34 = arith.constant 0 : index
    %c0_35 = arith.constant 0 : index
    %67 = vector.load %arg15[%c0_34, %c0_35] : memref<512x128xf32, #tpu.memory_space<vmem>>, vector<512x128xf32>
    %68 = arith.addf %67, %66 : vector<512x128xf32>
    %c0_36 = arith.constant 0 : index
    %c0_37 = arith.constant 0 : index
    %69 = vector.load %arg15[%c0_36, %c0_37] : memref<512x128xf32, #tpu.memory_space<vmem>>, vector<512x128xf32>
    tpu.vector_store %arg15[%c0_36, %c0_37], %68 {strides = array<i32>} : memref<512x128xf32, #tpu.memory_space<vmem>>, vector<512x128xf32>,
    %70 = vector.extract_strided_slice %55 {offsets = [0, 0, 0], sizes = [16, 32, 128], strides = [1, 1, 1]} : vector<18x32x128xbf16> to vector<16x32x128xbf16>
    %71 = vector.shape_cast %70 : vector<16x32x128xbf16> to vector<512x128xbf16>
    %c2 = arith.constant 2 : index
    %c0_38 = arith.constant 0 : index
    %c0_39 = arith.constant 0 : index
    %72 = vector.load %arg8[%c2, %c0_38, %c0_39] : memref<9x128x128xbf16, #tpu.memory_space<vmem>>, vector<1x128x128xbf16>
    %73 = vector.shape_cast %72 : vector<1x128x128xbf16> to vector<128x128xbf16>
    %cst_40 = arith.constant dense<0.000000e+00> : vector<512x128xf32>
    %74 = tpu.matmul %71, %73, %cst_40 {dimension_numbers = #tpu.dot_dimension_numbers<[1], [0], [0], [1], [0, 0, 1, 1], [], []>} : vector<512x128xbf16>, vector<128x128xbf16>, vector<512x128xf32> -> vector<512x128xf32>
    %c0_41 = arith.constant 0 : index
    %c0_42 = arith.constant 0 : index
    %75 = vector.load %arg15[%c0_41, %c0_42] : memref<512x128xf32, #tpu.memory_space<vmem>>, vector<512x128xf32>
    %76 = arith.addf %75, %74 : vector<512x128xf32>
    %c0_43 = arith.constant 0 : index
    %c0_44 = arith.constant 0 : index
    %77 = vector.load %arg15[%c0_43, %c0_44] : memref<512x128xf32, #tpu.memory_space<vmem>>, vector<512x128xf32>
    tpu.vector_store %arg15[%c0_43, %c0_44], %76 {strides = array<i32>} : memref<512x128xf32, #tpu.memory_space<vmem>>, vector<512x128xf32>,
    %78 = vector.extract_strided_slice %47 {offsets = [1, 0, 0], sizes = [16, 32, 128], strides = [1, 1, 1]} : vector<18x32x128xbf16> to vector<16x32x128xbf16>
    %79 = vector.shape_cast %78 : vector<16x32x128xbf16> to vector<512x128xbf16>
    %c3 = arith.constant 3 : index
    %c0_45 = arith.constant 0 : index
    %c0_46 = arith.constant 0 : index
    %80 = vector.load %arg8[%c3, %c0_45, %c0_46] : memref<9x128x128xbf16, #tpu.memory_space<vmem>>, vector<1x128x128xbf16>
    %81 = vector.shape_cast %80 : vector<1x128x128xbf16> to vector<128x128xbf16>
    %cst_47 = arith.constant dense<0.000000e+00> : vector<512x128xf32>
    %82 = tpu.matmul %79, %81, %cst_47 {dimension_numbers = #tpu.dot_dimension_numbers<[1], [0], [0], [1], [0, 0, 1, 1], [], []>} : vector<512x128xbf16>, vector<128x128xbf16>, vector<512x128xf32> -> vector<512x128xf32>
    %c0_48 = arith.constant 0 : index
    %c0_49 = arith.constant 0 : index
    %83 = vector.load %arg15[%c0_48, %c0_49] : memref<512x128xf32, #tpu.memory_space<vmem>>, vector<512x128xf32>
    %84 = arith.addf %83, %82 : vector<512x128xf32>
    %c0_50 = arith.constant 0 : index
    %c0_51 = arith.constant 0 : index
    %85 = vector.load %arg15[%c0_50, %c0_51] : memref<512x128xf32, #tpu.memory_space<vmem>>, vector<512x128xf32>
    tpu.vector_store %arg15[%c0_50, %c0_51], %84 {strides = array<i32>} : memref<512x128xf32, #tpu.memory_space<vmem>>, vector<512x128xf32>,
    %86 = vector.extract_strided_slice %39 {offsets = [1, 0, 0], sizes = [16, 32, 128], strides = [1, 1, 1]} : vector<18x32x128xbf16> to vector<16x32x128xbf16>
    %87 = vector.shape_cast %86 : vector<16x32x128xbf16> to vector<512x128xbf16>
    %c4 = arith.constant 4 : index
    %c0_52 = arith.constant 0 : index
    %c0_53 = arith.constant 0 : index
    %88 = vector.load %arg8[%c4, %c0_52, %c0_53] : memref<9x128x128xbf16, #tpu.memory_space<vmem>>, vector<1x128x128xbf16>
    %89 = vector.shape_cast %88 : vector<1x128x128xbf16> to vector<128x128xbf16>
    %cst_54 = arith.constant dense<0.000000e+00> : vector<512x128xf32>
    %90 = tpu.matmul %87, %89, %cst_54 {dimension_numbers = #tpu.dot_dimension_numbers<[1], [0], [0], [1], [0, 0, 1, 1], [], []>} : vector<512x128xbf16>, vector<128x128xbf16>, vector<512x128xf32> -> vector<512x128xf32>
    %c0_55 = arith.constant 0 : index
    %c0_56 = arith.constant 0 : index
    %91 = vector.load %arg15[%c0_55, %c0_56] : memref<512x128xf32, #tpu.memory_space<vmem>>, vector<512x128xf32>
    %92 = arith.addf %91, %90 : vector<512x128xf32>
    %c0_57 = arith.constant 0 : index
    %c0_58 = arith.constant 0 : index
    %93 = vector.load %arg15[%c0_57, %c0_58] : memref<512x128xf32, #tpu.memory_space<vmem>>, vector<512x128xf32>
    tpu.vector_store %arg15[%c0_57, %c0_58], %92 {strides = array<i32>} : memref<512x128xf32, #tpu.memory_space<vmem>>, vector<512x128xf32>,
    %94 = vector.extract_strided_slice %55 {offsets = [1, 0, 0], sizes = [16, 32, 128], strides = [1, 1, 1]} : vector<18x32x128xbf16> to vector<16x32x128xbf16>
    %95 = vector.shape_cast %94 : vector<16x32x128xbf16> to vector<512x128xbf16>
    %c5 = arith.constant 5 : index
    %c0_59 = arith.constant 0 : index
    %c0_60 = arith.constant 0 : index
    %96 = vector.load %arg8[%c5, %c0_59, %c0_60] : memref<9x128x128xbf16, #tpu.memory_space<vmem>>, vector<1x128x128xbf16>
    %97 = vector.shape_cast %96 : vector<1x128x128xbf16> to vector<128x128xbf16>
    %cst_61 = arith.constant dense<0.000000e+00> : vector<512x128xf32>
    %98 = tpu.matmul %95, %97, %cst_61 {dimension_numbers = #tpu.dot_dimension_numbers<[1], [0], [0], [1], [0, 0, 1, 1], [], []>} : vector<512x128xbf16>, vector<128x128xbf16>, vector<512x128xf32> -> vector<512x128xf32>
    %c0_62 = arith.constant 0 : index
    %c0_63 = arith.constant 0 : index
    %99 = vector.load %arg15[%c0_62, %c0_63] : memref<512x128xf32, #tpu.memory_space<vmem>>, vector<512x128xf32>
    %100 = arith.addf %99, %98 : vector<512x128xf32>
    %c0_64 = arith.constant 0 : index
    %c0_65 = arith.constant 0 : index
    %101 = vector.load %arg15[%c0_64, %c0_65] : memref<512x128xf32, #tpu.memory_space<vmem>>, vector<512x128xf32>
    tpu.vector_store %arg15[%c0_64, %c0_65], %100 {strides = array<i32>} : memref<512x128xf32, #tpu.memory_space<vmem>>, vector<512x128xf32>,
    %102 = vector.extract_strided_slice %47 {offsets = [2, 0, 0], sizes = [16, 32, 128], strides = [1, 1, 1]} : vector<18x32x128xbf16> to vector<16x32x128xbf16>
    %103 = vector.shape_cast %102 : vector<16x32x128xbf16> to vector<512x128xbf16>
    %c6 = arith.constant 6 : index
    %c0_66 = arith.constant 0 : index
    %c0_67 = arith.constant 0 : index
    %104 = vector.load %arg8[%c6, %c0_66, %c0_67] : memref<9x128x128xbf16, #tpu.memory_space<vmem>>, vector<1x128x128xbf16>
    %105 = vector.shape_cast %104 : vector<1x128x128xbf16> to vector<128x128xbf16>
    %cst_68 = arith.constant dense<0.000000e+00> : vector<512x128xf32>
    %106 = tpu.matmul %103, %105, %cst_68 {dimension_numbers = #tpu.dot_dimension_numbers<[1], [0], [0], [1], [0, 0, 1, 1], [], []>} : vector<512x128xbf16>, vector<128x128xbf16>, vector<512x128xf32> -> vector<512x128xf32>
    %c0_69 = arith.constant 0 : index
    %c0_70 = arith.constant 0 : index
    %107 = vector.load %arg15[%c0_69, %c0_70] : memref<512x128xf32, #tpu.memory_space<vmem>>, vector<512x128xf32>
    %108 = arith.addf %107, %106 : vector<512x128xf32>
    %c0_71 = arith.constant 0 : index
    %c0_72 = arith.constant 0 : index
    %109 = vector.load %arg15[%c0_71, %c0_72] : memref<512x128xf32, #tpu.memory_space<vmem>>, vector<512x128xf32>
    tpu.vector_store %arg15[%c0_71, %c0_72], %108 {strides = array<i32>} : memref<512x128xf32, #tpu.memory_space<vmem>>, vector<512x128xf32>,
    %110 = vector.extract_strided_slice %39 {offsets = [2, 0, 0], sizes = [16, 32, 128], strides = [1, 1, 1]} : vector<18x32x128xbf16> to vector<16x32x128xbf16>
    %111 = vector.shape_cast %110 : vector<16x32x128xbf16> to vector<512x128xbf16>
    %c7 = arith.constant 7 : index
    %c0_73 = arith.constant 0 : index
    %c0_74 = arith.constant 0 : index
    %112 = vector.load %arg8[%c7, %c0_73, %c0_74] : memref<9x128x128xbf16, #tpu.memory_space<vmem>>, vector<1x128x128xbf16>
    %113 = vector.shape_cast %112 : vector<1x128x128xbf16> to vector<128x128xbf16>
    %cst_75 = arith.constant dense<0.000000e+00> : vector<512x128xf32>
    %114 = tpu.matmul %111, %113, %cst_75 {dimension_numbers = #tpu.dot_dimension_numbers<[1], [0], [0], [1], [0, 0, 1, 1], [], []>} : vector<512x128xbf16>, vector<128x128xbf16>, vector<512x128xf32> -> vector<512x128xf32>
    %c0_76 = arith.constant 0 : index
    %c0_77 = arith.constant 0 : index
    %115 = vector.load %arg15[%c0_76, %c0_77] : memref<512x128xf32, #tpu.memory_space<vmem>>, vector<512x128xf32>
    %116 = arith.addf %115, %114 : vector<512x128xf32>
    %c0_78 = arith.constant 0 : index
    %c0_79 = arith.constant 0 : index
    %117 = vector.load %arg15[%c0_78, %c0_79] : memref<512x128xf32, #tpu.memory_space<vmem>>, vector<512x128xf32>
    tpu.vector_store %arg15[%c0_78, %c0_79], %116 {strides = array<i32>} : memref<512x128xf32, #tpu.memory_space<vmem>>, vector<512x128xf32>,
    %118 = vector.extract_strided_slice %55 {offsets = [2, 0, 0], sizes = [16, 32, 128], strides = [1, 1, 1]} : vector<18x32x128xbf16> to vector<16x32x128xbf16>
    %119 = vector.shape_cast %118 : vector<16x32x128xbf16> to vector<512x128xbf16>
    %c8 = arith.constant 8 : index
    %c0_80 = arith.constant 0 : index
    %c0_81 = arith.constant 0 : index
    %120 = vector.load %arg8[%c8, %c0_80, %c0_81] : memref<9x128x128xbf16, #tpu.memory_space<vmem>>, vector<1x128x128xbf16>
    %121 = vector.shape_cast %120 : vector<1x128x128xbf16> to vector<128x128xbf16>
    %cst_82 = arith.constant dense<0.000000e+00> : vector<512x128xf32>
    %122 = tpu.matmul %119, %121, %cst_82 {dimension_numbers = #tpu.dot_dimension_numbers<[1], [0], [0], [1], [0, 0, 1, 1], [], []>} : vector<512x128xbf16>, vector<128x128xbf16>, vector<512x128xf32> -> vector<512x128xf32>
    %c0_83 = arith.constant 0 : index
    %c0_84 = arith.constant 0 : index
    %123 = vector.load %arg15[%c0_83, %c0_84] : memref<512x128xf32, #tpu.memory_space<vmem>>, vector<512x128xf32>
    %124 = arith.addf %123, %122 : vector<512x128xf32>
    %c0_85 = arith.constant 0 : index
    %c0_86 = arith.constant 0 : index
    %125 = vector.load %arg15[%c0_85, %c0_86] : memref<512x128xf32, #tpu.memory_space<vmem>>, vector<512x128xf32>
    tpu.vector_store %arg15[%c0_85, %c0_86], %124 {strides = array<i32>} : memref<512x128xf32, #tpu.memory_space<vmem>>, vector<512x128xf32>,
    %c0_87 = arith.constant 0 : index
    %c0_88 = arith.constant 0 : index
    %126 = vector.load %arg15[%c0_87, %c0_88] : memref<512x128xf32, #tpu.memory_space<vmem>>, vector<512x128xf32>
    %c0_89 = arith.constant 0 : index
    %c0_90 = arith.constant 0 : index
    %127 = vector.load %arg9[%c0_89, %c0_90] : memref<1x128xf32, #tpu.memory_space<vmem>>, vector<1x128xf32>
    %128 = vector.broadcast %127 : vector<1x128xf32> to vector<512x128xf32>
    %129 = arith.mulf %126, %128 : vector<512x128xf32>
    %c0_91 = arith.constant 0 : index
    %c0_92 = arith.constant 0 : index
    %130 = vector.load %arg10[%c0_91, %c0_92] : memref<1x128xf32, #tpu.memory_space<vmem>>, vector<1x128xf32>
    %131 = vector.broadcast %130 : vector<1x128xf32> to vector<512x128xf32>
    %132 = arith.addf %129, %131 : vector<512x128xf32>
    %cst_93 = arith.constant 0.000000e+00 : f32
    %133 = vector.broadcast %cst_93 : f32 to vector<512x128xf32>
    %134 = arith.maximumf %132, %133 : vector<512x128xf32>
    %135 = arith.truncf %134 : vector<512x128xf32> to vector<512x128xbf16>
    %c0_94 = arith.constant 0 : index
    %c0_95 = arith.constant 0 : index
    %136 = vector.load %arg11[%c0_94, %c0_95] : memref<128x256xbf16, #tpu.memory_space<vmem>>, vector<128x256xbf16>
    %cst_96 = arith.constant dense<0.000000e+00> : vector<512x256xf32>
    %137 = tpu.matmul %135, %136, %cst_96 {dimension_numbers = #tpu.dot_dimension_numbers<[1], [0], [0], [1], [0, 0, 1, 1], [], []>} : vector<512x128xbf16>, vector<128x256xbf16>, vector<512x256xf32> -> vector<512x256xf32>
    %c0_97 = arith.constant 0 : index
    %c0_98 = arith.constant 0 : index
    %138 = vector.load %arg12[%c0_97, %c0_98] : memref<1x256xf32, #tpu.memory_space<vmem>>, vector<1x256xf32>
    %139 = vector.broadcast %138 : vector<1x256xf32> to vector<512x256xf32>
    %140 = arith.mulf %137, %139 : vector<512x256xf32>
    %c0_99 = arith.constant 0 : index
    %c0_100 = arith.constant 0 : index
    %141 = vector.load %arg13[%c0_99, %c0_100] : memref<1x256xf32, #tpu.memory_space<vmem>>, vector<1x256xf32>
    %142 = vector.broadcast %141 : vector<1x256xf32> to vector<512x256xf32>
    %143 = arith.addf %140, %142 : vector<512x256xf32>
    %c0_101 = arith.constant 0 : index
    %c0_102 = arith.constant 0 : index
    %c0_103 = arith.constant 0 : index
    %c0_104 = arith.constant 0 : index
    %144 = vector.load %arg3[%c0_101, %c0_102, %c0_103, %c0_104] : memref<1x16x32x256xf32, #tpu.memory_space<vmem>>, vector<1x16x32x256xf32>
    %145 = vector.shape_cast %144 : vector<1x16x32x256xf32> to vector<16x32x256xf32>
    %146 = vector.shape_cast %145 : vector<16x32x256xf32> to vector<512x256xf32>
    %147 = arith.addf %143, %146 : vector<512x256xf32>
    %cst_105 = arith.constant 0.000000e+00 : f32
    %148 = vector.broadcast %cst_105 : f32 to vector<512x256xf32>
    %149 = arith.maximumf %147, %148 : vector<512x256xf32>
    %150 = vector.shape_cast %149 : vector<512x256xf32> to vector<16x32x256xf32>
    %c0_106 = arith.constant 0 : index
    %c0_107 = arith.constant 0 : index
    %c0_108 = arith.constant 0 : index
    %c0_109 = arith.constant 0 : index
    %151 = vector.load %arg14[%c0_106, %c0_107, %c0_108, %c0_109] : memref<1x16x32x256xf32, #tpu.memory_space<vmem>>, vector<1x16x32x256xf32>
    %152 = vector.shape_cast %151 : vector<1x16x32x256xf32> to vector<16x32x256xf32>
    %153 = vector.shape_cast %150 : vector<16x32x256xf32> to vector<1x16x32x256xf32>
    tpu.vector_store %arg14[%c0_106, %c0_107, %c0_108, %c0_109], %153 {strides = array<i32>} : memref<1x16x32x256xf32, #tpu.memory_space<vmem>>, vector<1x16x32x256xf32>,
    return
  }
  func.func @transform_0(%arg0: i32, %arg1: i32) -> (i32, i32, i32, i32) {
    %c16_i32 = arith.constant 16 : i32
    %0 = arith.muli %arg1, %c16_i32 : i32
    %c1_i32 = arith.constant 1 : i32
    %1 = arith.subi %0, %c1_i32 : i32
    %c0_i32 = arith.constant 0 : i32
    %2 = arith.maxsi %1, %c0_i32 : i32
    %c0_i32_0 = arith.constant 0 : i32
    %c0_i32_1 = arith.constant 0 : i32
    %c0_i32_2 = arith.constant 0 : i32
    return %arg0, %2, %c0_i32_0, %c0_i32_1 : i32, i32, i32, i32
  }
  func.func @transform_1(%arg0: i32, %arg1: i32) -> (i32, i32, i32, i32) {
    %c0_i32 = arith.constant 0 : i32
    %c0_i32_0 = arith.constant 0 : i32
    %c0_i32_1 = arith.constant 0 : i32
    return %arg0, %arg1, %c0_i32, %c0_i32_0 : i32, i32, i32, i32
  }
  func.func @transform_2(%arg0: i32, %arg1: i32) -> (i32, i32, i32, i32) {
    %c16_i32 = arith.constant 16 : i32
    %0 = arith.muli %arg1, %c16_i32 : i32
    %c16_i32_0 = arith.constant 16 : i32
    %1 = arith.addi %0, %c16_i32_0 : i32
    %c31_i32 = arith.constant 31 : i32
    %2 = arith.minsi %1, %c31_i32 : i32
    %c0_i32 = arith.constant 0 : i32
    %c0_i32_1 = arith.constant 0 : i32
    %c0_i32_2 = arith.constant 0 : i32
    return %arg0, %2, %c0_i32, %c0_i32_1 : i32, i32, i32, i32
  }
  func.func @transform_3(%arg0: i32, %arg1: i32) -> (i32, i32) {
    %c0_i32 = arith.constant 0 : i32
    %c0_i32_0 = arith.constant 0 : i32
    %c0_i32_1 = arith.constant 0 : i32
    return %c0_i32, %c0_i32_0 : i32, i32
  }
  func.func @transform_4(%arg0: i32, %arg1: i32) -> (i32, i32) {
    %c0_i32 = arith.constant 0 : i32
    %c0_i32_0 = arith.constant 0 : i32
    %c0_i32_1 = arith.constant 0 : i32
    return %c0_i32, %c0_i32_0 : i32, i32
  }
  func.func @transform_5(%arg0: i32, %arg1: i32) -> (i32, i32) {
    %c0_i32 = arith.constant 0 : i32
    %c0_i32_0 = arith.constant 0 : i32
    %c0_i32_1 = arith.constant 0 : i32
    return %c0_i32, %c0_i32_0 : i32, i32
  }
  func.func @transform_6(%arg0: i32, %arg1: i32) -> (i32, i32, i32) {
    %c0_i32 = arith.constant 0 : i32
    %c0_i32_0 = arith.constant 0 : i32
    %c0_i32_1 = arith.constant 0 : i32
    %c0_i32_2 = arith.constant 0 : i32
    return %c0_i32, %c0_i32_0, %c0_i32_1 : i32, i32, i32
  }
  func.func @transform_7(%arg0: i32, %arg1: i32) -> (i32, i32) {
    %c0_i32 = arith.constant 0 : i32
    %c0_i32_0 = arith.constant 0 : i32
    %c0_i32_1 = arith.constant 0 : i32
    return %c0_i32, %c0_i32_0 : i32, i32
  }
  func.func @transform_8(%arg0: i32, %arg1: i32) -> (i32, i32) {
    %c0_i32 = arith.constant 0 : i32
    %c0_i32_0 = arith.constant 0 : i32
    %c0_i32_1 = arith.constant 0 : i32
    return %c0_i32, %c0_i32_0 : i32, i32
  }
  func.func @transform_9(%arg0: i32, %arg1: i32) -> (i32, i32) {
    %c0_i32 = arith.constant 0 : i32
    %c0_i32_0 = arith.constant 0 : i32
    %c0_i32_1 = arith.constant 0 : i32
    return %c0_i32, %c0_i32_0 : i32, i32
  }
  func.func @transform_10(%arg0: i32, %arg1: i32) -> (i32, i32) {
    %c0_i32 = arith.constant 0 : i32
    %c0_i32_0 = arith.constant 0 : i32
    %c0_i32_1 = arith.constant 0 : i32
    return %c0_i32, %c0_i32_0 : i32, i32
  }
  func.func @transform_11(%arg0: i32, %arg1: i32) -> (i32, i32) {
    %c0_i32 = arith.constant 0 : i32
    %c0_i32_0 = arith.constant 0 : i32
    %c0_i32_1 = arith.constant 0 : i32
    return %c0_i32, %c0_i32_0 : i32, i32
  }
  func.func @transform_12(%arg0: i32, %arg1: i32) -> (i32, i32, i32, i32) {
    %c0_i32 = arith.constant 0 : i32
    %c0_i32_0 = arith.constant 0 : i32
    %c0_i32_1 = arith.constant 0 : i32
    return %arg0, %arg1, %c0_i32, %c0_i32_0 : i32, i32, i32, i32
  }
}

</mosaic_0001>

<bundles_post_ra>
// kernel: tpu_custom_call.1
= control target key start
LH: loop header
LB: loop body
LE: loop exit
PB: predicated region body
PF: predicated region fallthrough
CT: control target
= control target key end

     0   :  { %s15681_s0 = inlined_call_operand.hbm [shape: f32[2,32,32,256], index: 0, kind: input, shape index: {}]   ;;  %s15682_s1 = inlined_call_operand.hbm [shape: f32[2,32,32,256], index: 1, kind: input, shape index: {}]   ;;  %s15683_s2 = inlined_call_operand.hbm [shape: f32[2,32,32,256], index: 2, kind: input, shape index: {}]   ;;  %s15684_s3 = inlined_call_operand.hbm [shape: bf16[256,128], index: 3, kind: input, shape index: {}]   ;;  %s15685_s4 = inlined_call_operand.hbm [shape: f32[1,128], index: 4, kind: input, shape index: {}]   ;;  %s15686_s5 = inlined_call_operand.hbm [shape: f32[1,128], index: 5, kind: input, shape index: {}]   ;;  %s15687_s6 = inlined_call_operand.hbm [shape: bf16[9,128,128], index: 6, kind: input, shape index: {}]   ;;  %s15688_s7 = inlined_call_operand.hbm [shape: f32[1,128], index: 7, kind: input, shape index: {}]   ;;  %s15689_s8 = inlined_call_operand.hbm [shape: f32[1,128], index: 8, kind: input, shape index: {}]   ;;  %s15690_s9 = inlined_call_operand.hbm [shape: bf16[128,256], index: 9, kind: input, shape index: {}]   ;;  %s15691_s10 = inlined_call_operand.hbm [shape: f32[1,256], index: 10, kind: input, shape index: {}]   ;;  %s15692_s11 = inlined_call_operand.hbm [shape: f32[1,256], index: 11, kind: input, shape index: {}]   ;;  %s15693_s12 = inlined_call_operand.hbm [shape: f32[2,32,32,256], index: 12, kind: output, shape index: {}]  }
   0x1   :  { %15879 = sst [smem:[#allocation271_spill]] %s15681_s0 }
   0x2   :  { %15880 = sst [smem:[#allocation272_spill]] %s15682_s1 }
   0x3   :  { %15881 = sst [smem:[#allocation273_spill]] %s15683_s2 }
   0x4   :  { %15882 = sst [smem:[#allocation274_spill]] %s15684_s3 }
   0x5   :  { %15883 = sst [smem:[#allocation275_spill]] %s15685_s4 }
   0x6   :  { %15884 = sst [smem:[#allocation276_spill]] %s15686_s5 }
   0x7   :  { %15885 = sst [smem:[#allocation277_spill]] %s15687_s6 }
   0x8   :  { %15886 = sst [smem:[#allocation278_spill]] %s15688_s7 }
   0x9   :  { %15887 = sst [smem:[#allocation279_spill]] %s15689_s8 }
   0xa   :  { %15888 = sst [smem:[#allocation280_spill]] %s15690_s9 }
   0xb   :  { %15889 = sst [smem:[#allocation281_spill]] %s15691_s10 }
   0xc   :  { %15890 = sst [smem:[#allocation282_spill]] %s15692_s11 }
   0xd   :  { %15891 = sst [smem:[#allocation283_spill]] %s15693_s12 }
   0xe   :  { %17 = vsyncpa [#allocation4], 0 }
   0xf   :  { %19 = vsyncpa [#allocation4 + $0x1], 0 }
  0x10   :  { %20 = vsyncpa [#allocation7], 0 }
  0x11   :  { %22 = vsyncpa [#allocation7 + $0x1], 0 }
  0x12   :  { %23 = vsyncpa [#allocation10], 0 }
  0x13   :  { %24 = vsyncpa [#allocation13], 0 }
  0x14   :  { %25 = vsyncpa [#allocation16], 0 }
  0x15   :  { %26 = vsyncpa [#allocation19], 0 }
  0x16   :  { %27 = vsyncpa [#allocation22], 0 }
  0x17   :  { %28 = vsyncpa [#allocation5], 0 }
  0x18   :  { %30 = vsyncpa [#allocation5 + $0x1], 0  ;;  %s11311_s21 = smov 0   ;;  %s11313_s22 = smov 0  }
  0x19   :  { %s11315_s23 = smov 0   ;;  %s11317_s24 = smov 0  }
  0x1a   :  { %s11319_s25 = smov 0   ;;  %s11321_s26 = smov 0  }
  0x1b   :  { %s11323_s27 = smov 0   ;;  %s11325_s28 = smov 0  }
  0x1c   :  { %s11327_s29 = smov 0   ;;  %s11329_s30 = smov 0  }
  0x1d   :  { %s11331_s13 = smov 0   ;;  %s11333_s14 = smov 0  }
  0x1e   :  { %s11335_s15 = smov 0   ;;  %s11337_s16 = smov 0  }
  0x1f LB: > { %15892 = sst [smem:[#allocation33_spill]] %s11169_s21  ;;  %s11382_s17 = sadd.s32 4294967295, %s11221_s16   ;;  %s11221_s16 = sphi %s11337_s16, %s36_s16   ;;  %s11217_s15 = sphi %s11335_s15, %s16805_s15   ;;  %s11213_s14 = sphi %s11333_s14, %s16804_s14   ;;  %s11209_s13 = sphi %s11331_s13, %s16803_s13   ;;  %s11205_s30 = sphi %s11329_s30, %s16802_s30   ;;  %s11201_s29 = sphi %s11327_s29, %s16801_s29   ;;  %s11197_s28 = sphi %s11325_s28, %s16800_s28   ;;  %s11193_s27 = sphi %s11323_s27, %s16799_s27   ;;  %s11189_s26 = sphi %s11321_s26, %s16798_s26   ;;  %s11185_s25 = sphi %s11319_s25, %s16792_s25   ;;  %s11181_s24 = sphi %s11317_s24, %s16791_s24   ;;  %s11177_s23 = sphi %s11315_s23, %s16797_s23   ;;  %s11173_s22 = sphi %s11313_s22, %s16796_s22   ;;  %s11169_s21 = sphi %s11311_s21, %s16789_s21  }
  0x20   : > { %15893 = sst [smem:[#allocation34_spill]] %s11173_s22  ;;  %p8818_p0 = scmp.ge.s32.totalorder %s11221_s16, 1 }
  0x21   : > { %15894 = sst [smem:[#allocation35_spill]] %s11177_s23  ;;  %p15700_p1 = scmp.eq.s32.totalorder %s11382_s17, 0 }
  0x22   : > { %15895 = sst [smem:[#allocation36_spill]] %s11181_s24  ;;  %p370_p2 = scmp.lt.s32.totalorder %s11221_s16, 5 }
  0x23   : > { %15896 = sst [smem:[#allocation37_spill]] %s11185_s25  ;;  %s11223_s19 = smov [#allocation9]  }
  0x24   : > { %15897 = sst [smem:[#allocation38_spill]] %s11189_s26  ;;  %p11387_p3 = pnand %p8818_p0, %p370_p2 }
  0x25   : > { %15898 = sst [smem:[#allocation39_spill]] %s11193_s27  ;;  %s382_s20 = sshll.u32 %s11223_s19, 4  ;;  %s383_s20 = int_to_ptr.vmem [resolvable:$true] %s382_s20 }
  0x26   : > { %15899 = sst [smem:[#allocation40_spill]] %s11197_s28  ;;  %p10416_p4 = pneg %p11387_p3 }
  0x27   : > { %15900 = sst [smem:[#allocation41_spill]] %s11205_s30  ;;  %s11225_s2 = smov [#allocation15]  }
  0x28   : > { %15901 = sst [smem:[#allocation42_spill]] %s11209_s13  ;;  %p11395_p5 = pnand %p10416_p4, %p15700_p1 }
  0x29   : > { %s15902_s18 = scalar_select %p11387_p3, 1, 0 }
  0x2a   : > { %s11224_s13 = smov [#allocation12]   ;;  %s431_s21 = sshll.u32 %s11225_s2, 4  ;;  %s432_s21 = int_to_ptr.vmem [resolvable:$true] %s431_s21 }
  0x2b   : > { %15903 = sst [smem:[#allocation43_spill]] %s15902_s18  ;;  %s407_s30 = sshll.u32 %s11224_s13, 4  ;;  %s408_s30 = int_to_ptr.vmem [resolvable:$true] %s407_s30 }
  0x2c   : > { %p11401_p6 = pneg %p11395_p5  ;;  %s10742_s19 = scalar_lea.vmem %s383_s20, 2048 }
  0x2d   : > { %p10743_p7 = scmp.ne.s32.totalorder %s383_s20, %s10742_s19  ;;  %p10750_p10 = scmp.lt.s32.totalorder %s383_s20, %s383_s20 }
  0x2e   : > { %p10751_p11 = scmp.lt.s32.totalorder %s10742_s19, %s10742_s19 }
  0x2f   : > { %p10745_p8 = pnand %p10743_p7, %p11401_p6 }
  0x30   : > { %p10752_p12 = por %p10751_p11, %p10750_p10 }
  0x31   : > { %p10746_p9 = pneg %p10745_p8 }
  0x33   : > { %p10753_p13 = pnand %p10752_p12, %p10746_p9 }
  0x35   : > { %10756 = shalt.err (!%p10753_p13)
}
  0x36   : > { %s15701_s13 = smov 64   ;;  %s15702_s2 = smov 4  }
  0x37   : > { %s15906_s3 = sld [smem:[#allocation274_spill]]  ;;  %s10768_s0 = scalar_lea.vmem %s408_s30, 16 }
  0x38   : > { %p10769_p0 = scmp.ne.s32.totalorder %s408_s30, %s10768_s0  ;;  %s10775_s19 = scalar_lea.vmem %s408_s30, 32 }
  0x39   : > { %p10776_p7 = scmp.lt.s32.totalorder %s408_s30, %s408_s30  ;;  %p10777_p8 = scmp.lt.s32.totalorder %s10775_s19, %s10768_s0 }
  0x3a   : > { %p10771_p2 = pnand %p10769_p0, %p11401_p6 }
  0x3b   : > { %p10778_p9 = por %p10777_p8, %p10776_p7 }
  0x3c   : > { %p10772_p4 = pneg %p10771_p2 }
  0x3d   : > { %10419 = dma.hbm_to_vmem [thread:$0]  (!%p11395_p5), %s15906_s3, 2048, %s383_s20, [#allocation10], %s15701_s13, %s15701_s13, %s15702_s2  }
  0x3e   : > { %p10779_p10 = pnand %p10778_p9, %p10772_p4 }
  0x40   : > { %10782 = shalt.err (!%p10779_p10)
}
  0x41   : > { %s15907_s5 = sld [smem:[#allocation276_spill]]  ;;  %s10794_s23 = scalar_lea.vmem %s432_s21, 16 }
  0x42   : > { %p10795_p11 = scmp.ne.s32.totalorder %s432_s21, %s10794_s23  ;;  %s10801_s18 = scalar_lea.vmem %s432_s21, 32 }
  0x43   : > { %p10802_p0 = scmp.lt.s32.totalorder %s432_s21, %s432_s21  ;;  %p10803_p2 = scmp.lt.s32.totalorder %s10801_s18, %s10794_s23 }
  0x44   : > { %p10797_p12 = pnand %p10795_p11, %p11401_p6 }
  0x45   : > { %p10804_p1 = por %p10803_p2, %p10802_p0 }
  0x46   : > { %p10798_p13 = pneg %p10797_p12 }
  0x47   : > { %10425 = dma.hbm_to_vmem [thread:$0]  (!%p11395_p5), %s15907_s5, 16, %s408_s30, [#allocation13]  }
  0x48   : > { %p10805_p7 = pnand %p10804_p1, %p10798_p13 }
  0x4a   : > { %10808 = shalt.err (!%p10805_p7)
}
  0x4b   : > { %s15908_s7 = sld [smem:[#allocation278_spill]]  ;;  %s11228_s27 = smov [#allocation18]  }
  0x4c   : > { %s452_s28 = sshll.u32 %s11228_s27, 4  ;;  %s453_s28 = int_to_ptr.vmem [resolvable:$true] %s452_s28 }
  0x4d   : > { %s10820_s30 = scalar_lea.vmem %s453_s28, 2048  ;;  %p10828_p10 = scmp.lt.s32.totalorder %s453_s28, %s453_s28 }
  0x4e   : > { %p10821_p4 = scmp.ne.s32.totalorder %s453_s28, %s10820_s30  ;;  %p10829_p11 = scmp.lt.s32.totalorder %s10820_s30, %s10820_s30 }
  0x50   : > { %p10823_p8 = pnand %p10821_p4, %p11401_p6  ;;  %p10830_p12 = por %p10829_p11, %p10828_p10 }
  0x51   : > { %10431 = dma.hbm_to_vmem [thread:$0]  (!%p11395_p5), %s15908_s7, 16, %s432_s21, [#allocation16]  }
  0x52   : > { %p10824_p9 = pneg %p10823_p8 }
  0x54   : > { %p10831_p1 = pnand %p10830_p12, %p10824_p9 }
  0x56   : > { %10834 = shalt.err (!%p10831_p1)
}
  0x57   : > { %s11229_s19 = smov 128   ;;  %s11230_s21 = smov 8  }
  0x58   : > { %s15909_s9 = sld [smem:[#allocation280_spill]]  ;;  %s8811_s0 = sadd.s32 4294967294, %s11221_s16  }
  0x59   : > { %s45_s20 = sadd.s32 1, %s11213_s14  ;;  %s48_s27 = sadd.s32 1, %s11217_s15 }
  0x5a   : > { %p46_p13 = scmp.ge.s32.totalorder %s45_s20, 2  ;;  %p15714_p0 = scmp.eq.s32.totalorder %s11221_s16, 0 }
  0x5b   : > { %p100_p2 = scmp.ne.s32.totalorder %s11189_s26, %s11185_s25  ;;  %p106_p7 = scmp.ne.s32.totalorder %s11185_s25, %s11181_s24 }
  0x5c   : > { %s16807_s20 = smov (%p46_p13, %s45_s20), 0  ;;  %s16809_s27 = smov (!%p46_p13, %s48_s27), %s11217_s15 }
  0x5d   : > { %p357_p4 = scmp.eq.s32.totalorder %s11382_s17, 3  ;;  %p11455_p8 = por %p100_p2, %p15714_p0 }
  0x5e   : > { %10437 = dma.hbm_to_vmem [thread:$0]  (!%p11395_p5), %s15909_s9, 2048, %s453_s28, [#allocation19], %s11229_s19, %s11229_s19, %s11230_s21  }
  0x5f   : > { %p363_p9 = scmp.eq.s32.totalorder %s8811_s0, 3  ;;  %p15911_p10 = scmp.eq.s32.totalorder %s11382_s17, 0 }
  0x60   : > { %p11465_p12 = por %p357_p4, %p100_p2  ;;  %p15713_p13 = scmp.lt.s32.totalorder %s11221_s16, 4 }
  0x61   : > { %p11461_p11 = por %p106_p7, %p15911_p10  ;;  %p11469_p1 = por %p363_p9, %p106_p7 }
  0x62   : > { %s15914_s21 = scalar_select %p11465_p12, 1, 0 }
  0x63   : > { %s15912_s19 = scalar_select %p11461_p11, 1, 0 }
  0x64   : > { %15915 = sst [smem:[#allocation45_spill]] %s15914_s21  ;;  %s11475_s18 = sshll.u32 %s11217_s15, 8 }
  0x65   : > { %15913 = sst [smem:[#allocation44_spill]] %s15912_s19  ;;  %s515_s0 = sand.u32 1, %s11221_s16  }
  0x66   : > { %s15916_s23 = scalar_select %p11469_p1, 1, 0 }
  0x67   : > { %s517_s30 = sand.u32 1, %s11189_s26   ;;  %s9274_s2 = sshll.u32 %s11213_s14, 7 }
  0x68   : > { %15917 = sst [smem:[#allocation46_spill]] %s15916_s23  ;;  %s8835_s13 = sshll.u32 %s517_s30, 10 }
  0x69   : > { %s526_s3 = sadd.s32 %s9274_s2, %s11475_s18  ;;  %s519_s7 = scalar_lea.vmem [#allocation6], %s8835_s13 }
  0x6a   : > { %s8839_s5 = sshll.u32 %s526_s3, 7  ;;  %s529_s9 = sshll.u32 %s519_s7, 4  ;;  %s530_s9 = int_to_ptr.vmem [resolvable:$true] %s529_s9 }
  0x6b   : > { %s15918_s1 = sld [smem:[#allocation272_spill]]  ;;  %p11488_p2 = pnand %p15713_p13, %p11455_p8 }
  0x6c   : > { %s11231_s25 = smov [#allocation11]   ;;  %s11494_s2 = scalar_lea.sflag [#allocation7], %s515_s0 }
  0x6d   : > { %s396_s26 = sshll.u32 %s11231_s25, 4  ;;  %p10837_p7 = pneg %p11488_p2  ;;  %s11492_s26 = int_to_ptr.vmem [resolvable:$true] %s396_s26 }
  0x6e   : > { %s10848_s3 = scalar_lea.vmem %s530_s9, 16384 }
  0x6f   : > { %p10849_p4 = scmp.ne.s32.totalorder %s530_s9, %s10848_s3 }
  0x71   : > { %s528_s21 = scalar_lea.hbm %s15918_s1, %s8839_s5  ;;  %p10851_p9 = pnand %p10849_p4, %p10837_p7 }
  0x72   : > { %s11232_s5 = smov [#allocation6]  }
  0x73   : > { %p10852_p10 = pneg %p10851_p9  ;;  %s10853_s7 = sshll.u32 %s11232_s5, 4  ;;  %s10854_s7 = int_to_ptr.vmem [resolvable:$false] %s10853_s7 }
  0x74   : > { %s10855_s24 = scalar_lea.vmem %s10854_s7, 32768  ;;  %p10856_p8 = scmp.lt.s32.totalorder %s530_s9, %s10854_s7 }
  0x75   : > { %p10857_p13 = scmp.lt.s32.totalorder %s10855_s24, %s10848_s3 }
  0x77   : > { %p10858_p0 = por %p10857_p13, %p10856_p8 }
  0x79   : > { %p10859_p1 = pnand %p10858_p0, %p10852_p10 }
  0x7b   : > { %10862 = shalt.err (!%p10859_p1)
}
  0x7c   : > { %s15718_s25 = smov 256   ;;  %s15720_s13 = smov 16  }
  0x7d   : > { %10450 = dma.hbm_to_vmem [thread:$0]  (!%p11488_p2), %s528_s21, 16384, %s530_s9, %s11494_s2, %s15718_s25, %s15718_s25, %s15720_s13  }
  0x7e   : > { %s10874_s30 = scalar_lea.vmem %s11492_s26, 16  ;;  %s10881_s28 = scalar_lea.vmem %s11492_s26, 32 }
  0x7f   : > { %p10875_p7 = scmp.ne.s32.totalorder %s11492_s26, %s10874_s30  ;;  %p10882_p1 = scmp.lt.s32.totalorder %s11492_s26, %s11492_s26 }
  0x80   : > { %p10883_p4 = scmp.lt.s32.totalorder %s10881_s28, %s10874_s30 }
  0x81   : > { %p10877_p13 = pnand %p10875_p7, %p11401_p6 }
  0x82   : > { %p10884_p9 = por %p10883_p4, %p10882_p1 }
  0x83   : > { %p10878_p0 = pneg %p10877_p13 }
  0x85   : > { %p10885_p10 = pnand %p10884_p9, %p10878_p0 }
  0x87   : > { %10888 = shalt.err (!%p10885_p10)
}
  0x88   : > { %s15920_s4 = sld [smem:[#allocation275_spill]]  ;;  %s11235_s9 = smov [#allocation14]  }
  0x89   : > { %s417_s21 = sshll.u32 %s11235_s9, 4  ;;  %s11236_s0 = smov [#allocation17]   ;;  %s418_s21 = int_to_ptr.vmem [resolvable:$true] %s417_s21 }
  0x8a   : > { %s442_s3 = sshll.u32 %s11236_s0, 4  ;;  %s10900_s5 = scalar_lea.vmem %s418_s21, 9216  ;;  %s443_s3 = int_to_ptr.vmem [resolvable:$true] %s442_s3 }
  0x8b   : > { %p10901_p2 = scmp.ne.s32.totalorder %s418_s21, %s10900_s5  ;;  %p10908_p13 = scmp.lt.s32.totalorder %s418_s21, %s418_s21 }
  0x8c   : > { %p10909_p0 = scmp.lt.s32.totalorder %s10900_s5, %s10900_s5 }
  0x8d   : > { %p10903_p8 = pnand %p10901_p2, %p11401_p6 }
  0x8e   : > { %10422 = dma.hbm_to_vmem [thread:$0]  (!%p11395_p5), %s15920_s4, 16, %s11492_s26, [#allocation10]  }
  0x8f   : > { %p10904_p7 = pneg %p10903_p8  ;;  %p10910_p1 = por %p10909_p0, %p10908_p13 }
  0x91   : > { %p10911_p4 = pnand %p10910_p1, %p10904_p7 }
  0x93   : > { %10914 = shalt.err (!%p10911_p4)
}
  0x94   : > { %s15921_s7 = smov 4   ;;  %s15922_s24 = smov 64  }
  0x95   : > { %s15923_s6 = sld [smem:[#allocation277_spill]]  ;;  %s10926_s28 = scalar_lea.vmem %s443_s3, 16 }
  0x96   : > { %p10927_p9 = scmp.ne.s32.totalorder %s443_s3, %s10926_s28  ;;  %s10933_s19 = scalar_lea.vmem %s443_s3, 32 }
  0x97   : > { %p10934_p8 = scmp.lt.s32.totalorder %s443_s3, %s443_s3  ;;  %p10935_p7 = scmp.lt.s32.totalorder %s10933_s19, %s10926_s28 }
  0x98   : > { %p10929_p10 = pnand %p10927_p9, %p11401_p6 }
  0x99   : > { %p10936_p13 = por %p10935_p7, %p10934_p8 }
  0x9a   : > { %p10930_p2 = pneg %p10929_p10 }
  0x9b   : > { %10428 = dma.hbm_to_vmem [thread:$0]  (!%p11395_p5), %s15923_s6, 9216, %s418_s21, [#allocation13], %s15922_s24, %s15922_s24, %s15921_s7  }
  0x9c   : > { %p10937_p0 = pnand %p10936_p13, %p10930_p2 }
  0x9e   : > { %10940 = shalt.err (!%p10937_p0)
}
  0x9f   : > { %s15924_s8 = sld [smem:[#allocation279_spill]]  ;;  %s11237_s21 = smov [#allocation20]  }
  0xa0   : > { %s466_s0 = sshll.u32 %s11237_s21, 4  ;;  %s11238_s5 = smov [#allocation21]   ;;  %s467_s0 = int_to_ptr.vmem [resolvable:$true] %s466_s0 }
  0xa1   : > { %s477_s7 = sshll.u32 %s11238_s5, 4  ;;  %s10952_s24 = scalar_lea.vmem %s467_s0, 32  ;;  %s478_s7 = int_to_ptr.vmem [resolvable:$true] %s477_s7 }
  0xa2   : > { %p10953_p1 = scmp.ne.s32.totalorder %s467_s0, %s10952_s24  ;;  %p10960_p10 = scmp.lt.s32.totalorder %s467_s0, %s467_s0 }
  0xa3   : > { %p10961_p2 = scmp.lt.s32.totalorder %s10952_s24, %s10952_s24 }
  0xa4   : > { %p10955_p4 = pnand %p10953_p1, %p11401_p6 }
  0xa5   : > { %10434 = dma.hbm_to_vmem [thread:$0]  (!%p11395_p5), %s15924_s8, 16, %s443_s3, [#allocation16]  }
  0xa6   : > { %p10956_p9 = pneg %p10955_p4  ;;  %p10962_p8 = por %p10961_p2, %p10960_p10 }
  0xa8   : > { %p10963_p7 = pnand %p10962_p8, %p10956_p9 }
  0xaa   : > { %10966 = shalt.err (!%p10963_p7)
}
  0xab   : > { %s15925_s10 = sld [smem:[#allocation281_spill]]  ;;  %s10978_s3 = scalar_lea.vmem %s478_s7, 32 }
  0xac   : > { %p10979_p13 = scmp.ne.s32.totalorder %s478_s7, %s10978_s3  ;;  %p10986_p1 = scmp.lt.s32.totalorder %s478_s7, %s478_s7 }
  0xad   : > { %p10987_p4 = scmp.lt.s32.totalorder %s10978_s3, %s10978_s3 }
  0xae   : > { %p10981_p0 = pnand %p10979_p13, %p11401_p6 }
  0xaf   : > { %p10988_p11 = por %p10987_p4, %p10986_p1 }
  0xb0   : > { %p10982_p12 = pneg %p10981_p0 }
  0xb1   : > { %10440 = dma.hbm_to_vmem [thread:$0]  (!%p11395_p5), %s15925_s10, 32, %s467_s0, [#allocation19]  }
  0xb2   : > { %p10989_p3 = pnand %p10988_p11, %p10982_p12 }
  0xb4   : > { %10992 = shalt.err (!%p10989_p3)
}
  0xb5   : > { %s15926_s11 = sld [smem:[#allocation282_spill]]  ;;  %p50_p6 = scmp.ge.s32.totalorder %s16809_s27, 2 }
  0xb6   : > { %s15927_s23 = sld [smem:[#allocation40_spill]]  ;;  %s8812_s9 = sshll.u32 %s11213_s14, 4 }
  0xb7   : > { %s15928_s22 = sld [smem:[#allocation39_spill]]  ;;  %s8814_s12 = sshll.u32 %s16807_s20, 4 }
  0xb8   : > { %s16811_s27 = smov (%p50_p6, %s16809_s27), 0  ;;  %s8813_s21 = sadd.s32 4294967295, %s8812_s9 }
  0xb9   : > { %s8815_s0 = sadd.s32 4294967295, %s8814_s12  ;;  %p54_p3 = scmp.gt.s32.totalorder %s8813_s21, 0 }
  0xba   : > { %p58_p11 = scmp.gt.s32.totalorder %s8815_s0, 0  ;;  %s15929_s5 = sld [smem:[#allocation38_spill]] }
  0xbb   : > { %10443 = dma.hbm_to_vmem [thread:$0]  (!%p11395_p5), %s15926_s11, 32, %s478_s7, [#allocation22]  }
  0xbc   : > { %s11556_s24 = ssub.s32 %s11217_s15, %s16811_s27  ;;  %s65_s7 = sadd.s32 1, %s11201_s29 }
  0xbd   : > { %s16813_s21 = smov (!%p54_p3, %s8813_s21), 0  ;;  %s16815_s0 = smov (!%p58_p11, %s8815_s0), 0 }
  0xbe   : > { %p72_p5 = scmp.ne.s32.totalorder %s11201_s29, %s15927_s23  ;;  %p78_p12 = scmp.ne.s32.totalorder %s15927_s23, %s15928_s22 }
  0xbf   : > { %s61_s26 = ssub.s32 %s16813_s21, %s16815_s0  ;;  %s15930_s30 = ssub.s32 %s11213_s14, %s16807_s20 }
  0xc0   : > { %s90_s3 = sor.u32 %s15930_s30, %s11556_s24  ;;  %s62_s28 = sor.u32 %s61_s26, %s11556_s24 }
  0xc1   : > { %p15931_p9 = scmp.eq.s32.totalorder %s11221_s16, 0  ;;  %p63_p2 = scmp.eq.s32.totalorder %s62_s28, 0 }
  0xc2   : > { %p15933_p8 = scmp.eq.s32.totalorder %s11382_s17, 0  ;;  %p91_p13 = scmp.eq.s32.totalorder %s90_s3, 0 }
  0xc3   : > { %p11570_p10 = por %p15931_p9, %p72_p5  ;;  %s11580_s23 = sadd.s32 16, %s8812_s9 }
  0xc4   : > { %p11576_p7 = por %p15933_p8, %p78_p12  ;;  %s15935_s0 = sadd.s32 1, %s15929_s5 }
  0xc5   : > { %s11583_s22 = scalar_select %p63_p2, %s11201_s29, %s65_s7  }
  0xc6   : > { %s16817_s5 = smov (!%p91_p13, %s15929_s5), %s15935_s0  ;;  %p118_p0 = scmp.lt.s32.totalorder %s11580_s23, 31 }
  0xc7   : > { %s11591_s26 = sadd.s32 16, %s8814_s12  ;;  %s488_s30 = sand.u32 1, %s11201_s29  }
  0xc8   : > { %p122_p1 = scmp.lt.s32.totalorder %s11591_s26, 31  ;;  %s8829_s28 = sshll.u32 %s488_s30, 6 }
  0xc9   : > { %s8832_s13 = sshll.u32 %s16813_s21, 3  ;;  %s492_s3 = scalar_lea.vmem [#allocation3], %s8829_s28 }
  0xca   : > { %s502_s1 = sadd.s32 %s11475_s18, %s8832_s13  ;;  %s505_s4 = sshll.u32 %s492_s3, 4  ;;  %s506_s4 = int_to_ptr.vmem [resolvable:$true] %s505_s4 }
  0xcb   : > { %s8834_s6 = sshll.u32 %s502_s1, 7  ;;  %s15936_s7 = sld [smem:[#allocation271_spill]] }
  0xcc   : > { %p15937_p4 = scmp.lt.s32.totalorder %s11221_s16, 4  ;;  %s489_s12 = scalar_lea.sflag [#allocation4], %s488_s30 }
  0xcd   : > { %s11006_s21 = scalar_lea.vmem %s506_s4, 1024  ;;  %s11239_s1 = smov [#allocation3]  }
  0xce   : > { %p11603_p6 = pnand %p15937_p4, %p11570_p10  ;;  %p11007_p11 = scmp.ne.s32.totalorder %s506_s4, %s11006_s21 }
  0xcf   : > { %s11011_s13 = sshll.u32 %s11239_s1, 4  ;;  %s11012_s13 = int_to_ptr.vmem [resolvable:$false] %s11011_s13 }
  0xd0   : > { %p10995_p3 = pneg %p11603_p6  ;;  %s11013_s28 = scalar_lea.vmem %s11012_s13, 2048 }
  0xd1   : > { %s504_s10 = scalar_lea.hbm %s15936_s7, %s8834_s6  ;;  %p11014_p9 = scmp.lt.s32.totalorder %s506_s4, %s11012_s13 }
  0xd2   : > { %p11009_p5 = pnand %p11007_p11, %p10995_p3  ;;  %p11015_p2 = scmp.lt.s32.totalorder %s11013_s28, %s11006_s21 }
  0xd4   : > { %p11010_p12 = pneg %p11009_p5  ;;  %p11016_p8 = por %p11015_p2, %p11014_p9 }
  0xd6   : > { %p11017_p13 = pnand %p11016_p8, %p11010_p12 }
  0xd8   : > { %11020 = shalt.err (!%p11017_p13)
}
  0xd9   : > { %s15939_s6 = smov 16   ;;  %s15940_s8 = smov 256  }
  0xda   : > { %s15941_s19 = sld [smem:[#allocation35_spill]]  ;;  %s16819_s23 = smov (!%p118_p0, %s11580_s23), 31 }
  0xdb   : > { %s15942_s30 = sld [smem:[#allocation34_spill]]  ;;  %s16821_s26 = smov (!%p122_p1, %s11591_s26), 31 }
  0xdc   : > { %s15943_s3 = sld [smem:[#allocation33_spill]]  ;;  %s125_s7 = ssub.s32 %s16819_s23, %s16821_s26 }
  0xdd   : > { %10447 = dma.hbm_to_vmem [thread:$0]  (!%p11603_p6), %s504_s10, 1024, %s506_s4, %s489_s12, %s15940_s8, %s15940_s8, %s15939_s6  }
  0xde   : > { %s126_s21 = sor.u32 %s125_s7, %s11556_s24  ;;  %p15944_p3 = scmp.eq.s32.totalorder %s11221_s16, 0 }
  0xdf   : > { %p127_p5 = scmp.eq.s32.totalorder %s126_s21, 0  ;;  %p15945_p12 = scmp.eq.s32.totalorder %s11382_s17, 0 }
  0xe0   : > { %s129_s9 = sadd.s32 1, %s15941_s19  ;;  %s541_s0 = sand.u32 1, %s15941_s19  }
  0xe1   : > { %p136_p10 = scmp.ne.s32.totalorder %s15941_s19, %s15942_s30  ;;  %s8840_s4 = sshll.u32 %s541_s0, 6 }
  0xe2   : > { %p142_p4 = scmp.ne.s32.totalorder %s15942_s30, %s15943_s3  ;;  %s8842_s10 = sshll.u32 %s16819_s23, 3 }
  0xe3   : > { %p138_p11 = por %p136_p10, %p15944_p3  ;;  %s16823_s19 = smov (!%p127_p5, %s15941_s19), %s129_s9 }
  0xe4   : > { %p11631_p9 = por %p142_p4, %p15945_p12  ;;  %s553_s12 = sadd.s32 %s8842_s10, %s11475_s18 }
  0xe5   : > { %s8844_s13 = sshll.u32 %s553_s12, 7  ;;  %s543_s28 = scalar_lea.vmem [#allocation8], %s8840_s4 }
  0xe6   : > { %s556_s30 = sshll.u32 %s543_s28, 4  ;;  %s15947_s11 = sld [smem:[#allocation273_spill]]  ;;  %s557_s30 = int_to_ptr.vmem [resolvable:$true] %s556_s30 }
  0xe7   : > { %p15948_p0 = scmp.lt.s32.totalorder %s11221_s16, 4  ;;  %s11034_s23 = scalar_lea.vmem %s557_s30, 1024 }
  0xe8   : > { %p11035_p2 = scmp.ne.s32.totalorder %s557_s30, %s11034_s23  ;;  %s11240_s18 = smov [#allocation8]  }
  0xe9   : > { %p11644_p1 = pnand %p15948_p0, %p138_p11  ;;  %s11039_s9 = sshll.u32 %s11240_s18, 4  ;;  %s11040_s9 = int_to_ptr.vmem [resolvable:$false] %s11039_s9 }
  0xea   : > { %s11041_s0 = scalar_lea.vmem %s11040_s9, 2048  ;;  %p11042_p10 = scmp.lt.s32.totalorder %s557_s30, %s11040_s9 }
  0xeb   : > { %p11023_p6 = pneg %p11644_p1  ;;  %p11043_p4 = scmp.lt.s32.totalorder %s11041_s0, %s11034_s23 }
  0xec   : > { %s555_s24 = scalar_lea.hbm %s15947_s11, %s8844_s13 }
  0xed   : > { %p11037_p8 = pnand %p11035_p2, %p11023_p6  ;;  %p11044_p3 = por %p11043_p4, %p11042_p10 }
  0xef   : > { %p11038_p13 = pneg %p11037_p8 }
  0xf1   : > { %p11045_p5 = pnand %p11044_p3, %p11038_p13 }
  0xf3   : > { %11048 = shalt.err (!%p11045_p5)
}
  0xf4   : > { %10453 = dma.hbm_to_vmem [thread:$0]  (!%p11644_p1), %s555_s24, 1024, %s557_s30, %s11494_s2, %s15940_s8, %s15940_s8, %s15939_s6  }
  0xf5   : > { %s15950_s11 = sld [smem:[#allocation43_spill]] }
  0xfb   : > { %p15951_p11 = scmp.ne.s32.totalorder %s15950_s11, 0 }
  0xfd   : > { %568 = sbr.rel (%p15951_p11) target bundleno = 2121 (0x849), region = 68 }
 0x102   : > { %s15952_s21 = sld [smem:[#allocation40_spill]] }
 0x108   : > { %s570_s4 = sand.u32 1, %s15952_s21  }
 0x109   : > { %s8846_s10 = sshll.u32 %s570_s4, 6  ;;  %s571_s12 = scalar_lea.sflag [#allocation4], %s570_s4 }
 0x10a   : > { %s11659_s13 = scalar_lea.vmem [#allocation3], %s8846_s10 }
 0x10b   : > { %11132 = dma.done.wait (%p11576_p7), %s571_s12, 1024  }
 0x10c   : > { %11134 = vsyncadd (%p11576_p7), %s571_s12, 4294966272  ;;  %s15953_s28 = sld [smem:[#allocation37_spill]]  ;;  %s579_s2 = sand.u32 1, %s11382_s17  }
 0x10d   : > { %s15954_s3 = sld [smem:[#allocation44_spill]]  ;;  %s580_s30 = scalar_lea.sflag [#allocation7], %s579_s2 }
 0x112   : > { %s581_s6 = sand.u32 1, %s15953_s28  }
 0x113   : > { %s11669_s8 = sshll.u32 %s581_s6, 10  ;;  %p15955_p12 = scmp.ne.s32.totalorder %s15954_s3, 0 }
 0x114   : > { %s11672_s26 = scalar_lea.vmem [#allocation6], %s11669_s8 }
 0x115   : > { %11136 = dma.done.wait (%p15955_p12), %s580_s30, 16384  }
 0x116   : > { %11138 = vsyncadd (%p15955_p12), %s580_s30, 4294950912  ;;  %s15956_s25 = sld [smem:[#allocation34_spill]] }
 0x11c   : > { %s590_s24 = sand.u32 1, %s15956_s25  }
 0x11d   : > { %s8848_s7 = sshll.u32 %s590_s24, 6 }
 0x11e   : > { %s11679_s23 = scalar_lea.vmem [#allocation8], %s8848_s7 }
 0x11f   : > { %11140 = dma.done.wait (%p11631_p9), %s580_s30, 1024  }
 0x120   : > { %11142 = vsyncadd (%p11631_p9), %s580_s30, 4294966272  ;;  %p15957_p7 = scmp.eq.s32.totalorder %s11382_s17, 0 }
 0x122   : > { %11144 = dma.done.wait (%p15957_p7), [#allocation10], 2064   ;;  %p15958_p0 = pmov %p15957_p7 }
 0x124   : > { %11146 = vsyncadd (%p15958_p0), [#allocation10], 4294965232  ;;  %p15959_p1 = pmov %p15958_p0 }
 0x125   : > { %p15960_p6 = pmov %p15958_p0 }
 0x126   : > { %11148 = dma.done.wait (%p15959_p1), [#allocation13], 9232  }
 0x127   : > { %11150 = vsyncadd (%p15960_p6), [#allocation13], 4294958064  ;;  %p15961_p2 = pmov %p15958_p0 }
 0x128   : > { %p15962_p8 = pmov %p15958_p0 }
 0x129   : > { %11152 = dma.done.wait (%p15961_p2), [#allocation16], 32  }
 0x12a   : > { %11154 = vsyncadd (%p15962_p8), [#allocation16], 4294967264  ;;  %p15963_p9 = pmov %p15958_p0 }
 0x12b   : > { %p15964_p13 = pmov %p15958_p0 }
 0x12c   : > { %11156 = dma.done.wait (%p15963_p9), [#allocation19], 2080  }
 0x12d   : > { %11158 = vsyncadd (%p15964_p13), [#allocation19], 4294965216  ;;  %p15965_p10 = pmov %p15958_p0 }
 0x12e   : > { %p15966_p4 = pmov %p15958_p0 }
 0x12f   : > { %11160 = dma.done.wait (%p15965_p10), [#allocation22], 32  }
 0x130   : > { %11162 = vsyncadd (%p15966_p4), [#allocation22], 4294967264  ;;  %v15722_v0 = vmov 0   ;;  %v10609_v1 = vld [vmem:[#allocation9 + $0x38] sm:$0xff]   ;;  %v10610_v2 = vld [vmem:[#allocation9 + $0x30] sm:$0xff]   ;;  %s15967_s17 = sld [smem:[#allocation41_spill]] }
 0x131   : > { %1034 = vmatprep.subr.bf16.mxu0 %v15722_v0  ;;  %v10611_v3 = vld [vmem:[#allocation9 + $0x28] sm:$0xff]   ;;  %v10612_v4 = vld [vmem:[#allocation9 + $0x20] sm:$0xff]   ;;  %v10613_v5 = vld [vmem:[#allocation9 + $0x18] sm:$0xff]   ;;  %vm11242_vm4 = vmmov 1   ;;  %s15079_s9 = scalar_lea.vmem [#allocation23], %s11669_s8  ;;  %s16781_s0 = sld [smem:[#allocation42_spill]] }
 0x132   : > { %1035 = vmatpush1.bf16.msra.mxu0 %v10609_v1  ;;  %v691_v6 = vld [vmem:[%s11659_s13 + $0x8] sm:$0xff]  ;;  %v693_v7 = vld [vmem:[%s11659_s13 + $0x18] sm:$0xff]  ;;  %v10614_v9 = vld [vmem:[#allocation9 + $0x10] sm:$0xff]   ;;  %s16782_s10 = sld [smem:[#allocation45_spill]]  ;;  %s11243_s24 = smov [#allocation23]  }
 0x133   : > { %1036 = vmatprep.subr.bf16.mxu0 %v15722_v0  ;;  %v699_v8 = vpack.c.bf16 %v693_v7, %v691_v6  ;;  %v10615_v10 = vld [vmem:[#allocation9 + $0x8] sm:$0xff]   ;;  %v10616_v11 = vld [vmem:[#allocation9] sm:$0xff]   ;;  %v10617_v12 = vld [vmem:[#allocation9 + $0x78] sm:$0xff]   ;;  %s16783_s8 = sld [smem:[#allocation283_spill]]  ;;  %s11053_s7 = sshll.u32 %s11243_s24, 4  ;;  %s11054_s7 = int_to_ptr.vmem [resolvable:$false] %s11053_s7 }
 0x134   : > { %v10618_v13 = vld [vmem:[#allocation9 + $0x70] sm:$0xff]   ;;  %v10619_v14 = vld [vmem:[#allocation9 + $0x68] sm:$0xff]   ;;  %v10620_v15 = vld [vmem:[#allocation9 + $0x60] sm:$0xff]  }
 0x135   : > { %1066 = vmatprep.mubr.bf16.mxu0 %v699_v8  ;;  %v10621_v16 = vld [vmem:[#allocation9 + $0x58] sm:$0xff]   ;;  %v10622_v17 = vld [vmem:[#allocation9 + $0x50] sm:$0xff]   ;;  %v10623_v18 = vld [vmem:[#allocation9 + $0x48] sm:$0xff]  }
 0x136   : > { %1037 = vmatpush1.bf16.msra.mxu0 %v10610_v2  ;;  %v10624_v19 = vld [vmem:[#allocation9 + $0x40] sm:$0xff]   ;;  %v692_v21 = vld [vmem:[%s11659_s13 + $0x10] sm:$0xff]  ;;  %v695_v22 = vld [vmem:[%s11659_s13 + $0x28] sm:$0xff]  ;;  %p1585_p3 = scmp.gt.s32.totalorder %s15967_s17, 0  ;;  %p1589_p5 = scmp.lt.s32.totalorder %s15967_s17, 1 }
 0x137   : > { %1038 = vmatprep.subr.bf16.mxu0 %v15722_v0  ;;  %v690_v20 = vld [vmem:[%s11659_s13] sm:$0xff]  ;;  %v697_v23 = vld [vmem:[%s11659_s13 + $0x38] sm:$0xff]  ;;  %v696_v27 = vld [vmem:[%s11659_s13 + $0x30] sm:$0xff]  ;;  %s9275_s11 = sshll.u32 %s15967_s17, 7  ;;  %s9270_s21 = sshll.u32 %s16781_s0, 8 }
 0x138   : > { %v698_v24 = vpack.c.bf16 %v692_v21, %v690_v20  ;;  %v701_v25 = vpack.c.bf16 %v697_v23, %v695_v22  ;;  %v694_v26 = vld [vmem:[%s11659_s13 + $0x20] sm:$0xff]  ;;  %v703_v28 = vld [vmem:[%s11672_s26 + $0x8] sm:$0xff]  ;;  %v705_v29 = vld [vmem:[%s11672_s26 + $0x18] sm:$0xff]  ;;  %s1586_s1 = scalar_select %p1585_p3, 1, 0 }
 0x139   : > { %v700_v30 = vpack.c.bf16 %v696_v27, %v694_v26  ;;  %v831_v31 = vpack.c.bf16 %v705_v29, %v703_v28  ;;  %v702_v32 = vld [vmem:[%s11672_s26] sm:$0xff]  ;;  %v704_v33 = vld [vmem:[%s11672_s26 + $0x10] sm:$0xff]  ;;  %v707_v34 = vld [vmem:[%s11672_s26 + $0x28] sm:$0xff]  ;;  %s1590_s18 = scalar_select %p1589_p5, 1, 0 }
 0x13a   : > { %1039 = vmatpush1.bf16.msra.mxu0 %v10611_v3  ;;  %v709_v35 = vld [vmem:[%s11672_s26 + $0x38] sm:$0xff]  ;;  %v830_v36 = vpack.c.bf16 %v704_v33, %v702_v32  ;;  %v706_v38 = vld [vmem:[%s11672_s26 + $0x20] sm:$0xff]  ;;  %v708_v39 = vld [vmem:[%s11672_s26 + $0x30] sm:$0xff]  ;;  %s8582_s4 = sadd.s32 %s9275_s11, %s9270_s21  ;;  %s8585_s13 = sshll.u32 %s15079_s9, 4  ;;  %s15600_s13 = int_to_ptr.vmem [resolvable:$true] %s8585_s13 }
 0x13b   : > { %1040 = vmatprep.subr.bf16.mxu0 %v15722_v0  ;;  %v833_v37 = vpack.c.bf16 %v709_v35, %v707_v34  ;;  %v711_v40 = vld [vmem:[%s11672_s26 + $0x48] sm:$0xff]  ;;  %v713_v41 = vld [vmem:[%s11672_s26 + $0x58] sm:$0xff]  ;;  %v832_v42 = vpack.c.bf16 %v708_v39, %v706_v38  ;;  %v710_v44 = vld [vmem:[%s11672_s26 + $0x40] sm:$0xff]  ;;  %s9271_s12 = sshll.u32 %s8582_s4, 7  ;;  %s11049_s25 = scalar_lea.vmem %s15600_s13, 16384 }
 0x13c   : > { %v835_v43 = vpack.c.bf16 %v713_v41, %v711_v40  ;;  %v712_v45 = vld [vmem:[%s11672_s26 + $0x50] sm:$0xff]  ;;  %v715_v46 = vld [vmem:[%s11672_s26 + $0x68] sm:$0xff]  ;;  %v717_v47 = vld [vmem:[%s11672_s26 + $0x78] sm:$0xff]  ;;  %s15598_s30 = scalar_lea.hbm %s16783_s8, %s9271_s12  ;;  %p11050_p11 = scmp.ne.s32.totalorder %s15600_s13, %s11049_s25 }
 0x13d   : > { %v834_v48 = vpack.c.bf16 %v712_v45, %v710_v44  ;;  %v837_v49 = vpack.c.bf16 %v717_v47, %v715_v46  ;;  %v714_v50 = vld [vmem:[%s11672_s26 + $0x60] sm:$0xff]  ;;  %v716_v51 = vld [vmem:[%s11672_s26 + $0x70] sm:$0xff]  ;;  %v719_v52 = vld [vmem:[%s11672_s26 + $0x88] sm:$0xff]  ;;  %p16784_p12 = scmp.ne.s32.totalorder %s16782_s10, 0  ;;  %p11056_p1 = scmp.lt.s32.totalorder %s15600_s13, %s11054_s7 }
 0x13e   : > { %1041 = vmatpush1.bf16.msra.mxu0 %v10612_v4  ;;  %v721_v53 = vld [vmem:[%s11672_s26 + $0x98] sm:$0xff]  ;;  %v836_v54 = vpack.c.bf16 %v716_v51, %v714_v50  ;;  %v718_v56 = vld [vmem:[%s11672_s26 + $0x80] sm:$0xff]  ;;  %v720_v57 = vld [vmem:[%s11672_s26 + $0x90] sm:$0xff] }
 0x13f   : > { %1042 = vmatprep.subr.bf16.mxu0 %v15722_v0  ;;  %v839_v55 = vpack.c.bf16 %v721_v53, %v719_v52  ;;  %v723_v58 = vld [vmem:[%s11672_s26 + $0xa8] sm:$0xff]  ;;  %v725_v59 = vld [vmem:[%s11672_s26 + $0xb8] sm:$0xff]  ;;  %v838_v60 = vpack.c.bf16 %v720_v57, %v718_v56  ;;  %v722_v62 = vld [vmem:[%s11672_s26 + $0xa0] sm:$0xff]  ;;  %p11051_p7 = pnand %p11050_p11, %p16784_p12 }
 0x140   : > { %v841_v61 = vpack.c.bf16 %v725_v59, %v723_v58  ;;  %v724_v63 = vld [vmem:[%s11672_s26 + $0xb0] sm:$0xff]  ;;  %v727_v1 = vld [vmem:[%s11672_s26 + $0xc8] sm:$0xff]  ;;  %v729_v2 = vld [vmem:[%s11672_s26 + $0xd8] sm:$0xff] }
 0x141   : > { %v840_v3 = vpack.c.bf16 %v724_v63, %v722_v62  ;;  %v843_v4 = vpack.c.bf16 %v729_v2, %v727_v1  ;;  %v10626_v6 = vld [vmem:[#allocation14 + $0x30] sm:$0xff]   ;;  %v726_v7 = vld [vmem:[%s11672_s26 + $0xc0] sm:$0xff]  ;;  %v10631_v29 = vld [vmem:[#allocation14 + $0x8] sm:$0xff]   ;;  %p11052_p0 = pneg %p11051_p7 }
 0x142   : > { %1043 = vmatpush1.bf16.msra.mxu0 %v10613_v5  ;;  %v10625_v5 = vld [vmem:[#allocation14 + $0x38] sm:$0xff]   ;;  %v728_v8 = vld [vmem:[%s11672_s26 + $0xd0] sm:$0xff]  ;;  %v743_v32 = vld [vmem:[%s11672_s26 + $0x148] sm:$0xff] }
 0x143   : > { %1044 = vmatprep.subr.bf16.mxu0 %v15722_v0  ;;  %9636 = vmatprep.subr.bf16.mxu1 %v10625_v5  ;;  %v10629_v21 = vld [vmem:[#allocation14 + $0x18] sm:$0xff]   ;;  %v736_v23 = vld [vmem:[%s11672_s26 + $0x110] sm:$0xff]  ;;  %v10632_v35 = vld [vmem:[#allocation14] sm:$0xff]  }
 0x144   : > { %9637 = vmatpush3.bf16.msra.mxu1 %v10625_v5  ;;  %v734_v22 = vld [vmem:[%s11672_s26 + $0x100] sm:$0xff]  ;;  %v10630_v27 = vld [vmem:[#allocation14 + $0x10] sm:$0xff]   ;;  %v747_v39 = vld [vmem:[%s11672_s26 + $0x168] sm:$0xff] }
 0x145   : > { %9638 = vmatprep.subr.bf16.mxu1 %v10626_v6  ;;  %v846_v26 = vpack.c.bf16 %v736_v23, %v734_v22  ;;  %v745_v33 = vld [vmem:[%s11672_s26 + $0x158] sm:$0xff]  ;;  %v744_v38 = vld [vmem:[%s11672_s26 + $0x150] sm:$0xff]  ;;  %v751_v45 = vld [vmem:[%s11672_s26 + $0x188] sm:$0xff] }
 0x146   : > { %1045 = vmatpush1.bf16.msra.mxu0 %v10614_v9  ;;  %v731_v9 = vld [vmem:[%s11672_s26 + $0xe8] sm:$0xff]  ;;  %v749_v40 = vld [vmem:[%s11672_s26 + $0x178] sm:$0xff]  ;;  %v748_v44 = vld [vmem:[%s11672_s26 + $0x170] sm:$0xff] }
 0x147   : > { %1046 = vmatprep.subr.bf16.mxu0 %v15722_v0  ;;  %v753_v46 = vld [vmem:[%s11672_s26 + $0x198] sm:$0xff]  ;;  %v752_v50 = vld [vmem:[%s11672_s26 + $0x190] sm:$0xff]  ;;  %v755_v51 = vld [vmem:[%s11672_s26 + $0x1a8] sm:$0xff] }
 0x148   : > { %9639 = vmatpush3.bf16.msra.mxu1 %v10626_v6  ;;  %v757_v52 = vld [vmem:[%s11672_s26 + $0x1b8] sm:$0xff]  ;;  %v756_v56 = vld [vmem:[%s11672_s26 + $0x1b0] sm:$0xff]  ;;  %v759_v57 = vld [vmem:[%s11672_s26 + $0x1c8] sm:$0xff] }
 0x149   : > { %v761_v58 = vld [vmem:[%s11672_s26 + $0x1d8] sm:$0xff]  ;;  %v760_v62 = vld [vmem:[%s11672_s26 + $0x1d0] sm:$0xff]  ;;  %v763_v63 = vld [vmem:[%s11672_s26 + $0x1e8] sm:$0xff] }
 0x14a   : > { %1047 = vmatpush1.bf16.msra.mxu0 %v10615_v10  ;;  %v733_v10 = vld [vmem:[%s11672_s26 + $0xf8] sm:$0xff]  ;;  %v762_v5 = vld [vmem:[%s11672_s26 + $0x1e0] sm:$0xff]  ;;  %v764_v6 = vld [vmem:[%s11672_s26 + $0x1f0] sm:$0xff] }
 0x14b   : > { %1048 = vmatprep.subr.bf16.mxu0 %v15722_v0  ;;  %v765_v1 = vld [vmem:[%s11672_s26 + $0x1f8] sm:$0xff]  ;;  %v772_v22 = vld [vmem:[%s11672_s26 + $0x230] sm:$0xff]  ;;  %v775_v23 = vld [vmem:[%s11672_s26 + $0x248] sm:$0xff] }
 0x14e   : > { %1049 = vmatpush1.bf16.msra.mxu0 %v10616_v11  ;;  %v842_v11 = vpack.c.bf16 %v728_v8, %v726_v7  ;;  %v767_v7 = vld [vmem:[%s11672_s26 + $0x208] sm:$0xff]  ;;  %v769_v8 = vld [vmem:[%s11672_s26 + $0x218] sm:$0xff] }
 0x14f   : > { %1050 = vmatprep.subr.bf16.mxu0 %v15722_v0 }
 0x152   : > { %1051 = vmatpush2.bf16.msra.mxu0 %v10617_v12  ;;  %v845_v12 = vpack.c.bf16 %v733_v10, %v731_v9  ;;  %v860_v9 = vpack.c.bf16 %v764_v6, %v762_v5  ;;  %v10634_v10 = vld [vmem:[#allocation14 + $0xf0] sm:$0xff]   ;;  %v799_v5 = vld [vmem:[%s11672_s26 + $0x308] sm:$0xff] }
 0x153   : > { %1052 = vmatprep.subr.bf16.mxu0 %v15722_v0  ;;  %v801_v6 = vld [vmem:[%s11672_s26 + $0x318] sm:$0xff] }
 0x156   : > { %1053 = vmatpush2.bf16.msra.mxu0 %v10618_v13  ;;  %v10627_v13 = vld [vmem:[#allocation14 + $0x28] sm:$0xff]  }
 0x157   : > { %1054 = vmatprep.subr.bf16.mxu0 %v15722_v0  ;;  %9640 = vmatprep.subr.bf16.mxu1 %v10627_v13 }
 0x158   : > { %9641 = vmatpush3.bf16.msra.mxu1 %v10627_v13  ;;  %v766_v13 = vld [vmem:[%s11672_s26 + $0x200] sm:$0xff] }
 0x15a   : > { %1055 = vmatpush2.bf16.msra.mxu0 %v10619_v14  ;;  %v730_v14 = vld [vmem:[%s11672_s26 + $0xe0] sm:$0xff] }
 0x15b   : > { %1056 = vmatprep.subr.bf16.mxu0 %v15722_v0 }
 0x15e   : > { %1057 = vmatpush2.bf16.msra.mxu0 %v10620_v15  ;;  %v732_v15 = vld [vmem:[%s11672_s26 + $0xf0] sm:$0xff] }
 0x15f   : > { %1058 = vmatprep.subr.bf16.mxu0 %v15722_v0 }
 0x162   : > { %1059 = vmatpush2.bf16.msra.mxu0 %v10621_v16  ;;  %v735_v16 = vld [vmem:[%s11672_s26 + $0x108] sm:$0xff] }
 0x163   : > { %1060 = vmatprep.subr.bf16.mxu0 %v15722_v0 }
 0x166   : > { %1061 = vmatpush2.bf16.msra.mxu0 %v10622_v17  ;;  %v737_v17 = vld [vmem:[%s11672_s26 + $0x118] sm:$0xff] }
 0x167   : > { %1062 = vmatprep.subr.bf16.mxu0 %v15722_v0  ;;  %v847_v20 = vpack.c.bf16 %v737_v17, %v735_v16  ;;  %v773_v16 = vld [vmem:[%s11672_s26 + $0x238] sm:$0xff] }
 0x16a   : > { %1063 = vmatpush2.bf16.msra.mxu0 %v10623_v18  ;;  %v844_v18 = vpack.c.bf16 %v732_v15, %v730_v14  ;;  %v768_v14 = vld [vmem:[%s11672_s26 + $0x210] sm:$0xff]  ;;  %v771_v15 = vld [vmem:[%s11672_s26 + $0x228] sm:$0xff] }
 0x16b   : > { %1064 = vmatprep.subr.bf16.mxu0 %v15722_v0  ;;  %v862_v17 = vpack.c.bf16 %v768_v14, %v766_v13  ;;  %v879_v14 = vpack.c.bf16 %v801_v6, %v799_v5 }
 0x16e   : > { %1065 = vmatpush2.bf16.msra.mxu0 %v10624_v19  ;;  %v10628_v19 = vld [vmem:[#allocation14 + $0x20] sm:$0xff]  }
 0x16f   : > { %9642 = vmatprep.subr.bf16.mxu1 %v10628_v19 }
 0x170   : > { %9643 = vmatpush3.bf16.msra.mxu1 %v10628_v19  ;;  %v865_v19 = vpack.c.bf16 %v773_v16, %v771_v15  ;;  %v10667_v15 = vld [vmem:[#allocation14 + $0xa8] sm:$0xff]  }
 0x171   : > { %1067 = vmatmul.mubr.bf16.vlgmr.msra.gmra.mxu0 %v698_v24  ;;  %v739_v24 = vld [vmem:[%s11672_s26 + $0x128] sm:$0xff]  ;;  %9644 = vmatprep.subr.bf16.mxu1 %v10629_v21 }
 0x172   : > { %1074 = vmatprep.mubr.bf16.mxu0 %v701_v25  ;;  %v741_v25 = vld [vmem:[%s11672_s26 + $0x138] sm:$0xff] }
 0x173   : > { %v849_v28 = vpack.c.bf16 %v741_v25, %v739_v24  ;;  %v777_v24 = vld [vmem:[%s11672_s26 + $0x258] sm:$0xff] }
 0x174   : > { %9645 = vmatpush3.bf16.msra.mxu1 %v10629_v21  ;;  %v770_v21 = vld [vmem:[%s11672_s26 + $0x220] sm:$0xff] }
 0x175   : > { %9646 = vmatprep.subr.bf16.mxu1 %v10630_v27  ;;  %v864_v25 = vpack.c.bf16 %v772_v22, %v770_v21 }
 0x178   : > { %9647 = vmatpush3.bf16.msra.mxu1 %v10630_v27  ;;  %v867_v27 = vpack.c.bf16 %v777_v24, %v775_v23  ;;  %v798_v23 = vld [vmem:[%s11672_s26 + $0x300] sm:$0xff]  ;;  %v800_v24 = vld [vmem:[%s11672_s26 + $0x310] sm:$0xff] }
 0x179   : > { %1075 = vmatmul.mubr.bf16.gmra.mxu0 %v700_v30  ;;  %v738_v30 = vld [vmem:[%s11672_s26 + $0x120] sm:$0xff]  ;;  %9648 = vmatprep.subr.bf16.mxu1 %v10631_v29 }
 0x17a   : > { %1082 = vmatprep.mubr.bf16.mxu0 %v831_v31  ;;  %v740_v31 = vld [vmem:[%s11672_s26 + $0x130] sm:$0xff] }
 0x17b   : > { %v848_v34 = vpack.c.bf16 %v740_v31, %v738_v30  ;;  %v776_v30 = vld [vmem:[%s11672_s26 + $0x250] sm:$0xff]  ;;  %v779_v31 = vld [vmem:[%s11672_s26 + $0x268] sm:$0xff] }
 0x17c   : > { %9649 = vmatpush3.bf16.msra.mxu1 %v10631_v29  ;;  %v774_v29 = vld [vmem:[%s11672_s26 + $0x240] sm:$0xff] }
 0x17d   : > { %9650 = vmatprep.subr.bf16.mxu1 %v10632_v35 }
 0x180   : > { %9651 = vmatpush3.bf16.msra.mxu1 %v10632_v35 }
 0x181   : > { %1083 = vmatmul.mubr.bf16.gmra.mxu0 %v830_v36  ;;  %v851_v36 = vpack.c.bf16 %v745_v33, %v743_v32  ;;  %v781_v32 = vld [vmem:[%s11672_s26 + $0x278] sm:$0xff]  ;;  %v866_v33 = vpack.c.bf16 %v776_v30, %v774_v29 }
 0x182   : > { %1090 = vmatprep.mubr.bf16.mxu0 %v833_v37  ;;  %v742_v37 = vld [vmem:[%s11672_s26 + $0x140] sm:$0xff]  ;;  %v869_v35 = vpack.c.bf16 %v781_v32, %v779_v31 }
 0x183   : > { %v850_v41 = vpack.c.bf16 %v744_v38, %v742_v37  ;;  %v778_v37 = vld [vmem:[%s11672_s26 + $0x260] sm:$0xff]  ;;  %v780_v38 = vld [vmem:[%s11672_s26 + $0x270] sm:$0xff] }
 0x189   : > { %1091 = vmatmul.mubr.bf16.gmra.mxu0 %v832_v42  ;;  %v853_v42 = vpack.c.bf16 %v749_v40, %v747_v39  ;;  %v783_v39 = vld [vmem:[%s11672_s26 + $0x288] sm:$0xff]  ;;  %v785_v40 = vld [vmem:[%s11672_s26 + $0x298] sm:$0xff] }
 0x18a   : > { %1098 = vmatprep.mubr.bf16.mxu0 %v835_v43  ;;  %v746_v43 = vld [vmem:[%s11672_s26 + $0x160] sm:$0xff] }
 0x18b   : > { %v852_v47 = vpack.c.bf16 %v748_v44, %v746_v43  ;;  %v782_v43 = vld [vmem:[%s11672_s26 + $0x280] sm:$0xff]  ;;  %v784_v44 = vld [vmem:[%s11672_s26 + $0x290] sm:$0xff] }
 0x191   : > { %1099 = vmatmul.mubr.bf16.gmra.mxu0 %v834_v48  ;;  %v855_v48 = vpack.c.bf16 %v753_v46, %v751_v45  ;;  %v787_v45 = vld [vmem:[%s11672_s26 + $0x2a8] sm:$0xff]  ;;  %v789_v46 = vld [vmem:[%s11672_s26 + $0x2b8] sm:$0xff] }
 0x192   : > { %1106 = vmatprep.mubr.bf16.mxu0 %v837_v49  ;;  %v750_v49 = vld [vmem:[%s11672_s26 + $0x180] sm:$0xff] }
 0x193   : > { %v854_v53 = vpack.c.bf16 %v752_v50, %v750_v49  ;;  %v786_v49 = vld [vmem:[%s11672_s26 + $0x2a0] sm:$0xff]  ;;  %v788_v50 = vld [vmem:[%s11672_s26 + $0x2b0] sm:$0xff] }
 0x199   : > { %1107 = vmatmul.mubr.bf16.gmra.mxu0 %v836_v54  ;;  %v857_v54 = vpack.c.bf16 %v757_v52, %v755_v51  ;;  %v791_v51 = vld [vmem:[%s11672_s26 + $0x2c8] sm:$0xff]  ;;  %v793_v52 = vld [vmem:[%s11672_s26 + $0x2d8] sm:$0xff] }
 0x19a   : > { %1114 = vmatprep.mubr.bf16.mxu0 %v839_v55  ;;  %v754_v55 = vld [vmem:[%s11672_s26 + $0x1a0] sm:$0xff] }
 0x19b   : > { %v856_v59 = vpack.c.bf16 %v756_v56, %v754_v55  ;;  %v790_v55 = vld [vmem:[%s11672_s26 + $0x2c0] sm:$0xff]  ;;  %v792_v56 = vld [vmem:[%s11672_s26 + $0x2d0] sm:$0xff] }
 0x1a1   : > { %1115 = vmatmul.mubr.bf16.gmra.mxu0 %v838_v60  ;;  %v859_v60 = vpack.c.bf16 %v761_v58, %v759_v57  ;;  %v795_v57 = vld [vmem:[%s11672_s26 + $0x2e8] sm:$0xff]  ;;  %v797_v58 = vld [vmem:[%s11672_s26 + $0x2f8] sm:$0xff] }
 0x1a2   : > { %1122 = vmatprep.mubr.bf16.mxu0 %v841_v61  ;;  %v758_v61 = vld [vmem:[%s11672_s26 + $0x1c0] sm:$0xff] }
 0x1a3   : > { %v858_v2 = vpack.c.bf16 %v760_v62, %v758_v61  ;;  %v11827_v61 = vld [vmem:[#allocation11] ss:$0 sm:$0xff] }
 0x1a9   : > { %1123 = vmatmul.mubr.bf16.gmra.mxu0 %v840_v3  ;;  %v861_v3 = vpack.c.bf16 %v765_v1, %v763_v63  ;;  %v11829_v63 = vld [vmem:[#allocation12] ss:$0 sm:$0xff] }
 0x1aa   : > { %1130 = vmatprep.mubr.bf16.mxu0 %v843_v4  ;;  %v10633_v4 = vld [vmem:[#allocation14 + $0xf8] sm:$0xff]  }
 0x1ab   : > { %9876 = vmatprep.subr.bf16.mxu0 %v10633_v4 }
 0x1ac   : > { %9877 = vmatpush3.bf16.msra.mxu0 %v10633_v4 }
 0x1ad   : > { %9878 = vmatprep.subr.bf16.mxu0 %v10634_v10 }
 0x1b0   : > { %9879 = vmatpush3.bf16.msra.mxu0 %v10634_v10 }
 0x1b1   : > { %1131 = vmatmul.mubr.bf16.gmra.mxu0 %v842_v11  ;;  %v863_v11 = vpack.c.bf16 %v769_v8, %v767_v7  ;;  %v1587_v8 = vstv %s1586_s1 }
 0x1b2   : > { %1138 = vmatprep.mubr.bf16.mxu0 %v845_v12  ;;  %v10635_v12 = vld [vmem:[#allocation14 + $0xe8] sm:$0xff]   ;;  %vm11838_vm0 = vcmp.eq.s32.totalorder %v1587_v8, 1 }
 0x1b3   : > { %9880 = vmatprep.subr.bf16.mxu0 %v10635_v12  ;;  %vm8941_vm8 = vmpackc.low %vm11838_vm0, %vm11838_vm0 }
 0x1b4   : > { %9881 = vmatpush3.bf16.msra.mxu0 %v10635_v12 }
 0x1b9   : > { %1139 = vmatmul.mubr.bf16.gmra.mxu0 %v844_v18  ;;  %v10636_v18 = vld [vmem:[#allocation14 + $0xe0] sm:$0xff]  }
 0x1ba   : > { %1146 = vmatprep.mubr.bf16.mxu0 %v847_v20  ;;  %9882 = vmatprep.subr.bf16.mxu0 %v10636_v18  ;;  %v10637_v20 = vld [vmem:[#allocation14 + $0xd8] sm:$0xff]  }
 0x1bb   : > { %9883 = vmatpush3.bf16.msra.mxu0 %v10636_v18 }
 0x1bc   : > { %9884 = vmatprep.subr.bf16.mxu0 %v10637_v20 }
 0x1bf   : > { %9885 = vmatpush3.bf16.msra.mxu0 %v10637_v20 }
 0x1c1   : > { %1147 = vmatmul.mubr.bf16.gmra.mxu0 %v846_v26  ;;  %v10638_v26 = vld [vmem:[#allocation14 + $0xd0] sm:$0xff]  }
 0x1c2   : > { %1154 = vmatprep.mubr.bf16.mxu0 %v849_v28  ;;  %9886 = vmatprep.subr.bf16.mxu0 %v10638_v26  ;;  %v10639_v28 = vld [vmem:[#allocation14 + $0xc8] sm:$0xff]  }
 0x1c3   : > { %9887 = vmatpush3.bf16.msra.mxu0 %v10638_v26  ;;  %v803_v26 = vld [vmem:[%s11672_s26 + $0x328] sm:$0xff] }
 0x1c4   : > { %9888 = vmatprep.subr.bf16.mxu0 %v10639_v28 }
 0x1c7   : > { %9889 = vmatpush3.bf16.msra.mxu0 %v10639_v28 }
 0x1c9   : > { %1155 = vmatmul.mubr.bf16.gmra.mxu0 %v848_v34  ;;  %v10640_v34 = vld [vmem:[#allocation14 + $0xc0] sm:$0xff]  }
 0x1ca   : > { %1162 = vmatprep.mubr.bf16.mxu0 %v851_v36  ;;  %9890 = vmatprep.subr.bf16.mxu0 %v10640_v34  ;;  %v11807_v36 = vld [vmem:[#allocation14 + $0x178] sm:$0xff]  }
 0x1cb   : > { %9891 = vmatpush3.bf16.msra.mxu0 %v10640_v34  ;;  %v878_v34 = vpack.c.bf16 %v800_v24, %v798_v23  ;;  %v806_v24 = vld [vmem:[%s11672_s26 + $0x340] sm:$0xff] }
 0x1cc   : > { %10036 = vmatprep.subr.bf16.mxu0 %v11807_v36 }
 0x1d1   : > { %1163 = vmatmul.mubr.bf16.gmra.mxu0 %v850_v41  ;;  %v868_v41 = vpack.c.bf16 %v780_v38, %v778_v37 }
 0x1d2   : > { %1170 = vmatprep.mubr.bf16.mxu0 %v853_v42  ;;  %v871_v42 = vpack.c.bf16 %v785_v40, %v783_v39 }
 0x1d9   : > { %1171 = vmatmul.mubr.bf16.gmra.mxu0 %v852_v47  ;;  %v870_v47 = vpack.c.bf16 %v784_v44, %v782_v43  ;;  %v802_v43 = vld [vmem:[%s11672_s26 + $0x320] sm:$0xff]  ;;  %v804_v44 = vld [vmem:[%s11672_s26 + $0x330] sm:$0xff] }
 0x1da   : > { %1178 = vmatprep.mubr.bf16.mxu0 %v855_v48  ;;  %v873_v48 = vpack.c.bf16 %v789_v46, %v787_v45 }
 0x1e1   : > { %1179 = vmatmul.mubr.bf16.gmra.mxu0 %v854_v53  ;;  %v872_v53 = vpack.c.bf16 %v788_v50, %v786_v49 }
 0x1e2   : > { %1186 = vmatprep.mubr.bf16.mxu0 %v857_v54  ;;  %v875_v54 = vpack.c.bf16 %v793_v52, %v791_v51 }
 0x1e9   : > { %1187 = vmatmul.mubr.bf16.gmra.mxu0 %v856_v59  ;;  %v874_v59 = vpack.c.bf16 %v792_v56, %v790_v55  ;;  %v809_v55 = vld [vmem:[%s11672_s26 + $0x358] sm:$0xff] }
 0x1ea   : > { %1194 = vmatprep.mubr.bf16.mxu0 %v859_v60  ;;  %v877_v60 = vpack.c.bf16 %v797_v58, %v795_v57 }
 0x1f1   : > { %1195 = vmatmul.mubr.bf16.gmra.mxu0 %v858_v2  ;;  %v794_v2 = vld [vmem:[%s11672_s26 + $0x2e0] sm:$0xff] }
 0x1f2   : > { %1202 = vmatprep.mubr.bf16.mxu0 %v861_v3  ;;  %v796_v3 = vld [vmem:[%s11672_s26 + $0x2f0] sm:$0xff] }
 0x1f9   : > { %1203 = vmatmul.mubr.bf16.gmra.mxu0 %v860_v9  ;;  %v1669_v9 = vlaneseq }
 0x1fa   : > { %1210 = vmatprep.mubr.bf16.mxu0 %v863_v11  ;;  %v876_v11 = vpack.c.bf16 %v796_v3, %v794_v2 }
 0x1fb   : > { %v11843_v18 = vshrl.u32 %v1669_v9, 7 }
 0x1fd   : > { %15970 = vst [vmem:[#allocation47_spill] sm:$0xff] %v11843_v18  ;;  %vm2051_vm1 = vcmp.lt.s32.totalorder %v11843_v18, 7  ;;  %vm1786_vm2 = vcmp.lt.s32.totalorder %v11843_v18, 1  ;;  %vm1710_vm3 = vcmp.gt.s32.totalorder %v11843_v18, 0 }
 0x1fe   : > { %vm11905_vm5 = vmpackc.low %vm11242_vm4, %vm1710_vm3 }
 0x201   : > { %1211 = vmatmul.mubr.bf16.gmra.mxu0 %v862_v17 }
 0x202   : > { %1218 = vmatprep.mubr.bf16.mxu0 %v865_v19 }
 0x209   : > { %1219 = vmatmul.mubr.bf16.gmra.mxu0 %v864_v25 }
 0x20a   : > { %1226 = vmatprep.mubr.bf16.mxu0 %v867_v27  ;;  %v805_v27 = vld [vmem:[%s11672_s26 + $0x338] sm:$0xff] }
 0x20b   : > { %v881_v38 = vpack.c.bf16 %v805_v27, %v803_v26  ;;  %v811_v27 = vld [vmem:[%s11672_s26 + $0x368] sm:$0xff] }
 0x211   : > { %1227 = vmatmul.mubr.bf16.gmra.mxu0 %v866_v33 }
 0x212   : > { %1234 = vmatprep.mubr.bf16.mxu0 %v869_v35 }
 0x219   : > { %1235 = vmatmul.mubr.bf16.gmra.mxu0 %v868_v41 }
 0x21a   : > { %1242 = vmatprep.mubr.bf16.mxu0 %v871_v42 }
 0x221   : > { %1243 = vmatmul.mubr.bf16.gmra.mxu0 %v870_v47 }
 0x222   : > { %1250 = vmatprep.mubr.bf16.mxu0 %v873_v48 }
 0x229   : > { %1251 = vmatmul.mubr.bf16.gmra.mxu0 %v872_v53  ;;  %v880_v53 = vpack.c.bf16 %v804_v44, %v802_v43 }
 0x22a   : > { %1258 = vmatprep.mubr.bf16.mxu0 %v875_v54  ;;  %v807_v54 = vld [vmem:[%s11672_s26 + $0x348] sm:$0xff] }
 0x22b   : > { %v883_v5 = vpack.c.bf16 %v809_v55, %v807_v54  ;;  %v815_v54 = vld [vmem:[%s11672_s26 + $0x388] sm:$0xff]  ;;  %v817_v55 = vld [vmem:[%s11672_s26 + $0x398] sm:$0xff] }
 0x231   : > { %v1068_v62 = vpop.f32.mrf.mxu0  ;;  %1259 = vmatmul.mubr.bf16.gmra.mxu0 %v874_v59 }
 0x232   : > { %v1362_v1 = vmul.f32 %v11827_v61, %v1068_v62  ;;  %1266 = vmatprep.mubr.bf16.mxu0 %v877_v60 }
 0x233   : > { %v1070_v4 = vpop.f32.mrf.mxu0 }
 0x234   : > { %v1441_v7 = vadd.f32 %v11829_v63, %v1362_v1 }
 0x235   : > { %v1071_v10 = vpop.f32.mrf.mxu0 }
 0x236   : > { %v1513_v12 = vmax.f32 %v1441_v7, 0.0  ;;  %v1363_v13 = vmul.f32 %v11827_v61, %v1071_v10 }
 0x237   : > { %v1073_v16 = vpop.f32.mrf.mxu0 }
 0x238   : > { %v1442_v17 = vadd.f32 %v11829_v63, %v1363_v13  ;;  %v1597_v20 = vsel %vm11838_vm0, %v1513_v12, 0.0 }
 0x239   : > { %v1076_v19 = vpop.f32.mrf.mxu0  ;;  %1267 = vmatmul.mubr.bf16.gmra.mxu0 %v876_v11  ;;  %v1979_v31 = vrot.slane %v1597_v20, 1  ;;  %v1714_v50 = vrot.slane %v1597_v20, 7 }
 0x23a   : > { %v1514_v21 = vmax.f32 %v1442_v17, 0.0  ;;  %v1364_v22 = vmul.f32 %v11827_v61, %v1076_v19  ;;  %1274 = vmatprep.mubr.bf16.mxu0 %v879_v14  ;;  %v10649_v17 = vld [vmem:[#allocation14 + $0x78] sm:$0xff]  }
 0x23b   : > { %v1078_v25 = vpop.f32.mrf.mxu0  ;;  %9716 = vmatprep.subr.bf16.mxu1 %v10649_v17 }
 0x23c   : > { %v1598_v28 = vsel %vm11838_vm0, %v1514_v21, 0.0  ;;  %v11854_v29 = vpack.c.bf16 %v1514_v21, %v1513_v12  ;;  %v1443_v30 = vadd.f32 %v11829_v63, %v1364_v22  ;;  %v808_v25 = vld [vmem:[%s11672_s26 + $0x350] sm:$0xff] }
 0x23d   : > { %v1997_v32 = vrot.slane %v1598_v28, 1  ;;  %v1079_v33 = vpop.f32.mrf.mxu0  ;;  %v1732_v47 = vrot.slane %v1598_v28, 7  ;;  %v813_v28 = vld [vmem:[%s11672_s26 + $0x378] sm:$0xff] }
 0x23e   : > { %v1515_v35 = vmax.f32 %v1443_v30, 0.0  ;;  %v1365_v37 = vmul.f32 %v11827_v61, %v1079_v33 }
 0x23f   : > { %v1081_v39 = vpop.f32.mrf.mxu0  ;;  %v11861_v40 = vsel %vm2051_vm1, %v1979_v31, %v1997_v32  ;;  %v1823_v4 = vsel %vm1786_vm2, %v1714_v50, %v1732_v47 }
 0x240   : > { %v1599_v41 = vsel %vm11838_vm0, %v1515_v35, 0.0  ;;  %v1444_v42 = vadd.f32 %v11829_v63, %v1365_v37  ;;  %v885_v39 = vpack.c.bf16 %v813_v28, %v811_v27 }
 0x241   : > { %v2015_v45 = vrot.slane %v1599_v41, 1  ;;  %v1084_v46 = vpop.f32.mrf.mxu0  ;;  %1275 = vmatmul.mubr.bf16.gmra.mxu0 %v878_v34  ;;  %v1750_v51 = vrot.slane %v1599_v41, 7 }
 0x242   : > { %v1516_v48 = vmax.f32 %v1444_v42, 0.0  ;;  %v1366_v49 = vmul.f32 %v11827_v61, %v1084_v46  ;;  %1282 = vmatprep.mubr.bf16.mxu0 %v881_v38 }
 0x243   : > { %v1086_v52 = vpop.f32.mrf.mxu0  ;;  %v11874_v56 = vsel %vm2051_vm1, %v1997_v32, %v2015_v45  ;;  %v1805_v16 = vsel %vm1786_vm2, %v1732_v47, %v1750_v51 }
 0x244   : > { %v1600_v57 = vsel %vm11838_vm0, %v1516_v48, 0.0  ;;  %v11878_v58 = vpack.c.bf16 %v1516_v48, %v1515_v35  ;;  %v1445_v59 = vadd.f32 %v11829_v63, %v1366_v49  ;;  %v882_v35 = vpack.c.bf16 %v808_v25, %v806_v24  ;;  %v810_v48 = vld [vmem:[%s11672_s26 + $0x360] sm:$0xff]  ;;  %v812_v49 = vld [vmem:[%s11672_s26 + $0x370] sm:$0xff] }
 0x245   : > { %v1768_v62 = vrot.slane %v1600_v57, 7  ;;  %v2033_v1 = vrot.slane %v1600_v57, 1  ;;  %v1087_v2 = vpop.f32.mrf.mxu0  ;;  %v10650_v25 = vld [vmem:[#allocation14 + $0x70] sm:$0xff]  }
 0x246   : > { %v1367_v3 = vmul.f32 %v11827_v61, %v1087_v2  ;;  %v11901_v12 = vmax.f32 %v1445_v59, 0.0 }
 0x247   : > { %v11889_v6 = vsel %vm2051_vm1, %v2015_v45, %v2033_v1  ;;  %v11893_v7 = vsel %vm2051_vm1, %v2033_v1, %v1979_v31  ;;  %v1089_v8 = vpop.f32.mrf.mxu0  ;;  %v1841_v9 = vsel %vm1786_vm2, %v1768_v62, %v1714_v50  ;;  %v1787_v10 = vsel %vm1786_vm2, %v1750_v51, %v1768_v62 }
 0x248   : > { %v1446_v13 = vadd.f32 %v11829_v63, %v1367_v3  ;;  %v8886_v20 = vpack.c.bf16 %v1823_v4, %v1841_v9  ;;  %v1940_v21 = vpack.c.bf16 %v1787_v10, %v1805_v16  ;;  %v1980_v30 = vrot.slane %v11901_v12, 1 }
 0x249   : > { %v1092_v19 = vpop.f32.mrf.mxu0  ;;  %1283 = vmatmul.mubr.bf16.gmra.mxu0 %v880_v53  ;;  %v1715_v3 = vrot.slane %v11901_v12, 7 }
 0x24a   : > { %v1518_v22 = vmax.f32 %v1446_v13, 0.0  ;;  %v1368_v23 = vmul.f32 %v11827_v61, %v1092_v19  ;;  %1290 = vmatprep.mubr.bf16.mxu0 %v883_v5  ;;  %9652 = vmatprep.mubr.msk.bf16.mxu1 %vm11905_vm5, %v8886_v20  ;;  %v884_v5 = vpack.c.bf16 %v812_v49, %v810_v48  ;;  %v887_v13 = vpack.c.bf16 %v817_v55, %v815_v54  ;;  %v818_v55 = vld [vmem:[%s11672_s26 + $0x3a0] sm:$0xff] }
 0x24b   : > { %v1094_v26 = vpop.f32.mrf.mxu0  ;;  %9653 = vmatmul.mubr.bf16.vlgmr.msra.gmra.mxu1 %v1940_v21 }
 0x24c   : > { %v1998_v31 = vrot.slane %v1518_v22, 1  ;;  %v1447_v32 = vadd.f32 %v11829_v63, %v1368_v23  ;;  %v11921_v33 = vpack.c.bf16 %v1518_v22, %v11901_v12  ;;  %9717 = vmatpush3.bf16.msra.mxu1 %v10649_v17  ;;  %v1733_v51 = vrot.slane %v1518_v22, 7 }
 0x24d   : > { %v1095_v34 = vpop.f32.mrf.mxu0  ;;  %9718 = vmatprep.subr.bf16.mxu1 %v10650_v25 }
 0x24e   : > { %15973 = vst [vmem:[#allocation48_spill] sm:$0xff] %v11921_v33  ;;  %v1519_v37 = vmax.f32 %v1447_v32, 0.0  ;;  %v1369_v38 = vmul.f32 %v11827_v61, %v1095_v34  ;;  %v2089_v41 = vsel %vm2051_vm1, %v1980_v30, %v1998_v31  ;;  %v1824_v19 = vsel %vm1786_vm2, %v1715_v3, %v1733_v51  ;;  %v816_v32 = vld [vmem:[%s11672_s26 + $0x390] sm:$0xff] }
 0x24f   : > { %v1097_v42 = vpop.f32.mrf.mxu0 }
 0x250   : > { %v2016_v43 = vrot.slane %v1519_v37, 1  ;;  %v1448_v44 = vadd.f32 %v11829_v63, %v1369_v38  ;;  %v1751_v52 = vrot.slane %v1519_v37, 7  ;;  %9719 = vmatpush3.bf16.msra.mxu1 %v10650_v25 }
 0x251   : > { %v1100_v45 = vpop.f32.mrf.mxu0  ;;  %1291 = vmatmul.mubr.bf16.gmra.mxu0 %v882_v35  ;;  %v819_v35 = vld [vmem:[%s11672_s26 + $0x3a8] sm:$0xff] }
 0x252   : > { %v1520_v46 = vmax.f32 %v1448_v44, 0.0  ;;  %v1370_v47 = vmul.f32 %v11827_v61, %v1100_v45  ;;  %1298 = vmatprep.mubr.bf16.mxu0 %v885_v39  ;;  %v2071_v50 = vsel %vm2051_vm1, %v1998_v31, %v2016_v43  ;;  %v1806_v24 = vsel %vm1786_vm2, %v1733_v51, %v1751_v52  ;;  %v814_v31 = vld [vmem:[%s11672_s26 + $0x380] sm:$0xff] }
 0x253   : > { %v1102_v53 = vpop.f32.mrf.mxu0  ;;  %v11934_v57 = vpack.c.bf16 %v2071_v50, %v2089_v41  ;;  %v886_v44 = vpack.c.bf16 %v816_v32, %v814_v31 }
 0x254   : > { %v1769_v59 = vrot.slane %v1520_v46, 7  ;;  %v2034_v62 = vrot.slane %v1520_v46, 1  ;;  %v1449_v1 = vadd.f32 %v11829_v63, %v1370_v47  ;;  %v11937_v2 = vpack.c.bf16 %v1520_v46, %v1519_v37  ;;  %v821_v37 = vld [vmem:[%s11672_s26 + $0x3b8] sm:$0xff] }
 0x255   : > { %15974 = vst [vmem:[#allocation49_spill] sm:$0xff] %v11934_v57  ;;  %v1103_v4 = vpop.f32.mrf.mxu0  ;;  %v889_v47 = vpack.c.bf16 %v821_v37, %v819_v35 }
 0x256   : > { %v2053_v8 = vsel %vm2051_vm1, %v2016_v43, %v2034_v62  ;;  %v2107_v9 = vsel %vm2051_vm1, %v2034_v62, %v1980_v30  ;;  %v1371_v10 = vmul.f32 %v11827_v61, %v1103_v4  ;;  %v1842_v12 = vsel %vm1786_vm2, %v1769_v59, %v1715_v3 }
 0x257   : > { %v11945_v16 = vpack.c.bf16 %v2107_v9, %v2053_v8  ;;  %v1105_v17 = vpop.f32.mrf.mxu0  ;;  %v1788_v20 = vsel %vm1786_vm2, %v1751_v52, %v1769_v59  ;;  %v1521_v21 = vmax.f32 %v1449_v1, 0.0  ;;  %v11954_v23 = vpack.c.bf16 %v1824_v19, %v1842_v12  ;;  %v820_v59 = vld [vmem:[%s11672_s26 + $0x3b0] sm:$0xff]  ;;  %v825_v8 = vld [vmem:[%s11672_s26 + $0x3d8] sm:$0xff] }
 0x258   : > { %v1450_v22 = vadd.f32 %v11829_v63, %v1371_v10  ;;  %v11958_v27 = vpack.c.bf16 %v1788_v20, %v1806_v24 }
 0x259   : > { %15975 = vst [vmem:[#allocation50_spill] sm:$0xff] %v11945_v16  ;;  %v1108_v26 = vpop.f32.mrf.mxu0  ;;  %1299 = vmatmul.mubr.bf16.gmra.mxu0 %v884_v5  ;;  %9656 = vmatprep.mubr.msk.bf16.mxu1 %vm11905_vm5, %v11954_v23  ;;  %v1981_v38 = vrot.slane %v1521_v21, 1  ;;  %v823_v5 = vld [vmem:[%s11672_s26 + $0x3c8] sm:$0xff]  ;;  %v1716_v12 = vrot.slane %v1521_v21, 7 }
 0x25a   : > { %v1522_v28 = vmax.f32 %v1450_v22, 0.0  ;;  %v1372_v30 = vmul.f32 %v11827_v61, %v1108_v26  ;;  %1306 = vmatprep.mubr.bf16.mxu0 %v887_v13  ;;  %9657 = vmatmul.mubr.bf16.gmra.mxu1 %v11958_v27  ;;  %v888_v22 = vpack.c.bf16 %v820_v59, %v818_v55 }
 0x25b   : > { %v1110_v34 = vpop.f32.mrf.mxu0 }
 0x25c   : > { %v1999_v39 = vrot.slane %v1522_v28, 1  ;;  %v1451_v41 = vadd.f32 %v11829_v63, %v1372_v30  ;;  %v11970_v42 = vpack.c.bf16 %v1522_v28, %v1521_v21  ;;  %v1734_v1 = vrot.slane %v1522_v28, 7 }
 0x25d   : > { %v1111_v43 = vpop.f32.mrf.mxu0  ;;  %v891_v28 = vpack.c.bf16 %v825_v8, %v823_v5 }
 0x25e   : > { %v1523_v45 = vmax.f32 %v1451_v41, 0.0  ;;  %v1373_v46 = vmul.f32 %v11827_v61, %v1111_v43  ;;  %v2090_v48 = vsel %vm2051_vm1, %v1981_v38, %v1999_v39  ;;  %v1825_v31 = vsel %vm1786_vm2, %v1716_v12, %v1734_v1  ;;  %v10651_v41 = vld [vmem:[#allocation14 + $0x68] sm:$0xff]  }
 0x25f   : > { %v1113_v49 = vpop.f32.mrf.mxu0  ;;  %9720 = vmatprep.subr.bf16.mxu1 %v10651_v41 }
 0x260   : > { %v2017_v50 = vrot.slane %v1523_v45, 1  ;;  %v1452_v51 = vadd.f32 %v11829_v63, %v1373_v46  ;;  %v1752_v3 = vrot.slane %v1523_v45, 7  ;;  %9721 = vmatpush3.bf16.msra.mxu1 %v10651_v41 }
 0x261   : > { %v1116_v52 = vpop.f32.mrf.mxu0  ;;  %1307 = vmatmul.mubr.bf16.gmra.mxu0 %v886_v44 }
 0x262   : > { %v1524_v53 = vmax.f32 %v1452_v51, 0.0  ;;  %v1374_v54 = vmul.f32 %v11827_v61, %v1116_v52  ;;  %1314 = vmatprep.mubr.bf16.mxu0 %v889_v47  ;;  %v2072_v62 = vsel %vm2051_vm1, %v1999_v39, %v2017_v50  ;;  %v1807_v39 = vsel %vm1786_vm2, %v1734_v1, %v1752_v3  ;;  %v822_v47 = vld [vmem:[%s11672_s26 + $0x3c0] sm:$0xff]  ;;  %v829_v51 = vld [vmem:[%s11672_s26 + $0x3f8] sm:$0xff] }
 0x263   : > { %v1118_v4 = vpop.f32.mrf.mxu0  ;;  %v11983_v9 = vpack.c.bf16 %v2072_v62, %v2090_v48  ;;  %v824_v48 = vld [vmem:[%s11672_s26 + $0x3d0] sm:$0xff] }
 0x264   : > { %v11985_v10 = vpack.c.bf16 %v1524_v53, %v1523_v45  ;;  %v1770_v13 = vrot.slane %v1524_v53, 7  ;;  %v2035_v17 = vrot.slane %v1524_v53, 1  ;;  %v1453_v19 = vadd.f32 %v11829_v63, %v1374_v54 }
 0x265   : > { %15976 = vst [vmem:[#allocation51_spill] sm:$0xff] %v11983_v9  ;;  %v1119_v20 = vpop.f32.mrf.mxu0  ;;  %v890_v62 = vpack.c.bf16 %v824_v48, %v822_v47 }
 0x266   : > { %v2054_v24 = vsel %vm2051_vm1, %v2017_v50, %v2035_v17  ;;  %v2108_v25 = vsel %vm2051_vm1, %v2035_v17, %v1981_v38  ;;  %v1375_v26 = vmul.f32 %v11827_v61, %v1119_v20  ;;  %v1843_v32 = vsel %vm1786_vm2, %v1770_v13, %v1716_v12  ;;  %v827_v50 = vld [vmem:[%s11672_s26 + $0x3e8] sm:$0xff]  ;;  %v826_v12 = vld [vmem:[%s11672_s26 + $0x3e0] sm:$0xff] }
 0x267   : > { %v1121_v30 = vpop.f32.mrf.mxu0  ;;  %v1789_v21 = vsel %vm1786_vm2, %v1752_v3, %v1770_v13  ;;  %v11999_v34 = vpack.c.bf16 %v2108_v25, %v2054_v24  ;;  %v1525_v35 = vmax.f32 %v1453_v19, 0.0  ;;  %v12002_v38 = vpack.c.bf16 %v1825_v31, %v1843_v32  ;;  %v828_v24 = vld [vmem:[%s11672_s26 + $0x3f0] sm:$0xff]  ;;  %v895_v25 = vld [vmem:[%s11679_s23 + $0x8] sm:$0xff] }
 0x268   : > { %v1454_v37 = vadd.f32 %v11829_v63, %v1375_v26  ;;  %v12006_v44 = vpack.c.bf16 %v1789_v21, %v1807_v39  ;;  %v893_v4 = vpack.c.bf16 %v829_v51, %v827_v50  ;;  %v897_v26 = vld [vmem:[%s11679_s23 + $0x18] sm:$0xff]  ;;  %v892_v47 = vpack.c.bf16 %v828_v24, %v826_v12  ;;  %v894_v12 = vld [vmem:[%s11679_s23] sm:$0xff]  ;;  %v899_v24 = vld [vmem:[%s11679_s23 + $0x28] sm:$0xff] }
 0x269   : > { %15977 = vst [vmem:[#allocation52_spill] sm:$0xff] %v11999_v34  ;;  %15978 = vst [vmem:[#allocation53_spill] sm:$0xff] %v12002_v38  ;;  %v1124_v43 = vpop.f32.mrf.mxu0  ;;  %1315 = vmatmul.mubr.bf16.gmra.mxu0 %v888_v22  ;;  %9660 = vmatprep.mubr.msk.bf16.mxu1 %vm11905_vm5, %v12002_v38  ;;  %v1982_v52 = vrot.slane %v1525_v35, 1  ;;  %v903_v48 = vpack.c.bf16 %v897_v26, %v895_v25  ;;  %v901_v25 = vld [vmem:[%s11679_s23 + $0x38] sm:$0xff] }
 0x26a   : > { %15979 = vst [vmem:[#allocation54_spill] sm:$0xff] %v12006_v44  ;;  %v1526_v45 = vmax.f32 %v1454_v37, 0.0  ;;  %v1376_v46 = vmul.f32 %v11827_v61, %v1124_v43  ;;  %1322 = vmatprep.mubr.bf16.mxu0 %v891_v28  ;;  %9661 = vmatmul.mubr.bf16.gmra.mxu1 %v12006_v44  ;;  %v1717_v43 = vrot.slane %v1525_v35, 7 }
 0x26b   : > { %v1126_v49 = vpop.f32.mrf.mxu0 }
 0x26c   : > { %v2000_v53 = vrot.slane %v1526_v45, 1  ;;  %v1455_v54 = vadd.f32 %v11829_v63, %v1376_v46  ;;  %v12018_v55 = vpack.c.bf16 %v1526_v45, %v1525_v35  ;;  %v1735_v30 = vrot.slane %v1526_v45, 7 }
 0x26d   : > { %v1127_v59 = vpop.f32.mrf.mxu0 }
 0x26e   : > { %v1527_v1 = vmax.f32 %v1455_v54, 0.0  ;;  %v1377_v3 = vmul.f32 %v11827_v61, %v1127_v59  ;;  %v2091_v5 = vsel %vm2051_vm1, %v1982_v52, %v2000_v53  ;;  %v1826_v54 = vsel %vm1786_vm2, %v1717_v43, %v1735_v30 }
 0x26f   : > { %v1129_v8 = vpop.f32.mrf.mxu0 }
 0x270   : > { %v2018_v13 = vrot.slane %v1527_v1, 1  ;;  %v1456_v17 = vadd.f32 %v11829_v63, %v1377_v3  ;;  %v1753_v21 = vrot.slane %v1527_v1, 7 }
 0x271   : > { %v1132_v19 = vpop.f32.mrf.mxu0  ;;  %1323 = vmatmul.mubr.bf16.gmra.mxu0 %v890_v62 }
 0x272   : > { %v1528_v20 = vmax.f32 %v1456_v17, 0.0  ;;  %v1378_v22 = vmul.f32 %v11827_v61, %v1132_v19  ;;  %1330 = vmatprep.mubr.bf16.mxu0 %v893_v4  ;;  %v2073_v28 = vsel %vm2051_vm1, %v2000_v53, %v2018_v13  ;;  %v1808_v3 = vsel %vm1786_vm2, %v1735_v30, %v1753_v21  ;;  %v10652_v4 = vld [vmem:[#allocation14 + $0x60] sm:$0xff]  }
 0x273   : > { %v1134_v31 = vpop.f32.mrf.mxu0  ;;  %v12031_v32 = vpack.c.bf16 %v2073_v28, %v2091_v5  ;;  %9722 = vmatprep.subr.bf16.mxu1 %v10652_v4 }
 0x274   : > { %v1771_v37 = vrot.slane %v1528_v20, 7  ;;  %v2036_v39 = vrot.slane %v1528_v20, 1  ;;  %v12033_v41 = vpack.c.bf16 %v1528_v20, %v1527_v1  ;;  %v1457_v45 = vadd.f32 %v11829_v63, %v1378_v22  ;;  %v896_v20 = vld [vmem:[%s11679_s23 + $0x10] sm:$0xff]  ;;  %9723 = vmatpush3.bf16.msra.mxu1 %v10652_v4 }
 0x275   : > { %15980 = vst [vmem:[#allocation55_spill] sm:$0xff] %v12031_v32  ;;  %v1135_v46 = vpop.f32.mrf.mxu0  ;;  %v902_v31 = vpack.c.bf16 %v896_v20, %v894_v12 }
 0x276   : > { %15981 = vst [vmem:[#allocation56_spill] sm:$0xff] %v12033_v41  ;;  %v2055_v49 = vsel %vm2051_vm1, %v2018_v13, %v2036_v39  ;;  %v2109_v50 = vsel %vm2051_vm1, %v2036_v39, %v1982_v52  ;;  %v1379_v51 = vmul.f32 %v11827_v61, %v1135_v46  ;;  %v1844_v35 = vsel %vm1786_vm2, %v1771_v37, %v1717_v43 }
 0x277   : > { %v1137_v53 = vpop.f32.mrf.mxu0  ;;  %v1790_v59 = vsel %vm1786_vm2, %v1753_v21, %v1771_v37  ;;  %v12047_v62 = vpack.c.bf16 %v2109_v50, %v2055_v49  ;;  %v12050_v1 = vpack.c.bf16 %v1826_v54, %v1844_v35  ;;  %v12056_v13 = vmax.f32 %v1457_v45, 0.0  ;;  %v898_v50 = vld [vmem:[%s11679_s23 + $0x20] sm:$0xff]  ;;  %v900_v45 = vld [vmem:[%s11679_s23 + $0x30] sm:$0xff]  ;;  %s11055_s23 = scalar_lea.vmem %s11054_s7, 32768 }
 0x278   : > { %v1458_v52 = vadd.f32 %v11829_v63, %v1379_v51  ;;  %v12054_v8 = vpack.c.bf16 %v1790_v59, %v1808_v3  ;;  %v905_v37 = vpack.c.bf16 %v901_v25, %v899_v24  ;;  %v904_v4 = vpack.c.bf16 %v900_v45, %v898_v50  ;;  %p11057_p6 = scmp.lt.s32.totalorder %s11055_s23, %s11049_s25 }
 0x279   : > { %15982 = vst [vmem:[#allocation57_spill] sm:$0xff] %v12047_v62  ;;  %15983 = vst [vmem:[#allocation58_spill] sm:$0xff] %v12050_v1  ;;  %v1140_v5 = vpop.f32.mrf.mxu0  ;;  %1331 = vmatmul.mubr.bf16.gmra.mxu0 %v892_v47  ;;  %9664 = vmatprep.mubr.msk.bf16.mxu1 %vm11905_vm5, %v12050_v1 }
 0x27a   : > { %15984 = vst [vmem:[#allocation59_spill] sm:$0xff] %v12054_v8  ;;  %v12058_v17 = vmax.f32 %v1458_v52, 0.0  ;;  %v1380_v19 = vmul.f32 %v11827_v61, %v1140_v5  ;;  %1338 = vmatprep.mubr.bf16.mxu0 %v903_v48  ;;  %9665 = vmatmul.mubr.bf16.gmra.mxu1 %v12054_v8  ;;  %v1718_v52 = vrot.slane %v12056_v13, 7  ;;  %p11058_p2 = por %p11057_p6, %p11056_p1 }
 0x27b   : > { %v1142_v22 = vpop.f32.mrf.mxu0 }
 0x27c   : > { %v1459_v26 = vadd.f32 %v11829_v63, %v1380_v19  ;;  %v12072_v28 = vpack.c.bf16 %v12058_v17, %v12056_v13  ;;  %v1736_v51 = vrot.slane %v12058_v17, 7  ;;  %p11059_p8 = pnand %p11058_p2, %p11052_p0 }
 0x27d   : > { %v1143_v30 = vpop.f32.mrf.mxu0 }
 0x27e   : > { %15985 = vst [vmem:[#allocation60_spill] sm:$0xff] %v12072_v28  ;;  %v1381_v21 = vmul.f32 %v11827_v61, %v1143_v30  ;;  %v12075_v43 = vmax.f32 %v1459_v26, 0.0  ;;  %v1827_v20 = vsel %vm1786_vm2, %v1718_v52, %v1736_v51 }
 0x27f   : > { %v1145_v39 = vpop.f32.mrf.mxu0 }
 0x280   : > { %v1460_v46 = vadd.f32 %v11829_v63, %v1381_v21  ;;  %v1754_v54 = vrot.slane %v12075_v43, 7 }
 0x281   : > { %v1148_v47 = vpop.f32.mrf.mxu0  ;;  %1339 = vmatmul.mubr.bf16.gmra.mxu0 %v902_v31  ;;  %v10653_v31 = vld [vmem:[#allocation14 + $0x58] sm:$0xff]  }
 0x282   : > { %v12078_v48 = vmax.f32 %v1460_v46, 0.0  ;;  %v1382_v49 = vmul.f32 %v11827_v61, %v1148_v47  ;;  %1346 = vmatprep.mubr.bf16.mxu0 %v905_v37  ;;  %v1809_v30 = vsel %vm1786_vm2, %v1736_v51, %v1754_v54  ;;  %9724 = vmatprep.subr.bf16.mxu1 %v10653_v31 }
 0x283   : > { %v1150_v53 = vpop.f32.mrf.mxu0  ;;  %9725 = vmatpush3.bf16.msra.mxu1 %v10653_v31 }
 0x284   : > { %v1772_v35 = vrot.slane %v12078_v48, 7  ;;  %v12088_v59 = vpack.c.bf16 %v12078_v48, %v12075_v43  ;;  %v1461_v5 = vadd.f32 %v11829_v63, %v1382_v49 }
 0x285   : > { %v1151_v3 = vpop.f32.mrf.mxu0 }
 0x286   : > { %15986 = vst [vmem:[#allocation61_spill] sm:$0xff] %v12088_v59  ;;  %v1383_v19 = vmul.f32 %v11827_v61, %v1151_v3  ;;  %v1845_v22 = vsel %vm1786_vm2, %v1772_v35, %v1718_v52  ;;  %v1791_v24 = vsel %vm1786_vm2, %v1754_v54, %v1772_v35  ;;  %v12106_v39 = vmax.f32 %v1461_v5, 0.0  ;;  %v10642_v35 = vld [vmem:[#allocation14 + $0x170] sm:$0xff]  }
 0x287   : > { %v1153_v12 = vpop.f32.mrf.mxu0  ;;  %v12100_v26 = vpack.c.bf16 %v1827_v20, %v1845_v22  ;;  %v12104_v37 = vpack.c.bf16 %v1791_v24, %v1809_v30  ;;  %v10643_v20 = vld [vmem:[#allocation14 + $0x168] sm:$0xff]  }
 0x288   : > { %v1462_v25 = vadd.f32 %v11829_v63, %v1383_v19 }
 0x289   : > { %15987 = vst [vmem:[#allocation62_spill] sm:$0xff] %v12100_v26  ;;  %v1156_v21 = vpop.f32.mrf.mxu0  ;;  %1347 = vmatmul.mubr.bf16.gmra.mxu0 %v904_v4  ;;  %15988 = vst [vmem:[#allocation63_spill] sm:$0xff] %v12104_v37  ;;  %9668 = vmatprep.mubr.msk.bf16.mxu1 %vm11905_vm5, %v12100_v26 }
 0x28a   : > { %v12108_v46 = vmax.f32 %v1462_v25, 0.0  ;;  %v1384_v47 = vmul.f32 %v11827_v61, %v1156_v21  ;;  %9892 = vmatprep.mubr.msk.bf16.mxu0 %vm11905_vm5, %v11954_v23  ;;  %9669 = vmatmul.mubr.bf16.gmra.mxu1 %v12104_v37  ;;  %v1719_v25 = vrot.slane %v12106_v39, 7 }
 0x28b   : > { %v1158_v49 = vpop.f32.mrf.mxu0 }
 0x28c   : > { %v1463_v50 = vadd.f32 %v11829_v63, %v1384_v47  ;;  %v12121_v45 = vpack.c.bf16 %v12108_v46, %v12106_v39  ;;  %v1737_v19 = vrot.slane %v12108_v46, 7 }
 0x28d   : > { %v1159_v51 = vpop.f32.mrf.mxu0 }
 0x28e   : > { %15989 = vst [vmem:[#allocation64_spill] sm:$0xff] %v12121_v45  ;;  %v1385_v53 = vmul.f32 %v11827_v61, %v1159_v51  ;;  %v12124_v52 = vmax.f32 %v1463_v50, 0.0  ;;  %v1828_v47 = vsel %vm1786_vm2, %v1719_v25, %v1737_v19 }
 0x28f   : > { %v1161_v54 = vpop.f32.mrf.mxu0 }
 0x290   : > { %v1464_v23 = vadd.f32 %v11829_v63, %v1385_v53  ;;  %v1755_v22 = vrot.slane %v12124_v52, 7 }
 0x291   : > { %v1164_v3 = vpop.f32.mrf.mxu0  ;;  %9893 = vmatmul.mubr.bf16.vlgmr.msra.gmra.mxu0 %v11958_v27 }
 0x292   : > { %v12128_v4 = vmax.f32 %v1464_v23, 0.0  ;;  %v1386_v5 = vmul.f32 %v11827_v61, %v1164_v3  ;;  %9896 = vmatprep.mubr.msk.bf16.mxu0 %vm11905_vm5, %v12002_v38  ;;  %10037 = vmatpush3.bf16.msra.mxu0 %v11807_v36  ;;  %v1810_v54 = vsel %vm1786_vm2, %v1737_v19, %v1755_v22  ;;  %v10644_v23 = vld [vmem:[#allocation14 + $0x160] sm:$0xff]  }
 0x293   : > { %v1166_v12 = vpop.f32.mrf.mxu0  ;;  %10038 = vmatprep.subr.bf16.mxu0 %v10642_v35 }
 0x294   : > { %v1773_v24 = vrot.slane %v12128_v4, 7  ;;  %v12140_v27 = vpack.c.bf16 %v12128_v4, %v12124_v52  ;;  %v1465_v31 = vadd.f32 %v11829_v63, %v1386_v5 }
 0x295   : > { %v1167_v30 = vpop.f32.mrf.mxu0 }
 0x296   : > { %15990 = vst [vmem:[#allocation65_spill] sm:$0xff] %v12140_v27  ;;  %v1387_v36 = vmul.f32 %v11827_v61, %v1167_v30  ;;  %10039 = vmatpush3.bf16.msra.mxu0 %v10642_v35  ;;  %v1846_v49 = vsel %vm1786_vm2, %v1773_v24, %v1719_v25  ;;  %v1792_v50 = vsel %vm1786_vm2, %v1755_v22, %v1773_v24  ;;  %v10654_v35 = vld [vmem:[#allocation14 + $0x50] sm:$0xff]   ;;  %v12159_v12 = vmax.f32 %v1465_v31, 0.0  ;;  %v10645_v30 = vld [vmem:[#allocation14 + $0x158] sm:$0xff]  }
 0x297   : > { %v1169_v21 = vpop.f32.mrf.mxu0  ;;  %10040 = vmatprep.subr.bf16.mxu0 %v10643_v20  ;;  %v12152_v53 = vpack.c.bf16 %v1828_v47, %v1846_v49  ;;  %v12157_v5 = vpack.c.bf16 %v1792_v50, %v1810_v54  ;;  %9726 = vmatprep.subr.bf16.mxu1 %v10654_v35  ;;  %v10646_v50 = vld [vmem:[#allocation14 + $0x150] sm:$0xff]  }
 0x298   : > { %v1466_v51 = vadd.f32 %v11829_v63, %v1387_v36  ;;  %9727 = vmatpush3.bf16.msra.mxu1 %v10654_v35 }
 0x299   : > { %15991 = vst [vmem:[#allocation66_spill] sm:$0xff] %v12152_v53  ;;  %v1172_v3 = vpop.f32.mrf.mxu0  ;;  %9897 = vmatmul.mubr.bf16.gmra.mxu0 %v12006_v44  ;;  %15992 = vst [vmem:[#allocation67_spill] sm:$0xff] %v12157_v5  ;;  %9672 = vmatprep.mubr.msk.bf16.mxu1 %vm11905_vm5, %v12152_v53  ;;  %v10656_v53 = vld [vmem:[#allocation14 + $0x40] sm:$0xff]  }
 0x29a   : > { %v12161_v25 = vmax.f32 %v1466_v51, 0.0  ;;  %v1388_v24 = vmul.f32 %v11827_v61, %v1172_v3  ;;  %9900 = vmatprep.mubr.msk.bf16.mxu0 %vm11905_vm5, %v12050_v1  ;;  %9673 = vmatmul.mubr.bf16.gmra.mxu1 %v12157_v5 }
 0x29b   : > { %10041 = vmatpush3.bf16.msra.mxu0 %v10643_v20  ;;  %v1174_v19 = vpop.f32.mrf.mxu0 }
 0x29c   : > { %v1467_v22 = vadd.f32 %v11829_v63, %v1388_v24  ;;  %10042 = vmatprep.subr.bf16.mxu0 %v10644_v23  ;;  %v12174_v31 = vpack.c.bf16 %v12161_v25, %v12159_v12 }
 0x29d   : > { %v1175_v36 = vpop.f32.mrf.mxu0 }
 0x29e   : > { %15993 = vst [vmem:[#allocation68_spill] sm:$0xff] %v12174_v31  ;;  %v1389_v21 = vmul.f32 %v11827_v61, %v1175_v36  ;;  %v12177_v49 = vmax.f32 %v1467_v22, 0.0  ;;  %v10647_v22 = vld [vmem:[#allocation14 + $0x148] sm:$0xff]  }
 0x29f   : > { %10043 = vmatpush3.bf16.msra.mxu0 %v10644_v23  ;;  %v1177_v47 = vpop.f32.mrf.mxu0  ;;  %v1738_v23 = vrot.slane %v12161_v25, 7 }
 0x2a0   : > { %v1468_v20 = vadd.f32 %v11829_v63, %v1389_v21  ;;  %10044 = vmatprep.subr.bf16.mxu0 %v10645_v30  ;;  %v1756_v24 = vrot.slane %v12177_v49, 7  ;;  %v1720_v21 = vrot.slane %v12159_v12, 7 }
 0x2a1   : > { %v1180_v51 = vpop.f32.mrf.mxu0  ;;  %9901 = vmatmul.mubr.bf16.gmra.mxu0 %v12054_v8 }
 0x2a2   : > { %v12181_v54 = vmax.f32 %v1468_v20, 0.0  ;;  %v1390_v3 = vmul.f32 %v11827_v61, %v1180_v51  ;;  %9904 = vmatprep.mubr.msk.bf16.mxu0 %vm11905_vm5, %v12100_v26 }
 0x2a3   : > { %10045 = vmatpush3.bf16.msra.mxu0 %v10645_v30  ;;  %v1182_v35 = vpop.f32.mrf.mxu0 }
 0x2a4   : > { %v1774_v19 = vrot.slane %v12181_v54, 7  ;;  %10046 = vmatprep.subr.bf16.mxu0 %v10646_v50  ;;  %v12192_v36 = vpack.c.bf16 %v12181_v54, %v12177_v49  ;;  %v1469_v20 = vadd.f32 %v11829_v63, %v1390_v3  ;;  %v1829_v35 = vsel %vm1786_vm2, %v1720_v21, %v1738_v23 }
 0x2a5   : > { %v1183_v47 = vpop.f32.mrf.mxu0  ;;  %v1811_v3 = vsel %vm1786_vm2, %v1738_v23, %v1756_v24 }
 0x2a6   : > { %15994 = vst [vmem:[#allocation69_spill] sm:$0xff] %v12192_v36  ;;  %v1391_v51 = vmul.f32 %v11827_v61, %v1183_v47  ;;  %v1847_v0 = vsel %vm1786_vm2, %v1774_v19, %v1720_v21  ;;  %v1793_v11 = vsel %vm1786_vm2, %v1756_v24, %v1774_v19  ;;  %v10648_v47 = vld [vmem:[#allocation14 + $0x140] sm:$0xff]   ;;  %v12212_v21 = vmax.f32 %v1469_v20, 0.0 }
 0x2a7   : > { %10047 = vmatpush3.bf16.msra.mxu0 %v10646_v50  ;;  %v1185_v30 = vpop.f32.mrf.mxu0  ;;  %v12204_v26 = vpack.c.bf16 %v1829_v35, %v1847_v0  ;;  %v1673_v50 = vadd.s32 24, %v11843_v18  ;;  %v12210_v1 = vpack.c.bf16 %v1793_v11, %v1811_v3 }
 0x2a8   : > { %v1470_v60 = vadd.f32 %v11829_v63, %v1391_v51  ;;  %10048 = vmatprep.subr.bf16.mxu0 %v10647_v22  ;;  %v10655_v30 = vld [vmem:[#allocation14 + $0x48] sm:$0xff]   ;;  %v15998_v51 = vmov 0 }
 0x2a9   : > { %15995 = vst [vmem:[#allocation70_spill] sm:$0xff] %v12204_v26  ;;  %v1188_v8 = vpop.f32.mrf.mxu0  ;;  %9905 = vmatmul.mubr.bf16.gmra.mxu0 %v12104_v37  ;;  %15996 = vst [vmem:[#allocation71_spill] sm:$0xff] %v12210_v1  ;;  %9676 = vmatprep.mubr.msk.bf16.mxu1 %vm11905_vm5, %v12204_v26  ;;  %vm1978_vm6 = vcmp.lt.s32.totalorder %v1673_v50, 31  ;;  %v10657_v50 = vld [vmem:[#allocation14 + $0x1f8] sm:$0xff]  }
 0x2aa   : > { %v12214_v19 = vmax.f32 %v1470_v60, 0.0  ;;  %v1392_v0 = vmul.f32 %v11827_v61, %v1188_v8  ;;  %10052 = vmatprep.mubr.bf16.mxu0 %v11934_v57  ;;  %9677 = vmatmul.mubr.bf16.gmra.mxu1 %v12210_v1  ;;  %vm12229_vm7 = vmpackc.low %vm1978_vm6, %vm11242_vm4 }
 0x2ab   : > { %10049 = vmatpush3.bf16.msra.mxu0 %v10647_v22  ;;  %v1190_v23 = vpop.f32.mrf.mxu0  ;;  %9728 = vmatprep.subr.bf16.mxu1 %v10655_v30  ;;  %v15999_v51 = vsel %vm12229_vm7, 4294967295, %v15998_v51 }
 0x2ac   : > { %v1471_v24 = vadd.f32 %v11829_v63, %v1392_v0  ;;  %10050 = vmatprep.subr.bf16.mxu0 %v10648_v47  ;;  %v12225_v60 = vpack.c.bf16 %v12214_v19, %v12212_v21  ;;  %9729 = vmatpush3.bf16.msra.mxu1 %v10655_v30  ;;  %16000 = vst [vmem:[#allocation73_spill] sm:$0xff] %v15999_v51  ;;  %v10675_v51 = vld [vmem:[#allocation14 + $0x128] sm:$0xff]  }
 0x2ad   : > { %v1191_v11 = vpop.f32.mrf.mxu0  ;;  %9730 = vmatprep.subr.bf16.mxu1 %v10656_v53 }
 0x2ae   : > { %15997 = vst [vmem:[#allocation72_spill] sm:$0xff] %v12225_v60  ;;  %v1393_v8 = vmul.f32 %v11827_v61, %v1191_v11  ;;  %v12233_v22 = vmax.f32 %v1471_v24, 0.0 }
 0x2af   : > { %10051 = vmatpush3.bf16.msra.mxu0 %v10648_v47  ;;  %v1193_v20 = vpop.f32.mrf.mxu0  ;;  %v1739_v47 = vrot.slane %v12214_v19, 7 }
 0x2b0   : > { %v1472_v35 = vadd.f32 %v11829_v63, %v1393_v8  ;;  %10196 = vmatprep.subr.bf16.mxu0 %v10657_v50  ;;  %v1757_v24 = vrot.slane %v12233_v22, 7  ;;  %v1721_v20 = vrot.slane %v12212_v21, 7  ;;  %9731 = vmatpush3.bf16.msra.mxu1 %v10656_v53 }
 0x2b1   : > { %v1196_v3 = vpop.f32.mrf.mxu0 }
 0x2b2   : > { %v12236_v0 = vmax.f32 %v1472_v35, 0.0  ;;  %v1394_v23 = vmul.f32 %v11827_v61, %v1196_v3  ;;  %10053 = vmatmul.mubr.msk.bf16.vlgmr.msra.gmra.mxu0 %vm12229_vm7, %v11945_v16  ;;  %v10658_v3 = vld [vmem:[#allocation14 + $0x1f0] sm:$0xff]   ;;  %v2019_v16 = vrot.slane %v12075_v43, 1 }
 0x2b3   : > { %10056 = vmatprep.mubr.bf16.mxu0 %v11983_v9  ;;  %v1198_v30 = vpop.f32.mrf.mxu0  ;;  %10197 = vmatpush3.bf16.msra.mxu0 %v10657_v50  ;;  %v10659_v9 = vld [vmem:[#allocation14 + $0x1e8] sm:$0xff]  }
 0x2b4   : > { %v1775_v11 = vrot.slane %v12236_v0, 7  ;;  %v12248_v8 = vpack.c.bf16 %v12236_v0, %v12233_v22  ;;  %v1473_v37 = vadd.f32 %v11829_v63, %v1394_v23  ;;  %v1830_v30 = vsel %vm1786_vm2, %v1721_v20, %v1739_v47  ;;  %10198 = vmatprep.subr.bf16.mxu0 %v10658_v3 }
 0x2b5   : > { %v1199_v35 = vpop.f32.mrf.mxu0  ;;  %v1812_v23 = vsel %vm1786_vm2, %v1739_v47, %v1757_v24  ;;  %v10660_v47 = vld [vmem:[#allocation14 + $0x1e0] sm:$0xff]  }
 0x2b6   : > { %16001 = vst [vmem:[#allocation74_spill] sm:$0xff] %v12248_v8  ;;  %v1395_v44 = vmul.f32 %v11827_v61, %v1199_v35  ;;  %v1848_v1 = vsel %vm1786_vm2, %v1775_v11, %v1721_v20  ;;  %v1794_v50 = vsel %vm1786_vm2, %v1757_v24, %v1775_v11  ;;  %v12267_v20 = vmax.f32 %v1473_v37, 0.0 }
 0x2b7   : > { %v1201_v38 = vpop.f32.mrf.mxu0  ;;  %v12260_v5 = vpack.c.bf16 %v1830_v30, %v1848_v1  ;;  %10199 = vmatpush3.bf16.msra.mxu0 %v10658_v3  ;;  %v12264_v35 = vpack.c.bf16 %v1794_v50, %v1812_v23  ;;  %v2001_v1 = vrot.slane %v12058_v17, 1  ;;  %v1983_v24 = vrot.slane %v12056_v13, 1  ;;  %v10662_v13 = vld [vmem:[#allocation14 + $0x1d8] sm:$0xff]  }
 0x2b8   : > { %v1474_v26 = vadd.f32 %v11829_v63, %v1395_v44  ;;  %10200 = vmatprep.subr.bf16.mxu0 %v10659_v9  ;;  %v2037_v17 = vrot.slane %v12078_v48, 1 }
 0x2b9   : > { %16002 = vst [vmem:[#allocation75_spill] sm:$0xff] %v12260_v5  ;;  %v1204_v38 = vpop.f32.mrf.mxu0  ;;  %16003 = vst [vmem:[#allocation76_spill] sm:$0xff] %v12264_v35  ;;  %9680 = vmatprep.mubr.msk.bf16.mxu1 %vm11905_vm5, %v12260_v5  ;;  %v2074_v30 = vsel %vm2051_vm1, %v2001_v1, %v2019_v16  ;;  %v2092_v53 = vsel %vm2051_vm1, %v1983_v24, %v2001_v1 }
 0x2ba   : > { %v12269_v57 = vmax.f32 %v1474_v26, 0.0  ;;  %v1396_v11 = vmul.f32 %v11827_v61, %v1204_v38  ;;  %10057 = vmatmul.mubr.msk.bf16.gmra.mxu0 %vm12229_vm7, %v11999_v34  ;;  %9681 = vmatmul.mubr.bf16.gmra.mxu1 %v12264_v35  ;;  %v2110_v1 = vsel %vm2051_vm1, %v2037_v17, %v1983_v24  ;;  %v10663_v24 = vld [vmem:[#allocation14 + $0x1d0] sm:$0xff]  }
 0x2bb   : > { %10060 = vmatprep.mubr.bf16.mxu0 %v12031_v32  ;;  %v1206_v44 = vpop.f32.mrf.mxu0  ;;  %10201 = vmatpush3.bf16.msra.mxu0 %v10659_v9  ;;  %v2038_v32 = vrot.slane %v12128_v4, 1 }
 0x2bc   : > { %v1475_v43 = vadd.f32 %v11829_v63, %v1396_v11  ;;  %v12284_v26 = vpack.c.bf16 %v12269_v57, %v12267_v20  ;;  %10202 = vmatprep.subr.bf16.mxu0 %v10660_v47  ;;  %v12296_v11 = vpack.c.bf16 %v2074_v30, %v2092_v53  ;;  %v12322_v53 = vld [vmem:[#allocation12] ss:$0 sm:$0xff] }
 0x2bd   : > { %v1207_v37 = vpop.f32.mrf.mxu0 }
 0x2be   : > { %16004 = vst [vmem:[#allocation77_spill] sm:$0xff] %v12284_v26  ;;  %v1397_v3 = vmul.f32 %v11827_v61, %v1207_v37  ;;  %v12291_v23 = vmax.f32 %v1475_v43, 0.0  ;;  %16005 = vst [vmem:[#allocation78_spill] sm:$0xff] %v12296_v11  ;;  %v2020_v61 = vrot.slane %v12124_v52, 1  ;;  %v12301_v37 = vld [vmem:[#allocation11] ss:$0 sm:$0xff] }
 0x2bf   : > { %v1209_v50 = vpop.f32.mrf.mxu0  ;;  %10203 = vmatpush3.bf16.msra.mxu0 %v10660_v47  ;;  %v1740_v43 = vrot.slane %v12269_v57, 7  ;;  %v2002_v47 = vrot.slane %v12108_v46, 1 }
 0x2c0   : > { %v1476_v38 = vadd.f32 %v11829_v63, %v1397_v3  ;;  %v2056_v63 = vsel %vm2051_vm1, %v2019_v16, %v2037_v17  ;;  %10204 = vmatprep.subr.bf16.mxu0 %v10662_v13  ;;  %v1758_v3 = vrot.slane %v12291_v23, 7  ;;  %v1722_v16 = vrot.slane %v12267_v20, 7 }
 0x2c1   : > { %v1212_v9 = vpop.f32.mrf.mxu0  ;;  %v1984_v17 = vrot.slane %v12106_v39, 1 }
 0x2c2   : > { %v12299_v44 = vmax.f32 %v1476_v38, 0.0  ;;  %v1398_v48 = vmul.f32 %v12301_v37, %v1212_v9  ;;  %10061 = vmatmul.mubr.msk.bf16.gmra.mxu0 %vm12229_vm7, %v12047_v62  ;;  %v1831_v5 = vsel %vm1786_vm2, %v1722_v16, %v1740_v43 }
 0x2c3   : > { %10064 = vmatprep.mubr.bf16.mxu0 %v12296_v11  ;;  %v1214_v52 = vpop.f32.mrf.mxu0  ;;  %10205 = vmatpush3.bf16.msra.mxu0 %v10662_v13  ;;  %v12332_v13 = vpack.c.bf16 %v2110_v1, %v2056_v63  ;;  %v12348_v1 = vld [vmem:[#allocation14 + $0xb8] sm:$0xff]  }
 0x2c4   : > { %v1776_v30 = vrot.slane %v12299_v44, 7  ;;  %v12318_v50 = vpack.c.bf16 %v12299_v44, %v12291_v23  ;;  %v1477_v9 = vadd.f32 %v12322_v53, %v1398_v48  ;;  %v2075_v52 = vsel %vm2051_vm1, %v2002_v47, %v2020_v61  ;;  %10206 = vmatprep.subr.bf16.mxu0 %v10663_v24  ;;  %9796 = vmatprep.subr.bf16.mxu1 %v12348_v1 }
 0x2c5   : > { %v1215_v38 = vpop.f32.mrf.mxu0  ;;  %16007 = vst [vmem:[#allocation80_spill] sm:$0xff] %v12332_v13 }
 0x2c6   : > { %16006 = vst [vmem:[#allocation79_spill] sm:$0xff] %v12318_v50  ;;  %v1399_v46 = vmul.f32 %v12301_v37, %v1215_v38  ;;  %v1849_v11 = vsel %vm1786_vm2, %v1776_v30, %v1722_v16  ;;  %v1795_v39 = vsel %vm1786_vm2, %v1758_v3, %v1776_v30  ;;  %v1813_v38 = vsel %vm1786_vm2, %v1740_v43, %v1758_v3  ;;  %v10664_v30 = vld [vmem:[#allocation14 + $0x1c8] sm:$0xff]  }
 0x2c7   : > { %v1217_v35 = vpop.f32.mrf.mxu0  ;;  %v12337_v62 = vpack.c.bf16 %v1831_v5, %v1849_v11  ;;  %v12344_v16 = vpack.c.bf16 %v1795_v39, %v1813_v38  ;;  %10207 = vmatpush3.bf16.msra.mxu0 %v10663_v24  ;;  %v2021_v5 = vrot.slane %v12177_v49, 1  ;;  %v12351_v11 = vmax.f32 %v1477_v9, 0.0 }
 0x2c8   : > { %v1478_v48 = vadd.f32 %v12322_v53, %v1399_v46  ;;  %v2093_v35 = vsel %vm2051_vm1, %v1984_v17, %v2002_v47  ;;  %v2003_v49 = vrot.slane %v12161_v25, 1  ;;  %10208 = vmatprep.subr.bf16.mxu0 %v10664_v30  ;;  %v2057_v3 = vsel %vm2051_vm1, %v2020_v61, %v2038_v32 }
 0x2c9   : > { %16008 = vst [vmem:[#allocation81_spill] sm:$0xff] %v12337_v62  ;;  %v1220_v34 = vpop.f32.mrf.mxu0  ;;  %16009 = vst [vmem:[#allocation82_spill] sm:$0xff] %v12344_v16  ;;  %v12346_v63 = vpack.c.bf16 %v2075_v52, %v2093_v35  ;;  %9684 = vmatprep.mubr.msk.bf16.mxu1 %vm11905_vm5, %v12337_v62  ;;  %v2111_v24 = vsel %vm2051_vm1, %v2038_v32, %v1984_v17  ;;  %v10665_v52 = vld [vmem:[#allocation14 + $0x1c0] sm:$0xff]   ;;  %v1985_v25 = vrot.slane %v12159_v12, 1  ;;  %v2039_v38 = vrot.slane %v12181_v54, 1 }
 0x2ca   : > { %v12353_v46 = vmax.f32 %v1478_v48, 0.0  ;;  %v1400_v43 = vmul.f32 %v12301_v37, %v1220_v34  ;;  %10065 = vmatmul.mubr.msk.bf16.gmra.mxu0 %vm12229_vm7, %v12332_v13  ;;  %9685 = vmatmul.mubr.bf16.gmra.mxu1 %v12344_v16  ;;  %v2076_v48 = vsel %vm2051_vm1, %v2003_v49, %v2021_v5 }
 0x2cb   : > { %16010 = vst [vmem:[#allocation83_spill] sm:$0xff] %v12346_v63  ;;  %10068 = vmatprep.mubr.bf16.mxu0 %v12346_v63  ;;  %v1222_v4 = vpop.f32.mrf.mxu0  ;;  %10209 = vmatpush3.bf16.msra.mxu0 %v10664_v30  ;;  %v2094_v32 = vsel %vm2051_vm1, %v1985_v25, %v2003_v49  ;;  %v2022_v30 = vrot.slane %v12233_v22, 1  ;;  %v2112_v49 = vsel %vm2051_vm1, %v2039_v38, %v1985_v25  ;;  %v2004_v22 = vrot.slane %v12214_v19, 1 }
 0x2cc   : > { %v1479_v47 = vadd.f32 %v12322_v53, %v1400_v43  ;;  %v12369_v34 = vpack.c.bf16 %v12353_v46, %v12351_v11  ;;  %10210 = vmatprep.subr.bf16.mxu0 %v10665_v52  ;;  %v12383_v4 = vpack.c.bf16 %v2111_v24, %v2057_v3  ;;  %v12387_v12 = vpack.c.bf16 %v2076_v48, %v2094_v32 }
 0x2cd   : > { %v1223_v9 = vpop.f32.mrf.mxu0  ;;  %v1741_v3 = vrot.slane %v12353_v46, 7  ;;  %v1986_v25 = vrot.slane %v12212_v21, 1  ;;  %v2077_v19 = vsel %vm2051_vm1, %v2004_v22, %v2022_v30 }
 0x2ce   : > { %16011 = vst [vmem:[#allocation84_spill] sm:$0xff] %v12369_v34  ;;  %v1401_v39 = vmul.f32 %v12301_v37, %v1223_v9  ;;  %v12380_v43 = vmax.f32 %v1479_v47, 0.0  ;;  %16012 = vst [vmem:[#allocation85_spill] sm:$0xff] %v12383_v4  ;;  %v2058_v47 = vsel %vm2051_vm1, %v2021_v5, %v2039_v38  ;;  %v1723_v5 = vrot.slane %v12351_v11, 7 }
 0x2cf   : > { %v1225_v35 = vpop.f32.mrf.mxu0  ;;  %16013 = vst [vmem:[#allocation86_spill] sm:$0xff] %v12387_v12  ;;  %10211 = vmatpush3.bf16.msra.mxu0 %v10665_v52  ;;  %v12419_v16 = vpack.c.bf16 %v2112_v49, %v2058_v47  ;;  %v2023_v49 = vrot.slane %v12291_v23, 1 }
 0x2d0   : > { %v1480_v61 = vadd.f32 %v12322_v53, %v1401_v39  ;;  %v1759_v52 = vrot.slane %v12380_v43, 7 }
 0x2d1   : > { %v1228_v17 = vpop.f32.mrf.mxu0  ;;  %16015 = vst [vmem:[#allocation88_spill] sm:$0xff] %v12419_v16 }
 0x2d2   : > { %v12390_v9 = vmax.f32 %v1480_v61, 0.0  ;;  %v1402_v54 = vmul.f32 %v12301_v37, %v1228_v17  ;;  %10069 = vmatmul.mubr.msk.bf16.gmra.mxu0 %vm12229_vm7, %v12383_v4  ;;  %v1832_v17 = vsel %vm1786_vm2, %v1723_v5, %v1741_v3 }
 0x2d3   : > { %10072 = vmatprep.mubr.bf16.mxu0 %v12387_v12  ;;  %v1230_v24 = vpop.f32.mrf.mxu0  ;;  %v2040_v12 = vrot.slane %v12236_v0, 1  ;;  %v2005_v0 = vrot.slane %v12269_v57, 1 }
 0x2d4   : > { %v1777_v39 = vrot.slane %v12390_v9, 7  ;;  %v12407_v48 = vpack.c.bf16 %v12390_v9, %v12380_v43  ;;  %v1481_v38 = vadd.f32 %v12322_v53, %v1402_v54 }
 0x2d5   : > { %v1231_v35 = vpop.f32.mrf.mxu0  ;;  %v2078_v57 = vsel %vm2051_vm1, %v2005_v0, %v2023_v49 }
 0x2d6   : > { %16014 = vst [vmem:[#allocation87_spill] sm:$0xff] %v12407_v48  ;;  %v1403_v61 = vmul.f32 %v12301_v37, %v1231_v35  ;;  %v1850_v24 = vsel %vm1786_vm2, %v1777_v39, %v1723_v5  ;;  %v1796_v62 = vsel %vm1786_vm2, %v1759_v52, %v1777_v39  ;;  %v1814_v35 = vsel %vm1786_vm2, %v1741_v3, %v1759_v52 }
 0x2d7   : > { %v1233_v32 = vpop.f32.mrf.mxu0  ;;  %v12424_v54 = vpack.c.bf16 %v1832_v17, %v1850_v24  ;;  %v12431_v63 = vpack.c.bf16 %v1796_v62, %v1814_v35  ;;  %v12436_v39 = vmax.f32 %v1481_v38, 0.0  ;;  %v2059_v3 = vsel %vm2051_vm1, %v2022_v30, %v2040_v12 }
 0x2d8   : > { %v1482_v21 = vadd.f32 %v12322_v53, %v1403_v61  ;;  %v2095_v32 = vsel %vm2051_vm1, %v1986_v25, %v2004_v22  ;;  %v2113_v22 = vsel %vm2051_vm1, %v2040_v12, %v1986_v25  ;;  %v1987_v38 = vrot.slane %v12267_v20, 1 }
 0x2d9   : > { %16016 = vst [vmem:[#allocation89_spill] sm:$0xff] %v12424_v54  ;;  %v1236_v4 = vpop.f32.mrf.mxu0  ;;  %16017 = vst [vmem:[#allocation90_spill] sm:$0xff] %v12431_v63  ;;  %v12433_v47 = vpack.c.bf16 %v2077_v19, %v2095_v32  ;;  %9688 = vmatprep.mubr.msk.bf16.mxu1 %vm11905_vm5, %v12424_v54  ;;  %v2041_v17 = vrot.slane %v12299_v44, 1  ;;  %v12467_v32 = vpack.c.bf16 %v2113_v22, %v2059_v3  ;;  %v2024_v20 = vrot.slane %v12380_v43, 1 }
 0x2da   : > { %v12438_v5 = vmax.f32 %v1482_v21, 0.0  ;;  %v1404_v61 = vmul.f32 %v12301_v37, %v1236_v4  ;;  %10073 = vmatmul.mubr.msk.bf16.gmra.mxu0 %vm12229_vm7, %v12419_v16  ;;  %9689 = vmatmul.mubr.bf16.gmra.mxu1 %v12431_v63  ;;  %v2096_v12 = vsel %vm2051_vm1, %v1987_v38, %v2005_v0  ;;  %v2006_v43 = vrot.slane %v12353_v46, 1 }
 0x2db   : > { %16018 = vst [vmem:[#allocation91_spill] sm:$0xff] %v12433_v47  ;;  %10076 = vmatprep.mubr.bf16.mxu0 %v12433_v47  ;;  %v1238_v62 = vpop.f32.mrf.mxu0  ;;  %16020 = vst [vmem:[#allocation93_spill] sm:$0xff] %v12467_v32  ;;  %v12471_v25 = vpack.c.bf16 %v2078_v57, %v2096_v12  ;;  %v2060_v44 = vsel %vm2051_vm1, %v2023_v49, %v2041_v17  ;;  %v1724_v49 = vrot.slane %v12436_v39, 7  ;;  %v2042_v54 = vrot.slane %v12390_v9, 1 }
 0x2dc   : > { %v1483_v23 = vadd.f32 %v12322_v53, %v1404_v61  ;;  %v12453_v4 = vpack.c.bf16 %v12438_v5, %v12436_v39  ;;  %v1742_v0 = vrot.slane %v12438_v5, 7  ;;  %v2079_v46 = vsel %vm2051_vm1, %v2006_v43, %v2024_v20 }
 0x2dd   : > { %v1239_v52 = vpop.f32.mrf.mxu0  ;;  %16021 = vst [vmem:[#allocation94_spill] sm:$0xff] %v12471_v25  ;;  %v2007_v9 = vrot.slane %v12438_v5, 1 }
 0x2de   : > { %16019 = vst [vmem:[#allocation92_spill] sm:$0xff] %v12453_v4  ;;  %v1405_v19 = vmul.f32 %v12301_v37, %v1239_v52  ;;  %v12464_v21 = vmax.f32 %v1483_v23, 0.0  ;;  %v2114_v23 = vsel %vm2051_vm1, %v2041_v17, %v1987_v38  ;;  %v1988_v38 = vrot.slane %v12351_v11, 1 }
 0x2df   : > { %v1241_v24 = vpop.f32.mrf.mxu0  ;;  %v1833_v12 = vsel %vm1786_vm2, %v1724_v49, %v1742_v0 }
 0x2e0   : > { %v1484_v35 = vadd.f32 %v12322_v53, %v1405_v19  ;;  %v1760_v22 = vrot.slane %v12464_v21, 7 }
 0x2e1   : > { %v1244_v30 = vpop.f32.mrf.mxu0 }
 0x2e2   : > { %v12474_v61 = vmax.f32 %v1484_v35, 0.0  ;;  %v1406_v62 = vmul.f32 %v12301_v37, %v1244_v30  ;;  %10077 = vmatmul.mubr.msk.bf16.gmra.mxu0 %vm12229_vm7, %v12467_v32 }
 0x2e3   : > { %10080 = vmatprep.mubr.bf16.mxu0 %v12471_v25  ;;  %v1246_v3 = vpop.f32.mrf.mxu0 }
 0x2e4   : > { %v1778_v52 = vrot.slane %v12474_v61, 7  ;;  %v12491_v19 = vpack.c.bf16 %v12474_v61, %v12464_v21  ;;  %v1485_v17 = vadd.f32 %v12322_v53, %v1406_v62  ;;  %v12503_v3 = vpack.c.bf16 %v2114_v23, %v2060_v44 }
 0x2e5   : > { %v1247_v57 = vpop.f32.mrf.mxu0  ;;  %v2025_v23 = vrot.slane %v12464_v21, 1 }
 0x2e6   : > { %16022 = vst [vmem:[#allocation95_spill] sm:$0xff] %v12491_v19  ;;  %v1407_v24 = vmul.f32 %v12301_v37, %v1247_v57  ;;  %v1851_v30 = vsel %vm1786_vm2, %v1778_v52, %v1724_v49  ;;  %16023 = vst [vmem:[#allocation96_spill] sm:$0xff] %v12503_v3  ;;  %v1797_v63 = vsel %vm1786_vm2, %v1760_v22, %v1778_v52  ;;  %v12520_v52 = vmax.f32 %v1485_v17, 0.0 }
 0x2e7   : > { %v1249_v35 = vpop.f32.mrf.mxu0  ;;  %v12508_v62 = vpack.c.bf16 %v1833_v12, %v1851_v30  ;;  %v1815_v57 = vsel %vm1786_vm2, %v1742_v0, %v1760_v22  ;;  %v1989_v17 = vrot.slane %v12436_v39, 1  ;;  %v2080_v5 = vsel %vm2051_vm1, %v2007_v9, %v2025_v23 }
 0x2e8   : > { %v1486_v11 = vadd.f32 %v12322_v53, %v1407_v24  ;;  %v2097_v35 = vsel %vm2051_vm1, %v1988_v38, %v2006_v43  ;;  %v12515_v32 = vpack.c.bf16 %v1797_v63, %v1815_v57  ;;  %v2115_v43 = vsel %vm2051_vm1, %v2042_v54, %v1988_v38 }
 0x2e9   : > { %16024 = vst [vmem:[#allocation97_spill] sm:$0xff] %v12508_v62  ;;  %v1252_v25 = vpop.f32.mrf.mxu0  ;;  %v12517_v44 = vpack.c.bf16 %v2079_v46, %v2097_v35  ;;  %9692 = vmatprep.mubr.msk.bf16.mxu1 %vm11905_vm5, %v12508_v62  ;;  %v2043_v30 = vrot.slane %v12474_v61, 1 }
 0x2ea   : > { %16025 = vst [vmem:[#allocation98_spill] sm:$0xff] %v12515_v32  ;;  %v1558_v49 = vmax.f32 %v1486_v11, 0.0  ;;  %v1408_v24 = vmul.f32 %v12301_v37, %v1252_v25  ;;  %10081 = vmatmul.mubr.msk.bf16.gmra.mxu0 %vm12229_vm7, %v12503_v3  ;;  %9693 = vmatmul.mubr.bf16.gmra.mxu1 %v12515_v32  ;;  %v2061_v25 = vsel %vm2051_vm1, %v2024_v20, %v2042_v54 }
 0x2eb   : > { %16026 = vst [vmem:[#allocation99_spill] sm:$0xff] %v12517_v44  ;;  %10084 = vmatprep.mubr.bf16.mxu0 %v12517_v44  ;;  %v1254_v63 = vpop.f32.mrf.mxu0  ;;  %v12546_v35 = vpack.c.bf16 %v2115_v43, %v2061_v25  ;;  %v2098_v20 = vsel %vm2051_vm1, %v1989_v17, %v2007_v9  ;;  %v2062_v61 = vsel %vm2051_vm1, %v2025_v23, %v2043_v30 }
 0x2ec   : > { %v1487_v21 = vadd.f32 %v12322_v53, %v1408_v24  ;;  %v12534_v0 = vpack.c.bf16 %v1558_v49, %v12520_v52  ;;  %v12550_v38 = vpack.c.bf16 %v2080_v5, %v2098_v20  ;;  %v1743_v25 = vrot.slane %v1558_v49, 7 }
 0x2ed   : > { %v1255_v22 = vpop.f32.mrf.mxu0  ;;  %16028 = vst [vmem:[#allocation101_spill] sm:$0xff] %v12546_v35  ;;  %v2008_v43 = vrot.slane %v1558_v49, 1  ;;  %v1990_v20 = vrot.slane %v12520_v52, 1 }
 0x2ee   : > { %16027 = vst [vmem:[#allocation100_spill] sm:$0xff] %v12534_v0  ;;  %v1559_v46 = vmax.f32 %v1487_v21, 0.0  ;;  %v1409_v12 = vmul.f32 %v12301_v37, %v1255_v22  ;;  %16029 = vst [vmem:[#allocation102_spill] sm:$0xff] %v12550_v38  ;;  %v2116_v21 = vsel %vm2051_vm1, %v2043_v30, %v1989_v17 }
 0x2ef   : > { %v1257_v11 = vpop.f32.mrf.mxu0 }
 0x2f0   : > { %v1488_v57 = vadd.f32 %v12322_v53, %v1409_v12  ;;  %v2026_v39 = vrot.slane %v1559_v46, 1  ;;  %v1761_v22 = vrot.slane %v1559_v46, 7  ;;  %v1725_v11 = vrot.slane %v12520_v52, 7 }
 0x2f1   : > { %v1260_v54 = vpop.f32.mrf.mxu0 }
 0x2f2   : > { %v1560_v24 = vmax.f32 %v1488_v57, 0.0  ;;  %v1410_v63 = vmul.f32 %v12301_v37, %v1260_v54  ;;  %10085 = vmatmul.mubr.msk.bf16.gmra.mxu0 %vm12229_vm7, %v12546_v35  ;;  %v2081_v17 = vsel %vm2051_vm1, %v2008_v43, %v2026_v39  ;;  %v1834_v49 = vsel %vm1786_vm2, %v1725_v11, %v1743_v25 }
 0x2f3   : > { %10088 = vmatprep.mubr.bf16.mxu0 %v12550_v38  ;;  %v1262_v9 = vpop.f32.mrf.mxu0 }
 0x2f4   : > { %v1779_v12 = vrot.slane %v1560_v24, 7  ;;  %v12561_v5 = vpack.c.bf16 %v1560_v24, %v1559_v46  ;;  %v1489_v54 = vadd.f32 %v12322_v53, %v1410_v63  ;;  %v12573_v9 = vpack.c.bf16 %v2116_v21, %v2062_v61 }
 0x2f5   : > { %v1263_v57 = vpop.f32.mrf.mxu0  ;;  %v2044_v62 = vrot.slane %v1560_v24, 1 }
 0x2f6   : > { %16030 = vst [vmem:[#allocation103_spill] sm:$0xff] %v12561_v5  ;;  %v1411_v23 = vmul.f32 %v12301_v37, %v1263_v57  ;;  %v1852_v46 = vsel %vm1786_vm2, %v1779_v12, %v1725_v11  ;;  %16031 = vst [vmem:[#allocation104_spill] sm:$0xff] %v12573_v9  ;;  %v1798_v32 = vsel %vm1786_vm2, %v1761_v22, %v1779_v12  ;;  %v1561_v61 = vmax.f32 %v1489_v54, 0.0 }
 0x2f7   : > { %v1265_v30 = vpop.f32.mrf.mxu0  ;;  %v12578_v63 = vpack.c.bf16 %v1834_v49, %v1852_v46  ;;  %v1816_v57 = vsel %vm1786_vm2, %v1743_v25, %v1761_v22 }
 0x2f8   : > { %v1490_v52 = vadd.f32 %v12322_v53, %v1411_v23  ;;  %v2099_v30 = vsel %vm2051_vm1, %v1990_v20, %v2008_v43  ;;  %v12584_v35 = vpack.c.bf16 %v1798_v32, %v1816_v57  ;;  %v2117_v43 = vsel %vm2051_vm1, %v2044_v62, %v1990_v20 }
 0x2f9   : > { %16032 = vst [vmem:[#allocation105_spill] sm:$0xff] %v12578_v63  ;;  %v1268_v38 = vpop.f32.mrf.mxu0  ;;  %v12586_v11 = vpack.c.bf16 %v2081_v17, %v2099_v30  ;;  %9696 = vmatprep.mubr.msk.bf16.mxu1 %vm11905_vm5, %v12578_v63  ;;  %v1991_v46 = vrot.slane %v1561_v61, 1 }
 0x2fa   : > { %16033 = vst [vmem:[#allocation106_spill] sm:$0xff] %v12584_v35  ;;  %v1562_v21 = vmax.f32 %v1490_v52, 0.0  ;;  %v1412_v12 = vmul.f32 %v12301_v37, %v1268_v38  ;;  %10089 = vmatmul.mubr.msk.bf16.gmra.mxu0 %vm12229_vm7, %v12573_v9  ;;  %9697 = vmatmul.mubr.bf16.gmra.mxu1 %v12584_v35  ;;  %v2063_v38 = vsel %vm2051_vm1, %v2026_v39, %v2044_v62 }
 0x2fb   : > { %16034 = vst [vmem:[#allocation107_spill] sm:$0xff] %v12586_v11  ;;  %10092 = vmatprep.mubr.bf16.mxu0 %v12586_v11  ;;  %v1270_v32 = vpop.f32.mrf.mxu0  ;;  %v12606_v30 = vpack.c.bf16 %v2117_v43, %v2063_v38 }
 0x2fc   : > { %v1491_v24 = vadd.f32 %v12322_v53, %v1412_v12  ;;  %v12598_v25 = vpack.c.bf16 %v1562_v21, %v1561_v61  ;;  %v2009_v54 = vrot.slane %v1562_v21, 1  ;;  %v1744_v20 = vrot.slane %v1562_v21, 7 }
 0x2fd   : > { %v1271_v22 = vpop.f32.mrf.mxu0  ;;  %16036 = vst [vmem:[#allocation109_spill] sm:$0xff] %v12606_v30 }
 0x2fe   : > { %16035 = vst [vmem:[#allocation108_spill] sm:$0xff] %v12598_v25  ;;  %v1563_v23 = vmax.f32 %v1491_v24, 0.0  ;;  %v1413_v17 = vmul.f32 %v12301_v37, %v1271_v22  ;;  %v2100_v39 = vsel %vm2051_vm1, %v1991_v46, %v2009_v54 }
 0x2ff   : > { %v1273_v49 = vpop.f32.mrf.mxu0 }
 0x300   : > { %v2027_v52 = vrot.slane %v1563_v23, 1  ;;  %v1492_v57 = vadd.f32 %v12322_v53, %v1413_v17  ;;  %v1762_v38 = vrot.slane %v1563_v23, 7 }
 0x301   : > { %v1276_v12 = vpop.f32.mrf.mxu0 }
 0x302   : > { %v1564_v32 = vmax.f32 %v1492_v57, 0.0  ;;  %v1414_v35 = vmul.f32 %v12301_v37, %v1276_v12  ;;  %10093 = vmatmul.mubr.msk.bf16.gmra.mxu0 %vm12229_vm7, %v12606_v30  ;;  %v2082_v62 = vsel %vm2051_vm1, %v2009_v54, %v2027_v52  ;;  %v1726_v57 = vrot.slane %v1561_v61, 7 }
 0x303   : > { %v1278_v24 = vpop.f32.mrf.mxu0  ;;  %v12616_v22 = vpack.c.bf16 %v2082_v62, %v2100_v39 }
 0x304   : > { %v1780_v43 = vrot.slane %v1564_v32, 7  ;;  %v2045_v17 = vrot.slane %v1564_v32, 1  ;;  %v12618_v49 = vpack.c.bf16 %v1564_v32, %v1563_v23  ;;  %v1493_v21 = vadd.f32 %v12322_v53, %v1414_v35 }
 0x305   : > { %16037 = vst [vmem:[#allocation110_spill] sm:$0xff] %v12616_v22  ;;  %v1279_v12 = vpop.f32.mrf.mxu0  ;;  %10096 = vmatprep.mubr.bf16.mxu0 %v12616_v22  ;;  %v1835_v39 = vsel %vm1786_vm2, %v1726_v57, %v1744_v20  ;;  %v1817_v35 = vsel %vm1786_vm2, %v1744_v20, %v1762_v38 }
 0x306   : > { %16038 = vst [vmem:[#allocation111_spill] sm:$0xff] %v12618_v49  ;;  %v2064_v63 = vsel %vm2051_vm1, %v2027_v52, %v2045_v17  ;;  %v2118_v30 = vsel %vm2051_vm1, %v2045_v17, %v1991_v46  ;;  %v1415_v54 = vmul.f32 %v12301_v37, %v1279_v12  ;;  %v1853_v61 = vsel %vm1786_vm2, %v1780_v43, %v1726_v57 }
 0x307   : > { %v1281_v62 = vpop.f32.mrf.mxu0  ;;  %v12631_v23 = vpack.c.bf16 %v2118_v30, %v2064_v63  ;;  %v1799_v32 = vsel %vm1786_vm2, %v1762_v38, %v1780_v43  ;;  %v12636_v24 = vpack.c.bf16 %v1835_v39, %v1853_v61  ;;  %v1565_v12 = vmax.f32 %v1493_v21, 0.0 }
 0x308   : > { %v1494_v52 = vadd.f32 %v12322_v53, %v1415_v54  ;;  %v12640_v17 = vpack.c.bf16 %v1799_v32, %v1817_v35 }
 0x309   : > { %16039 = vst [vmem:[#allocation112_spill] sm:$0xff] %v12631_v23  ;;  %16040 = vst [vmem:[#allocation113_spill] sm:$0xff] %v12636_v24  ;;  %v1284_v46 = vpop.f32.mrf.mxu0  ;;  %9700 = vmatprep.mubr.msk.bf16.mxu1 %vm11905_vm5, %v12636_v24  ;;  %v1992_v39 = vrot.slane %v1565_v12, 1 }
 0x30a   : > { %16041 = vst [vmem:[#allocation114_spill] sm:$0xff] %v12640_v17  ;;  %v1566_v62 = vmax.f32 %v1494_v52, 0.0  ;;  %v1416_v22 = vmul.f32 %v12301_v37, %v1284_v46  ;;  %10097 = vmatmul.mubr.msk.bf16.gmra.mxu0 %vm12229_vm7, %v12631_v23  ;;  %9701 = vmatmul.mubr.bf16.gmra.mxu1 %v12640_v17 }
 0x30b   : > { %v1286_v63 = vpop.f32.mrf.mxu0 }
 0x30c   : > { %v1495_v30 = vadd.f32 %v12322_v53, %v1416_v22  ;;  %v12651_v20 = vpack.c.bf16 %v1566_v62, %v1565_v12  ;;  %v2010_v43 = vrot.slane %v1566_v62, 1  ;;  %v1745_v17 = vrot.slane %v1566_v62, 7 }
 0x30d   : > { %v1287_v38 = vpop.f32.mrf.mxu0 }
 0x30e   : > { %16042 = vst [vmem:[#allocation115_spill] sm:$0xff] %v12651_v20  ;;  %v1567_v57 = vmax.f32 %v1495_v30, 0.0  ;;  %v1417_v21 = vmul.f32 %v12301_v37, %v1287_v38  ;;  %v2101_v22 = vsel %vm2051_vm1, %v1992_v39, %v2010_v43 }
 0x30f   : > { %v1289_v54 = vpop.f32.mrf.mxu0 }
 0x310   : > { %v2028_v61 = vrot.slane %v1567_v57, 1  ;;  %v1496_v32 = vadd.f32 %v12322_v53, %v1417_v21  ;;  %v1763_v38 = vrot.slane %v1567_v57, 7  ;;  %v1727_v21 = vrot.slane %v1565_v12, 7 }
 0x311   : > { %v1292_v52 = vpop.f32.mrf.mxu0 }
 0x312   : > { %v1568_v35 = vmax.f32 %v1496_v32, 0.0  ;;  %v1418_v46 = vmul.f32 %v12301_v37, %v1292_v52  ;;  %v2083_v63 = vsel %vm2051_vm1, %v2010_v43, %v2028_v61 }
 0x313   : > { %v1294_v24 = vpop.f32.mrf.mxu0  ;;  %v12660_v30 = vpack.c.bf16 %v2083_v63, %v2101_v22  ;;  %v1836_v63 = vsel %vm1786_vm2, %v1727_v21, %v1745_v17 }
 0x314   : > { %v1781_v54 = vrot.slane %v1568_v35, 7  ;;  %v2046_v23 = vrot.slane %v1568_v35, 1  ;;  %v12662_v11 = vpack.c.bf16 %v1568_v35, %v1567_v57  ;;  %v1497_v62 = vadd.f32 %v12322_v53, %v1418_v46 }
 0x315   : > { %16043 = vst [vmem:[#allocation116_spill] sm:$0xff] %v12660_v30  ;;  %v1295_v9 = vpop.f32.mrf.mxu0  ;;  %10100 = vmatprep.mubr.bf16.mxu0 %v12660_v30 }
 0x316   : > { %16044 = vst [vmem:[#allocation117_spill] sm:$0xff] %v12662_v11  ;;  %v2065_v32 = vsel %vm2051_vm1, %v2028_v61, %v2046_v23  ;;  %v2119_v52 = vsel %vm2051_vm1, %v2046_v23, %v1992_v39  ;;  %v1419_v24 = vmul.f32 %v12301_v37, %v1295_v9  ;;  %v1854_v12 = vsel %vm1786_vm2, %v1781_v54, %v1727_v21 }
 0x317   : > { %v1297_v43 = vpop.f32.mrf.mxu0  ;;  %v12675_v57 = vpack.c.bf16 %v2119_v52, %v2065_v32  ;;  %v1800_v35 = vsel %vm1786_vm2, %v1763_v38, %v1781_v54  ;;  %v12680_v22 = vpack.c.bf16 %v1836_v63, %v1854_v12  ;;  %v1818_v23 = vsel %vm1786_vm2, %v1745_v17, %v1763_v38 }
 0x318   : > { %v1498_v61 = vadd.f32 %v12322_v53, %v1419_v24  ;;  %v12687_v39 = vpack.c.bf16 %v1800_v35, %v1818_v23  ;;  %v1569_v46 = vmax.f32 %v1497_v62, 0.0 }
 0x319   : > { %16045 = vst [vmem:[#allocation118_spill] sm:$0xff] %v12675_v57  ;;  %16046 = vst [vmem:[#allocation119_spill] sm:$0xff] %v12680_v22  ;;  %v1300_v9 = vpop.f32.mrf.mxu0  ;;  %10101 = vmatmul.mubr.msk.bf16.gmra.mxu0 %vm12229_vm7, %v12675_v57  ;;  %9704 = vmatprep.mubr.msk.bf16.mxu1 %vm11905_vm5, %v12680_v22 }
 0x31a   : > { %16047 = vst [vmem:[#allocation120_spill] sm:$0xff] %v12687_v39  ;;  %v1570_v21 = vmax.f32 %v1498_v61, 0.0  ;;  %v1420_v32 = vmul.f32 %v12301_v37, %v1300_v9  ;;  %9705 = vmatmul.mubr.bf16.gmra.mxu1 %v12687_v39  ;;  %v1993_v12 = vrot.slane %v1569_v46, 1 }
 0x31b   : > { %v1302_v54 = vpop.f32.mrf.mxu0 }
 0x31c   : > { %v1499_v17 = vadd.f32 %v12322_v53, %v1420_v32  ;;  %v12695_v38 = vpack.c.bf16 %v1570_v21, %v1569_v46  ;;  %v2011_v24 = vrot.slane %v1570_v21, 1  ;;  %v1746_v39 = vrot.slane %v1570_v21, 7 }
 0x31d   : > { %v1303_v52 = vpop.f32.mrf.mxu0 }
 0x31e   : > { %16048 = vst [vmem:[#allocation121_spill] sm:$0xff] %v12695_v38  ;;  %v1571_v43 = vmax.f32 %v1499_v17, 0.0  ;;  %v1421_v63 = vmul.f32 %v12301_v37, %v1303_v52  ;;  %v2102_v32 = vsel %vm2051_vm1, %v1993_v12, %v2011_v24 }
 0x31f   : > { %v1305_v62 = vpop.f32.mrf.mxu0 }
 0x320   : > { %v2029_v35 = vrot.slane %v1571_v43, 1  ;;  %v1500_v61 = vadd.f32 %v12322_v53, %v1421_v63  ;;  %v1764_v52 = vrot.slane %v1571_v43, 7  ;;  %v1728_v63 = vrot.slane %v1569_v46, 7 }
 0x321   : > { %v1308_v23 = vpop.f32.mrf.mxu0 }
 0x322   : > { %v1572_v9 = vmax.f32 %v1500_v61, 0.0  ;;  %v1422_v22 = vmul.f32 %v12301_v37, %v1308_v23  ;;  %v2084_v54 = vsel %vm2051_vm1, %v2011_v24, %v2029_v35 }
 0x323   : > { %v1310_v57 = vpop.f32.mrf.mxu0  ;;  %v12704_v17 = vpack.c.bf16 %v2084_v54, %v2102_v32  ;;  %v1837_v54 = vsel %vm1786_vm2, %v1728_v63, %v1746_v39 }
 0x324   : > { %v1782_v62 = vrot.slane %v1572_v9, 7  ;;  %v2047_v30 = vrot.slane %v1572_v9, 1  ;;  %v12706_v44 = vpack.c.bf16 %v1572_v9, %v1571_v43  ;;  %v1501_v21 = vadd.f32 %v12322_v53, %v1422_v22 }
 0x325   : > { %16049 = vst [vmem:[#allocation122_spill] sm:$0xff] %v12704_v17  ;;  %v1311_v3 = vpop.f32.mrf.mxu0  ;;  %10104 = vmatprep.mubr.bf16.mxu0 %v12704_v17 }
 0x326   : > { %16050 = vst [vmem:[#allocation123_spill] sm:$0xff] %v12706_v44  ;;  %v2066_v61 = vsel %vm2051_vm1, %v2029_v35, %v2047_v30  ;;  %v2120_v23 = vsel %vm2051_vm1, %v2047_v30, %v1993_v12  ;;  %v1423_v57 = vmul.f32 %v12301_v37, %v1311_v3  ;;  %v1855_v46 = vsel %vm1786_vm2, %v1782_v62, %v1728_v63  ;;  %v12728_v3 = vpop.f32.mrf.mxu1 }
 0x327   : > { %v1313_v24 = vpop.f32.mrf.mxu0  ;;  %v12719_v43 = vpack.c.bf16 %v2120_v23, %v2066_v61  ;;  %v1801_v9 = vsel %vm1786_vm2, %v1764_v52, %v1782_v62  ;;  %v12724_v32 = vpack.c.bf16 %v1837_v54, %v1855_v46  ;;  %v1819_v30 = vsel %vm1786_vm2, %v1746_v39, %v1764_v52  ;;  %16053 = vst [vmem:[#allocation126_spill] sm:$0xff] %v12728_v3 }
 0x328   : > { %v1502_v35 = vadd.f32 %v12322_v53, %v1423_v57  ;;  %v12733_v12 = vpack.c.bf16 %v1801_v9, %v1819_v30  ;;  %v1573_v63 = vmax.f32 %v1501_v21, 0.0  ;;  %v12743_v57 = vpop.f32.mrf.mxu1 }
 0x329   : > { %16051 = vst [vmem:[#allocation124_spill] sm:$0xff] %v12719_v43  ;;  %16052 = vst [vmem:[#allocation125_spill] sm:$0xff] %v12724_v32  ;;  %v1316_v22 = vpop.f32.mrf.mxu0  ;;  %10105 = vmatmul.mubr.msk.bf16.gmra.mxu0 %vm12229_vm7, %v12719_v43  ;;  %9708 = vmatprep.mubr.msk.bf16.mxu1 %vm11905_vm5, %v12724_v32 }
 0x32a   : > { %16054 = vst [vmem:[#allocation127_spill] sm:$0xff] %v12733_v12  ;;  %v1574_v61 = vmax.f32 %v1502_v35, 0.0  ;;  %v1424_v62 = vmul.f32 %v12301_v37, %v1316_v22  ;;  %9709 = vmatmul.mubr.bf16.gmra.mxu1 %v12733_v12  ;;  %16056 = vst [vmem:[#allocation129_spill] sm:$0xff] %v12743_v57  ;;  %v1994_v35 = vrot.slane %v1573_v63, 1  ;;  %v12747_v32 = vpop.f32.mrf.mxu1 }
 0x32b   : > { %v1318_v39 = vpop.f32.mrf.mxu0  ;;  %16057 = vst [vmem:[#allocation130_spill] sm:$0xff] %v12747_v32 }
 0x32c   : > { %v1503_v52 = vadd.f32 %v12322_v53, %v1424_v62  ;;  %v12741_v23 = vpack.c.bf16 %v1574_v61, %v1573_v63  ;;  %v2012_v54 = vrot.slane %v1574_v61, 1 }
 0x32d   : > { %v1319_v24 = vpop.f32.mrf.mxu0 }
 0x32e   : > { %16055 = vst [vmem:[#allocation128_spill] sm:$0xff] %v12741_v23  ;;  %v1575_v46 = vmax.f32 %v1503_v52, 0.0  ;;  %v1425_v21 = vmul.f32 %v12301_v37, %v1319_v24  ;;  %v2103_v57 = vsel %vm2051_vm1, %v1994_v35, %v2012_v54  ;;  %v1747_v52 = vrot.slane %v1574_v61, 7 }
 0x32f   : > { %v1321_v9 = vpop.f32.mrf.mxu0 }
 0x330   : > { %v2030_v30 = vrot.slane %v1575_v46, 1  ;;  %v1504_v22 = vadd.f32 %v12322_v53, %v1425_v21  ;;  %v1765_v43 = vrot.slane %v1575_v46, 7 }
 0x331   : > { %v1324_v12 = vpop.f32.mrf.mxu0 }
 0x332   : > { %v1576_v39 = vmax.f32 %v1504_v22, 0.0  ;;  %v1426_v62 = vmul.f32 %v12301_v37, %v1324_v12  ;;  %v2085_v3 = vsel %vm2051_vm1, %v2012_v54, %v2030_v30  ;;  %v12759_v22 = vpop.f32.mrf.mxu1  ;;  %v1729_v12 = vrot.slane %v1573_v63, 7 }
 0x333   : > { %v1326_v24 = vpop.f32.mrf.mxu0  ;;  %v12754_v9 = vpack.c.bf16 %v2085_v3, %v2103_v57 }
 0x334   : > { %v1783_v17 = vrot.slane %v1576_v39, 7  ;;  %v2048_v47 = vrot.slane %v1576_v39, 1  ;;  %v1505_v21 = vadd.f32 %v12322_v53, %v1426_v62  ;;  %v12757_v32 = vpack.c.bf16 %v1576_v39, %v1575_v46  ;;  %v12767_v57 = vpop.f32.mrf.mxu1 }
 0x335   : > { %16058 = vst [vmem:[#allocation131_spill] sm:$0xff] %v12754_v9  ;;  %v1327_v16 = vpop.f32.mrf.mxu0  ;;  %10108 = vmatprep.mubr.bf16.mxu0 %v12754_v9  ;;  %v1838_v46 = vsel %vm1786_vm2, %v1729_v12, %v1747_v52 }
 0x336   : > { %16059 = vst [vmem:[#allocation132_spill] sm:$0xff] %v12757_v32  ;;  %v2067_v54 = vsel %vm2051_vm1, %v2030_v30, %v2048_v47  ;;  %v2121_v61 = vsel %vm2051_vm1, %v2048_v47, %v1994_v35  ;;  %v1427_v3 = vmul.f32 %v12301_v37, %v1327_v16  ;;  %v1856_v63 = vsel %vm1786_vm2, %v1783_v17, %v1729_v12 }
 0x337   : > { %v1329_v24 = vpop.f32.mrf.mxu0  ;;  %v12773_v39 = vpack.c.bf16 %v2121_v61, %v2067_v54  ;;  %v1802_v62 = vsel %vm1786_vm2, %v1765_v43, %v1783_v17  ;;  %v12777_v30 = vmax.f32 %v1505_v21, 0.0  ;;  %v12780_v35 = vpack.c.bf16 %v1838_v46, %v1856_v63 }
 0x338   : > { %v1506_v47 = vadd.f32 %v12322_v53, %v1427_v3  ;;  %v1820_v16 = vsel %vm1786_vm2, %v1747_v52, %v1765_v43  ;;  %v12798_v43 = vpop.f32.mrf.mxu1 }
 0x339   : > { %16060 = vst [vmem:[#allocation133_spill] sm:$0xff] %v12773_v39  ;;  %16061 = vst [vmem:[#allocation134_spill] sm:$0xff] %v12780_v35  ;;  %v1332_v24 = vpop.f32.mrf.mxu0  ;;  %10109 = vmatmul.mubr.msk.bf16.gmra.mxu0 %vm12229_vm7, %v12773_v39  ;;  %v12787_v12 = vpack.c.bf16 %v1802_v62, %v1820_v16  ;;  %9712 = vmatprep.mubr.msk.bf16.mxu1 %vm11905_vm5, %v12780_v35  ;;  %v1995_v54 = vrot.slane %v12777_v30, 1  ;;  %v10666_v35 = vld [vmem:[#allocation14 + $0xb0] sm:$0xff]  }
 0x33a   : > { %v12792_v17 = vmax.f32 %v1506_v47, 0.0  ;;  %v1428_v21 = vmul.f32 %v12301_v37, %v1332_v24  ;;  %16063 = vst [vmem:[#allocation136_spill] sm:$0xff] %v12798_v43  ;;  %v12813_v47 = vpop.f32.mrf.mxu1 }
 0x33b   : > { %16062 = vst [vmem:[#allocation135_spill] sm:$0xff] %v12787_v12  ;;  %9713 = vmatmul.mubr.bf16.gmra.mxu1 %v12787_v12  ;;  %v1334_v52 = vpop.f32.mrf.mxu0 }
 0x33c   : > { %v2013_v61 = vrot.slane %v12792_v17, 1  ;;  %v1507_v3 = vadd.f32 %v12322_v53, %v1428_v21  ;;  %9732 = vmatprep.mubr.msk.bf16.mxu1 %vm8941_vm8, %v11854_v29 }
 0x33d   : > { %v1335_v46 = vpop.f32.mrf.mxu0 }
 0x33e   : > { %v12810_v63 = vmax.f32 %v1507_v3, 0.0  ;;  %v1429_v62 = vmul.f32 %v12301_v37, %v1335_v46  ;;  %v2104_v21 = vsel %vm2051_vm1, %v1995_v54, %v2013_v61  ;;  %v12825_v46 = vpop.f32.mrf.mxu1 }
 0x33f   : > { %v1337_v16 = vpop.f32.mrf.mxu0  ;;  %16064 = vst [vmem:[#allocation137_spill] sm:$0xff] %v12825_v46 }
 0x340   : > { %v2031_v24 = vrot.slane %v12810_v63, 1  ;;  %v1508_v52 = vadd.f32 %v12322_v53, %v1429_v62 }
 0x341   : > { %v1340_v12 = vpop.f32.mrf.mxu0 }
 0x342   : > { %v12819_v43 = vmax.f32 %v1508_v52, 0.0  ;;  %v1430_v29 = vmul.f32 %v12301_v37, %v1340_v12  ;;  %v2086_v3 = vsel %vm2051_vm1, %v2013_v61, %v2031_v24  ;;  %v12839_v61 = vpop.f32.mrf.mxu1 }
 0x343   : > { %9733 = vmatmul.mubr.msk.bf16.vlgmr.msra.gmra.mxu1 %vm8941_vm8, %v11878_v58  ;;  %v1342_v62 = vpop.f32.mrf.mxu0  ;;  %v12833_v16 = vpack.c.bf16 %v2086_v3, %v2104_v21  ;;  %16066 = vst [vmem:[#allocation139_spill] sm:$0xff] %v12839_v61 }
 0x344   : > { %v2049_v52 = vrot.slane %v12819_v43, 1  ;;  %v1509_v12 = vadd.f32 %v12322_v53, %v1430_v29  ;;  %9797 = vmatpush3.bf16.msra.mxu1 %v12348_v1  ;;  %9736 = vmatprep.mubr.bf16.mxu1 %v11921_v33 }
 0x345   : > { %16065 = vst [vmem:[#allocation138_spill] sm:$0xff] %v12833_v16  ;;  %v1343_v46 = vpop.f32.mrf.mxu0  ;;  %10112 = vmatprep.mubr.bf16.mxu0 %v12833_v16  ;;  %9798 = vmatprep.subr.bf16.mxu1 %v10666_v35  ;;  %v12854_v16 = vpop.f32.mrf.mxu1 }
 0x346   : > { %v2068_v58 = vsel %vm2051_vm1, %v2031_v24, %v2049_v52  ;;  %v2122_v21 = vsel %vm2051_vm1, %v2049_v52, %v1995_v54  ;;  %v1431_v29 = vmul.f32 %v12301_v37, %v1343_v46  ;;  %v1581_v62 = vmax.f32 %v1509_v12, 0.0  ;;  %v10668_v54 = vld [vmem:[#allocation14 + $0xa0] sm:$0xff]  }
 0x347   : > { %v1345_v1 = vpop.f32.mrf.mxu0  ;;  %v12849_v3 = vpack.c.bf16 %v2122_v21, %v2068_v58  ;;  %v1591_v24 = vstv %s1590_s18  ;;  %v12869_v21 = vpop.f32.mrf.mxu1 }
 0x348   : > { %v12852_v33 = vadd.f32 %v12322_v53, %v1431_v29  ;;  %9799 = vmatpush3.bf16.msra.mxu1 %v10666_v35  ;;  %vm12871_vm9 = vcmp.eq.s32.totalorder %v1591_v24, 1  ;;  %v16070_v29 = vmov 0  ;;  %v10669_v1 = vld [vmem:[#allocation14 + $0x98] sm:$0xff]  }
 0x349   : > { %16067 = vst [vmem:[#allocation140_spill] sm:$0xff] %v12849_v3  ;;  %v1348_v61 = vpop.f32.mrf.mxu0  ;;  %10113 = vmatmul.mubr.msk.bf16.gmra.mxu0 %vm12229_vm7, %v12849_v3  ;;  %9800 = vmatprep.subr.bf16.mxu1 %v10667_v15  ;;  %v16071_v29 = vsel %vm12871_vm9, 4294967295, %v16070_v29  ;;  %vm9187_vm10 = vmpackc.low %vm12871_vm9, %vm12871_vm9 }
 0x34a   : > { %16068 = vst [vmem:[#allocation141_spill] sm:$0xff] %v12852_v33  ;;  %v15830_v46 = vmax.f32 %v12852_v33, 0.0  ;;  %v1432_v52 = vmul.f32 %v12301_v37, %v1348_v61  ;;  %10212 = vmatprep.mubr.bf16.mxu0 %v11970_v42  ;;  %16072 = vst [vmem:[#allocation143_spill] sm:$0xff] %v16071_v29 }
 0x34b   : > { %9737 = vmatmul.mubr.bf16.gmra.mxu1 %v11937_v2  ;;  %v1350_v12 = vpop.f32.mrf.mxu0 }
 0x34c   : > { %v12865_v35 = vpack.c.bf16 %v15830_v46, %v1581_v62  ;;  %v1511_v58 = vadd.f32 %v12322_v53, %v1432_v52  ;;  %9740 = vmatprep.mubr.bf16.mxu1 %v11970_v42  ;;  %9801 = vmatpush3.bf16.msra.mxu1 %v10667_v15  ;;  %v12878_v46 = vsel %vm12871_vm9, %v1581_v62, 0.0  ;;  %v12885_v52 = vpop.f32.mrf.mxu1 }
 0x34d   : > { %v1351_v61 = vpop.f32.mrf.mxu0  ;;  %9802 = vmatprep.subr.bf16.mxu1 %v10668_v54  ;;  %16073 = vst [vmem:[#allocation144_spill] sm:$0xff] %v12878_v46  ;;  %v16078_v29 = vrot.slane %v12878_v46, 1 }
 0x34e   : > { %16069 = vst [vmem:[#allocation142_spill] sm:$0xff] %v12865_v35  ;;  %v1583_v3 = vmax.f32 %v1511_v58, 0.0  ;;  %v1433_v12 = vmul.f32 %v12301_v37, %v1351_v61  ;;  %v10670_v58 = vld [vmem:[#allocation14 + $0x90] sm:$0xff]  }
 0x34f   : > { %v1353_v33 = vpop.f32.mrf.mxu0 }
 0x350   : > { %v12882_v15 = vsel %vm12871_vm9, %v1583_v3, 0.0  ;;  %v1512_v24 = vadd.f32 %v12322_v53, %v1433_v12  ;;  %9803 = vmatpush3.bf16.msra.mxu1 %v10668_v54  ;;  %v12889_v33 = vpop.f32.mrf.mxu1  ;;  %v10671_v12 = vld [vmem:[#allocation14 + $0x88] sm:$0xff]  }
 0x351   : > { %16074 = vst [vmem:[#allocation145_spill] sm:$0xff] %v12882_v15  ;;  %10213 = vmatmul.mubr.bf16.vlgmr.msra.gmra.mxu0 %v11985_v10  ;;  %9804 = vmatprep.subr.bf16.mxu1 %v10669_v1  ;;  %v15833_v62 = vrot.slane %v12882_v15, 1 }
 0x352   : > { %v1584_v35 = vmax.f32 %v1512_v24, 0.0  ;;  %10216 = vmatprep.mubr.bf16.mxu0 %v12018_v55  ;;  %v12902_v24 = vpop.f32.mrf.mxu1 }
 0x353   : > { %9741 = vmatmul.mubr.bf16.gmra.mxu1 %v11985_v10 }
 0x354   : > { %v12896_v53 = vsel %vm12871_vm9, %v1584_v35, 0.0  ;;  %v12898_v54 = vpack.c.bf16 %v1584_v35, %v1583_v3  ;;  %9744 = vmatprep.mubr.bf16.mxu1 %v12018_v55  ;;  %9805 = vmatpush3.bf16.msra.mxu1 %v10669_v1  ;;  %v10672_v1 = vld [vmem:[#allocation14 + $0x80] sm:$0xff]   ;;  %v12933_v35 = vld [vmem:[#allocation14 + $0xf8] sm:$0xff]  }
 0x355   : > { %16075 = vst [vmem:[#allocation146_spill] sm:$0xff] %v12896_v53  ;;  %v2050_v61 = vrot.slane %v12896_v53, 1  ;;  %9806 = vmatprep.subr.bf16.mxu1 %v10670_v58 }
 0x356   : > { %16076 = vst [vmem:[#allocation147_spill] sm:$0xff] %v12898_v54  ;;  %v12920_v54 = vpop.f32.mrf.mxu1 }
 0x357   : > { %v12908_v37 = vsel %vm2051_vm1, %v15833_v62, %v2050_v61  ;;  %v12914_v3 = vsel %vm2051_vm1, %v2050_v61, %v16078_v29  ;;  %v12924_v62 = vpop.f32.mrf.mxu0 }
 0x358   : > { %16077 = vst [vmem:[#allocation148_spill] sm:$0xff] %v12908_v37  ;;  %16079 = vst [vmem:[#allocation149_spill] sm:$0xff] %v12914_v3  ;;  %9807 = vmatpush3.bf16.msra.mxu1 %v10670_v58  ;;  %v12926_v29 = vpop.f32.mrf.mxu1 }
 0x359   : > { %10217 = vmatmul.mubr.bf16.gmra.mxu0 %v12033_v41  ;;  %9808 = vmatprep.subr.bf16.mxu1 %v10671_v12  ;;  %16080 = vst [vmem:[#allocation150_spill] sm:$0xff] %v12924_v62  ;;  %v12930_v61 = vpop.f32.mrf.mxu0 }
 0x35a   : > { %10220 = vmatprep.mubr.bf16.mxu0 %v12072_v28  ;;  %v12928_v58 = vpop.f32.mrf.mxu1  ;;  %16081 = vst [vmem:[#allocation151_spill] sm:$0xff] %v12930_v61 }
 0x35b   : > { %9745 = vmatmul.mubr.bf16.gmra.mxu1 %v12033_v41  ;;  %v12941_v37 = vpop.f32.mrf.mxu0  ;;  %v16186_v41 = vld [vmem:[#allocation66_spill] sm:$0xff] }
 0x35c   : > { %9748 = vmatprep.mubr.bf16.mxu1 %v12072_v28  ;;  %9809 = vmatpush3.bf16.msra.mxu1 %v10671_v12  ;;  %v12939_v12 = vpop.f32.mrf.mxu1  ;;  %16082 = vst [vmem:[#allocation152_spill] sm:$0xff] %v12941_v37 }
 0x35d   : > { %9810 = vmatprep.subr.bf16.mxu1 %v10672_v1  ;;  %v12945_v3 = vpop.f32.mrf.mxu0 }
 0x35e   : > { %16083 = vst [vmem:[#allocation153_spill] sm:$0xff] %v12945_v3 }
 0x35f   : > { %v12953_v62 = vpop.f32.mrf.mxu0 }
 0x360   : > { %9811 = vmatpush3.bf16.msra.mxu1 %v10672_v1  ;;  %v12943_v1 = vpop.f32.mrf.mxu1  ;;  %16084 = vst [vmem:[#allocation154_spill] sm:$0xff] %v12953_v62 }
 0x361   : > { %10221 = vmatmul.mubr.bf16.gmra.mxu0 %v12088_v59  ;;  %10356 = vmatprep.subr.bf16.mxu1 %v12933_v35  ;;  %v12957_v53 = vpop.f32.mrf.mxu0 }
 0x362   : > { %10224 = vmatprep.mubr.bf16.mxu0 %v12121_v45  ;;  %v12951_v61 = vpop.f32.mrf.mxu1  ;;  %16085 = vst [vmem:[#allocation155_spill] sm:$0xff] %v12957_v53 }
 0x363   : > { %9749 = vmatmul.mubr.bf16.gmra.mxu1 %v12088_v59  ;;  %v12965_v37 = vpop.f32.mrf.mxu0  ;;  %v16178_v59 = vld [vmem:[#allocation122_spill] sm:$0xff] }
 0x364   : > { %9752 = vmatprep.mubr.bf16.mxu1 %v12121_v45  ;;  %v12955_v15 = vpop.f32.mrf.mxu1  ;;  %16086 = vst [vmem:[#allocation156_spill] sm:$0xff] %v12965_v37 }
 0x366   : > { %v12961_v3 = vpop.f32.mrf.mxu1 }
 0x368   : > { %v12967_v46 = vpop.f32.mrf.mxu1 }
 0x369   : > { %10225 = vmatmul.mubr.bf16.gmra.mxu0 %v12140_v27 }
 0x36a   : > { %10228 = vmatprep.mubr.bf16.mxu0 %v12174_v31  ;;  %v12973_v53 = vpop.f32.mrf.mxu1 }
 0x36b   : > { %9753 = vmatmul.mubr.bf16.gmra.mxu1 %v12140_v27  ;;  %16088 = vst [vmem:[#allocation158_spill] sm:$0xff] %v12973_v53 }
 0x36c   : > { %9756 = vmatprep.mubr.bf16.mxu1 %v12174_v31  ;;  %v12969_v31 = vpop.f32.mrf.mxu0 }
 0x36d   : > { %16087 = vst [vmem:[#allocation157_spill] sm:$0xff] %v12969_v31 }
 0x36e   : > { %v12977_v62 = vpop.f32.mrf.mxu0 }
 0x36f   : > { %16089 = vst [vmem:[#allocation159_spill] sm:$0xff] %v12977_v62 }
 0x371   : > { %10229 = vmatmul.mubr.bf16.gmra.mxu0 %v12192_v36 }
 0x372   : > { %10232 = vmatprep.mubr.bf16.mxu0 %v12225_v60 }
 0x373   : > { %9757 = vmatmul.mubr.bf16.gmra.mxu1 %v12192_v36  ;;  %v12979_v36 = vpop.f32.mrf.mxu1 }
 0x374   : > { %9760 = vmatprep.mubr.bf16.mxu1 %v12225_v60  ;;  %16090 = vst [vmem:[#allocation160_spill] sm:$0xff] %v12979_v36  ;;  %v12981_v60 = vpop.f32.mrf.mxu0  ;;  %v16239_v36 = vld [vmem:[#allocation120_spill] sm:$0xff] }
 0x375   : > { %16091 = vst [vmem:[#allocation161_spill] sm:$0xff] %v12981_v60  ;;  %v12983_v37 = vpop.f32.mrf.mxu1 }
 0x376   : > { %16092 = vst [vmem:[#allocation162_spill] sm:$0xff] %v12983_v37  ;;  %v12989_v31 = vpop.f32.mrf.mxu0 }
 0x377   : > { %16093 = vst [vmem:[#allocation163_spill] sm:$0xff] %v12989_v31 }
 0x379   : > { %10233 = vmatmul.mubr.bf16.gmra.mxu0 %v12248_v8 }
 0x37a   : > { %10236 = vmatprep.mubr.bf16.mxu0 %v12284_v26 }
 0x37b   : > { %9761 = vmatmul.mubr.bf16.gmra.mxu1 %v12248_v8  ;;  %v12991_v8 = vpop.f32.mrf.mxu1 }
 0x37c   : > { %9764 = vmatprep.mubr.bf16.mxu1 %v12284_v26  ;;  %16094 = vst [vmem:[#allocation164_spill] sm:$0xff] %v12991_v8  ;;  %v12993_v26 = vpop.f32.mrf.mxu0  ;;  %v16181_v8 = vld [vmem:[#allocation124_spill] sm:$0xff] }
 0x37d   : > { %16095 = vst [vmem:[#allocation165_spill] sm:$0xff] %v12993_v26  ;;  %v12995_v62 = vpop.f32.mrf.mxu1 }
 0x37e   : > { %16096 = vst [vmem:[#allocation166_spill] sm:$0xff] %v12995_v62 }
 0x37f   : > { %v12999_v60 = vpop.f32.mrf.mxu1 }
 0x380   : > { %16097 = vst [vmem:[#allocation167_spill] sm:$0xff] %v12999_v60 }
 0x381   : > { %10237 = vmatmul.mubr.bf16.gmra.mxu0 %v12318_v50 }
 0x382   : > { %10240 = vmatprep.mubr.bf16.mxu0 %v12369_v34 }
 0x383   : > { %9765 = vmatmul.mubr.bf16.gmra.mxu1 %v12318_v50  ;;  %v13003_v50 = vpop.f32.mrf.mxu0 }
 0x384   : > { %9768 = vmatprep.mubr.bf16.mxu1 %v12369_v34  ;;  %16098 = vst [vmem:[#allocation168_spill] sm:$0xff] %v13003_v50  ;;  %v13005_v34 = vpop.f32.mrf.mxu1 }
 0x385   : > { %16099 = vst [vmem:[#allocation169_spill] sm:$0xff] %v13005_v34  ;;  %v13007_v31 = vpop.f32.mrf.mxu0  ;;  %v16177_v34 = vld [vmem:[#allocation118_spill] sm:$0xff] }
 0x386   : > { %16100 = vst [vmem:[#allocation170_spill] sm:$0xff] %v13007_v31  ;;  %v13011_v26 = vpop.f32.mrf.mxu1 }
 0x387   : > { %16101 = vst [vmem:[#allocation171_spill] sm:$0xff] %v13011_v26  ;;  %v13015_v27 = vpop.f32.mrf.mxu0 }
 0x388   : > { %16102 = vst [vmem:[#allocation172_spill] sm:$0xff] %v13015_v27 }
 0x389   : > { %10241 = vmatmul.mubr.bf16.gmra.mxu0 %v12407_v48 }
 0x38a   : > { %10244 = vmatprep.mubr.bf16.mxu0 %v12453_v4 }
 0x38b   : > { %9769 = vmatmul.mubr.bf16.gmra.mxu1 %v12407_v48  ;;  %v13017_v48 = vpop.f32.mrf.mxu1 }
 0x38c   : > { %9772 = vmatprep.mubr.bf16.mxu1 %v12453_v4  ;;  %16103 = vst [vmem:[#allocation173_spill] sm:$0xff] %v13017_v48  ;;  %v13019_v4 = vpop.f32.mrf.mxu0  ;;  %v16176_v48 = vld [vmem:[#allocation116_spill] sm:$0xff] }
 0x38d   : > { %16104 = vst [vmem:[#allocation174_spill] sm:$0xff] %v13019_v4  ;;  %v13021_v50 = vpop.f32.mrf.mxu1 }
 0x38e   : > { %16105 = vst [vmem:[#allocation175_spill] sm:$0xff] %v13021_v50  ;;  %v13027_v31 = vpop.f32.mrf.mxu0  ;;  %v16175_v50 = vld [vmem:[#allocation112_spill] sm:$0xff] }
 0x38f   : > { %16106 = vst [vmem:[#allocation176_spill] sm:$0xff] %v13027_v31 }
 0x391   : > { %10245 = vmatmul.mubr.bf16.gmra.mxu0 %v12491_v19 }
 0x392   : > { %10248 = vmatprep.mubr.bf16.mxu0 %v12534_v0 }
 0x393   : > { %9773 = vmatmul.mubr.bf16.gmra.mxu1 %v12491_v19  ;;  %v13029_v19 = vpop.f32.mrf.mxu1 }
 0x394   : > { %9776 = vmatprep.mubr.bf16.mxu1 %v12534_v0  ;;  %16107 = vst [vmem:[#allocation177_spill] sm:$0xff] %v13029_v19  ;;  %v13031_v0 = vpop.f32.mrf.mxu0 }
 0x395   : > { %16108 = vst [vmem:[#allocation178_spill] sm:$0xff] %v13031_v0  ;;  %v13033_v27 = vpop.f32.mrf.mxu1 }
 0x396   : > { %16109 = vst [vmem:[#allocation179_spill] sm:$0xff] %v13033_v27  ;;  %v13039_v4 = vpop.f32.mrf.mxu0 }
 0x397   : > { %16110 = vst [vmem:[#allocation180_spill] sm:$0xff] %v13039_v4 }
 0x398   : > { %v13045_v31 = vpop.f32.mrf.mxu0 }
 0x399   : > { %10249 = vmatmul.mubr.bf16.gmra.mxu0 %v12561_v5  ;;  %16113 = vst [vmem:[#allocation183_spill] sm:$0xff] %v13045_v31 }
 0x39a   : > { %10252 = vmatprep.mubr.bf16.mxu0 %v12598_v25 }
 0x39b   : > { %9777 = vmatmul.mubr.bf16.gmra.mxu1 %v12561_v5  ;;  %v13041_v5 = vpop.f32.mrf.mxu1 }
 0x39c   : > { %9780 = vmatprep.mubr.bf16.mxu1 %v12598_v25  ;;  %16111 = vst [vmem:[#allocation181_spill] sm:$0xff] %v13041_v5  ;;  %v16174_v5 = vld [vmem:[#allocation110_spill] sm:$0xff] }
 0x39d   : > { %v13043_v25 = vpop.f32.mrf.mxu1 }
 0x39e   : > { %16112 = vst [vmem:[#allocation182_spill] sm:$0xff] %v13043_v25 }
 0x39f   : > { %v13049_v0 = vpop.f32.mrf.mxu1 }
 0x3a0   : > { %16114 = vst [vmem:[#allocation184_spill] sm:$0xff] %v13049_v0 }
 0x3a1   : > { %10253 = vmatmul.mubr.bf16.gmra.mxu0 %v12618_v49 }
 0x3a2   : > { %10256 = vmatprep.mubr.bf16.mxu0 %v12651_v20 }
 0x3a3   : > { %9781 = vmatmul.mubr.bf16.gmra.mxu1 %v12618_v49  ;;  %v13053_v49 = vpop.f32.mrf.mxu0 }
 0x3a4   : > { %9784 = vmatprep.mubr.bf16.mxu1 %v12651_v20  ;;  %16115 = vst [vmem:[#allocation185_spill] sm:$0xff] %v13053_v49  ;;  %v13055_v20 = vpop.f32.mrf.mxu1 }
 0x3a5   : > { %16116 = vst [vmem:[#allocation186_spill] sm:$0xff] %v13055_v20  ;;  %v13057_v4 = vpop.f32.mrf.mxu0 }
 0x3a6   : > { %16117 = vst [vmem:[#allocation187_spill] sm:$0xff] %v13057_v4  ;;  %v13061_v31 = vpop.f32.mrf.mxu1  ;;  %v16123_v4 = vpack.c.bf16 %v11874_v56, %v11861_v40  ;;  %v10725_v56 = vld [vmem:[#allocation14 + $0xe8] sm:$0xff]  }
 0x3a7   : > { %16118 = vst [vmem:[#allocation188_spill] sm:$0xff] %v13061_v31  ;;  %v13065_v0 = vpop.f32.mrf.mxu0 }
 0x3a8   : > { %16119 = vst [vmem:[#allocation189_spill] sm:$0xff] %v13065_v0  ;;  %v16127_v0 = vpack.c.bf16 %v11893_v7, %v11889_v6  ;;  %v16132_v6 = vld [vmem:[#allocation51_spill] sm:$0xff]  ;;  %v10726_v7 = vld [vmem:[#allocation14 + $0xe0] sm:$0xff]  }
 0x3a9   : > { %10257 = vmatmul.mubr.bf16.gmra.mxu0 %v12662_v11 }
 0x3aa   : > { %10260 = vmatprep.mubr.bf16.mxu0 %v12695_v38 }
 0x3ab   : > { %9785 = vmatmul.mubr.bf16.gmra.mxu1 %v12662_v11  ;;  %v13067_v11 = vpop.f32.mrf.mxu1 }
 0x3ac   : > { %9788 = vmatprep.mubr.bf16.mxu1 %v12695_v38  ;;  %16120 = vst [vmem:[#allocation190_spill] sm:$0xff] %v13067_v11  ;;  %v13069_v38 = vpop.f32.mrf.mxu0 }
 0x3ad   : > { %16121 = vst [vmem:[#allocation191_spill] sm:$0xff] %v13069_v38  ;;  %v13071_v49 = vpop.f32.mrf.mxu1  ;;  %v16128_v38 = vld [vmem:[#allocation49_spill] sm:$0xff] }
 0x3ae   : > { %16122 = vst [vmem:[#allocation192_spill] sm:$0xff] %v13071_v49 }
 0x3af   : > { %v13078_v31 = vpop.f32.mrf.mxu1 }
 0x3b0   : > { %16124 = vst [vmem:[#allocation193_spill] sm:$0xff] %v13078_v31 }
 0x3b1   : > { %10261 = vmatmul.mubr.bf16.gmra.mxu0 %v12706_v44 }
 0x3b2   : > { %10264 = vmatprep.mubr.bf16.mxu0 %v12741_v23 }
 0x3b3   : > { %9789 = vmatmul.mubr.bf16.gmra.mxu1 %v12706_v44  ;;  %v13080_v44 = vpop.f32.mrf.mxu1 }
 0x3b4   : > { %9792 = vmatprep.mubr.bf16.mxu1 %v12741_v23  ;;  %16125 = vst [vmem:[#allocation194_spill] sm:$0xff] %v13080_v44  ;;  %v16167_v44 = vld [vmem:[#allocation101_spill] sm:$0xff] }
 0x3b9   : > { %10265 = vmatmul.mubr.bf16.gmra.mxu0 %v12757_v32 }
 0x3ba   : > { %v13082_v23 = vpop.f32.mrf.mxu1 }
 0x3bb   : > { %9793 = vmatmul.mubr.bf16.gmra.mxu1 %v12757_v32  ;;  %16126 = vst [vmem:[#allocation195_spill] sm:$0xff] %v13082_v23  ;;  %v10724_v32 = vld [vmem:[#allocation14 + $0xf0] sm:$0xff]   ;;  %v16131_v23 = vld [vmem:[#allocation50_spill] sm:$0xff] }
 0x3bc   : > { %9812 = vmatprep.mubr.bf16.mxu1 %v16123_v4  ;;  %v13091_v40 = vpop.f32.mrf.mxu1 }
 0x3bd   : > { %16129 = vst [vmem:[#allocation49_spill] sm:$0xff] %v13091_v40  ;;  %v16156_v40 = vld [vmem:[#allocation93_spill] sm:$0xff] }
 0x3be   : > { %v13093_v4 = vpop.f32.mrf.mxu1 }
 0x3bf   : > { %16130 = vst [vmem:[#allocation196_spill] sm:$0xff] %v13093_v4  ;;  %v16136_v4 = vld [vmem:[#allocation55_spill] sm:$0xff] }
 0x3c3   : > { %9813 = vmatmul.mubr.msk.bf16.vlgmr.msra.gmra.mxu1 %vm12229_vm7, %v16127_v0  ;;  %v13099_v0 = vpop.f32.mrf.mxu1 }
 0x3c4   : > { %10364 = vmatpush3.bf16.msra.mxu1 %v12933_v35  ;;  %9816 = vmatprep.mubr.bf16.mxu1 %v16128_v38  ;;  %16133 = vst [vmem:[#allocation50_spill] sm:$0xff] %v13099_v0  ;;  %v10727_v35 = vld [vmem:[#allocation14 + $0xd8] sm:$0xff]   ;;  %v10729_v0 = vld [vmem:[#allocation14 + $0xc8] sm:$0xff]  }
 0x3c5   : > { %10357 = vmatprep.subr.bf16.mxu1 %v10724_v32 }
 0x3c8   : > { %10365 = vmatpush3.bf16.msra.mxu1 %v10724_v32  ;;  %v16135_v32 = vld [vmem:[#allocation52_spill] sm:$0xff] }
 0x3c9   : > { %10358 = vmatprep.subr.bf16.mxu1 %v10725_v56 }
 0x3ca   : > { %v13101_v38 = vpop.f32.mrf.mxu1 }
 0x3cb   : > { %9817 = vmatmul.mubr.msk.bf16.gmra.mxu1 %vm12229_vm7, %v16131_v23  ;;  %16134 = vst [vmem:[#allocation197_spill] sm:$0xff] %v13101_v38  ;;  %v16140_v38 = vld [vmem:[#allocation78_spill] sm:$0xff] }
 0x3cc   : > { %9820 = vmatprep.mubr.bf16.mxu1 %v16132_v6  ;;  %10366 = vmatpush3.bf16.msra.mxu1 %v10725_v56  ;;  %v13107_v23 = vpop.f32.mrf.mxu1  ;;  %v10728_v6 = vld [vmem:[#allocation14 + $0xd0] sm:$0xff]  }
 0x3cd   : > { %10359 = vmatprep.subr.bf16.mxu1 %v10726_v7  ;;  %16137 = vst [vmem:[#allocation198_spill] sm:$0xff] %v13107_v23 }
 0x3ce   : > { %v13109_v56 = vpop.f32.mrf.mxu1 }
 0x3cf   : > { %16138 = vst [vmem:[#allocation199_spill] sm:$0xff] %v13109_v56 }
 0x3d0   : > { %10367 = vmatpush3.bf16.msra.mxu1 %v10726_v7  ;;  %v16139_v7 = vld [vmem:[#allocation57_spill] sm:$0xff] }
 0x3d1   : > { %10360 = vmatprep.subr.bf16.mxu1 %v10727_v35 }
 0x3d3   : > { %9821 = vmatmul.mubr.msk.bf16.gmra.mxu1 %vm12229_vm7, %v16135_v32  ;;  %v13115_v32 = vpop.f32.mrf.mxu1 }
 0x3d4   : > { %9824 = vmatprep.mubr.bf16.mxu1 %v16136_v4  ;;  %10368 = vmatpush3.bf16.msra.mxu1 %v10727_v35  ;;  %16141 = vst [vmem:[#allocation200_spill] sm:$0xff] %v13115_v32  ;;  %v10730_v4 = vld [vmem:[#allocation14 + $0xc0] sm:$0xff]   ;;  %v13117_v35 = vld [vmem:[#allocation14 + $0x138] sm:$0xff]  }
 0x3d5   : > { %10361 = vmatprep.subr.bf16.mxu1 %v10728_v6  ;;  %v16147_v32 = vld [vmem:[#allocation85_spill] sm:$0xff] }
 0x3d8   : > { %10369 = vmatpush3.bf16.msra.mxu1 %v10728_v6 }
 0x3d9   : > { %10362 = vmatprep.subr.bf16.mxu1 %v10729_v0 }
 0x3da   : > { %v13119_v23 = vpop.f32.mrf.mxu1 }
 0x3db   : > { %9825 = vmatmul.mubr.msk.bf16.gmra.mxu1 %vm12229_vm7, %v16139_v7  ;;  %16142 = vst [vmem:[#allocation201_spill] sm:$0xff] %v13119_v23  ;;  %v16144_v7 = vld [vmem:[#allocation83_spill] sm:$0xff]  ;;  %v16148_v23 = vld [vmem:[#allocation86_spill] sm:$0xff] }
 0x3dc   : > { %9828 = vmatprep.mubr.bf16.mxu1 %v16140_v38  ;;  %10370 = vmatpush3.bf16.msra.mxu1 %v10729_v0  ;;  %v13122_v6 = vpop.f32.mrf.mxu1 }
 0x3dd   : > { %10363 = vmatprep.subr.bf16.mxu1 %v10730_v4  ;;  %16143 = vst [vmem:[#allocation202_spill] sm:$0xff] %v13122_v6  ;;  %v16151_v6 = vld [vmem:[#allocation88_spill] sm:$0xff] }
 0x3de   : > { %v13128_v0 = vpop.f32.mrf.mxu1 }
 0x3df   : > { %16145 = vst [vmem:[#allocation203_spill] sm:$0xff] %v13128_v0 }
 0x3e0   : > { %10371 = vmatpush3.bf16.msra.mxu1 %v10730_v4  ;;  %v13130_v38 = vpop.f32.mrf.mxu1 }
 0x3e1   : > { %9956 = vmatprep.subr.bf16.mxu1 %v13117_v35  ;;  %16146 = vst [vmem:[#allocation204_spill] sm:$0xff] %v13130_v38 }
 0x3e3   : > { %9829 = vmatmul.mubr.msk.bf16.gmra.mxu1 %vm12229_vm7, %v12332_v13  ;;  %v16152_v13 = vld [vmem:[#allocation91_spill] sm:$0xff] }
 0x3e4   : > { %9832 = vmatprep.mubr.bf16.mxu1 %v16144_v7 }
 0x3ea   : > { %v13136_v4 = vpop.f32.mrf.mxu1 }
 0x3eb   : > { %9833 = vmatmul.mubr.msk.bf16.gmra.mxu1 %vm12229_vm7, %v16147_v32  ;;  %16149 = vst [vmem:[#allocation205_spill] sm:$0xff] %v13136_v4 }
 0x3ec   : > { %9836 = vmatprep.mubr.bf16.mxu1 %v16148_v23  ;;  %v13138_v56 = vpop.f32.mrf.mxu1  ;;  %v16157_v23 = vld [vmem:[#allocation94_spill] sm:$0xff] }
 0x3ed   : > { %16150 = vst [vmem:[#allocation206_spill] sm:$0xff] %v13138_v56 }
 0x3ee   : > { %v13144_v7 = vpop.f32.mrf.mxu1 }
 0x3ef   : > { %16153 = vst [vmem:[#allocation207_spill] sm:$0xff] %v13144_v7  ;;  %v16162_v7 = vld [vmem:[#allocation96_spill] sm:$0xff] }
 0x3f0   : > { %v13146_v0 = vpop.f32.mrf.mxu1 }
 0x3f1   : > { %16154 = vst [vmem:[#allocation208_spill] sm:$0xff] %v13146_v0 }
 0x3f3   : > { %9837 = vmatmul.mubr.msk.bf16.gmra.mxu1 %vm12229_vm7, %v16151_v6  ;;  %v13160_v6 = vpop.f32.mrf.mxu0 }
 0x3f4   : > { %9840 = vmatprep.mubr.bf16.mxu1 %v16152_v13  ;;  %16161 = vst [vmem:[#allocation213_spill] sm:$0xff] %v13160_v6  ;;  %v13180_v6 = vpack.c.bf16 %v12792_v17, %v12777_v30 }
 0x3f6   : > { %16166 = vst [vmem:[#allocation216_spill] sm:$0xff] %v13180_v6  ;;  %10268 = vmatprep.mubr.bf16.mxu0 %v13180_v6 }
 0x3fb   : > { %v13148_v38 = vpop.f32.mrf.mxu1  ;;  %9841 = vmatmul.mubr.msk.bf16.gmra.mxu1 %vm12229_vm7, %v16156_v40  ;;  %v13170_v40 = vpop.f32.mrf.mxu0 }
 0x3fc   : > { %16155 = vst [vmem:[#allocation209_spill] sm:$0xff] %v13148_v38  ;;  %9844 = vmatprep.mubr.bf16.mxu1 %v16157_v23  ;;  %v16163_v38 = vld [vmem:[#allocation99_spill] sm:$0xff]  ;;  %16164 = vst [vmem:[#allocation214_spill] sm:$0xff] %v13170_v40  ;;  %v13191_v40 = vpack.c.bf16 %v12819_v43, %v12810_v63 }
 0x3fd   : > { %v13154_v32 = vpop.f32.mrf.mxu1 }
 0x3fe   : > { %16158 = vst [vmem:[#allocation210_spill] sm:$0xff] %v13154_v32  ;;  %16169 = vst [vmem:[#allocation217_spill] sm:$0xff] %v13191_v40 }
 0x3ff   : > { %v13156_v56 = vpop.f32.mrf.mxu1 }
 0x400   : > { %16159 = vst [vmem:[#allocation211_spill] sm:$0xff] %v13156_v56  ;;  %v13176_v56 = vpop.f32.mrf.mxu0 }
 0x401   : > { %v13158_v4 = vpop.f32.mrf.mxu1  ;;  %16165 = vst [vmem:[#allocation215_spill] sm:$0xff] %v13176_v56 }
 0x402   : > { %16160 = vst [vmem:[#allocation212_spill] sm:$0xff] %v13158_v4  ;;  %v13195_v56 = vpop.f32.mrf.mxu0  ;;  %10269 = vmatmul.mubr.bf16.gmra.mxu0 %v13191_v40  ;;  %v16173_v40 = vld [vmem:[#allocation109_spill] sm:$0xff] }
 0x403   : > { %v13162_v13 = vpop.f32.mrf.mxu1  ;;  %9845 = vmatmul.mubr.msk.bf16.gmra.mxu1 %vm12229_vm7, %v16162_v7  ;;  %16170 = vst [vmem:[#allocation218_spill] sm:$0xff] %v13195_v56 }
 0x404   : > { %9848 = vmatprep.mubr.bf16.mxu1 %v16163_v38  ;;  %v16168_v38 = vld [vmem:[#allocation102_spill] sm:$0xff] }
 0x405   : > { %v13168_v0 = vpop.f32.mrf.mxu1  ;;  %v16397_v18 = vld [vmem:[#allocation217_spill] sm:$0xff] }
 0x407   : > { %v13172_v23 = vpop.f32.mrf.mxu1 }
 0x409   : > { %v13174_v32 = vpop.f32.mrf.mxu1 }
 0x40b   : > { %v13182_v4 = vpop.f32.mrf.mxu1  ;;  %9849 = vmatmul.mubr.msk.bf16.gmra.mxu1 %vm12229_vm7, %v16167_v44  ;;  %v16171_v44 = vld [vmem:[#allocation104_spill] sm:$0xff] }
 0x40c   : > { %9852 = vmatprep.mubr.bf16.mxu1 %v16168_v38  ;;  %v16172_v38 = vld [vmem:[#allocation107_spill] sm:$0xff] }
 0x40d   : > { %v13193_v7 = vpop.f32.mrf.mxu1 }
 0x40f   : > { %v13198_v31 = vpop.f32.mrf.mxu1 }
 0x411   : > { %v13200_v49 = vpop.f32.mrf.mxu1 }
 0x413   : > { %v13202_v11 = vpop.f32.mrf.mxu1  ;;  %9853 = vmatmul.mubr.msk.bf16.gmra.mxu1 %vm12229_vm7, %v16171_v44 }
 0x414   : > { %9856 = vmatprep.mubr.bf16.mxu1 %v16172_v38 }
 0x415   : > { %v13208_v6 = vpop.f32.mrf.mxu1 }
 0x417   : > { %v13210_v20 = vpop.f32.mrf.mxu1 }
 0x419   : > { %v13212_v25 = vpop.f32.mrf.mxu1 }
 0x41b   : > { %v13214_v56 = vpop.f32.mrf.mxu1  ;;  %9857 = vmatmul.mubr.msk.bf16.gmra.mxu1 %vm12229_vm7, %v16173_v40 }
 0x41c   : > { %9860 = vmatprep.mubr.bf16.mxu1 %v16174_v5 }
 0x41d   : > { %v13220_v27 = vpop.f32.mrf.mxu1 }
 0x41f   : > { %v13222_v19 = vpop.f32.mrf.mxu1 }
 0x421   : > { %v13224_v44 = vpop.f32.mrf.mxu1 }
 0x423   : > { %v13226_v38 = vpop.f32.mrf.mxu1  ;;  %9861 = vmatmul.mubr.msk.bf16.gmra.mxu1 %vm12229_vm7, %v16175_v50 }
 0x424   : > { %9864 = vmatprep.mubr.bf16.mxu1 %v16176_v48 }
 0x425   : > { %v13232_v26 = vpop.f32.mrf.mxu1 }
 0x427   : > { %v13234_v45 = vpop.f32.mrf.mxu1 }
 0x429   : > { %v13236_v40 = vpop.f32.mrf.mxu1 }
 0x42b   : > { %v13238_v5 = vpop.f32.mrf.mxu1  ;;  %9865 = vmatmul.mubr.msk.bf16.gmra.mxu1 %vm12229_vm7, %v16177_v34 }
 0x42c   : > { %9868 = vmatprep.mubr.bf16.mxu1 %v16178_v59 }
 0x42d   : > { %v13244_v60 = vpop.f32.mrf.mxu1 }
 0x42f   : > { %v13246_v62 = vpop.f32.mrf.mxu1 }
 0x431   : > { %v13248_v50 = vpop.f32.mrf.mxu1 }
 0x432   : > { %16179 = vst [vmem:[#allocation219_spill] sm:$0xff] %v13248_v50  ;;  %v16242_v50 = vld [vmem:[#allocation125_spill] sm:$0xff] }
 0x433   : > { %v13250_v48 = vpop.f32.mrf.mxu1  ;;  %9869 = vmatmul.mubr.msk.bf16.gmra.mxu1 %vm12229_vm7, %v16181_v8 }
 0x434   : > { %16180 = vst [vmem:[#allocation220_spill] sm:$0xff] %v13250_v48  ;;  %9872 = vmatprep.mubr.bf16.mxu1 %v12754_v9 }
 0x435   : > { %v13256_v28 = vpop.f32.mrf.mxu1 }
 0x436   : > { %16182 = vst [vmem:[#allocation221_spill] sm:$0xff] %v13256_v28  ;;  %v10674_v28 = vld [vmem:[#allocation14 + $0x130] sm:$0xff]  }
 0x437   : > { %v13258_v37 = vpop.f32.mrf.mxu1 }
 0x438   : > { %16183 = vst [vmem:[#allocation222_spill] sm:$0xff] %v13258_v37 }
 0x439   : > { %v13260_v34 = vpop.f32.mrf.mxu1 }
 0x43a   : > { %16184 = vst [vmem:[#allocation223_spill] sm:$0xff] %v13260_v34  ;;  %v16191_v34 = vld [vmem:[#allocation67_spill] sm:$0xff] }
 0x43b   : > { %v13262_v59 = vpop.f32.mrf.mxu1  ;;  %9873 = vmatmul.mubr.msk.bf16.gmra.mxu1 %vm12229_vm7, %v12773_v39 }
 0x43c   : > { %16185 = vst [vmem:[#allocation224_spill] sm:$0xff] %v13262_v59  ;;  %9908 = vmatprep.mubr.msk.bf16.mxu1 %vm11905_vm5, %v16186_v41  ;;  %v16192_v59 = vld [vmem:[#allocation70_spill] sm:$0xff] }
 0x43d   : > { %v13270_v48 = vpop.f32.mrf.mxu1 }
 0x43e   : > { %16187 = vst [vmem:[#allocation225_spill] sm:$0xff] %v13270_v48 }
 0x43f   : > { %v13272_v8 = vpop.f32.mrf.mxu1 }
 0x440   : > { %16188 = vst [vmem:[#allocation226_spill] sm:$0xff] %v13272_v8 }
 0x441   : > { %v13274_v9 = vpop.f32.mrf.mxu1 }
 0x442   : > { %16189 = vst [vmem:[#allocation227_spill] sm:$0xff] %v13274_v9  ;;  %v10676_v9 = vld [vmem:[#allocation14 + $0x120] sm:$0xff]  }
 0x443   : > { %v13276_v37 = vpop.f32.mrf.mxu1  ;;  %9909 = vmatmul.mubr.bf16.vlgmr.msra.gmra.mxu1 %v16191_v34  ;;  %v16197_v34 = vld [vmem:[#allocation71_spill] sm:$0xff] }
 0x444   : > { %16190 = vst [vmem:[#allocation228_spill] sm:$0xff] %v13276_v37  ;;  %9957 = vmatpush3.bf16.msra.mxu1 %v13117_v35  ;;  %9912 = vmatprep.mubr.msk.bf16.mxu1 %vm11905_vm5, %v16192_v59  ;;  %v16198_v35 = vld [vmem:[#allocation75_spill] sm:$0xff] }
 0x445   : > { %v13283_v39 = vpop.f32.mrf.mxu1  ;;  %9958 = vmatprep.subr.bf16.mxu1 %v10674_v28 }
 0x446   : > { %16193 = vst [vmem:[#allocation229_spill] sm:$0xff] %v13283_v39  ;;  %v10677_v39 = vld [vmem:[#allocation14 + $0x118] sm:$0xff]  }
 0x447   : > { %v13285_v41 = vpop.f32.mrf.mxu1 }
 0x448   : > { %16194 = vst [vmem:[#allocation230_spill] sm:$0xff] %v13285_v41  ;;  %9959 = vmatpush3.bf16.msra.mxu1 %v10674_v28 }
 0x449   : > { %v13287_v8 = vpop.f32.mrf.mxu1  ;;  %9960 = vmatprep.subr.bf16.mxu1 %v10675_v51 }
 0x44a   : > { %16195 = vst [vmem:[#allocation231_spill] sm:$0xff] %v13287_v8  ;;  %v10678_v8 = vld [vmem:[#allocation14 + $0x110] sm:$0xff]  }
 0x44b   : > { %v13289_v37 = vpop.f32.mrf.mxu1  ;;  %9913 = vmatmul.mubr.bf16.gmra.mxu1 %v16197_v34  ;;  %v16204_v34 = vld [vmem:[#allocation81_spill] sm:$0xff] }
 0x44c   : > { %16196 = vst [vmem:[#allocation232_spill] sm:$0xff] %v13289_v37  ;;  %9916 = vmatprep.mubr.msk.bf16.mxu1 %vm11905_vm5, %v16198_v35  ;;  %9961 = vmatpush3.bf16.msra.mxu1 %v10675_v51  ;;  %v16203_v37 = vld [vmem:[#allocation76_spill] sm:$0xff]  ;;  %v10679_v35 = vld [vmem:[#allocation14 + $0x108] sm:$0xff]  }
 0x44d   : > { %v13295_v59 = vpop.f32.mrf.mxu1  ;;  %9962 = vmatprep.subr.bf16.mxu1 %v10676_v9 }
 0x44e   : > { %16199 = vst [vmem:[#allocation233_spill] sm:$0xff] %v13295_v59 }
 0x44f   : > { %v13297_v48 = vpop.f32.mrf.mxu1 }
 0x450   : > { %16200 = vst [vmem:[#allocation234_spill] sm:$0xff] %v13297_v48  ;;  %9963 = vmatpush3.bf16.msra.mxu1 %v10676_v9 }
 0x451   : > { %v13299_v28 = vpop.f32.mrf.mxu1  ;;  %9964 = vmatprep.subr.bf16.mxu1 %v10677_v39 }
 0x452   : > { %16201 = vst [vmem:[#allocation235_spill] sm:$0xff] %v13299_v28  ;;  %v10680_v28 = vld [vmem:[#allocation14 + $0x100] sm:$0xff]  }
 0x453   : > { %v13301_v41 = vpop.f32.mrf.mxu1  ;;  %9917 = vmatmul.mubr.bf16.gmra.mxu1 %v16203_v37  ;;  %v16210_v37 = vld [vmem:[#allocation89_spill] sm:$0xff] }
 0x454   : > { %16202 = vst [vmem:[#allocation236_spill] sm:$0xff] %v13301_v41  ;;  %9920 = vmatprep.mubr.msk.bf16.mxu1 %vm11905_vm5, %v16204_v34  ;;  %9965 = vmatpush3.bf16.msra.mxu1 %v10677_v39  ;;  %v16209_v41 = vld [vmem:[#allocation82_spill] sm:$0xff]  ;;  %v13321_v34 = vld [vmem:[#allocation14 + $0x1b8] sm:$0xff]  }
 0x455   : > { %v13307_v51 = vpop.f32.mrf.mxu1  ;;  %9966 = vmatprep.subr.bf16.mxu1 %v10678_v8 }
 0x456   : > { %16205 = vst [vmem:[#allocation237_spill] sm:$0xff] %v13307_v51 }
 0x457   : > { %v13309_v59 = vpop.f32.mrf.mxu1 }
 0x458   : > { %16206 = vst [vmem:[#allocation238_spill] sm:$0xff] %v13309_v59  ;;  %9967 = vmatpush3.bf16.msra.mxu1 %v10678_v8 }
 0x459   : > { %v13311_v9 = vpop.f32.mrf.mxu1  ;;  %9968 = vmatprep.subr.bf16.mxu1 %v10679_v35 }
 0x45a   : > { %16207 = vst [vmem:[#allocation239_spill] sm:$0xff] %v13311_v9  ;;  %v16216_v9 = vld [vmem:[#allocation97_spill] sm:$0xff] }
 0x45b   : > { %v13313_v48 = vpop.f32.mrf.mxu1  ;;  %9921 = vmatmul.mubr.bf16.gmra.mxu1 %v16209_v41  ;;  %v16215_v41 = vld [vmem:[#allocation90_spill] sm:$0xff] }
 0x45c   : > { %16208 = vst [vmem:[#allocation240_spill] sm:$0xff] %v13313_v48  ;;  %9924 = vmatprep.mubr.msk.bf16.mxu1 %vm11905_vm5, %v16210_v37  ;;  %9969 = vmatpush3.bf16.msra.mxu1 %v10679_v35 }
 0x45d   : > { %v13319_v39 = vpop.f32.mrf.mxu1  ;;  %9970 = vmatprep.subr.bf16.mxu1 %v10680_v28 }
 0x45e   : > { %16211 = vst [vmem:[#allocation241_spill] sm:$0xff] %v13319_v39 }
 0x45f   : > { %v13323_v59 = vpop.f32.mrf.mxu1 }
 0x460   : > { %16212 = vst [vmem:[#allocation242_spill] sm:$0xff] %v13323_v59  ;;  %9971 = vmatpush3.bf16.msra.mxu1 %v10680_v28  ;;  %v16221_v28 = vld [vmem:[#allocation98_spill] sm:$0xff] }
 0x461   : > { %v13325_v8 = vpop.f32.mrf.mxu1  ;;  %10116 = vmatprep.subr.bf16.mxu1 %v13321_v34 }
 0x462   : > { %16213 = vst [vmem:[#allocation243_spill] sm:$0xff] %v13325_v8  ;;  %v16222_v8 = vld [vmem:[#allocation105_spill] sm:$0xff] }
 0x463   : > { %v13328_v48 = vpop.f32.mrf.mxu1  ;;  %9925 = vmatmul.mubr.bf16.gmra.mxu1 %v16215_v41 }
 0x464   : > { %16214 = vst [vmem:[#allocation244_spill] sm:$0xff] %v13328_v48  ;;  %9928 = vmatprep.mubr.msk.bf16.mxu1 %vm11905_vm5, %v16216_v9 }
 0x465   : > { %v13334_v35 = vpop.f32.mrf.mxu1 }
 0x466   : > { %16217 = vst [vmem:[#allocation245_spill] sm:$0xff] %v13334_v35  ;;  %v16227_v35 = vld [vmem:[#allocation106_spill] sm:$0xff] }
 0x467   : > { %v13336_v37 = vpop.f32.mrf.mxu1 }
 0x468   : > { %16218 = vst [vmem:[#allocation246_spill] sm:$0xff] %v13336_v37  ;;  %v16228_v37 = vld [vmem:[#allocation113_spill] sm:$0xff] }
 0x469   : > { %v13338_v39 = vpop.f32.mrf.mxu1 }
 0x46a   : > { %16219 = vst [vmem:[#allocation247_spill] sm:$0xff] %v13338_v39 }
 0x46b   : > { %v13340_v59 = vpop.f32.mrf.mxu1  ;;  %9929 = vmatmul.mubr.bf16.gmra.mxu1 %v16221_v28 }
 0x46c   : > { %16220 = vst [vmem:[#allocation248_spill] sm:$0xff] %v13340_v59  ;;  %9932 = vmatprep.mubr.msk.bf16.mxu1 %vm11905_vm5, %v16222_v8 }
 0x46d   : > { %v13346_v48 = vpop.f32.mrf.mxu1 }
 0x46e   : > { %16223 = vst [vmem:[#allocation249_spill] sm:$0xff] %v13346_v48  ;;  %v16233_v48 = vld [vmem:[#allocation114_spill] sm:$0xff] }
 0x46f   : > { %v13348_v41 = vpop.f32.mrf.mxu1 }
 0x470   : > { %16224 = vst [vmem:[#allocation250_spill] sm:$0xff] %v13348_v41  ;;  %v16234_v41 = vld [vmem:[#allocation119_spill] sm:$0xff] }
 0x471   : > { %v13350_v51 = vpop.f32.mrf.mxu1 }
 0x472   : > { %16225 = vst [vmem:[#allocation251_spill] sm:$0xff] %v13350_v51 }
 0x473   : > { %v13352_v9 = vpop.f32.mrf.mxu1  ;;  %9933 = vmatmul.mubr.bf16.gmra.mxu1 %v16227_v35 }
 0x474   : > { %16226 = vst [vmem:[#allocation252_spill] sm:$0xff] %v13352_v9  ;;  %9936 = vmatprep.mubr.msk.bf16.mxu1 %vm11905_vm5, %v16228_v37  ;;  %v16238_v37 = vld [vmem:[#allocation126_spill] sm:$0xff] }
 0x475   : > { %v13358_v59 = vpop.f32.mrf.mxu1 }
 0x476   : > { %16229 = vst [vmem:[#allocation253_spill] sm:$0xff] %v13358_v59  ;;  %v3077_v59 = vadd.f32 %v13162_v13, %v16238_v37  ;;  %v3076_v13 = vadd.f32 %v13174_v32, %v12759_v22  ;;  %v16250_v32 = vld [vmem:[#allocation134_spill] sm:$0xff] }
 0x477   : > { %v13360_v28 = vpop.f32.mrf.mxu1 }
 0x478   : > { %16230 = vst [vmem:[#allocation254_spill] sm:$0xff] %v13360_v28 }
 0x479   : > { %v13362_v39 = vpop.f32.mrf.mxu1 }
 0x47a   : > { %16231 = vst [vmem:[#allocation255_spill] sm:$0xff] %v13362_v39  ;;  %v16240_v39 = vld [vmem:[#allocation129_spill] sm:$0xff] }
 0x47b   : > { %v13364_v8 = vpop.f32.mrf.mxu1  ;;  %9937 = vmatmul.mubr.bf16.gmra.mxu1 %v16233_v48 }
 0x47c   : > { %16232 = vst [vmem:[#allocation256_spill] sm:$0xff] %v13364_v8  ;;  %9940 = vmatprep.mubr.msk.bf16.mxu1 %vm11905_vm5, %v16234_v41  ;;  %v3075_v8 = vadd.f32 %v13168_v0, %v16240_v39  ;;  %v1730_v39 = vrot.slane %v12777_v30, 7 }
 0x47d   : > { %v13370_v9 = vpop.f32.mrf.mxu1 }
 0x47e   : > { %16235 = vst [vmem:[#allocation257_spill] sm:$0xff] %v13370_v9  ;;  %v16243_v9 = vld [vmem:[#allocation130_spill] sm:$0xff] }
 0x47f   : > { %v13372_v35 = vpop.f32.mrf.mxu1 }
 0x480   : > { %16236 = vst [vmem:[#allocation258_spill] sm:$0xff] %v13372_v35  ;;  %v3078_v35 = vadd.f32 %v13172_v23, %v16243_v9  ;;  %v1784_v23 = vrot.slane %v12819_v43, 7  ;;  %v16247_v9 = vld [vmem:[#allocation127_spill] sm:$0xff] }
 0x481   : > { %v13374_v51 = vpop.f32.mrf.mxu1 }
 0x482   : > { %16237 = vst [vmem:[#allocation259_spill] sm:$0xff] %v13374_v51 }
 0x483   : > { %v9814_v28 = vpop.f32.mrf.mxu1  ;;  %9941 = vmatmul.mubr.bf16.gmra.mxu1 %v16239_v36 }
 0x484   : > { %v13381_v48 = vadd.f32 %v9814_v28, %v3077_v59  ;;  %9944 = vmatprep.mubr.msk.bf16.mxu1 %vm11905_vm5, %v16242_v50  ;;  %v3081_v59 = vadd.f32 %v13182_v4, %v12767_v57  ;;  %v1748_v28 = vrot.slane %v12792_v17, 7  ;;  %v3082_v57 = vadd.f32 %v13198_v31, %v12813_v47  ;;  %v16331_v50 = vld [vmem:[#allocation244_spill] sm:$0xff] }
 0x485   : > { %v3302_v41 = vpop.f32.mrf.mxu1  ;;  %v1857_v4 = vsel %vm1786_vm2, %v1784_v23, %v1730_v39 }
 0x486   : > { %16241 = vst [vmem:[#allocation126_spill] sm:$0xff] %v13381_v48  ;;  %v13388_v51 = vadd.f32 %v3302_v41, %v3075_v8  ;;  %v16248_v8 = vld [vmem:[#allocation136_spill] sm:$0xff]  ;;  %v1839_v43 = vsel %vm1786_vm2, %v1730_v39, %v1748_v28  ;;  %v3083_v39 = vadd.f32 %v13208_v6, %v12854_v16  ;;  %v3084_v16 = vadd.f32 %v13212_v25, %v12885_v52  ;;  %v16366_v48 = vld [vmem:[#allocation257_spill] sm:$0xff] }
 0x487   : > { %v9815_v53 = vpop.f32.mrf.mxu1  ;;  %v3079_v22 = vadd.f32 %v13193_v7, %v16248_v8  ;;  %v16252_v7 = vld [vmem:[#allocation137_spill] sm:$0xff]  ;;  %v16254_v8 = vld [vmem:[#allocation139_spill] sm:$0xff]  ;;  %v3090_v52 = vadd.f32 %v13222_v19, %v12920_v54  ;;  %v3091_v19 = vadd.f32 %v13232_v26, %v12939_v12 }
 0x488   : > { %16244 = vst [vmem:[#allocation129_spill] sm:$0xff] %v13388_v51  ;;  %v13392_v37 = vadd.f32 %v9815_v53, %v3078_v35  ;;  %v3080_v35 = vadd.f32 %v13200_v49, %v16252_v7  ;;  %v3085_v31 = vadd.f32 %v13202_v11, %v16254_v8  ;;  %v3086_v11 = vadd.f32 %v13210_v20, %v12869_v21  ;;  %v16362_v51 = vld [vmem:[#allocation256_spill] sm:$0xff] }
 0x489   : > { %v3305_v36 = vpop.f32.mrf.mxu1  ;;  %v3089_v20 = vadd.f32 %v13214_v56, %v12889_v33  ;;  %v3088_v33 = vadd.f32 %v13224_v44, %v12926_v29  ;;  %v10683_v29 = vld [vmem:[#allocation14 + $0x1a8] sm:$0xff]  }
 0x48a   : > { %16245 = vst [vmem:[#allocation130_spill] sm:$0xff] %v13392_v37  ;;  %v13396_v0 = vadd.f32 %v3305_v36, %v3076_v13  ;;  %v16361_v37 = vld [vmem:[#allocation209_spill] sm:$0xff] }
 0x48b   : > { %v9818_v41 = vpop.f32.mrf.mxu1  ;;  %9945 = vmatmul.mubr.bf16.gmra.mxu1 %v16247_v9 }
 0x48c   : > { %16246 = vst [vmem:[#allocation260_spill] sm:$0xff] %v13396_v0  ;;  %v13404_v53 = vadd.f32 %v9818_v41, %v3081_v59  ;;  %9948 = vmatprep.mubr.msk.bf16.mxu1 %vm11905_vm5, %v16250_v32  ;;  %v1766_v41 = vrot.slane %v12810_v63, 7  ;;  %v16257_v32 = vld [vmem:[#allocation135_spill] sm:$0xff] }
 0x48d   : > { %v3318_v36 = vpop.f32.mrf.mxu1 }
 0x48e   : > { %16249 = vst [vmem:[#allocation136_spill] sm:$0xff] %v13404_v53  ;;  %v13411_v30 = vadd.f32 %v3318_v36, %v3079_v22  ;;  %v13426_v22 = vpack.c.bf16 %v1839_v43, %v1857_v4  ;;  %v16354_v53 = vld [vmem:[#allocation253_spill] sm:$0xff] }
 0x48f   : > { %v9819_v17 = vpop.f32.mrf.mxu1 }
 0x490   : > { %16251 = vst [vmem:[#allocation261_spill] sm:$0xff] %v13411_v30  ;;  %v13419_v13 = vadd.f32 %v9819_v17, %v3082_v57  ;;  %16256 = vst [vmem:[#allocation262_spill] sm:$0xff] %v13426_v22  ;;  %v1803_v57 = vsel %vm1786_vm2, %v1766_v41, %v1784_v23  ;;  %v1821_v17 = vsel %vm1786_vm2, %v1748_v28, %v1766_v41  ;;  %v16351_v30 = vld [vmem:[#allocation252_spill] sm:$0xff] }
 0x491   : > { %v3321_v59 = vpop.f32.mrf.mxu1  ;;  %v13448_v7 = vpack.c.bf16 %v1803_v57, %v1821_v17  ;;  %v3087_v28 = vadd.f32 %v13220_v27, %v12902_v24  ;;  %v3093_v27 = vadd.f32 %v13226_v38, %v12928_v58  ;;  %v3094_v58 = vadd.f32 %v13234_v45, %v12943_v1 }
 0x492   : > { %16253 = vst [vmem:[#allocation137_spill] sm:$0xff] %v13419_v13  ;;  %v13424_v47 = vadd.f32 %v3321_v59, %v3080_v35  ;;  %v16264_v59 = vld [vmem:[#allocation48_spill] sm:$0xff]  ;;  %v3095_v45 = vadd.f32 %v13244_v60, %v12961_v3  ;;  %v3098_v17 = vadd.f32 %v13246_v62, %v12967_v46  ;;  %v16273_v46 = vld [vmem:[#allocation162_spill] sm:$0xff]  ;;  %v16274_v62 = vld [vmem:[#allocation221_spill] sm:$0xff] }
 0x493   : > { %v9822_v36 = vpop.f32.mrf.mxu1  ;;  %9949 = vmatmul.mubr.bf16.gmra.mxu1 %v16257_v32  ;;  %16261 = vst [vmem:[#allocation266_spill] sm:$0xff] %v13448_v7  ;;  %v10686_v3 = vld [vmem:[#allocation14 + $0x190] sm:$0xff]   ;;  %v16350_v13 = vld [vmem:[#allocation205_spill] sm:$0xff] }
 0x494   : > { %16255 = vst [vmem:[#allocation139_spill] sm:$0xff] %v13424_v47  ;;  %v13431_v9 = vadd.f32 %v9822_v36, %v3085_v31  ;;  %9952 = vmatprep.mubr.msk.bf16.mxu1 %vm11905_vm5, %v13426_v22  ;;  %v10682_v36 = vld [vmem:[#allocation14 + $0x1b0] sm:$0xff]   ;;  %v16320_v22 = vld [vmem:[#allocation195_spill] sm:$0xff] }
 0x495   : > { %v3334_v49 = vpop.f32.mrf.mxu1  ;;  %v16321_v32 = vld [vmem:[#allocation240_spill] sm:$0xff] }
 0x496   : > { %16258 = vst [vmem:[#allocation263_spill] sm:$0xff] %v13431_v9  ;;  %v13438_v63 = vadd.f32 %v3334_v49, %v3083_v39  ;;  %v16344_v9 = vld [vmem:[#allocation249_spill] sm:$0xff] }
 0x497   : > { %v9823_v43 = vpop.f32.mrf.mxu1 }
 0x498   : > { %16259 = vst [vmem:[#allocation264_spill] sm:$0xff] %v13438_v63  ;;  %v13446_v6 = vadd.f32 %v9823_v43, %v3086_v11  ;;  %v16268_v43 = vld [vmem:[#allocation158_spill] sm:$0xff]  ;;  %v16341_v63 = vld [vmem:[#allocation248_spill] sm:$0xff] }
 0x499   : > { %v3337_v4 = vpop.f32.mrf.mxu1 }
 0x49a   : > { %16260 = vst [vmem:[#allocation265_spill] sm:$0xff] %v13446_v6  ;;  %v13452_v21 = vadd.f32 %v3337_v4, %v3084_v16  ;;  %v16269_v16 = vld [vmem:[#allocation219_spill] sm:$0xff]  ;;  %v16340_v6 = vld [vmem:[#allocation201_spill] sm:$0xff] }
 0x49b   : > { %v9826_v35 = vpop.f32.mrf.mxu1  ;;  %9953 = vmatmul.mubr.bf16.gmra.mxu1 %v13448_v7 }
 0x49c   : > { %16262 = vst [vmem:[#allocation267_spill] sm:$0xff] %v13452_v21  ;;  %v13457_v23 = vadd.f32 %v9826_v35, %v3089_v20  ;;  %9972 = vmatprep.mubr.bf16.mxu1 %v16264_v59  ;;  %v16271_v20 = vld [vmem:[#allocation220_spill] sm:$0xff] }
 0x49d   : > { %v3350_v25 = vpop.f32.mrf.mxu1 }
 0x49e   : > { %16263 = vst [vmem:[#allocation268_spill] sm:$0xff] %v13457_v23  ;;  %v13462_v41 = vadd.f32 %v3350_v25, %v3087_v28  ;;  %v16272_v25 = vld [vmem:[#allocation56_spill] sm:$0xff]  ;;  %v16334_v23 = vld [vmem:[#allocation245_spill] sm:$0xff] }
 0x49f   : > { %v9827_v8 = vpop.f32.mrf.mxu1 }
 0x4a0   : > { %16265 = vst [vmem:[#allocation48_spill] sm:$0xff] %v13462_v41  ;;  %v13466_v56 = vadd.f32 %v9827_v8, %v3090_v52  ;;  %v3099_v52 = vadd.f32 %v16274_v62, %v16273_v46  ;;  %v16330_v41 = vld [vmem:[#allocation197_spill] sm:$0xff] }
 0x4a1   : > { %v3353_v31 = vpop.f32.mrf.mxu1 }
 0x4a2   : > { %16266 = vst [vmem:[#allocation269_spill] sm:$0xff] %v13466_v56  ;;  %v13470_v24 = vadd.f32 %v3353_v31, %v3088_v33  ;;  %v16275_v33 = vld [vmem:[#allocation60_spill] sm:$0xff] }
 0x4a3   : > { %v9830_v39 = vpop.f32.mrf.mxu1  ;;  %9973 = vmatmul.mubr.bf16.vlgmr.msra.gmra.mxu1 %v11937_v2  ;;  %v3092_v2 = vadd.f32 %v13236_v40, %v12951_v61  ;;  %v10685_v40 = vld [vmem:[#allocation14 + $0x198] sm:$0xff]  }
 0x4a4   : > { %16267 = vst [vmem:[#allocation270_spill] sm:$0xff] %v13470_v24  ;;  %v13475_v54 = vadd.f32 %v9830_v39, %v3093_v27  ;;  %10117 = vmatpush3.bf16.msra.mxu1 %v13321_v34  ;;  %9976 = vmatprep.mubr.bf16.mxu1 %v11970_v42  ;;  %v10684_v34 = vld [vmem:[#allocation14 + $0x1a0] sm:$0xff]   ;;  %v3097_v42 = vadd.f32 %v13238_v5, %v12955_v15  ;;  %v16276_v27 = vld [vmem:[#allocation164_spill] sm:$0xff]  ;;  %v16324_v24 = vld [vmem:[#allocation241_spill] sm:$0xff] }
 0x4a5   : > { %v3366_v44 = vpop.f32.mrf.mxu1  ;;  %10118 = vmatprep.subr.bf16.mxu1 %v10682_v36  ;;  %v16277_v39 = vld [vmem:[#allocation222_spill] sm:$0xff] }
 0x4a6   : > { %v13481_v38 = vadd.f32 %v3366_v44, %v3091_v19  ;;  %v3102_v19 = vadd.f32 %v16277_v39, %v16276_v27 }
 0x4a7   : > { %v9831_v49 = vpop.f32.mrf.mxu1 }
 0x4a8   : > { %v13485_v11 = vadd.f32 %v9831_v49, %v3094_v58  ;;  %10119 = vmatpush3.bf16.msra.mxu1 %v10682_v36  ;;  %v10687_v36 = vld [vmem:[#allocation14 + $0x188] sm:$0xff]   ;;  %v16278_v58 = vld [vmem:[#allocation166_spill] sm:$0xff] }
 0x4a9   : > { %v3369_v26 = vpop.f32.mrf.mxu1  ;;  %10120 = vmatprep.subr.bf16.mxu1 %v10683_v29  ;;  %v16279_v49 = vld [vmem:[#allocation223_spill] sm:$0xff] }
 0x4aa   : > { %v13489_v12 = vadd.f32 %v3369_v26, %v3092_v2  ;;  %v3100_v2 = vadd.f32 %v16279_v49, %v16278_v58 }
 0x4ab   : > { %v9834_v57 = vpop.f32.mrf.mxu1  ;;  %9977 = vmatmul.mubr.bf16.gmra.mxu1 %v11985_v10  ;;  %v3096_v10 = vadd.f32 %v16269_v16, %v16268_v43  ;;  %v16283_v43 = vld [vmem:[#allocation169_spill] sm:$0xff] }
 0x4ac   : > { %v13494_v1 = vadd.f32 %v9834_v57, %v3097_v42  ;;  %9980 = vmatprep.mubr.bf16.mxu1 %v12018_v55  ;;  %10121 = vmatpush3.bf16.msra.mxu1 %v10683_v29  ;;  %v16270_v55 = vld [vmem:[#allocation160_spill] sm:$0xff]  ;;  %v10688_v42 = vld [vmem:[#allocation14 + $0x180] sm:$0xff]   ;;  %v16280_v57 = vld [vmem:[#allocation167_spill] sm:$0xff] }
 0x4ad   : > { %v3382_v61 = vpop.f32.mrf.mxu1  ;;  %10122 = vmatprep.subr.bf16.mxu1 %v10684_v34  ;;  %v3101_v35 = vadd.f32 %v16271_v20, %v16270_v55  ;;  %v16284_v16 = vld [vmem:[#allocation225_spill] sm:$0xff]  ;;  %v16285_v55 = vld [vmem:[#allocation64_spill] sm:$0xff] }
 0x4ae   : > { %v13499_v5 = vadd.f32 %v3382_v61, %v3095_v45  ;;  %v16281_v45 = vld [vmem:[#allocation224_spill] sm:$0xff]  ;;  %v13533_v20 = vld [vmem:[#allocation14 + $0x238] sm:$0xff]  }
 0x4af   : > { %v9835_v15 = vpop.f32.mrf.mxu1  ;;  %v3105_v61 = vadd.f32 %v16281_v45, %v16280_v57  ;;  %v16294_v57 = vld [vmem:[#allocation229_spill] sm:$0xff] }
 0x4b0   : > { %v13503_v4 = vadd.f32 %v9835_v15, %v3098_v17  ;;  %10123 = vmatpush3.bf16.msra.mxu1 %v10684_v34  ;;  %v16282_v15 = vld [vmem:[#allocation61_spill] sm:$0xff] }
 0x4b1   : > { %v3385_v60 = vpop.f32.mrf.mxu1  ;;  %10124 = vmatprep.subr.bf16.mxu1 %v10685_v40 }
 0x4b2   : > { %v13507_v28 = vadd.f32 %v3385_v60, %v3096_v10  ;;  %v3103_v10 = vadd.f32 %v16284_v16, %v16283_v43  ;;  %v16297_v43 = vld [vmem:[#allocation230_spill] sm:$0xff] }
 0x4b3   : > { %v9838_v59 = vpop.f32.mrf.mxu1  ;;  %9981 = vmatmul.mubr.bf16.gmra.mxu1 %v16272_v25 }
 0x4b4   : > { %v13512_v8 = vadd.f32 %v9838_v59, %v3101_v35  ;;  %9984 = vmatprep.mubr.bf16.mxu1 %v16275_v33  ;;  %10125 = vmatpush3.bf16.msra.mxu1 %v10685_v40  ;;  %v16286_v35 = vld [vmem:[#allocation171_spill] sm:$0xff]  ;;  %v16287_v59 = vld [vmem:[#allocation226_spill] sm:$0xff] }
 0x4b5   : > { %v3398_v31 = vpop.f32.mrf.mxu1  ;;  %10126 = vmatprep.subr.bf16.mxu1 %v10686_v3  ;;  %v3106_v25 = vadd.f32 %v16287_v59, %v16286_v35  ;;  %v16289_v33 = vld [vmem:[#allocation227_spill] sm:$0xff] }
 0x4b6   : > { %v13517_v44 = vadd.f32 %v3398_v31, %v3099_v52  ;;  %v16288_v52 = vld [vmem:[#allocation173_spill] sm:$0xff]  ;;  %v16299_v35 = vld [vmem:[#allocation231_spill] sm:$0xff] }
 0x4b7   : > { %v9839_v29 = vpop.f32.mrf.mxu1  ;;  %v3104_v31 = vadd.f32 %v16289_v33, %v16288_v52  ;;  %v16300_v52 = vld [vmem:[#allocation182_spill] sm:$0xff]  ;;  %v16301_v33 = vld [vmem:[#allocation232_spill] sm:$0xff] }
 0x4b8   : > { %v13521_v26 = vadd.f32 %v9839_v29, %v3102_v19  ;;  %10127 = vmatpush3.bf16.msra.mxu1 %v10686_v3  ;;  %v16291_v19 = vld [vmem:[#allocation228_spill] sm:$0xff] }
 0x4b9   : > { %v3401_v34 = vpop.f32.mrf.mxu1  ;;  %10128 = vmatprep.subr.bf16.mxu1 %v10687_v36 }
 0x4ba   : > { %v13525_v40 = vadd.f32 %v3401_v34, %v3100_v2  ;;  %v16292_v2 = vld [vmem:[#allocation65_spill] sm:$0xff] }
 0x4bb   : > { %v9842_v17 = vpop.f32.mrf.mxu1  ;;  %9985 = vmatmul.mubr.bf16.gmra.mxu1 %v16282_v15  ;;  %v16293_v34 = vld [vmem:[#allocation177_spill] sm:$0xff] }
 0x4bc   : > { %v13530_v60 = vadd.f32 %v9842_v17, %v3105_v61  ;;  %9988 = vmatprep.mubr.bf16.mxu1 %v16285_v55  ;;  %10129 = vmatpush3.bf16.msra.mxu1 %v10687_v36  ;;  %v16290_v36 = vld [vmem:[#allocation175_spill] sm:$0xff]  ;;  %v3107_v45 = vadd.f32 %v16294_v57, %v16293_v34  ;;  %v16295_v17 = vld [vmem:[#allocation68_spill] sm:$0xff] }
 0x4bd   : > { %v3414_v3 = vpop.f32.mrf.mxu1  ;;  %10130 = vmatprep.subr.bf16.mxu1 %v10688_v42  ;;  %v3109_v29 = vadd.f32 %v16291_v19, %v16290_v36  ;;  %v16302_v19 = vld [vmem:[#allocation69_spill] sm:$0xff]  ;;  %v16305_v57 = vld [vmem:[#allocation72_spill] sm:$0xff] }
 0x4be   : > { %v13537_v46 = vadd.f32 %v3414_v3, %v3103_v10  ;;  %v16298_v3 = vld [vmem:[#allocation181_spill] sm:$0xff] }
 0x4bf   : > { %v9843_v62 = vpop.f32.mrf.mxu1  ;;  %v3108_v59 = vadd.f32 %v16299_v35, %v16298_v3  ;;  %v16309_v3 = vld [vmem:[#allocation235_spill] sm:$0xff] }
 0x4c0   : > { %v13541_v27 = vadd.f32 %v9843_v62, %v3106_v25  ;;  %10131 = vmatpush3.bf16.msra.mxu1 %v10688_v42  ;;  %v16296_v42 = vld [vmem:[#allocation179_spill] sm:$0xff] }
 0x4c1   : > { %v3417_v39 = vpop.f32.mrf.mxu1  ;;  %10276 = vmatprep.subr.bf16.mxu1 %v13533_v20  ;;  %v3110_v16 = vadd.f32 %v16297_v43, %v16296_v42 }
 0x4c2   : > { %v13546_v58 = vadd.f32 %v3417_v39, %v3104_v31  ;;  %v3113_v31 = vadd.f32 %v16301_v33, %v16300_v52  ;;  %v16310_v52 = vld [vmem:[#allocation190_spill] sm:$0xff]  ;;  %v16311_v33 = vld [vmem:[#allocation236_spill] sm:$0xff] }
 0x4c3   : > { %v9846_v49 = vpop.f32.mrf.mxu1  ;;  %9989 = vmatmul.mubr.bf16.gmra.mxu1 %v16292_v2 }
 0x4c4   : > { %v13551_v61 = vadd.f32 %v9846_v49, %v3109_v29  ;;  %9992 = vmatprep.mubr.bf16.mxu1 %v16295_v17  ;;  %v16303_v29 = vld [vmem:[#allocation184_spill] sm:$0xff]  ;;  %v16304_v49 = vld [vmem:[#allocation233_spill] sm:$0xff]  ;;  %v16306_v17 = vld [vmem:[#allocation186_spill] sm:$0xff] }
 0x4c5   : > { %v3430_v15 = vpop.f32.mrf.mxu1  ;;  %v3111_v2 = vadd.f32 %v16304_v49, %v16303_v29  ;;  %v16312_v29 = vld [vmem:[#allocation74_spill] sm:$0xff]  ;;  %v16313_v49 = vld [vmem:[#allocation192_spill] sm:$0xff] }
 0x4c6   : > { %v13556_v10 = vadd.f32 %v3430_v15, %v3107_v45  ;;  %v16307_v15 = vld [vmem:[#allocation234_spill] sm:$0xff] }
 0x4c7   : > { %v9847_v55 = vpop.f32.mrf.mxu1  ;;  %v3114_v42 = vadd.f32 %v16307_v15, %v16306_v17 }
 0x4c8   : > { %v13560_v25 = vadd.f32 %v9847_v55, %v3110_v16  ;;  %v16308_v55 = vld [vmem:[#allocation188_spill] sm:$0xff] }
 0x4c9   : > { %v3433_v62 = vpop.f32.mrf.mxu1  ;;  %v3112_v35 = vadd.f32 %v16309_v3, %v16308_v55  ;;  %v16316_v55 = vld [vmem:[#allocation193_spill] sm:$0xff] }
 0x4ca   : > { %v13564_v39 = vadd.f32 %v3433_v62, %v3108_v59 }
 0x4cb   : > { %v9850_v36 = vpop.f32.mrf.mxu1  ;;  %9993 = vmatmul.mubr.bf16.gmra.mxu1 %v16302_v19  ;;  %v3117_v19 = vadd.f32 %v16311_v33, %v16310_v52  ;;  %v16318_v52 = vld [vmem:[#allocation194_spill] sm:$0xff] }
 0x4cc   : > { %v13569_v34 = vadd.f32 %v9850_v36, %v3113_v31  ;;  %9996 = vmatprep.mubr.bf16.mxu1 %v16305_v57  ;;  %v16314_v57 = vld [vmem:[#allocation237_spill] sm:$0xff] }
 0x4cd   : > { %v3446_v45 = vpop.f32.mrf.mxu1  ;;  %v3115_v17 = vadd.f32 %v16314_v57, %v16313_v49  ;;  %v3121_v49 = vadd.f32 %v16321_v32, %v16320_v22  ;;  %v16322_v57 = vld [vmem:[#allocation79_spill] sm:$0xff]  ;;  %v16328_v32 = vld [vmem:[#allocation50_spill] sm:$0xff] }
 0x4ce   : > { %v13574_v43 = vadd.f32 %v3446_v45, %v3111_v2  ;;  %v16315_v45 = vld [vmem:[#allocation77_spill] sm:$0xff]  ;;  %v16329_v22 = vld [vmem:[#allocation243_spill] sm:$0xff] }
 0x4cf   : > { %v9851_v16 = vpop.f32.mrf.mxu1 }
 0x4d0   : > { %v13578_v59 = vadd.f32 %v9851_v16, %v3114_v42  ;;  %v16317_v42 = vld [vmem:[#allocation238_spill] sm:$0xff] }
 0x4d1   : > { %v3449_v62 = vpop.f32.mrf.mxu1  ;;  %v3118_v16 = vadd.f32 %v16317_v42, %v16316_v55 }
 0x4d2   : > { %v13582_v31 = vadd.f32 %v3449_v62, %v3112_v35  ;;  %v16319_v35 = vld [vmem:[#allocation239_spill] sm:$0xff] }
 0x4d3   : > { %v9854_v36 = vpop.f32.mrf.mxu1  ;;  %9997 = vmatmul.mubr.bf16.gmra.mxu1 %v16312_v29  ;;  %v3116_v62 = vadd.f32 %v16319_v35, %v16318_v52  ;;  %v16326_v52 = vld [vmem:[#allocation196_spill] sm:$0xff] }
 0x4d4   : > { %v13587_v2 = vadd.f32 %v9854_v36, %v3117_v19  ;;  %10000 = vmatprep.mubr.bf16.mxu1 %v16315_v45  ;;  %v16323_v45 = vld [vmem:[#allocation49_spill] sm:$0xff] }
 0x4d5   : > { %v3462_v15 = vpop.f32.mrf.mxu1  ;;  %v3119_v55 = vadd.f32 %v16324_v24, %v16323_v45  ;;  %v3125_v24 = vadd.f32 %v16331_v50, %v16330_v41  ;;  %v16332_v45 = vld [vmem:[#allocation87_spill] sm:$0xff]  ;;  %v16338_v50 = vld [vmem:[#allocation200_spill] sm:$0xff] }
 0x4d6   : > { %v13592_v3 = vadd.f32 %v3462_v15, %v3115_v17  ;;  %v16325_v15 = vld [vmem:[#allocation84_spill] sm:$0xff]  ;;  %v16339_v41 = vld [vmem:[#allocation247_spill] sm:$0xff] }
 0x4d7   : > { %v9855_v7 = vpop.f32.mrf.mxu1 }
 0x4d8   : > { %v13596_v33 = vadd.f32 %v9855_v7, %v3118_v16  ;;  %v16327_v7 = vld [vmem:[#allocation242_spill] sm:$0xff] }
 0x4d9   : > { %v3465_v29 = vpop.f32.mrf.mxu1  ;;  %v3122_v16 = vadd.f32 %v16327_v7, %v16326_v52 }
 0x4da   : > { %v13600_v19 = vadd.f32 %v3465_v29, %v3116_v62  ;;  %v3120_v62 = vadd.f32 %v16329_v22, %v16328_v32  ;;  %v16336_v32 = vld [vmem:[#allocation199_spill] sm:$0xff] }
 0x4db   : > { %v9858_v36 = vpop.f32.mrf.mxu1  ;;  %10001 = vmatmul.mubr.bf16.gmra.mxu1 %v16322_v57 }
 0x4dc   : > { %v13605_v17 = vadd.f32 %v9858_v36, %v3121_v49  ;;  %10004 = vmatprep.mubr.bf16.mxu1 %v16325_v15  ;;  %v16333_v15 = vld [vmem:[#allocation198_spill] sm:$0xff] }
 0x4dd   : > { %v3478_v42 = vpop.f32.mrf.mxu1  ;;  %v3123_v52 = vadd.f32 %v16334_v23, %v16333_v15  ;;  %v3129_v23 = vadd.f32 %v16341_v63, %v16340_v6  ;;  %v16342_v15 = vld [vmem:[#allocation95_spill] sm:$0xff]  ;;  %v16348_v63 = vld [vmem:[#allocation204_spill] sm:$0xff] }
 0x4de   : > { %v13610_v35 = vadd.f32 %v3478_v42, %v3119_v55  ;;  %v16335_v42 = vld [vmem:[#allocation92_spill] sm:$0xff]  ;;  %v16349_v6 = vld [vmem:[#allocation251_spill] sm:$0xff] }
 0x4df   : > { %v9859_v56 = vpop.f32.mrf.mxu1 }
 0x4e0   : > { %v13614_v29 = vadd.f32 %v9859_v56, %v3122_v16  ;;  %v16337_v56 = vld [vmem:[#allocation246_spill] sm:$0xff] }
 0x4e1   : > { %v3481_v57 = vpop.f32.mrf.mxu1  ;;  %v3126_v16 = vadd.f32 %v16337_v56, %v16336_v32 }
 0x4e2   : > { %v13618_v49 = vadd.f32 %v3481_v57, %v3120_v62  ;;  %v3124_v62 = vadd.f32 %v16339_v41, %v16338_v50  ;;  %v16346_v50 = vld [vmem:[#allocation203_spill] sm:$0xff] }
 0x4e3   : > { %v9862_v36 = vpop.f32.mrf.mxu1  ;;  %10005 = vmatmul.mubr.bf16.gmra.mxu1 %v16332_v45 }
 0x4e4   : > { %v13623_v55 = vadd.f32 %v9862_v36, %v3125_v24  ;;  %10008 = vmatprep.mubr.bf16.mxu1 %v16335_v42  ;;  %v16343_v42 = vld [vmem:[#allocation202_spill] sm:$0xff] }
 0x4e5   : > { %v3494_v7 = vpop.f32.mrf.mxu1  ;;  %v3127_v32 = vadd.f32 %v16344_v9, %v16343_v42  ;;  %v3133_v9 = vadd.f32 %v16351_v30, %v16350_v13  ;;  %v16352_v42 = vld [vmem:[#allocation103_spill] sm:$0xff]  ;;  %v16358_v30 = vld [vmem:[#allocation208_spill] sm:$0xff] }
 0x4e6   : > { %v13628_v22 = vadd.f32 %v3494_v7, %v3123_v52  ;;  %v16345_v7 = vld [vmem:[#allocation100_spill] sm:$0xff]  ;;  %v16359_v13 = vld [vmem:[#allocation255_spill] sm:$0xff] }
 0x4e7   : > { %v9863_v21 = vpop.f32.mrf.mxu1 }
 0x4e8   : > { %v13632_v57 = vadd.f32 %v9863_v21, %v3126_v16  ;;  %v16347_v21 = vld [vmem:[#allocation250_spill] sm:$0xff] }
 0x4e9   : > { %v3497_v45 = vpop.f32.mrf.mxu1  ;;  %v3130_v16 = vadd.f32 %v16347_v21, %v16346_v50 }
 0x4ea   : > { %v13636_v24 = vadd.f32 %v3497_v45, %v3124_v62  ;;  %v3128_v62 = vadd.f32 %v16349_v6, %v16348_v63  ;;  %v16356_v63 = vld [vmem:[#allocation207_spill] sm:$0xff] }
 0x4eb   : > { %v9866_v36 = vpop.f32.mrf.mxu1  ;;  %10009 = vmatmul.mubr.bf16.gmra.mxu1 %v16342_v15 }
 0x4ec   : > { %v13641_v52 = vadd.f32 %v9866_v36, %v3129_v23  ;;  %10012 = vmatprep.mubr.bf16.mxu1 %v16345_v7  ;;  %v16353_v7 = vld [vmem:[#allocation206_spill] sm:$0xff] }
 0x4ed   : > { %v3510_v56 = vpop.f32.mrf.mxu1  ;;  %v3131_v50 = vadd.f32 %v16354_v53, %v16353_v7  ;;  %v3137_v53 = vadd.f32 %v16362_v51, %v16361_v37  ;;  %v16364_v7 = vld [vmem:[#allocation111_spill] sm:$0xff]  ;;  %v13684_v51 = vpop.f32.mrf.mxu0  ;;  %v16371_v37 = vld [vmem:[#allocation212_spill] sm:$0xff] }
 0x4ee   : > { %v13646_v41 = vadd.f32 %v3510_v56, %v3127_v32  ;;  %v16355_v56 = vld [vmem:[#allocation108_spill] sm:$0xff]  ;;  %16370 = vst [vmem:[#allocation160_spill] sm:$0xff] %v13684_v51  ;;  %v16382_v51 = vld [vmem:[#allocation146_spill] sm:$0xff] }
 0x4ef   : > { %v9867_v47 = vpop.f32.mrf.mxu1 }
 0x4f0   : > { %v13650_v45 = vadd.f32 %v9867_v47, %v3130_v16  ;;  %v16357_v47 = vld [vmem:[#allocation254_spill] sm:$0xff] }
 0x4f1   : > { %v3513_v15 = vpop.f32.mrf.mxu1  ;;  %v3134_v16 = vadd.f32 %v16357_v47, %v16356_v63 }
 0x4f2   : > { %v13654_v23 = vadd.f32 %v3513_v15, %v3128_v62  ;;  %v3132_v62 = vadd.f32 %v16359_v13, %v16358_v30  ;;  %v16368_v30 = vld [vmem:[#allocation211_spill] sm:$0xff] }
 0x4f3   : > { %v9870_v36 = vpop.f32.mrf.mxu1  ;;  %10013 = vmatmul.mubr.bf16.gmra.mxu1 %v16352_v42 }
 0x4f4   : > { %v13659_v32 = vadd.f32 %v9870_v36, %v3133_v9  ;;  %10016 = vmatprep.mubr.bf16.mxu1 %v16355_v56  ;;  %v16365_v56 = vld [vmem:[#allocation210_spill] sm:$0xff] }
 0x4f5   : > { %v3526_v21 = vpop.f32.mrf.mxu1  ;;  %v3135_v63 = vadd.f32 %v16366_v48, %v16365_v56  ;;  %v13693_v56 = vpop.f32.mrf.mxu0 }
 0x4f6   : > { %v13664_v6 = vadd.f32 %v3526_v21, %v3131_v50  ;;  %v16367_v21 = vld [vmem:[#allocation115_spill] sm:$0xff]  ;;  %16375 = vst [vmem:[#allocation56_spill] sm:$0xff] %v13693_v56  ;;  %v1785_v56 = vrot.slane %v16382_v51, 7  ;;  %v16386_v51 = vld [vmem:[#allocation142_spill] sm:$0xff] }
 0x4f7   : > { %v9871_v0 = vpop.f32.mrf.mxu1  ;;  %10272 = vmatprep.mubr.msk.bf16.mxu0 %vm9187_vm10, %v16386_v51 }
 0x4f8   : > { %v13668_v15 = vadd.f32 %v9871_v0, %v3134_v16  ;;  %v16369_v0 = vld [vmem:[#allocation258_spill] sm:$0xff] }
 0x4f9   : > { %v3529_v42 = vpop.f32.mrf.mxu1  ;;  %v3138_v16 = vadd.f32 %v16369_v0, %v16368_v30 }
 0x4fa   : > { %16360 = vst [vmem:[#allocation158_spill] sm:$0xff] %v13668_v15  ;;  %v13672_v9 = vadd.f32 %v3529_v42, %v3132_v62  ;;  %v16372_v62 = vld [vmem:[#allocation259_spill] sm:$0xff] }
 0x4fb   : > { %v9874_v36 = vpop.f32.mrf.mxu1  ;;  %10017 = vmatmul.mubr.bf16.gmra.mxu1 %v16364_v7  ;;  %v3136_v42 = vadd.f32 %v16372_v62, %v16371_v37  ;;  %v16381_v62 = vld [vmem:[#allocation144_spill] sm:$0xff] }
 0x4fc   : > { %16363 = vst [vmem:[#allocation219_spill] sm:$0xff] %v13672_v9  ;;  %v13677_v50 = vadd.f32 %v9874_v36, %v3137_v53  ;;  %10020 = vmatprep.mubr.bf16.mxu1 %v16367_v21  ;;  %v16374_v36 = vld [vmem:[#allocation117_spill] sm:$0xff] }
 0x4fd   : > { %v3542_v47 = vpop.f32.mrf.mxu1 }
 0x4fe   : > { %v13682_v13 = vadd.f32 %v3542_v47, %v3135_v63  ;;  %v16377_v63 = vld [vmem:[#allocation121_spill] sm:$0xff] }
 0x4ff   : > { %v9875_v15 = vpop.f32.mrf.mxu1  ;;  %v16378_v47 = vld [vmem:[#allocation141_spill] sm:$0xff] }
 0x500   : > { %v13688_v7 = vadd.f32 %v9875_v15, %v3138_v16  ;;  %v16379_v30 = vmax.f32 %v16378_v47, 0.0 }
 0x501   : > { %v3545_v9 = vpop.f32.mrf.mxu1 }
 0x502   : > { %v13690_v48 = vadd.f32 %v3545_v9, %v3136_v42  ;;  %v1666_v37 = vsel %vm12871_vm9, %v16379_v30, 0.0  ;;  %v1731_v42 = vrot.slane %v16381_v62, 7 }
 0x503   : > { %v9910_v53 = vpop.f32.mrf.mxu1  ;;  %10021 = vmatmul.mubr.bf16.gmra.mxu1 %v16374_v36  ;;  %v1749_v36 = vrot.slane %v1666_v37, 7 }
 0x504   : > { %16373 = vst [vmem:[#allocation220_spill] sm:$0xff] %v13690_v48  ;;  %v13696_v21 = vadd.f32 %v9910_v53, %v13475_v54  ;;  %10024 = vmatprep.mubr.bf16.mxu1 %v16377_v63  ;;  %v13708_v48 = vpop.f32.mrf.mxu0  ;;  %v2014_v53 = vrot.slane %v1666_v37, 1  ;;  %v16384_v63 = vld [vmem:[#allocation145_spill] sm:$0xff]  ;;  %v16388_v37 = vld [vmem:[#allocation128_spill] sm:$0xff] }
 0x505   : > { %v3912_v15 = vpop.f32.mrf.mxu1  ;;  %16383 = vst [vmem:[#allocation221_spill] sm:$0xff] %v13708_v48  ;;  %v1767_v47 = vrot.slane %v16384_v63, 7  ;;  %v16390_v51 = vrot.slane %v16384_v63, 1 }
 0x506   : > { %16376 = vst [vmem:[#allocation162_spill] sm:$0xff] %v13696_v21  ;;  %v13704_v16 = vadd.f32 %v3912_v15, %v13481_v38  ;;  %v16385_v15 = vld [vmem:[#allocation123_spill] sm:$0xff]  ;;  %v13722_v48 = vpop.f32.mrf.mxu0 }
 0x507   : > { %v9911_v9 = vpop.f32.mrf.mxu1  ;;  %16387 = vst [vmem:[#allocation60_spill] sm:$0xff] %v13722_v48  ;;  %v16395_v48 = vld [vmem:[#allocation132_spill] sm:$0xff] }
 0x508   : > { %v13711_v54 = vadd.f32 %v9911_v9, %v13485_v11  ;;  %v16389_v9 = vld [vmem:[#allocation147_spill] sm:$0xff] }
 0x509   : > { %v3915_v21 = vpop.f32.mrf.mxu1  ;;  %10273 = vmatmul.mubr.msk.bf16.gmra.mxu0 %vm9187_vm10, %v16389_v9 }
 0x50a   : > { %v13715_v30 = vadd.f32 %v3915_v21, %v13489_v12  ;;  %v13731_v12 = vsel %vm1786_vm2, %v1731_v42, %v1749_v36  ;;  %v13735_v21 = vsel %vm1786_vm2, %v1785_v56, %v1731_v42  ;;  %v16392_v42 = vmov 0  }
 0x50b   : > { %v9914_v38 = vpop.f32.mrf.mxu1  ;;  %10025 = vmatmul.mubr.bf16.gmra.mxu1 %v16385_v15  ;;  %7455 = vmatprep.mubr.bf16.mxu0 %v16392_v42  ;;  %v16396_v15 = vld [vmem:[#allocation216_spill] sm:$0xff] }
 0x50c   : > { %v13725_v11 = vadd.f32 %v9914_v38, %v13494_v1  ;;  %10028 = vmatprep.mubr.bf16.mxu1 %v16388_v37  ;;  %v13741_v1 = vsel %vm1786_vm2, %v1767_v47, %v1785_v56  ;;  %v13745_v38 = vsel %vm1786_vm2, %v1749_v36, %v1767_v47  ;;  %v13751_v37 = vsel %vm2051_vm1, %v2014_v53, %v16390_v51 }
 0x50d   : > { %v3928_v0 = vpop.f32.mrf.mxu1  ;;  %16391 = vst [vmem:[#allocation164_spill] sm:$0xff] %v13751_v37  ;;  %v16393_v56 = vrot.slane %v16381_v62, 1  ;;  %v16409_v37 = vld [vmem:[#allocation67_spill] sm:$0xff] }
 0x50e   : > { %v13755_v9 = vadd.f32 %v3928_v0, %v13499_v5 }
 0x50f   : > { %v13763_v36 = vsel %vm2051_vm1, %v16393_v56, %v2014_v53  ;;  %v9915_v47 = vpop.f32.mrf.mxu1 }
 0x510   : > { %16394 = vst [vmem:[#allocation222_spill] sm:$0xff] %v13763_v36  ;;  %v13768_v51 = vadd.f32 %v9915_v47, %v13503_v4 }
 0x511   : > { %v3931_v42 = vpop.f32.mrf.mxu1 }
 0x512   : > { %v13771_v5 = vadd.f32 %v3931_v42, %v13507_v28 }
 0x513   : > { %v9918_v0 = vpop.f32.mrf.mxu1  ;;  %10029 = vmatmul.mubr.bf16.gmra.mxu1 %v16395_v48  ;;  %v16398_v48 = vld [vmem:[#allocation53_spill] sm:$0xff] }
 0x514   : > { %v13775_v62 = vadd.f32 %v9918_v0, %v13512_v8  ;;  %10032 = vmatprep.mubr.bf16.mxu1 %v16396_v15  ;;  %v10690_v0 = vld [vmem:[#allocation14 + $0x230] sm:$0xff]  }
 0x515   : > { %v3944_v53 = vpop.f32.mrf.mxu1 }
 0x516   : > { %v13779_v56 = vadd.f32 %v3944_v53, %v13517_v44 }
 0x517   : > { %v9919_v63 = vpop.f32.mrf.mxu1 }
 0x518   : > { %v13782_v4 = vadd.f32 %v9919_v63, %v13521_v26 }
 0x519   : > { %v3947_v47 = vpop.f32.mrf.mxu1 }
 0x51a   : > { %v13785_v28 = vadd.f32 %v3947_v47, %v13525_v40 }
 0x51b   : > { %v9922_v42 = vpop.f32.mrf.mxu1  ;;  %10033 = vmatmul.mubr.bf16.gmra.mxu1 %v16397_v18 }
 0x51c   : > { %v13789_v8 = vadd.f32 %v9922_v42, %v13530_v60  ;;  %10132 = vmatprep.mubr.msk.bf16.mxu1 %vm11905_vm5, %v16398_v48  ;;  %v16399_v60 = vld [vmem:[#allocation54_spill] sm:$0xff] }
 0x51d   : > { %v3960_v44 = vpop.f32.mrf.mxu1  ;;  %v16400_v42 = vld [vmem:[#allocation58_spill] sm:$0xff] }
 0x51e   : > { %v13795_v15 = vadd.f32 %v3960_v44, %v13537_v46 }
 0x51f   : > { %v9923_v26 = vpop.f32.mrf.mxu1 }
 0x520   : > { %v13798_v63 = vadd.f32 %v9923_v26, %v13541_v27  ;;  %v10691_v27 = vld [vmem:[#allocation14 + $0x228] sm:$0xff]  }
 0x521   : > { %v3963_v40 = vpop.f32.mrf.mxu1 }
 0x522   : > { %v13801_v53 = vadd.f32 %v3963_v40, %v13546_v58 }
 0x523   : > { %v9926_v18 = vpop.f32.mrf.mxu1  ;;  %10133 = vmatmul.mubr.bf16.vlgmr.msra.gmra.mxu1 %v16399_v60 }
 0x524   : > { %v13805_v47 = vadd.f32 %v9926_v18, %v13551_v61  ;;  %10277 = vmatpush3.bf16.msra.mxu1 %v13533_v20  ;;  %10136 = vmatprep.mubr.msk.bf16.mxu1 %vm11905_vm5, %v16400_v42  ;;  %v10692_v61 = vld [vmem:[#allocation14 + $0x220] sm:$0xff]   ;;  %v16401_v18 = vld [vmem:[#allocation59_spill] sm:$0xff] }
 0x525   : > { %v3976_v46 = vpop.f32.mrf.mxu1  ;;  %10278 = vmatprep.subr.bf16.mxu1 %v10690_v0  ;;  %v16402_v42 = vld [vmem:[#allocation62_spill] sm:$0xff] }
 0x526   : > { %v13812_v48 = vadd.f32 %v3976_v46, %v13556_v10  ;;  %v13830_v46 = vpop.f32.mrf.mxu0 }
 0x527   : > { %v9927_v58 = vpop.f32.mrf.mxu1  ;;  %16403 = vst [vmem:[#allocation166_spill] sm:$0xff] %v13830_v46 }
 0x528   : > { %v13815_v44 = vadd.f32 %v9927_v58, %v13560_v25  ;;  %10279 = vmatpush3.bf16.msra.mxu1 %v10690_v0  ;;  %v10693_v25 = vld [vmem:[#allocation14 + $0x218] sm:$0xff]  }
 0x529   : > { %v3979_v26 = vpop.f32.mrf.mxu1  ;;  %10280 = vmatprep.subr.bf16.mxu1 %v10691_v27 }
 0x52a   : > { %v13818_v20 = vadd.f32 %v3979_v26, %v13564_v39  ;;  %v10694_v26 = vld [vmem:[#allocation14 + $0x210] sm:$0xff]  }
 0x52b   : > { %v9930_v40 = vpop.f32.mrf.mxu1  ;;  %10137 = vmatmul.mubr.bf16.gmra.mxu1 %v16401_v18 }
 0x52c   : > { %v13822_v60 = vadd.f32 %v9930_v40, %v13569_v34  ;;  %10140 = vmatprep.mubr.msk.bf16.mxu1 %vm11905_vm5, %v16402_v42  ;;  %10281 = vmatpush3.bf16.msra.mxu1 %v10691_v27  ;;  %v13838_v27 = vpop.f32.mrf.mxu0  ;;  %v16405_v42 = vld [vmem:[#allocation63_spill] sm:$0xff] }
 0x52d   : > { %v3992_v10 = vpop.f32.mrf.mxu1  ;;  %10282 = vmatprep.subr.bf16.mxu1 %v10692_v61  ;;  %16404 = vst [vmem:[#allocation223_spill] sm:$0xff] %v13838_v27 }
 0x52e   : > { %v13828_v0 = vadd.f32 %v3992_v10, %v13574_v43  ;;  %v16406_v10 = vld [vmem:[#allocation66_spill] sm:$0xff] }
 0x52f   : > { %v9931_v39 = vpop.f32.mrf.mxu1 }
 0x530   : > { %v13833_v58 = vadd.f32 %v9931_v39, %v13578_v59  ;;  %10283 = vmatpush3.bf16.msra.mxu1 %v10692_v61  ;;  %v10695_v61 = vld [vmem:[#allocation14 + $0x208] sm:$0xff]  }
 0x531   : > { %v3995_v34 = vpop.f32.mrf.mxu1  ;;  %10284 = vmatprep.subr.bf16.mxu1 %v10693_v25 }
 0x532   : > { %v13836_v40 = vadd.f32 %v3995_v34, %v13582_v31  ;;  %v13850_v31 = vpop.f32.mrf.mxu0 }
 0x533   : > { %v9934_v18 = vpop.f32.mrf.mxu1  ;;  %10141 = vmatmul.mubr.bf16.gmra.mxu1 %v16405_v42  ;;  %16407 = vst [vmem:[#allocation167_spill] sm:$0xff] %v13850_v31  ;;  %v16429_v31 = vld [vmem:[#allocation90_spill] sm:$0xff] }
 0x534   : > { %v13842_v43 = vadd.f32 %v9934_v18, %v13587_v2  ;;  %10144 = vmatprep.mubr.msk.bf16.mxu1 %vm11905_vm5, %v16406_v10  ;;  %10285 = vmatpush3.bf16.msra.mxu1 %v10693_v25  ;;  %v10696_v18 = vld [vmem:[#allocation14 + $0x200] sm:$0xff]   ;;  %v13858_v25 = vpop.f32.mrf.mxu0 }
 0x535   : > { %v4008_v59 = vpop.f32.mrf.mxu1  ;;  %10286 = vmatprep.subr.bf16.mxu1 %v10694_v26  ;;  %16408 = vst [vmem:[#allocation224_spill] sm:$0xff] %v13858_v25 }
 0x536   : > { %v13848_v39 = vadd.f32 %v4008_v59, %v13592_v3  ;;  %v16410_v59 = vld [vmem:[#allocation70_spill] sm:$0xff] }
 0x537   : > { %v9935_v34 = vpop.f32.mrf.mxu1 }
 0x538   : > { %v13853_v36 = vadd.f32 %v9935_v34, %v13596_v33  ;;  %10287 = vmatpush3.bf16.msra.mxu1 %v10694_v26 }
 0x539   : > { %v4011_v2 = vpop.f32.mrf.mxu1  ;;  %10288 = vmatprep.subr.bf16.mxu1 %v10695_v61 }
 0x53a   : > { %v13856_v42 = vadd.f32 %v4011_v2, %v13600_v19  ;;  %v13870_v19 = vpop.f32.mrf.mxu0 }
 0x53b   : > { %v9938_v10 = vpop.f32.mrf.mxu1  ;;  %10145 = vmatmul.mubr.bf16.gmra.mxu1 %v16409_v37  ;;  %16411 = vst [vmem:[#allocation61_spill] sm:$0xff] %v13870_v19  ;;  %v16426_v19 = vld [vmem:[#allocation219_spill] sm:$0xff] }
 0x53c   : > { %v13862_v3 = vadd.f32 %v9938_v10, %v13605_v17  ;;  %10148 = vmatprep.mubr.msk.bf16.mxu1 %vm11905_vm5, %v16410_v59  ;;  %10289 = vmatpush3.bf16.msra.mxu1 %v10695_v61  ;;  %v13878_v10 = vpop.f32.mrf.mxu0  ;;  %v16413_v61 = vld [vmem:[#allocation71_spill] sm:$0xff] }
 0x53d   : > { %v4024_v33 = vpop.f32.mrf.mxu1  ;;  %10290 = vmatprep.subr.bf16.mxu1 %v10696_v18  ;;  %16412 = vst [vmem:[#allocation169_spill] sm:$0xff] %v13878_v10  ;;  %v16417_v10 = vld [vmem:[#allocation76_spill] sm:$0xff] }
 0x53e   : > { %v13868_v26 = vadd.f32 %v4024_v33, %v13610_v35  ;;  %v16414_v35 = vld [vmem:[#allocation75_spill] sm:$0xff] }
 0x53f   : > { %v9939_v34 = vpop.f32.mrf.mxu1 }
 0x540   : > { %v13873_v2 = vadd.f32 %v9939_v34, %v13614_v29  ;;  %10291 = vmatpush3.bf16.msra.mxu1 %v10696_v18  ;;  %v13890_v18 = vpop.f32.mrf.mxu0 }
 0x541   : > { %v4027_v37 = vpop.f32.mrf.mxu1  ;;  %16415 = vst [vmem:[#allocation225_spill] sm:$0xff] %v13890_v18  ;;  %v16421_v18 = vld [vmem:[#allocation82_spill] sm:$0xff] }
 0x542   : > { %v13876_v17 = vadd.f32 %v4027_v37, %v13618_v49 }
 0x543   : > { %v9942_v59 = vpop.f32.mrf.mxu1  ;;  %10149 = vmatmul.mubr.bf16.gmra.mxu1 %v16413_v61 }
 0x544   : > { %v13882_v25 = vadd.f32 %v9942_v59, %v13623_v55  ;;  %10152 = vmatprep.mubr.msk.bf16.mxu1 %vm11905_vm5, %v16414_v35  ;;  %v13898_v55 = vpop.f32.mrf.mxu0 }
 0x545   : > { %v4040_v33 = vpop.f32.mrf.mxu1  ;;  %16416 = vst [vmem:[#allocation64_spill] sm:$0xff] %v13898_v55 }
 0x546   : > { %v13888_v29 = vadd.f32 %v4040_v33, %v13628_v22  ;;  %v16418_v22 = vld [vmem:[#allocation81_spill] sm:$0xff] }
 0x547   : > { %v9943_v49 = vpop.f32.mrf.mxu1 }
 0x548   : > { %v13893_v34 = vadd.f32 %v9943_v49, %v13632_v57  ;;  %v13910_v49 = vpop.f32.mrf.mxu0 }
 0x549   : > { %v4043_v37 = vpop.f32.mrf.mxu1  ;;  %16419 = vst [vmem:[#allocation171_spill] sm:$0xff] %v13910_v49 }
 0x54a   : > { %v13896_v61 = vadd.f32 %v4043_v37, %v13636_v24 }
 0x54b   : > { %v9946_v59 = vpop.f32.mrf.mxu1  ;;  %10153 = vmatmul.mubr.bf16.gmra.mxu1 %v16417_v10 }
 0x54c   : > { %v13902_v35 = vadd.f32 %v9946_v59, %v13641_v52  ;;  %10156 = vmatprep.mubr.msk.bf16.mxu1 %vm11905_vm5, %v16418_v22  ;;  %v13918_v52 = vpop.f32.mrf.mxu0 }
 0x54d   : > { %v4056_v33 = vpop.f32.mrf.mxu1  ;;  %16420 = vst [vmem:[#allocation226_spill] sm:$0xff] %v13918_v52 }
 0x54e   : > { %v13908_v57 = vadd.f32 %v4056_v33, %v13646_v41  ;;  %v16422_v41 = vld [vmem:[#allocation89_spill] sm:$0xff] }
 0x54f   : > { %v9947_v24 = vpop.f32.mrf.mxu1 }
 0x550   : > { %v13913_v37 = vadd.f32 %v9947_v24, %v13650_v45  ;;  %v13930_v24 = vpop.f32.mrf.mxu0 }
 0x551   : > { %v4059_v55 = vpop.f32.mrf.mxu1  ;;  %16423 = vst [vmem:[#allocation173_spill] sm:$0xff] %v13930_v24  ;;  %v16435_v24 = vld [vmem:[#allocation220_spill] sm:$0xff] }
 0x552   : > { %v13916_v10 = vadd.f32 %v4059_v55, %v13654_v23  ;;  %v16424_v55 = vld [vmem:[#allocation158_spill] sm:$0xff] }
 0x553   : > { %v9950_v59 = vpop.f32.mrf.mxu1  ;;  %10157 = vmatmul.mubr.bf16.gmra.mxu1 %v16421_v18 }
 0x554   : > { %v13922_v22 = vadd.f32 %v9950_v59, %v13659_v32  ;;  %10160 = vmatprep.mubr.msk.bf16.mxu1 %vm11905_vm5, %v16422_v41  ;;  %v13938_v32 = vpop.f32.mrf.mxu0 }
 0x555   : > { %v4072_v33 = vpop.f32.mrf.mxu1  ;;  %16428 = vst [vmem:[#allocation228_spill] sm:$0xff] %v13938_v32 }
 0x556   : > { %v13928_v45 = vadd.f32 %v4072_v33, %v13664_v6  ;;  %v16431_v6 = vld [vmem:[#allocation97_spill] sm:$0xff] }
 0x557   : > { %v9951_v23 = vpop.f32.mrf.mxu1 }
 0x558   : > { %v13933_v49 = vadd.f32 %v9951_v23, %v16424_v55  ;;  %v13950_v55 = vpop.f32.mrf.mxu0 }
 0x559   : > { %v4075_v52 = vpop.f32.mrf.mxu1  ;;  %16433 = vst [vmem:[#allocation229_spill] sm:$0xff] %v13950_v55 }
 0x55a   : > { %16425 = vst [vmem:[#allocation227_spill] sm:$0xff] %v13933_v49  ;;  %v13936_v18 = vadd.f32 %v4075_v52, %v16426_v19  ;;  %v13960_v46 = vpop.f32.mrf.mxu0  ;;  %v16454_v49 = vld [vmem:[#allocation154_spill] sm:$0xff] }
 0x55b   : > { %v9954_v59 = vpop.f32.mrf.mxu1  ;;  %10161 = vmatmul.mubr.bf16.gmra.mxu1 %v16429_v31  ;;  %16439 = vst [vmem:[#allocation230_spill] sm:$0xff] %v13960_v46 }
 0x55c   : > { %16427 = vst [vmem:[#allocation175_spill] sm:$0xff] %v13936_v18  ;;  %v13942_v41 = vadd.f32 %v9954_v59, %v13677_v50  ;;  %10164 = vmatprep.mubr.msk.bf16.mxu1 %vm11905_vm5, %v16431_v6  ;;  %v16437_v50 = vld [vmem:[#allocation126_spill] sm:$0xff] }
 0x55d   : > { %v4088_v33 = vpop.f32.mrf.mxu1  ;;  %v16438_v59 = vld [vmem:[#allocation150_spill] sm:$0xff] }
 0x55e   : > { %16430 = vst [vmem:[#allocation65_spill] sm:$0xff] %v13942_v41  ;;  %v13948_v23 = vadd.f32 %v4088_v33, %v13682_v13  ;;  %v4169_v27 = vadd.f32 %v16438_v59, %v16437_v50  ;;  %v16440_v41 = vld [vmem:[#allocation98_spill] sm:$0xff]  ;;  %v16442_v33 = vld [vmem:[#allocation105_spill] sm:$0xff]  ;;  %v13974_v59 = vpop.f32.mrf.mxu0 }
 0x55f   : > { %v9955_v19 = vpop.f32.mrf.mxu1  ;;  %16448 = vst [vmem:[#allocation182_spill] sm:$0xff] %v13974_v59  ;;  %v16463_v59 = vld [vmem:[#allocation156_spill] sm:$0xff] }
 0x560   : > { %16432 = vst [vmem:[#allocation177_spill] sm:$0xff] %v13948_v23  ;;  %v13953_v52 = vadd.f32 %v9955_v19, %v13688_v7  ;;  %v16443_v7 = vld [vmem:[#allocation129_spill] sm:$0xff]  ;;  %v16444_v19 = vld [vmem:[#allocation151_spill] sm:$0xff] }
 0x561   : > { %v4091_v32 = vpop.f32.mrf.mxu1  ;;  %v4167_v55 = vadd.f32 %v16444_v19, %v16443_v7  ;;  %v13984_v19 = vpop.f32.mrf.mxu0 }
 0x562   : > { %16434 = vst [vmem:[#allocation68_spill] sm:$0xff] %v13953_v52  ;;  %v13956_v31 = vadd.f32 %v4091_v32, %v16435_v24  ;;  %v16446_v32 = vld [vmem:[#allocation130_spill] sm:$0xff]  ;;  %16455 = vst [vmem:[#allocation184_spill] sm:$0xff] %v13984_v19 }
 0x563   : > { %v9974_v6 = vpop.f32.mrf.mxu1  ;;  %10165 = vmatmul.mubr.bf16.gmra.mxu1 %v16440_v41  ;;  %v16451_v41 = vld [vmem:[#allocation153_spill] sm:$0xff] }
 0x564   : > { %16436 = vst [vmem:[#allocation179_spill] sm:$0xff] %v13956_v31  ;;  %v13963_v13 = vadd.f32 %v9974_v6, %v4169_v27  ;;  %10168 = vmatprep.mubr.msk.bf16.mxu1 %vm11905_vm5, %v16442_v33  ;;  %v16447_v31 = vld [vmem:[#allocation152_spill] sm:$0xff] }
 0x565   : > { %v4394_v52 = vpop.f32.mrf.mxu1  ;;  %v4170_v50 = vadd.f32 %v16447_v31, %v16446_v32  ;;  %v16450_v27 = vld [vmem:[#allocation260_spill] sm:$0xff]  ;;  %v16458_v32 = vld [vmem:[#allocation113_spill] sm:$0xff] }
 0x566   : > { %16441 = vst [vmem:[#allocation181_spill] sm:$0xff] %v13963_v13  ;;  %v13970_v24 = vadd.f32 %v4394_v52, %v4167_v55  ;;  %v4168_v6 = vadd.f32 %v16451_v41, %v16450_v27  ;;  %v16453_v33 = vld [vmem:[#allocation136_spill] sm:$0xff]  ;;  %v16456_v52 = vld [vmem:[#allocation106_spill] sm:$0xff] }
 0x567   : > { %v9975_v46 = vpop.f32.mrf.mxu1  ;;  %v4173_v7 = vadd.f32 %v16454_v49, %v16453_v33  ;;  %v13998_v33 = vpop.f32.mrf.mxu0 }
 0x568   : > { %16445 = vst [vmem:[#allocation231_spill] sm:$0xff] %v13970_v24  ;;  %v13976_v23 = vadd.f32 %v9975_v46, %v4170_v50  ;;  %v16459_v46 = vld [vmem:[#allocation261_spill] sm:$0xff]  ;;  %v16460_v50 = vld [vmem:[#allocation155_spill] sm:$0xff]  ;;  %16464 = vst [vmem:[#allocation186_spill] sm:$0xff] %v13998_v33 }
 0x569   : > { %v4397_v13 = vpop.f32.mrf.mxu1  ;;  %v4171_v27 = vadd.f32 %v16460_v50, %v16459_v46  ;;  %v16470_v24 = vld [vmem:[#allocation159_spill] sm:$0xff]  ;;  %v14008_v50 = vpop.f32.mrf.mxu0 }
 0x56a   : > { %16449 = vst [vmem:[#allocation232_spill] sm:$0xff] %v13976_v23  ;;  %v13980_v18 = vadd.f32 %v4397_v13, %v4168_v6  ;;  %v16462_v6 = vld [vmem:[#allocation137_spill] sm:$0xff]  ;;  %16471 = vst [vmem:[#allocation235_spill] sm:$0xff] %v14008_v50 }
 0x56b   : > { %v9978_v55 = vpop.f32.mrf.mxu1  ;;  %10169 = vmatmul.mubr.bf16.gmra.mxu1 %v16456_v52  ;;  %v4174_v49 = vadd.f32 %v16463_v59, %v16462_v6  ;;  %v16474_v6 = vld [vmem:[#allocation119_spill] sm:$0xff] }
 0x56c   : > { %16452 = vst [vmem:[#allocation69_spill] sm:$0xff] %v13980_v18  ;;  %v13987_v31 = vadd.f32 %v9978_v55, %v4173_v7  ;;  %10172 = vmatprep.mubr.msk.bf16.mxu1 %vm11905_vm5, %v16458_v32  ;;  %v16466_v7 = vld [vmem:[#allocation139_spill] sm:$0xff]  ;;  %v16467_v55 = vld [vmem:[#allocation157_spill] sm:$0xff] }
 0x56d   : > { %v4410_v41 = vpop.f32.mrf.mxu1  ;;  %v4172_v52 = vadd.f32 %v16467_v55, %v16466_v7  ;;  %v16469_v32 = vld [vmem:[#allocation263_spill] sm:$0xff]  ;;  %v10697_v55 = vld [vmem:[#allocation18 + $0x70] ss:$8 sps:$4 sm:$0xff]  }
 0x56e   : > { %16457 = vst [vmem:[#allocation233_spill] sm:$0xff] %v13987_v31  ;;  %v13994_v13 = vadd.f32 %v4410_v41, %v4171_v27  ;;  %v4177_v46 = vadd.f32 %v16470_v24, %v16469_v32  ;;  %v16472_v41 = vld [vmem:[#allocation114_spill] sm:$0xff]  ;;  %v16478_v24 = vld [vmem:[#allocation265_spill] sm:$0xff]  ;;  %v16479_v32 = vld [vmem:[#allocation163_spill] sm:$0xff] }
 0x56f   : > { %v9979_v19 = vpop.f32.mrf.mxu1  ;;  %v4178_v50 = vadd.f32 %v16479_v32, %v16478_v24  ;;  %v16487_v24 = vld [vmem:[#allocation120_spill] sm:$0xff]  ;;  %v16489_v32 = vld [vmem:[#allocation125_spill] sm:$0xff] }
 0x570   : > { %16461 = vst [vmem:[#allocation72_spill] sm:$0xff] %v13994_v13  ;;  %v14000_v18 = vadd.f32 %v9979_v19, %v4174_v49  ;;  %v16475_v19 = vld [vmem:[#allocation264_spill] sm:$0xff]  ;;  %v16476_v49 = vld [vmem:[#allocation161_spill] sm:$0xff] }
 0x571   : > { %v4413_v31 = vpop.f32.mrf.mxu1  ;;  %v4175_v7 = vadd.f32 %v16476_v49, %v16475_v19  ;;  %v16484_v49 = vld [vmem:[#allocation268_spill] sm:$0xff] }
 0x572   : > { %16465 = vst [vmem:[#allocation234_spill] sm:$0xff] %v14000_v18  ;;  %v14004_v23 = vadd.f32 %v4413_v31, %v4172_v52  ;;  %v10699_v31 = vld [vmem:[#allocation18 + $0x74] ss:$8 sps:$4 sm:$0xff]   ;;  %v16485_v13 = vld [vmem:[#allocation168_spill] sm:$0xff] }
 0x573   : > { %v9982_v27 = vpop.f32.mrf.mxu1  ;;  %10173 = vmatmul.mubr.bf16.gmra.mxu1 %v16472_v41  ;;  %7423 = vmatprep.subr.bf16.mxu0 %v10699_v31  ;;  %v16481_v41 = vld [vmem:[#allocation267_spill] sm:$0xff] }
 0x574   : > { %16468 = vst [vmem:[#allocation188_spill] sm:$0xff] %v14004_v23  ;;  %v14011_v59 = vadd.f32 %v9982_v27, %v4177_v46  ;;  %10176 = vmatprep.mubr.msk.bf16.mxu1 %vm11905_vm5, %v16474_v6  ;;  %v14022_v23 = vpop.f32.mrf.mxu0  ;;  %7424 = vmatpush1.bf16.msra.mxu0 %v10697_v55  ;;  %v16482_v6 = vld [vmem:[#allocation165_spill] sm:$0xff]  ;;  %v16491_v55 = vld [vmem:[#allocation170_spill] sm:$0xff] }
 0x575   : > { %v4426_v52 = vpop.f32.mrf.mxu1  ;;  %16480 = vst [vmem:[#allocation74_spill] sm:$0xff] %v14022_v23 }
 0x576   : > { %16473 = vst [vmem:[#allocation190_spill] sm:$0xff] %v14011_v59  ;;  %v14018_v33 = vadd.f32 %v4426_v52, %v4175_v7  ;;  %v4176_v59 = vadd.f32 %v16482_v6, %v16481_v41  ;;  %v4181_v7 = vadd.f32 %v16485_v13, %v16484_v49  ;;  %v14032_v52 = vpop.f32.mrf.mxu0  ;;  %v16493_v6 = vld [vmem:[#allocation172_spill] sm:$0xff] }
 0x577   : > { %v9983_v46 = vpop.f32.mrf.mxu1  ;;  %16486 = vst [vmem:[#allocation237_spill] sm:$0xff] %v14032_v52 }
 0x578   : > { %16477 = vst [vmem:[#allocation236_spill] sm:$0xff] %v14018_v33  ;;  %v14024_v27 = vadd.f32 %v9983_v46, %v4178_v50  ;;  %v16490_v50 = vld [vmem:[#allocation48_spill] sm:$0xff]  ;;  %v14046_v49 = vpop.f32.mrf.mxu0 }
 0x579   : > { %v4429_v18 = vpop.f32.mrf.mxu1  ;;  %v4179_v46 = vadd.f32 %v16491_v55, %v16490_v50  ;;  %v16497_v55 = vld [vmem:[#allocation127_spill] sm:$0xff] }
 0x57a   : > { %v14028_v19 = vadd.f32 %v4429_v18, %v4176_v59  ;;  %v16492_v59 = vld [vmem:[#allocation269_spill] sm:$0xff] }
 0x57b   : > { %v9986_v33 = vpop.f32.mrf.mxu1  ;;  %10177 = vmatmul.mubr.bf16.gmra.mxu1 %v16487_v24  ;;  %v4182_v13 = vadd.f32 %v16493_v6, %v16492_v59  ;;  %v16499_v59 = vld [vmem:[#allocation134_spill] sm:$0xff]  ;;  %v10702_v6 = vld [vmem:[#allocation18 + $0x64] ss:$8 sps:$4 sm:$0xff]  }
 0x57c   : > { %16483 = vst [vmem:[#allocation192_spill] sm:$0xff] %v14028_v19  ;;  %v14035_v31 = vadd.f32 %v9986_v33, %v4181_v7  ;;  %10180 = vmatprep.mubr.msk.bf16.mxu1 %vm11905_vm5, %v16489_v32  ;;  %v16494_v33 = vld [vmem:[#allocation270_spill] sm:$0xff]  ;;  %v14054_v32 = vpop.f32.mrf.mxu0  ;;  %7425 = vmatprep.subr.bf16.mxu0 %v10702_v6 }
 0x57d   : > { %v4442_v41 = vpop.f32.mrf.mxu1  ;;  %v16495_v7 = vld [vmem:[#allocation174_spill] sm:$0xff]  ;;  %16496 = vst [vmem:[#allocation193_spill] sm:$0xff] %v14054_v32  ;;  %v16501_v32 = vld [vmem:[#allocation135_spill] sm:$0xff] }
 0x57e   : > { %16488 = vst [vmem:[#allocation77_spill] sm:$0xff] %v14035_v31  ;;  %v14042_v18 = vadd.f32 %v4442_v41, %v4179_v46  ;;  %v4180_v24 = vadd.f32 %v16495_v7, %v16494_v33  ;;  %v16498_v46 = vld [vmem:[#allocation162_spill] sm:$0xff] }
 0x57f   : > { %v9987_v52 = vpop.f32.mrf.mxu1  ;;  %v16502_v6 = vld [vmem:[#allocation262_spill] sm:$0xff] }
 0x580   : > { %v14048_v23 = vadd.f32 %v9987_v52, %v4182_v13  ;;  %v10700_v52 = vld [vmem:[#allocation18 + $0x60] ss:$8 sps:$4 sm:$0xff]  }
 0x581   : > { %v4445_v31 = vpop.f32.mrf.mxu1  ;;  %7426 = vmatpush1.bf16.msra.mxu0 %v10700_v52 }
 0x582   : > { %v14052_v19 = vadd.f32 %v4445_v31, %v4180_v24  ;;  %v14066_v31 = vpop.f32.mrf.mxu0 }
 0x583   : > { %v9990_v50 = vpop.f32.mrf.mxu1  ;;  %10181 = vmatmul.mubr.bf16.gmra.mxu1 %v16497_v55 }
 0x584   : > { %v14058_v41 = vadd.f32 %v9990_v50, %v16498_v46  ;;  %10184 = vmatprep.mubr.msk.bf16.mxu1 %vm11905_vm5, %v16499_v59  ;;  %v14074_v46 = vpop.f32.mrf.mxu0 }
 0x585   : > { %v4458_v13 = vpop.f32.mrf.mxu1  ;;  %16500 = vst [vmem:[#allocation238_spill] sm:$0xff] %v14074_v46  ;;  %v16504_v46 = vld [vmem:[#allocation266_spill] sm:$0xff] }
 0x586   : > { %v14064_v33 = vadd.f32 %v4458_v13, %v13704_v16  ;;  %v14086_v13 = vpop.f32.mrf.mxu0 }
 0x587   : > { %v9991_v7 = vpop.f32.mrf.mxu1 }
 0x588   : > { %v14069_v24 = vadd.f32 %v9991_v7, %v13711_v54 }
 0x589   : > { %v4461_v50 = vpop.f32.mrf.mxu1 }
 0x58a   : > { %v14072_v55 = vadd.f32 %v4461_v50, %v13715_v30 }
 0x58b   : > { %v9994_v59 = vpop.f32.mrf.mxu1  ;;  %10185 = vmatmul.mubr.bf16.gmra.mxu1 %v16501_v32 }
 0x58c   : > { %v14078_v16 = vadd.f32 %v9994_v59, %v13725_v11  ;;  %10188 = vmatprep.mubr.msk.bf16.mxu1 %vm11905_vm5, %v16502_v6  ;;  %v14094_v11 = vpop.f32.mrf.mxu0 }
 0x58d   : > { %v4474_v52 = vpop.f32.mrf.mxu1  ;;  %16503 = vst [vmem:[#allocation194_spill] sm:$0xff] %v14094_v11 }
 0x58e   : > { %v14084_v54 = vadd.f32 %v4474_v52, %v13755_v9  ;;  %v16505_v9 = vpack.c.bf16 %v13731_v12, %v13735_v21  ;;  %v10705_v52 = vld [vmem:[#allocation18 + $0x54] ss:$8 sps:$4 sm:$0xff]  }
 0x58f   : > { %v9995_v30 = vpop.f32.mrf.mxu1  ;;  %7427 = vmatprep.subr.bf16.mxu0 %v10705_v52 }
 0x590   : > { %v14089_v7 = vadd.f32 %v9995_v30, %v13768_v51  ;;  %v10703_v51 = vld [vmem:[#allocation18 + $0x50] ss:$8 sps:$4 sm:$0xff]  }
 0x591   : > { %v4477_v50 = vpop.f32.mrf.mxu1  ;;  %7428 = vmatpush1.bf16.msra.mxu0 %v10703_v51 }
 0x592   : > { %v14092_v32 = vadd.f32 %v4477_v50, %v13771_v5  ;;  %v14108_v50 = vpop.f32.mrf.mxu0 }
 0x593   : > { %v9998_v59 = vpop.f32.mrf.mxu1  ;;  %10189 = vmatmul.mubr.bf16.gmra.mxu1 %v16504_v46 }
 0x594   : > { %v14098_v6 = vadd.f32 %v9998_v59, %v13775_v62  ;;  %10192 = vmatprep.mubr.msk.bf16.mxu1 %vm11905_vm5, %v16505_v9  ;;  %v14116_v14 = vpop.f32.mrf.mxu0  ;;  %v16506_v59 = vpack.c.bf16 %v13741_v1, %v13745_v38  ;;  %v16507_v9 = vld [vmem:[#allocation51_spill] sm:$0xff] }
 0x595   : > { %v4490_v30 = vpop.f32.mrf.mxu1 }
 0x596   : > { %v14106_v5 = vadd.f32 %v4490_v30, %v13779_v56 }
 0x597   : > { %v9999_v11 = vpop.f32.mrf.mxu1 }
 0x598   : > { %v14111_v62 = vadd.f32 %v9999_v11, %v13782_v4  ;;  %v14128_v11 = vpop.f32.mrf.mxu0 }
 0x599   : > { %v4493_v46 = vpop.f32.mrf.mxu1  ;;  %16508 = vst [vmem:[#allocation239_spill] sm:$0xff] %v14128_v11  ;;  %v16515_v11 = vld [vmem:[#allocation57_spill] sm:$0xff] }
 0x59a   : > { %v14114_v12 = vadd.f32 %v4493_v46, %v13785_v28  ;;  %v14136_v1 = vpop.f32.mrf.mxu0 }
 0x59b   : > { %v10002_v21 = vpop.f32.mrf.mxu1  ;;  %10193 = vmatmul.mubr.bf16.gmra.mxu1 %v16506_v59  ;;  %16509 = vst [vmem:[#allocation195_spill] sm:$0xff] %v14136_v1  ;;  %v16512_v59 = vld [vmem:[#allocation55_spill] sm:$0xff] }
 0x59c   : > { %v14122_v56 = vadd.f32 %v10002_v21, %v13789_v8  ;;  %10292 = vmatprep.mubr.bf16.mxu1 %v16507_v9  ;;  %v16510_v8 = vld [vmem:[#allocation52_spill] sm:$0xff]  ;;  %v10706_v9 = vld [vmem:[#allocation18 + $0x40] ss:$8 sps:$4 sm:$0xff]  }
 0x59d   : > { %v4506_v51 = vpop.f32.mrf.mxu1 }
 0x59e   : > { %v14126_v4 = vadd.f32 %v4506_v51, %v13795_v15  ;;  %v10708_v51 = vld [vmem:[#allocation18 + $0x44] ss:$8 sps:$4 sm:$0xff]  }
 0x59f   : > { %v10003_v28 = vpop.f32.mrf.mxu1  ;;  %7429 = vmatprep.subr.bf16.mxu0 %v10708_v51  ;;  %v16516_v51 = vld [vmem:[#allocation78_spill] sm:$0xff] }
 0x5a0   : > { %v14131_v52 = vadd.f32 %v10003_v28, %v13798_v63  ;;  %7430 = vmatpush1.bf16.msra.mxu0 %v10706_v9 }
 0x5a1   : > { %v4509_v30 = vpop.f32.mrf.mxu1 }
 0x5a2   : > { %v14134_v46 = vadd.f32 %v4509_v30, %v13801_v53  ;;  %v14148_v53 = vpop.f32.mrf.mxu0 }
 0x5a3   : > { %v10006_v38 = vpop.f32.mrf.mxu1  ;;  %10293 = vmatmul.mubr.msk.bf16.vlgmr.msra.gmra.mxu1 %vm12229_vm7, %v16510_v8  ;;  %16513 = vst [vmem:[#allocation240_spill] sm:$0xff] %v14148_v53 }
 0x5a4   : > { %v14142_v15 = vadd.f32 %v10006_v38, %v13805_v47  ;;  %10296 = vmatprep.mubr.bf16.mxu1 %v16512_v59  ;;  %v14156_v38 = vpop.f32.mrf.mxu0 }
 0x5a5   : > { %v4522_v63 = vpop.f32.mrf.mxu1  ;;  %16514 = vst [vmem:[#allocation79_spill] sm:$0xff] %v14156_v38 }
 0x5a6   : > { %v14146_v28 = vadd.f32 %v4522_v63, %v13812_v48  ;;  %v14165_v9 = vpop.f32.mrf.mxu0 }
 0x5a7   : > { %v10007_v30 = vpop.f32.mrf.mxu1  ;;  %16517 = vst [vmem:[#allocation49_spill] sm:$0xff] %v14165_v9  ;;  %v10711_v9 = vld [vmem:[#allocation18 + $0x34] ss:$8 sps:$4 sm:$0xff]  }
 0x5a8   : > { %v14151_v1 = vadd.f32 %v10007_v30, %v13815_v44  ;;  %7431 = vmatprep.subr.bf16.mxu0 %v10711_v9  ;;  %v16525_v9 = vld [vmem:[#allocation86_spill] sm:$0xff] }
 0x5a9   : > { %v4525_v8 = vpop.f32.mrf.mxu1 }
 0x5aa   : > { %v14154_v47 = vadd.f32 %v4525_v8, %v13818_v20  ;;  %v14173_v8 = vpop.f32.mrf.mxu0 }
 0x5ab   : > { %v10010_v59 = vpop.f32.mrf.mxu1  ;;  %10297 = vmatmul.mubr.msk.bf16.gmra.mxu1 %vm12229_vm7, %v16515_v11  ;;  %16518 = vst [vmem:[#allocation241_spill] sm:$0xff] %v14173_v8 }
 0x5ac   : > { %v14162_v48 = vadd.f32 %v10010_v59, %v13822_v60  ;;  %10300 = vmatprep.mubr.bf16.mxu1 %v16516_v51  ;;  %v16519_v59 = vld [vmem:[#allocation80_spill] sm:$0xff] }
 0x5ad   : > { %v4538_v44 = vpop.f32.mrf.mxu1 }
 0x5ae   : > { %v14168_v63 = vadd.f32 %v4538_v44, %v13828_v0  ;;  %v16520_v0 = vld [vmem:[#allocation83_spill] sm:$0xff]  ;;  %v10709_v44 = vld [vmem:[#allocation18 + $0x30] ss:$8 sps:$4 sm:$0xff]  }
 0x5af   : > { %v10011_v20 = vpop.f32.mrf.mxu1  ;;  %7432 = vmatpush1.bf16.msra.mxu0 %v10709_v44 }
 0x5b0   : > { %v14171_v30 = vadd.f32 %v10011_v20, %v13833_v58  ;;  %v14185_v58 = vpop.f32.mrf.mxu0 }
 0x5b1   : > { %v4541_v38 = vpop.f32.mrf.mxu1  ;;  %16521 = vst [vmem:[#allocation84_spill] sm:$0xff] %v14185_v58  ;;  %v16524_v58 = vld [vmem:[#allocation85_spill] sm:$0xff] }
 0x5b2   : > { %v14176_v11 = vadd.f32 %v4541_v38, %v13836_v40 }
 0x5b3   : > { %v10014_v60 = vpop.f32.mrf.mxu1  ;;  %10301 = vmatmul.mubr.msk.bf16.gmra.mxu1 %vm12229_vm7, %v16519_v59  ;;  %v14193_v59 = vpop.f32.mrf.mxu0 }
 0x5b4   : > { %v14182_v51 = vadd.f32 %v10014_v60, %v13842_v43  ;;  %10304 = vmatprep.mubr.bf16.mxu1 %v16520_v0  ;;  %16522 = vst [vmem:[#allocation196_spill] sm:$0xff] %v14193_v59  ;;  %v16532_v59 = vld [vmem:[#allocation93_spill] sm:$0xff] }
 0x5b5   : > { %v4554_v20 = vpop.f32.mrf.mxu1  ;;  %v14198_v0 = vpop.f32.mrf.mxu0 }
 0x5b6   : > { %v14188_v8 = vadd.f32 %v4554_v20, %v13848_v39  ;;  %16523 = vst [vmem:[#allocation242_spill] sm:$0xff] %v14198_v0 }
 0x5b7   : > { %v10015_v40 = vpop.f32.mrf.mxu1  ;;  %v14210_v20 = vpop.f32.mrf.mxu0 }
 0x5b8   : > { %v14191_v38 = vadd.f32 %v10015_v40, %v13853_v36  ;;  %16526 = vst [vmem:[#allocation50_spill] sm:$0xff] %v14210_v20  ;;  %v10714_v20 = vld [vmem:[#allocation18 + $0x24] ss:$8 sps:$4 sm:$0xff]  }
 0x5b9   : > { %v4557_v43 = vpop.f32.mrf.mxu1  ;;  %7433 = vmatprep.subr.bf16.mxu0 %v10714_v20  ;;  %v16534_v20 = vld [vmem:[#allocation94_spill] sm:$0xff] }
 0x5ba   : > { %v14196_v60 = vadd.f32 %v4557_v43, %v13856_v42 }
 0x5bb   : > { %v10018_v53 = vpop.f32.mrf.mxu1  ;;  %10305 = vmatmul.mubr.msk.bf16.gmra.mxu1 %vm12229_vm7, %v16524_v58  ;;  %v14218_v58 = vpop.f32.mrf.mxu0 }
 0x5bc   : > { %v14204_v39 = vadd.f32 %v10018_v53, %v13862_v3  ;;  %10308 = vmatprep.mubr.bf16.mxu1 %v16525_v9  ;;  %16527 = vst [vmem:[#allocation243_spill] sm:$0xff] %v14218_v58  ;;  %v16528_v53 = vld [vmem:[#allocation88_spill] sm:$0xff]  ;;  %v16529_v9 = vld [vmem:[#allocation91_spill] sm:$0xff] }
 0x5bd   : > { %v4570_v36 = vpop.f32.mrf.mxu1 }
 0x5be   : > { %v14208_v44 = vadd.f32 %v4570_v36, %v13868_v26  ;;  %v10712_v36 = vld [vmem:[#allocation18 + $0x20] ss:$8 sps:$4 sm:$0xff]  }
 0x5bf   : > { %v10019_v42 = vpop.f32.mrf.mxu1  ;;  %7434 = vmatpush1.bf16.msra.mxu0 %v10712_v36 }
 0x5c0   : > { %v14213_v40 = vadd.f32 %v10019_v42, %v13873_v2 }
 0x5c1   : > { %v4573_v43 = vpop.f32.mrf.mxu1 }
 0x5c2   : > { %v14216_v0 = vadd.f32 %v4573_v43, %v13876_v17  ;;  %v14230_v17 = vpop.f32.mrf.mxu0 }
 0x5c3   : > { %v10022_v3 = vpop.f32.mrf.mxu1  ;;  %10309 = vmatmul.mubr.msk.bf16.gmra.mxu1 %vm12229_vm7, %v16528_v53  ;;  %16530 = vst [vmem:[#allocation197_spill] sm:$0xff] %v14230_v17  ;;  %v16546_v17 = vld [vmem:[#allocation227_spill] sm:$0xff] }
 0x5c4   : > { %v14224_v26 = vadd.f32 %v10022_v3, %v13882_v25  ;;  %10312 = vmatprep.mubr.bf16.mxu1 %v16529_v9  ;;  %v14235_v53 = vpop.f32.mrf.mxu0 }
 0x5c5   : > { %v4586_v2 = vpop.f32.mrf.mxu1  ;;  %16531 = vst [vmem:[#allocation244_spill] sm:$0xff] %v14235_v53 }
 0x5c6   : > { %v14228_v42 = vadd.f32 %v4586_v2, %v13888_v29  ;;  %v14247_v36 = vpop.f32.mrf.mxu0 }
 0x5c7   : > { %v10023_v43 = vpop.f32.mrf.mxu1  ;;  %16535 = vst [vmem:[#allocation198_spill] sm:$0xff] %v14247_v36  ;;  %v10717_v36 = vld [vmem:[#allocation18 + $0x14] ss:$8 sps:$4 sm:$0xff]  }
 0x5c8   : > { %v14233_v58 = vadd.f32 %v10023_v43, %v13893_v34  ;;  %7435 = vmatprep.subr.bf16.mxu0 %v10717_v36 }
 0x5c9   : > { %v4589_v25 = vpop.f32.mrf.mxu1 }
 0x5ca   : > { %v14238_v3 = vadd.f32 %v4589_v25, %v13896_v61  ;;  %v14255_v25 = vpop.f32.mrf.mxu0 }
 0x5cb   : > { %v10026_v9 = vpop.f32.mrf.mxu1  ;;  %10313 = vmatmul.mubr.msk.bf16.gmra.mxu1 %vm12229_vm7, %v16532_v59  ;;  %16538 = vst [vmem:[#allocation199_spill] sm:$0xff] %v14255_v25 }
 0x5cc   : > { %v14244_v29 = vadd.f32 %v10026_v9, %v13902_v35  ;;  %10316 = vmatprep.mubr.bf16.mxu1 %v16534_v20  ;;  %v16540_v9 = vld [vmem:[#allocation96_spill] sm:$0xff] }
 0x5cd   : > { %v4602_v34 = vpop.f32.mrf.mxu1 }
 0x5ce   : > { %16533 = vst [vmem:[#allocation87_spill] sm:$0xff] %v14244_v29  ;;  %v14250_v2 = vadd.f32 %v4602_v34, %v13908_v57  ;;  %v16542_v57 = vld [vmem:[#allocation99_spill] sm:$0xff]  ;;  %v10715_v34 = vld [vmem:[#allocation18 + $0x10] ss:$8 sps:$4 sm:$0xff]  }
 0x5cf   : > { %v10027_v43 = vpop.f32.mrf.mxu1  ;;  %7436 = vmatpush1.bf16.msra.mxu0 %v10715_v34  ;;  %v16579_v29 = vld [vmem:[#allocation185_spill] sm:$0xff] }
 0x5d0   : > { %16536 = vst [vmem:[#allocation245_spill] sm:$0xff] %v14250_v2  ;;  %v14253_v61 = vadd.f32 %v10027_v43, %v13913_v37  ;;  %v14267_v37 = vpop.f32.mrf.mxu0  ;;  %v16575_v2 = vld [vmem:[#allocation69_spill] sm:$0xff] }
 0x5d1   : > { %v4605_v53 = vpop.f32.mrf.mxu1  ;;  %16543 = vst [vmem:[#allocation247_spill] sm:$0xff] %v14267_v37  ;;  %v16551_v37 = vld [vmem:[#allocation101_spill] sm:$0xff] }
 0x5d2   : > { %16537 = vst [vmem:[#allocation92_spill] sm:$0xff] %v14253_v61  ;;  %v14258_v59 = vadd.f32 %v4605_v53, %v13916_v10  ;;  %v14272_v10 = vpop.f32.mrf.mxu0  ;;  %v16563_v61 = vld [vmem:[#allocation176_spill] sm:$0xff] }
 0x5d3   : > { %v10030_v35 = vpop.f32.mrf.mxu1  ;;  %10317 = vmatmul.mubr.msk.bf16.gmra.mxu1 %vm12229_vm7, %v16540_v9  ;;  %16545 = vst [vmem:[#allocation248_spill] sm:$0xff] %v14272_v10  ;;  %v16555_v10 = vld [vmem:[#allocation177_spill] sm:$0xff] }
 0x5d4   : > { %16539 = vst [vmem:[#allocation246_spill] sm:$0xff] %v14258_v59  ;;  %v14264_v20 = vadd.f32 %v10030_v35, %v13922_v22  ;;  %10320 = vmatprep.mubr.bf16.mxu1 %v16542_v57  ;;  %v16548_v35 = vld [vmem:[#allocation175_spill] sm:$0xff]  ;;  %v14280_v57 = vpop.f32.mrf.mxu0 }
 0x5d5   : > { %v4618_v43 = vpop.f32.mrf.mxu1  ;;  %16550 = vst [vmem:[#allocation249_spill] sm:$0xff] %v14280_v57 }
 0x5d6   : > { %16541 = vst [vmem:[#allocation200_spill] sm:$0xff] %v14264_v20  ;;  %v14270_v25 = vadd.f32 %v4618_v43, %v13928_v45  ;;  %v16552_v45 = vld [vmem:[#allocation65_spill] sm:$0xff]  ;;  %v16554_v43 = vld [vmem:[#allocation102_spill] sm:$0xff] }
 0x5d7   : > { %v10031_v53 = vpop.f32.mrf.mxu1 }
 0x5d8   : > { %16544 = vst [vmem:[#allocation201_spill] sm:$0xff] %v14270_v25  ;;  %v14275_v9 = vadd.f32 %v10031_v53, %v16546_v17  ;;  %v14292_v53 = vpop.f32.mrf.mxu0 }
 0x5d9   : > { %v4621_v22 = vpop.f32.mrf.mxu1  ;;  %16557 = vst [vmem:[#allocation250_spill] sm:$0xff] %v14292_v53 }
 0x5da   : > { %16547 = vst [vmem:[#allocation95_spill] sm:$0xff] %v14275_v9  ;;  %v14278_v20 = vadd.f32 %v4621_v22, %v16548_v35  ;;  %v16558_v35 = vld [vmem:[#allocation68_spill] sm:$0xff]  ;;  %v16560_v9 = vld [vmem:[#allocation179_spill] sm:$0xff] }
 0x5db   : > { %v10034_v59 = vpop.f32.mrf.mxu1  ;;  %10321 = vmatmul.mubr.msk.bf16.gmra.mxu1 %vm12229_vm7, %v16551_v37  ;;  %v16562_v37 = vld [vmem:[#allocation181_spill] sm:$0xff] }
 0x5dc   : > { %16549 = vst [vmem:[#allocation202_spill] sm:$0xff] %v14278_v20  ;;  %v14286_v36 = vadd.f32 %v10034_v59, %v16552_v45  ;;  %10324 = vmatprep.mubr.bf16.mxu1 %v16554_v43  ;;  %v5261_v59 = vadd.f32 %v16563_v61, %v16562_v37  ;;  %v14302_v45 = vpop.f32.mrf.mxu0 }
 0x5dd   : > { %v4634_v34 = vpop.f32.mrf.mxu1  ;;  %16564 = vst [vmem:[#allocation205_spill] sm:$0xff] %v14302_v45 }
 0x5de   : > { %16553 = vst [vmem:[#allocation100_spill] sm:$0xff] %v14286_v36  ;;  %v14290_v17 = vadd.f32 %v4634_v34, %v16555_v10  ;;  %v16565_v36 = vld [vmem:[#allocation104_spill] sm:$0xff]  ;;  %v16567_v34 = vld [vmem:[#allocation107_spill] sm:$0xff]  ;;  %v14316_v37 = vpop.f32.mrf.mxu0 }
 0x5df   : > { %v10035_v22 = vpop.f32.mrf.mxu1  ;;  %16573 = vst [vmem:[#allocation206_spill] sm:$0xff] %v14316_v37 }
 0x5e0   : > { %16556 = vst [vmem:[#allocation203_spill] sm:$0xff] %v14290_v17  ;;  %v14295_v20 = vadd.f32 %v10035_v22, %v16558_v35  ;;  %v16568_v22 = vld [vmem:[#allocation231_spill] sm:$0xff]  ;;  %v16569_v35 = vld [vmem:[#allocation178_spill] sm:$0xff] }
 0x5e1   : > { %v4637_v57 = vpop.f32.mrf.mxu1  ;;  %v5259_v53 = vadd.f32 %v16569_v35, %v16568_v22  ;;  %v10718_v35 = vld [vmem:[#allocation18] ss:$8 sps:$4 sm:$0xff]  }
 0x5e2   : > { %16559 = vst [vmem:[#allocation204_spill] sm:$0xff] %v14295_v20  ;;  %v14298_v25 = vadd.f32 %v4637_v57, %v16560_v9  ;;  %v16571_v57 = vld [vmem:[#allocation232_spill] sm:$0xff] }
 0x5e3   : > { %v10134_v43 = vpop.f32.mrf.mxu1  ;;  %10325 = vmatmul.mubr.msk.bf16.gmra.mxu1 %vm12229_vm7, %v16565_v36  ;;  %v16576_v36 = vld [vmem:[#allocation183_spill] sm:$0xff] }
 0x5e4   : > { %16561 = vst [vmem:[#allocation251_spill] sm:$0xff] %v14298_v25  ;;  %v14307_v10 = vadd.f32 %v10134_v43, %v5261_v59  ;;  %10328 = vmatprep.mubr.bf16.mxu1 %v16567_v34  ;;  %v16572_v25 = vld [vmem:[#allocation180_spill] sm:$0xff]  ;;  %v5260_v59 = vadd.f32 %v16576_v36, %v16575_v2  ;;  %v16578_v34 = vld [vmem:[#allocation233_spill] sm:$0xff] }
 0x5e5   : > { %v5486_v20 = vpop.f32.mrf.mxu1  ;;  %v5262_v61 = vadd.f32 %v16572_v25, %v16571_v57  ;;  %v5265_v22 = vadd.f32 %v16579_v29, %v16578_v34  ;;  %v16581_v25 = vld [vmem:[#allocation109_spill] sm:$0xff]  ;;  %v16583_v57 = vld [vmem:[#allocation110_spill] sm:$0xff]  ;;  %v16584_v2 = vld [vmem:[#allocation72_spill] sm:$0xff] }
 0x5e6   : > { %16566 = vst [vmem:[#allocation252_spill] sm:$0xff] %v14307_v10  ;;  %v14312_v9 = vadd.f32 %v5486_v20, %v5259_v53  ;;  %v10720_v20 = vld [vmem:[#allocation18 + $0x4] ss:$8 sps:$4 sm:$0xff]   ;;  %v14326_v53 = vpop.f32.mrf.mxu0  ;;  %v16588_v34 = vld [vmem:[#allocation189_spill] sm:$0xff] }
 0x5e7   : > { %v10135_v45 = vpop.f32.mrf.mxu1  ;;  %16580 = vst [vmem:[#allocation207_spill] sm:$0xff] %v14326_v53  ;;  %7437 = vmatprep.subr.bf16.mxu0 %v10720_v20  ;;  %v16594_v20 = vld [vmem:[#allocation213_spill] sm:$0xff] }
 0x5e8   : > { %16570 = vst [vmem:[#allocation103_spill] sm:$0xff] %v14312_v9  ;;  %v14318_v17 = vadd.f32 %v10135_v45, %v5262_v61  ;;  %v16585_v61 = vld [vmem:[#allocation187_spill] sm:$0xff]  ;;  %7438 = vmatpush1.bf16.msra.mxu0 %v10718_v35 }
 0x5e9   : > { %v5489_v43 = vpop.f32.mrf.mxu1  ;;  %v5263_v36 = vadd.f32 %v16585_v61, %v16584_v2  ;;  %v16593_v2 = vld [vmem:[#allocation190_spill] sm:$0xff] }
 0x5ea   : > { %16574 = vst [vmem:[#allocation253_spill] sm:$0xff] %v14318_v17  ;;  %v14322_v10 = vadd.f32 %v5489_v43, %v5260_v59  ;;  %v16587_v43 = vld [vmem:[#allocation234_spill] sm:$0xff]  ;;  %v14340_v17 = vpop.f32.mrf.mxu0  ;;  %v5269_v61 = vadd.f32 %v16594_v20, %v16593_v2 }
 0x5eb   : > { %v10138_v9 = vpop.f32.mrf.mxu1  ;;  %10329 = vmatmul.mubr.msk.bf16.gmra.mxu1 %vm12229_vm7, %v16581_v25 }
 0x5ec   : > { %16577 = vst [vmem:[#allocation108_spill] sm:$0xff] %v14322_v10  ;;  %v14331_v45 = vadd.f32 %v10138_v9, %v5265_v22  ;;  %10332 = vmatprep.mubr.bf16.mxu1 %v16583_v57  ;;  %v5266_v10 = vadd.f32 %v16588_v34, %v16587_v43  ;;  %v16590_v9 = vld [vmem:[#allocation188_spill] sm:$0xff]  ;;  %v16591_v22 = vld [vmem:[#allocation191_spill] sm:$0xff]  ;;  %v14350_v35 = vpop.f32.mrf.mxu0  ;;  %v16600_v34 = vld [vmem:[#allocation214_spill] sm:$0xff] }
 0x5ed   : > { %v5502_v59 = vpop.f32.mrf.mxu1  ;;  %v5264_v25 = vadd.f32 %v16591_v22, %v16590_v9  ;;  %16595 = vst [vmem:[#allocation256_spill] sm:$0xff] %v14350_v35  ;;  %v16606_v35 = vld [vmem:[#allocation160_spill] sm:$0xff] }
 0x5ee   : > { %16582 = vst [vmem:[#allocation254_spill] sm:$0xff] %v14331_v45  ;;  %v14336_v29 = vadd.f32 %v5502_v59, %v5263_v36  ;;  %v16596_v59 = vld [vmem:[#allocation112_spill] sm:$0xff]  ;;  %v14364_v20 = vpop.f32.mrf.mxu0 }
 0x5ef   : > { %v10139_v53 = vpop.f32.mrf.mxu1 }
 0x5f0   : > { %16586 = vst [vmem:[#allocation208_spill] sm:$0xff] %v14336_v29  ;;  %v14342_v37 = vadd.f32 %v10139_v53, %v5266_v10  ;;  %v16598_v10 = vld [vmem:[#allocation116_spill] sm:$0xff] }
 0x5f1   : > { %v5505_v57 = vpop.f32.mrf.mxu1  ;;  %v16599_v53 = vld [vmem:[#allocation236_spill] sm:$0xff] }
 0x5f2   : > { %16589 = vst [vmem:[#allocation255_spill] sm:$0xff] %v14342_v37  ;;  %v14346_v45 = vadd.f32 %v5505_v57, %v5264_v25  ;;  %v5267_v9 = vadd.f32 %v16600_v34, %v16599_v53  ;;  %v16601_v57 = vld [vmem:[#allocation215_spill] sm:$0xff]  ;;  %v16602_v29 = vld [vmem:[#allocation192_spill] sm:$0xff]  ;;  %v14374_v34 = vpop.f32.mrf.mxu0 }
 0x5f3   : > { %v10142_v36 = vpop.f32.mrf.mxu1  ;;  %10333 = vmatmul.mubr.msk.bf16.gmra.mxu1 %vm12229_vm7, %v16596_v59  ;;  %v5270_v2 = vadd.f32 %v16601_v57, %v14024_v27  ;;  %v16603_v59 = vld [vmem:[#allocation218_spill] sm:$0xff]  ;;  %v16610_v57 = vld [vmem:[#allocation56_spill] sm:$0xff] }
 0x5f4   : > { %16592 = vst [vmem:[#allocation209_spill] sm:$0xff] %v14346_v45  ;;  %v14355_v43 = vadd.f32 %v10142_v36, %v5269_v61  ;;  %10336 = vmatprep.mubr.bf16.mxu1 %v16598_v10  ;;  %v5268_v61 = vadd.f32 %v16603_v59, %v16602_v29  ;;  %v16605_v10 = vld [vmem:[#allocation77_spill] sm:$0xff]  ;;  %v5271_v29 = vadd.f32 %v16610_v57, %v14042_v18 }
 0x5f5   : > { %v5518_v22 = vpop.f32.mrf.mxu1  ;;  %v5273_v53 = vadd.f32 %v16606_v35, %v16605_v10 }
 0x5f6   : > { %16597 = vst [vmem:[#allocation111_spill] sm:$0xff] %v14355_v43  ;;  %v14360_v25 = vadd.f32 %v5518_v22, %v5267_v9  ;;  %v16607_v22 = vld [vmem:[#allocation118_spill] sm:$0xff] }
 0x5f7   : > { %v10143_v45 = vpop.f32.mrf.mxu1 }
 0x5f8   : > { %v14366_v37 = vadd.f32 %v10143_v45, %v5270_v2  ;;  %v16609_v45 = vld [vmem:[#allocation122_spill] sm:$0xff] }
 0x5f9   : > { %v5521_v36 = vpop.f32.mrf.mxu1 }
 0x5fa   : > { %v14370_v43 = vadd.f32 %v5521_v36, %v5268_v61  ;;  %v16611_v61 = vld [vmem:[#allocation221_spill] sm:$0xff]  ;;  %v14388_v36 = vpop.f32.mrf.mxu0 }
 0x5fb   : > { %v10146_v9 = vpop.f32.mrf.mxu1  ;;  %10337 = vmatmul.mubr.msk.bf16.gmra.mxu1 %vm12229_vm7, %v16607_v22  ;;  %v5274_v35 = vadd.f32 %v16611_v61, %v14048_v23  ;;  %v16612_v22 = vld [vmem:[#allocation60_spill] sm:$0xff]  ;;  %v16617_v61 = vld [vmem:[#allocation131_spill] sm:$0xff] }
 0x5fc   : > { %16604 = vst [vmem:[#allocation210_spill] sm:$0xff] %v14370_v43  ;;  %v14379_v27 = vadd.f32 %v10146_v9, %v5273_v53  ;;  %10340 = vmatprep.mubr.bf16.mxu1 %v16609_v45  ;;  %v5272_v53 = vadd.f32 %v16612_v22, %v14052_v19  ;;  %v16614_v45 = vld [vmem:[#allocation166_spill] sm:$0xff]  ;;  %v14398_v57 = vpop.f32.mrf.mxu0 }
 0x5fd   : > { %v5534_v2 = vpop.f32.mrf.mxu1  ;;  %v5277_v18 = vadd.f32 %v16614_v45, %v14058_v41 }
 0x5fe   : > { %16608 = vst [vmem:[#allocation257_spill] sm:$0xff] %v14379_v27  ;;  %v14384_v59 = vadd.f32 %v5534_v2, %v5271_v29  ;;  %v16615_v2 = vld [vmem:[#allocation124_spill] sm:$0xff] }
 0x5ff   : > { %v10147_v10 = vpop.f32.mrf.mxu1 }
 0x600   : > { %v14390_v43 = vadd.f32 %v10147_v10, %v5274_v35  ;;  %v16618_v35 = vld [vmem:[#allocation223_spill] sm:$0xff] }
 0x601   : > { %v5537_v9 = vpop.f32.mrf.mxu1  ;;  %v5275_v19 = vadd.f32 %v16618_v35, %v14064_v33 }
 0x602   : > { %v14394_v27 = vadd.f32 %v5537_v9, %v5272_v53  ;;  %v16619_v53 = vld [vmem:[#allocation167_spill] sm:$0xff]  ;;  %v14412_v9 = vpop.f32.mrf.mxu0 }
 0x603   : > { %v10150_v29 = vpop.f32.mrf.mxu1  ;;  %10341 = vmatmul.mubr.msk.bf16.gmra.mxu1 %vm12229_vm7, %v16615_v2  ;;  %v5278_v41 = vadd.f32 %v16619_v53, %v14069_v24  ;;  %v16620_v2 = vld [vmem:[#allocation224_spill] sm:$0xff]  ;;  %v16625_v53 = vld [vmem:[#allocation138_spill] sm:$0xff] }
 0x604   : > { %16613 = vst [vmem:[#allocation115_spill] sm:$0xff] %v14394_v27  ;;  %v14403_v23 = vadd.f32 %v10150_v29, %v5277_v18  ;;  %10344 = vmatprep.mubr.bf16.mxu1 %v16617_v61  ;;  %v5276_v18 = vadd.f32 %v16620_v2, %v14072_v55  ;;  %v16622_v61 = vld [vmem:[#allocation61_spill] sm:$0xff]  ;;  %v14422_v35 = vpop.f32.mrf.mxu0 }
 0x605   : > { %v5550_v10 = vpop.f32.mrf.mxu1  ;;  %v5281_v33 = vadd.f32 %v16622_v61, %v14078_v16 }
 0x606   : > { %16616 = vst [vmem:[#allocation211_spill] sm:$0xff] %v14403_v23  ;;  %v14408_v22 = vadd.f32 %v5550_v10, %v5275_v19  ;;  %v16623_v10 = vld [vmem:[#allocation133_spill] sm:$0xff] }
 0x607   : > { %v10151_v45 = vpop.f32.mrf.mxu1 }
 0x608   : > { %v14414_v27 = vadd.f32 %v10151_v45, %v5278_v41  ;;  %v16626_v41 = vld [vmem:[#allocation169_spill] sm:$0xff] }
 0x609   : > { %v5553_v29 = vpop.f32.mrf.mxu1  ;;  %v5279_v55 = vadd.f32 %v16626_v41, %v14084_v54 }
 0x60a   : > { %v14418_v23 = vadd.f32 %v5553_v29, %v5276_v18  ;;  %v16628_v18 = vld [vmem:[#allocation225_spill] sm:$0xff]  ;;  %v14436_v29 = vpop.f32.mrf.mxu0 }
 0x60b   : > { %v10154_v19 = vpop.f32.mrf.mxu1  ;;  %10345 = vmatmul.mubr.msk.bf16.gmra.mxu1 %vm12229_vm7, %v16623_v10  ;;  %v5282_v16 = vadd.f32 %v16628_v18, %v14089_v7  ;;  %v16630_v10 = vld [vmem:[#allocation64_spill] sm:$0xff] }
 0x60c   : > { %16621 = vst [vmem:[#allocation258_spill] sm:$0xff] %v14418_v23  ;;  %v14427_v24 = vadd.f32 %v10154_v19, %v5281_v33  ;;  %10348 = vmatprep.mubr.bf16.mxu1 %v16625_v53  ;;  %v5280_v33 = vadd.f32 %v16630_v10, %v14092_v32  ;;  %v16632_v53 = vld [vmem:[#allocation171_spill] sm:$0xff]  ;;  %v14446_v41 = vpop.f32.mrf.mxu0  ;;  %v16634_v18 = vld [vmem:[#allocation164_spill] sm:$0xff]  ;;  %v16637_v32 = vld [vmem:[#allocation226_spill] sm:$0xff] }
 0x60d   : > { %v5566_v45 = vpop.f32.mrf.mxu1  ;;  %v5285_v54 = vadd.f32 %v16632_v53, %v14098_v6  ;;  %v5283_v10 = vadd.f32 %v16637_v32, %v14106_v5  ;;  %v16638_v6 = vld [vmem:[#allocation173_spill] sm:$0xff] }
 0x60e   : > { %16624 = vst [vmem:[#allocation212_spill] sm:$0xff] %v14427_v24  ;;  %v14432_v2 = vadd.f32 %v5566_v45, %v5279_v55  ;;  %v16633_v45 = vld [vmem:[#allocation140_spill] sm:$0xff]  ;;  %v5286_v53 = vadd.f32 %v16638_v6, %v14111_v62  ;;  %v16645_v6 = vld [vmem:[#allocation230_spill] sm:$0xff] }
 0x60f   : > { %v10155_v61 = vpop.f32.mrf.mxu1 }
 0x610   : > { %16627 = vst [vmem:[#allocation259_spill] sm:$0xff] %v14432_v2  ;;  %v14438_v23 = vadd.f32 %v10155_v61, %v5282_v16  ;;  %v16635_v16 = vld [vmem:[#allocation222_spill] sm:$0xff] }
 0x611   : > { %v5569_v19 = vpop.f32.mrf.mxu1  ;;  %v16636_v61 = vpack.c.bf16 %v16634_v18, %v16635_v16  ;;  %v16641_v16 = vld [vmem:[#allocation229_spill] sm:$0xff] }
 0x612   : > { %16629 = vst [vmem:[#allocation117_spill] sm:$0xff] %v14438_v23  ;;  %v14442_v24 = vadd.f32 %v5569_v19, %v5280_v33  ;;  %v5289_v5 = vadd.f32 %v16641_v16, %v14122_v56 }
 0x613   : > { %v10158_v55 = vpop.f32.mrf.mxu1  ;;  %10349 = vmatmul.mubr.msk.bf16.gmra.mxu1 %vm12229_vm7, %v16633_v45 }
 0x614   : > { %16631 = vst [vmem:[#allocation121_spill] sm:$0xff] %v14442_v24  ;;  %v14451_v7 = vadd.f32 %v10158_v55, %v5285_v54  ;;  %10352 = vmatprep.mubr.bf16.mxu1 %v16636_v61  ;;  %v14462_v24 = vpop.f32.mrf.mxu0  ;;  %v16639_v54 = vld [vmem:[#allocation228_spill] sm:$0xff] }
 0x615   : > { %v5582_v33 = vpop.f32.mrf.mxu1  ;;  %v5284_v55 = vadd.f32 %v16639_v54, %v14114_v12  ;;  %v5287_v12 = vadd.f32 %v16645_v6, %v14126_v4 }
 0x616   : > { %v14458_v19 = vadd.f32 %v5582_v33, %v5283_v10  ;;  %v14472_v61 = vpop.f32.mrf.mxu0  ;;  %v16642_v10 = vld [vmem:[#allocation149_spill] sm:$0xff]  ;;  %v16643_v33 = vld [vmem:[#allocation148_spill] sm:$0xff] }
 0x617   : > { %v10159_v23 = vpop.f32.mrf.mxu1  ;;  %v16644_v62 = vpack.c.bf16 %v16642_v10, %v16643_v33  ;;  %v16647_v10 = vld [vmem:[#allocation184_spill] sm:$0xff] }
 0x618   : > { %v14464_v2 = vadd.f32 %v10159_v23, %v5286_v53  ;;  %v5288_v21 = vadd.f32 %v16647_v10, %v14134_v46 }
 0x619   : > { %v5585_v45 = vpop.f32.mrf.mxu1 }
 0x61a   : > { %v14468_v18 = vadd.f32 %v5585_v45, %v5284_v55  ;;  %v16646_v55 = vld [vmem:[#allocation182_spill] sm:$0xff]  ;;  %v14487_v45 = vpop.f32.mrf.mxu0 }
 0x61b   : > { %v10162_v32 = vpop.f32.mrf.mxu1  ;;  %10353 = vmatmul.mubr.msk.bf16.gmra.mxu1 %vm12229_vm7, %v16644_v62  ;;  %v5290_v56 = vadd.f32 %v16646_v55, %v14131_v52  ;;  %v16650_v52 = vld [vmem:[#allocation235_spill] sm:$0xff] }
 0x61c   : > { %16640 = vst [vmem:[#allocation141_spill] sm:$0xff] %v14468_v18  ;;  %v14479_v23 = vadd.f32 %v10162_v32, %v5289_v5  ;;  %v16649_v32 = vld [vmem:[#allocation186_spill] sm:$0xff]  ;;  %v14497_v62 = vpop.f32.mrf.mxu0 }
 0x61d   : > { %v5598_v53 = vpop.f32.mrf.mxu1  ;;  %v5293_v4 = vadd.f32 %v16649_v32, %v14142_v15  ;;  %v16654_v15 = vld [vmem:[#allocation237_spill] sm:$0xff] }
 0x61e   : > { %v14483_v54 = vadd.f32 %v5598_v53, %v5287_v12  ;;  %v5291_v53 = vadd.f32 %v16650_v52, %v14146_v28  ;;  %v14507_v10 = vpop.f32.mrf.mxu0  ;;  %v5292_v32 = vadd.f32 %v16654_v15, %v14154_v47  ;;  %v5297_v28 = vadd.f32 %v14046_v49, %v14162_v48  ;;  %v16660_v49 = vld [vmem:[#allocation238_spill] sm:$0xff] }
 0x61f   : > { %v10163_v16 = vpop.f32.mrf.mxu1  ;;  %v5298_v47 = vadd.f32 %v14066_v31, %v14171_v30  ;;  %v5296_v48 = vadd.f32 %v16660_v49, %v14176_v11  ;;  %v16663_v31 = vld [vmem:[#allocation194_spill] sm:$0xff]  ;;  %v5302_v11 = vadd.f32 %v14108_v50, %v14191_v38  ;;  %v16669_v50 = vld [vmem:[#allocation195_spill] sm:$0xff] }
 0x620   : > { %v14489_v18 = vadd.f32 %v10163_v16, %v5290_v56  ;;  %v16652_v16 = vld [vmem:[#allocation74_spill] sm:$0xff]  ;;  %v5299_v30 = vadd.f32 %v16663_v31, %v14188_v8  ;;  %v5303_v38 = vadd.f32 %v16669_v50, %v14208_v44 }
 0x621   : > { %v5601_v33 = vpop.f32.mrf.mxu1  ;;  %v5294_v46 = vadd.f32 %v16652_v16, %v14151_v1  ;;  %v16657_v1 = vld [vmem:[#allocation193_spill] sm:$0xff] }
 0x622   : > { %v14493_v5 = vadd.f32 %v5601_v33, %v5288_v21 }
 0x623   : > { %v10166_v6 = vpop.f32.mrf.mxu1 }
 0x624   : > { %16648 = vst [vmem:[#allocation143_spill] sm:$0xff] %v14493_v5  ;;  %v14499_v12 = vadd.f32 %v10166_v6, %v5293_v4  ;;  %v14517_v6 = vpop.f32.mrf.mxu0 }
 0x625   : > { %v5614_v55 = vpop.f32.mrf.mxu1 }
 0x626   : > { %v14503_v56 = vadd.f32 %v5614_v55, %v5291_v53  ;;  %v5295_v55 = vadd.f32 %v16657_v1, %v14168_v63  ;;  %v5301_v63 = vadd.f32 %v14086_v13, %v14182_v51  ;;  %v5300_v13 = vadd.f32 %v14116_v14, %v14196_v60 }
 0x627   : > { %v10167_v21 = vpop.f32.mrf.mxu1 }
 0x628   : > { %16651 = vst [vmem:[#allocation144_spill] sm:$0xff] %v14503_v56  ;;  %v14509_v33 = vadd.f32 %v10167_v21, %v5294_v46  ;;  %v14527_v21 = vpop.f32.mrf.mxu0 }
 0x629   : > { %v5617_v5 = vpop.f32.mrf.mxu1 }
 0x62a   : > { %16653 = vst [vmem:[#allocation146_spill] sm:$0xff] %v14509_v33  ;;  %v14513_v4 = vadd.f32 %v5617_v5, %v5292_v32 }
 0x62b   : > { %v10170_v52 = vpop.f32.mrf.mxu1 }
 0x62c   : > { %16655 = vst [vmem:[#allocation145_spill] sm:$0xff] %v14513_v4  ;;  %v14519_v53 = vadd.f32 %v10170_v52, %v5297_v28  ;;  %v14537_v52 = vpop.f32.mrf.mxu0  ;;  %v16729_v4 = vld [vmem:[#allocation208_spill] sm:$0xff] }
 0x62d   : > { %v5630_v16 = vpop.f32.mrf.mxu1  ;;  %v6355_v33 = vadd.f32 %v14374_v34, %v16729_v4 }
 0x62e   : > { %16656 = vst [vmem:[#allocation123_spill] sm:$0xff] %v14519_v53  ;;  %v14523_v46 = vadd.f32 %v5630_v16, %v5295_v55 }
 0x62f   : > { %v10171_v5 = vpop.f32.mrf.mxu1 }
 0x630   : > { %16658 = vst [vmem:[#allocation142_spill] sm:$0xff] %v14523_v46  ;;  %v14529_v15 = vadd.f32 %v10171_v5, %v5298_v47  ;;  %v14547_v5 = vpop.f32.mrf.mxu0  ;;  %v16725_v46 = vld [vmem:[#allocation108_spill] sm:$0xff] }
 0x631   : > { %v5633_v32 = vpop.f32.mrf.mxu1 }
 0x632   : > { %16659 = vst [vmem:[#allocation128_spill] sm:$0xff] %v14529_v15  ;;  %v14533_v28 = vadd.f32 %v5633_v32, %v5296_v48 }
 0x633   : > { %v10174_v1 = vpop.f32.mrf.mxu1 }
 0x634   : > { %16661 = vst [vmem:[#allocation147_spill] sm:$0xff] %v14533_v28  ;;  %v14539_v55 = vadd.f32 %v10174_v1, %v5301_v63  ;;  %v16667_v63 = vld [vmem:[#allocation239_spill] sm:$0xff]  ;;  %v14557_v1 = vpop.f32.mrf.mxu0 }
 0x635   : > { %v5646_v16 = vpop.f32.mrf.mxu1  ;;  %v5305_v8 = vadd.f32 %v16667_v63, %v14204_v39  ;;  %v16673_v39 = vld [vmem:[#allocation79_spill] sm:$0xff] }
 0x636   : > { %16662 = vst [vmem:[#allocation132_spill] sm:$0xff] %v14539_v55  ;;  %v14543_v47 = vadd.f32 %v5646_v16, %v5299_v30  ;;  %v14567_v60 = vpop.f32.mrf.mxu0  ;;  %v5304_v63 = vadd.f32 %v16673_v39, %v14216_v0 }
 0x637   : > { %v10175_v49 = vpop.f32.mrf.mxu1 }
 0x638   : > { %16664 = vst [vmem:[#allocation216_spill] sm:$0xff] %v14543_v47  ;;  %v14549_v48 = vadd.f32 %v10175_v49, %v5302_v11  ;;  %v16671_v49 = vld [vmem:[#allocation240_spill] sm:$0xff]  ;;  %v14577_v50 = vpop.f32.mrf.mxu0 }
 0x639   : > { %v5649_v51 = vpop.f32.mrf.mxu1  ;;  %v5306_v14 = vadd.f32 %v16671_v49, %v14213_v40  ;;  %v16677_v40 = vld [vmem:[#allocation241_spill] sm:$0xff] }
 0x63a   : > { %16665 = vst [vmem:[#allocation217_spill] sm:$0xff] %v14549_v48  ;;  %v14553_v32 = vadd.f32 %v5649_v51, %v5300_v13  ;;  %v5307_v49 = vadd.f32 %v16677_v40, %v14228_v42  ;;  %v14587_v39 = vpop.f32.mrf.mxu0 }
 0x63b   : > { %v10178_v31 = vpop.f32.mrf.mxu1 }
 0x63c   : > { %16666 = vst [vmem:[#allocation53_spill] sm:$0xff] %v14553_v32  ;;  %v14559_v30 = vadd.f32 %v10178_v31, %v5305_v8  ;;  %v16675_v31 = vld [vmem:[#allocation49_spill] sm:$0xff]  ;;  %v14597_v40 = vpop.f32.mrf.mxu0 }
 0x63d   : > { %v5662_v16 = vpop.f32.mrf.mxu1  ;;  %v5309_v44 = vadd.f32 %v16675_v31, %v14224_v26  ;;  %v16681_v26 = vld [vmem:[#allocation196_spill] sm:$0xff] }
 0x63e   : > { %16668 = vst [vmem:[#allocation54_spill] sm:$0xff] %v14559_v30  ;;  %v14563_v11 = vadd.f32 %v5662_v16, %v5303_v38  ;;  %v5308_v31 = vadd.f32 %v16681_v26, %v14238_v3  ;;  %v14607_v26 = vpop.f32.mrf.mxu0 }
 0x63f   : > { %v10179_v13 = vpop.f32.mrf.mxu1 }
 0x640   : > { %16670 = vst [vmem:[#allocation58_spill] sm:$0xff] %v14563_v11  ;;  %v14569_v51 = vadd.f32 %v10179_v13, %v5306_v14  ;;  %v16679_v13 = vld [vmem:[#allocation84_spill] sm:$0xff] }
 0x641   : > { %v5665_v32 = vpop.f32.mrf.mxu1  ;;  %v5310_v0 = vadd.f32 %v16679_v13, %v14233_v58  ;;  %v16686_v58 = vld [vmem:[#allocation245_spill] sm:$0xff]  ;;  %v16687_v13 = vld [vmem:[#allocation50_spill] sm:$0xff] }
 0x642   : > { %16672 = vst [vmem:[#allocation59_spill] sm:$0xff] %v14569_v51  ;;  %v14573_v8 = vadd.f32 %v5665_v32, %v5304_v63 }
 0x643   : > { %v10182_v38 = vpop.f32.mrf.mxu1 }
 0x644   : > { %16674 = vst [vmem:[#allocation62_spill] sm:$0xff] %v14573_v8  ;;  %v14579_v16 = vadd.f32 %v10182_v38, %v5309_v44  ;;  %v16683_v38 = vld [vmem:[#allocation87_spill] sm:$0xff] }
 0x645   : > { %v5678_v11 = vpop.f32.mrf.mxu1 }
 0x646   : > { %16676 = vst [vmem:[#allocation63_spill] sm:$0xff] %v14579_v16  ;;  %v14583_v14 = vadd.f32 %v5678_v11, %v5307_v49  ;;  %v16684_v16 = vld [vmem:[#allocation242_spill] sm:$0xff] }
 0x647   : > { %v10183_v32 = vpop.f32.mrf.mxu1  ;;  %v5313_v42 = vadd.f32 %v16684_v16, %v16683_v38  ;;  %v16692_v16 = vld [vmem:[#allocation246_spill] sm:$0xff]  ;;  %v16693_v38 = vld [vmem:[#allocation197_spill] sm:$0xff] }
 0x648   : > { %16678 = vst [vmem:[#allocation66_spill] sm:$0xff] %v14583_v14  ;;  %v14589_v63 = vadd.f32 %v10183_v32, %v5310_v0  ;;  %v5311_v14 = vadd.f32 %v16687_v13, %v16686_v58  ;;  %v16689_v32 = vld [vmem:[#allocation92_spill] sm:$0xff]  ;;  %v14617_v13 = vpop.f32.mrf.mxu0 }
 0x649   : > { %v5681_v8 = vpop.f32.mrf.mxu1 }
 0x64a   : > { %16680 = vst [vmem:[#allocation67_spill] sm:$0xff] %v14589_v63  ;;  %v14593_v44 = vadd.f32 %v5681_v8, %v5308_v31  ;;  %v16690_v63 = vld [vmem:[#allocation243_spill] sm:$0xff] }
 0x64b   : > { %v10186_v11 = vpop.f32.mrf.mxu1  ;;  %v5314_v3 = vadd.f32 %v16690_v63, %v16689_v32  ;;  %v16698_v63 = vld [vmem:[#allocation201_spill] sm:$0xff]  ;;  %v16699_v32 = vld [vmem:[#allocation198_spill] sm:$0xff] }
 0x64c   : > { %16682 = vst [vmem:[#allocation70_spill] sm:$0xff] %v14593_v44  ;;  %v14599_v49 = vadd.f32 %v10186_v11, %v5313_v42  ;;  %v5312_v44 = vadd.f32 %v16693_v38, %v16692_v16  ;;  %v16695_v11 = vld [vmem:[#allocation200_spill] sm:$0xff]  ;;  %v14627_v38 = vpop.f32.mrf.mxu0 }
 0x64d   : > { %v5694_v51 = vpop.f32.mrf.mxu1 }
 0x64e   : > { %16685 = vst [vmem:[#allocation71_spill] sm:$0xff] %v14599_v49  ;;  %v14603_v0 = vadd.f32 %v5694_v51, %v5311_v14  ;;  %v16696_v49 = vld [vmem:[#allocation244_spill] sm:$0xff] }
 0x64f   : > { %v10187_v8 = vpop.f32.mrf.mxu1  ;;  %v5317_v58 = vadd.f32 %v16696_v49, %v16695_v11  ;;  %v16704_v49 = vld [vmem:[#allocation202_spill] sm:$0xff]  ;;  %v16705_v11 = vld [vmem:[#allocation247_spill] sm:$0xff] }
 0x650   : > { %16688 = vst [vmem:[#allocation75_spill] sm:$0xff] %v14603_v0  ;;  %v14609_v31 = vadd.f32 %v10187_v8, %v5314_v3  ;;  %v5315_v0 = vadd.f32 %v16699_v32, %v16698_v63  ;;  %v16701_v8 = vld [vmem:[#allocation95_spill] sm:$0xff]  ;;  %v14637_v32 = vpop.f32.mrf.mxu0 }
 0x651   : > { %v5697_v30 = vpop.f32.mrf.mxu1 }
 0x652   : > { %16691 = vst [vmem:[#allocation76_spill] sm:$0xff] %v14609_v31  ;;  %v14613_v42 = vadd.f32 %v5697_v30, %v5312_v44  ;;  %v16702_v31 = vld [vmem:[#allocation199_spill] sm:$0xff] }
 0x653   : > { %v10190_v51 = vpop.f32.mrf.mxu1  ;;  %v5318_v16 = vadd.f32 %v16702_v31, %v16701_v8  ;;  %v16710_v31 = vld [vmem:[#allocation203_spill] sm:$0xff]  ;;  %v16711_v8 = vld [vmem:[#allocation249_spill] sm:$0xff] }
 0x654   : > { %16694 = vst [vmem:[#allocation81_spill] sm:$0xff] %v14613_v42  ;;  %v14619_v14 = vadd.f32 %v10190_v51, %v5317_v58  ;;  %v5316_v42 = vadd.f32 %v16705_v11, %v16704_v49  ;;  %v16707_v51 = vld [vmem:[#allocation100_spill] sm:$0xff]  ;;  %v14647_v11 = vpop.f32.mrf.mxu0 }
 0x655   : > { %v5710_v48 = vpop.f32.mrf.mxu1 }
 0x656   : > { %16697 = vst [vmem:[#allocation82_spill] sm:$0xff] %v14619_v14  ;;  %v14623_v3 = vadd.f32 %v5710_v48, %v5315_v0  ;;  %v16708_v14 = vld [vmem:[#allocation248_spill] sm:$0xff] }
 0x657   : > { %v10191_v30 = vpop.f32.mrf.mxu1  ;;  %v5321_v63 = vadd.f32 %v16708_v14, %v16707_v51  ;;  %v16716_v14 = vld [vmem:[#allocation251_spill] sm:$0xff]  ;;  %v16717_v51 = vld [vmem:[#allocation205_spill] sm:$0xff] }
 0x658   : > { %16700 = vst [vmem:[#allocation89_spill] sm:$0xff] %v14623_v3  ;;  %v14629_v44 = vadd.f32 %v10191_v30, %v5318_v16  ;;  %v5319_v3 = vadd.f32 %v16711_v8, %v16710_v31  ;;  %v16713_v30 = vld [vmem:[#allocation204_spill] sm:$0xff]  ;;  %v14657_v8 = vpop.f32.mrf.mxu0 }
 0x659   : > { %v5713_v47 = vpop.f32.mrf.mxu1 }
 0x65a   : > { %16703 = vst [vmem:[#allocation158_spill] sm:$0xff] %v14629_v44  ;;  %v14633_v58 = vadd.f32 %v5713_v47, %v5316_v42  ;;  %v16714_v44 = vld [vmem:[#allocation250_spill] sm:$0xff] }
 0x65b   : > { %v10194_v48 = vpop.f32.mrf.mxu1  ;;  %v5322_v49 = vadd.f32 %v16714_v44, %v16713_v30  ;;  %v16721_v30 = vld [vmem:[#allocation103_spill] sm:$0xff] }
 0x65c   : > { %16706 = vst [vmem:[#allocation219_spill] sm:$0xff] %v14633_v58  ;;  %v14639_v0 = vadd.f32 %v10194_v48, %v5321_v63  ;;  %v5320_v58 = vadd.f32 %v16717_v51, %v16716_v14  ;;  %v16719_v48 = vld [vmem:[#allocation252_spill] sm:$0xff]  ;;  %v16723_v14 = vld [vmem:[#allocation253_spill] sm:$0xff]  ;;  %v14668_v51 = vld [vmem:[#allocation17] ss:$0 sm:$0xff] }
 0x65d   : > { %v5726_v55 = vpop.f32.mrf.mxu1 }
 0x65e   : > { %16709 = vst [vmem:[#allocation90_spill] sm:$0xff] %v14639_v0  ;;  %v14643_v16 = vadd.f32 %v5726_v55, %v5319_v3  ;;  %v16720_v0 = vld [vmem:[#allocation206_spill] sm:$0xff] }
 0x65f   : > { %v10195_v47 = vpop.f32.mrf.mxu1  ;;  %v6353_v31 = vadd.f32 %v16720_v0, %v16719_v48  ;;  %v14659_v3 = vld [vmem:[#allocation15] ss:$0 sm:$0xff] }
 0x660   : > { %16712 = vst [vmem:[#allocation97_spill] sm:$0xff] %v14643_v16  ;;  %v14649_v42 = vadd.f32 %v10195_v47, %v5322_v49  ;;  %v16722_v16 = vld [vmem:[#allocation207_spill] sm:$0xff] }
 0x661   : > { %v5729_v28 = vpop.f32.mrf.mxu1  ;;  %v6351_v15 = vadd.f32 %v16722_v16, %v16721_v30  ;;  %v16727_v30 = vld [vmem:[#allocation254_spill] sm:$0xff] }
 0x662   : > { %16715 = vst [vmem:[#allocation220_spill] sm:$0xff] %v14649_v42  ;;  %v14653_v63 = vadd.f32 %v5729_v28, %v5320_v58  ;;  %v6354_v28 = vadd.f32 %v14340_v17, %v16723_v14  ;;  %v14666_v58 = vpop.f32.mrf.mxu0  ;;  %v6357_v17 = vadd.f32 %v14364_v20, %v16727_v30 }
 0x663   : > { %v10294_v55 = vpop.f32.mrf.mxu1  ;;  %16724 = vst [vmem:[#allocation150_spill] sm:$0xff] %v14666_v58 }
 0x664   : > { %16718 = vst [vmem:[#allocation126_spill] sm:$0xff] %v14653_v63  ;;  %v6899_v44 = vadd.f32 %v10294_v55, %v6353_v31  ;;  %v16726_v31 = vld [vmem:[#allocation256_spill] sm:$0xff] }
 0x665   : > { %v6578_v49 = vpop.f32.mrf.mxu1  ;;  %v6352_v55 = vadd.f32 %v16726_v31, %v16725_v46 }
 0x666   : > { %v7098_v47 = vmul.f32 %v14659_v3, %v6899_v44  ;;  %v6897_v42 = vadd.f32 %v6578_v49, %v6351_v15  ;;  %v14677_v49 = vpop.f32.mrf.mxu0 }
 0x667   : > { %v10295_v0 = vpop.f32.mrf.mxu1  ;;  %16728 = vst [vmem:[#allocation98_spill] sm:$0xff] %v14677_v49  ;;  %v16731_v49 = vld [vmem:[#allocation255_spill] sm:$0xff] }
 0x668   : > { %v7096_v48 = vmul.f32 %v14659_v3, %v6897_v42  ;;  %v6900_v63 = vadd.f32 %v10295_v0, %v6354_v28  ;;  %v7169_v16 = vadd.f32 %v14668_v51, %v7098_v47  ;;  %v14685_v20 = vpop.f32.mrf.mxu0  ;;  %v6358_v34 = vadd.f32 %v14388_v36, %v16731_v49 }
 0x669   : > { %v6581_v53 = vpop.f32.mrf.mxu1  ;;  %16730 = vst [vmem:[#allocation105_spill] sm:$0xff] %v14685_v20 }
 0x66a   : > { %v7099_v44 = vmul.f32 %v14659_v3, %v6900_v63  ;;  %v6898_v15 = vadd.f32 %v6581_v53, %v6352_v55  ;;  %v7167_v42 = vadd.f32 %v14668_v51, %v7096_v48  ;;  %v7233_v31 = vmax.f32 %v7169_v16, 0.0  ;;  %v16732_v48 = vld [vmem:[#allocation209_spill] sm:$0xff] }
 0x66b   : > { %v10298_v14 = vpop.f32.mrf.mxu1 }
 0x66c   : > { %v7170_v28 = vadd.f32 %v14668_v51, %v7099_v44  ;;  %v7097_v46 = vmul.f32 %v14659_v3, %v6898_v15  ;;  %v6903_v0 = vadd.f32 %v10298_v14, %v6357_v17  ;;  %v6356_v44 = vadd.f32 %v14398_v57, %v16732_v48 }
 0x66d   : > { %v6594_v47 = vpop.f32.mrf.mxu1  ;;  %v7231_v56 = vmax.f32 %v7167_v42, 0.0 }
 0x66e   : > { %v7234_v63 = vmax.f32 %v7170_v28, 0.0  ;;  %v7168_v53 = vadd.f32 %v14668_v51, %v7097_v46  ;;  %v6901_v55 = vadd.f32 %v6594_v47, %v6355_v33  ;;  %v7102_v30 = vmul.f32 %v14659_v3, %v6903_v0  ;;  %v16733_v47 = vld [vmem:[#allocation111_spill] sm:$0xff]  ;;  %v14695_v0 = vpop.f32.mrf.mxu0 }
 0x66f   : > { %v10299_v4 = vpop.f32.mrf.mxu1  ;;  %v6361_v20 = vadd.f32 %v14412_v9, %v16733_v47  ;;  %v16734_v9 = vmov 0  }
 0x670   : > { %v7296_v15 = vpack.c.bf16 %v7234_v63, %v7233_v31  ;;  %v7232_v17 = vmax.f32 %v7168_v53, 0.0  ;;  %v7100_v16 = vmul.f32 %v14659_v3, %v6901_v55  ;;  %v6904_v14 = vadd.f32 %v10299_v4, %v6358_v34  ;;  %v14709_v48 = vpop.f32.mrf.mxu0 }
 0x671   : > { %v6597_v28 = vpop.f32.mrf.mxu1  ;;  %v7173_v36 = vadd.f32 %v14668_v51, %v7102_v30  ;;  %v6362_v4 = vadd.f32 %v14436_v29, %v14366_v37  ;;  %v16736_v29 = vld [vmem:[#allocation257_spill] sm:$0xff] }
 0x672   : > { %v7295_v46 = vpack.c.bf16 %v7232_v17, %v7231_v56  ;;  %v6902_v33 = vadd.f32 %v6597_v28, %v6356_v44  ;;  %v7103_v49 = vmul.f32 %v14659_v3, %v6904_v14  ;;  %v7171_v57 = vadd.f32 %v14668_v51, %v7100_v16  ;;  %v16735_v28 = vld [vmem:[#allocation210_spill] sm:$0xff] }
 0x673   : > { %v10302_v58 = vpop.f32.mrf.mxu1  ;;  %v6359_v56 = vadd.f32 %v14422_v35, %v14360_v25 }
 0x674   : > { %v7101_v42 = vmul.f32 %v14659_v3, %v6902_v33  ;;  %v6907_v31 = vadd.f32 %v10302_v58, %v6361_v20  ;;  %7456 = vmatmul.mubr.bf16.vlgmr.msra.gmra.mxu0 %v7295_v46  ;;  %v7174_v63 = vadd.f32 %v14668_v51, %v7103_v49  ;;  %v7237_v58 = vmax.f32 %v7173_v36, 0.0 }
 0x675   : > { %v6610_v53 = vpop.f32.mrf.mxu1  ;;  %7465 = vmatprep.mubr.bf16.mxu0 %v16734_v9  ;;  %v7235_v17 = vmax.f32 %v7171_v57, 0.0  ;;  %v6360_v46 = vadd.f32 %v14446_v41, %v16735_v28  ;;  %v6365_v36 = vadd.f32 %v14462_v24, %v16736_v29  ;;  %v6363_v41 = vadd.f32 %v14472_v61, %v14384_v59 }
 0x676   : > { %v7172_v55 = vadd.f32 %v14668_v51, %v7101_v42  ;;  %v7106_v30 = vmul.f32 %v14659_v3, %v6907_v31  ;;  %v6905_v34 = vadd.f32 %v6610_v53, %v6359_v56  ;;  %v7238_v20 = vmax.f32 %v7174_v63, 0.0  ;;  %v14720_v42 = vpop.f32.mrf.mxu0 }
 0x677   : > { %v10303_v44 = vpop.f32.mrf.mxu1 }
 0x678   : > { %v7236_v25 = vmax.f32 %v7172_v55, 0.0  ;;  %v6908_v35 = vadd.f32 %v10303_v44, %v6362_v4  ;;  %v14711_v16 = vpack.c.bf16 %v7238_v20, %v7237_v58  ;;  %v7104_v14 = vmul.f32 %v14659_v3, %v6905_v34  ;;  %v14731_v44 = vpop.f32.mrf.mxu0 }
 0x679   : > { %v6613_v33 = vpop.f32.mrf.mxu1  ;;  %v7177_v49 = vadd.f32 %v14668_v51, %v7106_v30  ;;  %v6366_v34 = vadd.f32 %v14487_v45, %v14390_v43 }
 0x67a   : > { %v7297_v47 = vpack.c.bf16 %v7236_v25, %v7235_v17  ;;  %v7107_v37 = vmul.f32 %v14659_v3, %v6908_v35  ;;  %v6906_v57 = vadd.f32 %v6613_v33, %v6360_v46  ;;  %v7175_v53 = vadd.f32 %v14668_v51, %v7104_v14  ;;  %v16737_v35 = vld [vmem:[#allocation115_spill] sm:$0xff] }
 0x67b   : > { %v10306_v31 = vpop.f32.mrf.mxu1  ;;  %v7241_v24 = vmax.f32 %v7177_v49, 0.0  ;;  %v6364_v43 = vadd.f32 %v14497_v62, %v16737_v35 }
 0x67c   : > { %v7178_v56 = vadd.f32 %v14668_v51, %v7107_v37  ;;  %v6911_v63 = vadd.f32 %v10306_v31, %v6365_v36  ;;  %7466 = vmatmul.mubr.bf16.gmra.mxu0 %v7296_v15  ;;  %v7105_v55 = vmul.f32 %v14659_v3, %v6906_v57  ;;  %v7239_v45 = vmax.f32 %v7175_v53, 0.0  ;;  %v16738_v37 = vld [vmem:[#allocation211_spill] sm:$0xff]  ;;  %v14743_v36 = vpop.f32.mrf.mxu0 }
 0x67d   : > { %v6626_v30 = vpop.f32.mrf.mxu1  ;;  %7475 = vmatprep.mubr.bf16.mxu0 %v16734_v9  ;;  %v6369_v29 = vadd.f32 %v14507_v10, %v16738_v37 }
 0x67e   : > { %v7242_v4 = vmax.f32 %v7178_v56, 0.0  ;;  %v7110_v58 = vmul.f32 %v14659_v3, %v6911_v63  ;;  %v6909_v20 = vadd.f32 %v6626_v30, %v6363_v41  ;;  %v7176_v15 = vadd.f32 %v14668_v51, %v7105_v55 }
 0x67f   : > { %v10307_v59 = vpop.f32.mrf.mxu1  ;;  %v6367_v56 = vadd.f32 %v14517_v6, %v14408_v22  ;;  %v6370_v6 = vadd.f32 %v14527_v21, %v14414_v27 }
 0x680   : > { %v14734_v61 = vpack.c.bf16 %v7242_v4, %v7241_v24  ;;  %v7108_v17 = vmul.f32 %v14659_v3, %v6909_v20  ;;  %v6912_v25 = vadd.f32 %v10307_v59, %v6366_v34  ;;  %v7240_v14 = vmax.f32 %v7176_v15, 0.0  ;;  %v14754_v4 = vpop.f32.mrf.mxu0  ;;  %v16739_v20 = vld [vmem:[#allocation258_spill] sm:$0xff] }
 0x681   : > { %v6629_v28 = vpop.f32.mrf.mxu1  ;;  %v7181_v46 = vadd.f32 %v14668_v51, %v7110_v58  ;;  %v6368_v15 = vadd.f32 %v14537_v52, %v16739_v20 }
 0x682   : > { %v7111_v33 = vmul.f32 %v14659_v3, %v6912_v25  ;;  %v6910_v49 = vadd.f32 %v6629_v28, %v6364_v43  ;;  %v14745_v57 = vpack.c.bf16 %v7240_v14, %v7239_v45  ;;  %v7179_v62 = vadd.f32 %v14668_v51, %v7108_v17  ;;  %v16740_v28 = vld [vmem:[#allocation212_spill] sm:$0xff] }
 0x683   : > { %v10310_v31 = vpop.f32.mrf.mxu1  ;;  %v7245_v10 = vmax.f32 %v7181_v46, 0.0  ;;  %v6373_v46 = vadd.f32 %v14547_v5, %v16740_v28 }
 0x684   : > { %v7182_v63 = vadd.f32 %v14668_v51, %v7111_v33  ;;  %v7109_v41 = vmul.f32 %v14659_v3, %v6910_v49  ;;  %v6915_v53 = vadd.f32 %v10310_v31, %v6369_v29  ;;  %7476 = vmatmul.mubr.bf16.gmra.mxu0 %v7297_v47  ;;  %v7243_v47 = vmax.f32 %v7179_v62, 0.0  ;;  %v14768_v33 = vpop.f32.mrf.mxu0  ;;  %v16741_v31 = vld [vmem:[#allocation259_spill] sm:$0xff] }
 0x685   : > { %v6642_v55 = vpop.f32.mrf.mxu1  ;;  %7485 = vmatprep.mubr.bf16.mxu0 %v16734_v9 }
 0x686   : > { %v7246_v30 = vmax.f32 %v7182_v63, 0.0  ;;  %v7180_v34 = vadd.f32 %v14668_v51, %v7109_v41  ;;  %v6913_v24 = vadd.f32 %v6642_v55, %v6367_v56  ;;  %v7114_v22 = vmul.f32 %v14659_v3, %v6915_v53  ;;  %v16742_v55 = vld [vmem:[#allocation117_spill] sm:$0xff] }
 0x687   : > { %v10311_v58 = vpop.f32.mrf.mxu1  ;;  %v6371_v56 = vadd.f32 %v14557_v1, %v16741_v31 }
 0x688   : > { %v14761_v59 = vpack.c.bf16 %v7246_v30, %v7245_v10  ;;  %v7244_v17 = vmax.f32 %v7180_v34, 0.0  ;;  %v7112_v25 = vmul.f32 %v14659_v3, %v6913_v24  ;;  %v6916_v35 = vadd.f32 %v10311_v58, %v6370_v6  ;;  %v14783_v30 = vpop.f32.mrf.mxu0 }
 0x689   : > { %v6645_v43 = vpop.f32.mrf.mxu1  ;;  %v7185_v27 = vadd.f32 %v14668_v51, %v7114_v22  ;;  %v6374_v10 = vadd.f32 %v14567_v60, %v16742_v55 }
 0x68a   : > { %v14764_v45 = vpack.c.bf16 %v7244_v17, %v7243_v47  ;;  %v6914_v14 = vadd.f32 %v6645_v43, %v6368_v15  ;;  %v7115_v21 = vmul.f32 %v14659_v3, %v6916_v35  ;;  %v7183_v49 = vadd.f32 %v14668_v51, %v7112_v25  ;;  %v16743_v15 = vld [vmem:[#allocation121_spill] sm:$0xff] }
 0x68b   : > { %v10314_v52 = vpop.f32.mrf.mxu1  ;;  %v7249_v34 = vmax.f32 %v7185_v27, 0.0  ;;  %v6372_v47 = vadd.f32 %v14577_v50, %v16743_v15  ;;  %v6377_v43 = vadd.f32 %v14587_v39, %v14451_v7  ;;  %v6375_v50 = vadd.f32 %v14597_v40, %v14458_v19 }
 0x68c   : > { %v7113_v37 = vmul.f32 %v14659_v3, %v6914_v14  ;;  %v6919_v29 = vadd.f32 %v10314_v52, %v6373_v46  ;;  %7486 = vmatmul.mubr.bf16.gmra.mxu0 %v14711_v16  ;;  %v7186_v62 = vadd.f32 %v14668_v51, %v7115_v21  ;;  %v7247_v22 = vmax.f32 %v7183_v49, 0.0  ;;  %v14796_v14 = vpop.f32.mrf.mxu0 }
 0x68d   : > { %v6658_v5 = vpop.f32.mrf.mxu1  ;;  %7495 = vmatprep.mubr.bf16.mxu0 %v16734_v9  ;;  %v6378_v7 = vadd.f32 %v14607_v26, %v14464_v2 }
 0x68e   : > { %v7184_v63 = vadd.f32 %v14668_v51, %v7113_v37  ;;  %v7118_v41 = vmul.f32 %v14659_v3, %v6919_v29  ;;  %v6917_v53 = vadd.f32 %v6658_v5, %v6371_v56  ;;  %v7250_v16 = vmax.f32 %v7186_v62, 0.0  ;;  %v14808_v62 = vpop.f32.mrf.mxu0 }
 0x68f   : > { %v10315_v24 = vpop.f32.mrf.mxu1 }
 0x690   : > { %v7248_v1 = vmax.f32 %v7184_v63, 0.0  ;;  %v6920_v6 = vadd.f32 %v10315_v24, %v6374_v10  ;;  %v14785_v58 = vpack.c.bf16 %v7250_v16, %v7249_v34  ;;  %v7116_v20 = vmul.f32 %v14659_v3, %v6917_v53 }
 0x691   : > { %v6661_v17 = vpop.f32.mrf.mxu1  ;;  %v7189_v60 = vadd.f32 %v14668_v51, %v7118_v41  ;;  %v16744_v41 = vld [vmem:[#allocation141_spill] sm:$0xff]  ;;  %v6381_v24 = vadd.f32 %v14627_v38, %v14479_v23 }
 0x692   : > { %v14790_v25 = vpack.c.bf16 %v7248_v1, %v7247_v22  ;;  %v7119_v35 = vmul.f32 %v14659_v3, %v6920_v6  ;;  %v6918_v28 = vadd.f32 %v6661_v17, %v6372_v47  ;;  %v7187_v52 = vadd.f32 %v14668_v51, %v7116_v20  ;;  %v14820_v22 = vpop.f32.mrf.mxu0 }
 0x693   : > { %v10318_v46 = vpop.f32.mrf.mxu1  ;;  %v7253_v39 = vmax.f32 %v7189_v60, 0.0  ;;  %v6376_v2 = vadd.f32 %v14617_v13, %v16744_v41  ;;  %v6379_v20 = vadd.f32 %v14637_v32, %v14483_v54  ;;  %v6382_v32 = vadd.f32 %v14647_v11, %v14489_v18  ;;  %v16747_v41 = vld [vmem:[#allocation144_spill] sm:$0xff] }
 0x694   : > { %v7190_v27 = vadd.f32 %v14668_v51, %v7119_v35  ;;  %v6923_v21 = vadd.f32 %v10318_v46, %v6377_v43  ;;  %7496 = vmatmul.mubr.bf16.gmra.mxu0 %v14745_v57  ;;  %v7117_v49 = vmul.f32 %v14659_v3, %v6918_v28  ;;  %v7251_v26 = vmax.f32 %v7187_v52, 0.0  ;;  %v14832_v28 = vpop.f32.mrf.mxu0 }
 0x695   : > { %v6674_v37 = vpop.f32.mrf.mxu1  ;;  %7505 = vmatprep.mubr.bf16.mxu0 %v16734_v9 }
 0x696   : > { %v7254_v29 = vmax.f32 %v7190_v27, 0.0  ;;  %v7122_v31 = vmul.f32 %v14659_v3, %v6923_v21  ;;  %v6921_v56 = vadd.f32 %v6674_v37, %v6375_v50  ;;  %v7188_v57 = vadd.f32 %v14668_v51, %v7117_v49  ;;  %v16745_v27 = vld [vmem:[#allocation143_spill] sm:$0xff] }
 0x697   : > { %v10319_v19 = vpop.f32.mrf.mxu1  ;;  %v6380_v21 = vadd.f32 %v14657_v8, %v16745_v27 }
 0x698   : > { %v14811_v40 = vpack.c.bf16 %v7254_v29, %v7253_v39  ;;  %v7120_v5 = vmul.f32 %v14659_v3, %v6921_v56  ;;  %v6924_v63 = vadd.f32 %v10319_v19, %v6378_v7  ;;  %v7252_v53 = vmax.f32 %v7188_v57, 0.0  ;;  %v14846_v57 = vpop.f32.mrf.mxu0 }
 0x699   : > { %v6677_v55 = vpop.f32.mrf.mxu1  ;;  %v7193_v10 = vadd.f32 %v14668_v51, %v7122_v31  ;;  %v16746_v31 = vld [vmem:[#allocation150_spill] sm:$0xff] }
 0x69a   : > { %v7123_v34 = vmul.f32 %v14659_v3, %v6924_v63  ;;  %v6922_v16 = vadd.f32 %v6677_v55, %v6376_v2  ;;  %v14822_v1 = vpack.c.bf16 %v7252_v53, %v7251_v26  ;;  %v7191_v13 = vadd.f32 %v14668_v51, %v7120_v5  ;;  %v16748_v2 = vld [vmem:[#allocation98_spill] sm:$0xff] }
 0x69b   : > { %v10322_v6 = vpop.f32.mrf.mxu1  ;;  %v7257_v23 = vmax.f32 %v7193_v10, 0.0  ;;  %v6385_v56 = vadd.f32 %v16746_v31, %v14499_v12  ;;  %v6383_v26 = vadd.f32 %v16748_v2, %v16747_v41 }
 0x69c   : > { %v7194_v15 = vadd.f32 %v14668_v51, %v7123_v34  ;;  %v7121_v47 = vmul.f32 %v14659_v3, %v6922_v16  ;;  %v6927_v17 = vadd.f32 %v10322_v6, %v6381_v24  ;;  %7506 = vmatmul.mubr.bf16.gmra.mxu0 %v14734_v61  ;;  %v7255_v61 = vmax.f32 %v7191_v13, 0.0  ;;  %v16749_v16 = vld [vmem:[#allocation146_spill] sm:$0xff]  ;;  %v16750_v24 = vld [vmem:[#allocation105_spill] sm:$0xff] }
 0x69d   : > { %v6690_v60 = vpop.f32.mrf.mxu1  ;;  %7515 = vmatprep.mubr.bf16.mxu0 %v16734_v9  ;;  %v6386_v6 = vadd.f32 %v16750_v24, %v16749_v16 }
 0x69e   : > { %v7258_v38 = vmax.f32 %v7194_v15, 0.0  ;;  %v7192_v35 = vadd.f32 %v14668_v51, %v7121_v47  ;;  %v6925_v43 = vadd.f32 %v6690_v60, %v6379_v20  ;;  %v7126_v54 = vmul.f32 %v14659_v3, %v6927_v17  ;;  %v14861_v20 = vpop.f32.mrf.mxu0 }
 0x69f   : > { %v10323_v46 = vpop.f32.mrf.mxu1 }
 0x6a0   : > { %v14839_v50 = vpack.c.bf16 %v7258_v38, %v7257_v23  ;;  %v7256_v52 = vmax.f32 %v7192_v35, 0.0  ;;  %v7124_v49 = vmul.f32 %v14659_v3, %v6925_v43  ;;  %v6928_v37 = vadd.f32 %v10323_v46, %v6382_v32  ;;  %v16751_v35 = vld [vmem:[#allocation145_spill] sm:$0xff] }
 0x6a1   : > { %v6693_v7 = vpop.f32.mrf.mxu1  ;;  %v7197_v18 = vadd.f32 %v14668_v51, %v7126_v54  ;;  %v6384_v43 = vadd.f32 %v14695_v0, %v16751_v35  ;;  %v16753_v0 = vld [vmem:[#allocation142_spill] sm:$0xff] }
 0x6a2   : > { %v14842_v39 = vpack.c.bf16 %v7256_v52, %v7255_v61  ;;  %v6926_v29 = vadd.f32 %v6693_v7, %v6380_v21  ;;  %v7127_v11 = vmul.f32 %v14659_v3, %v6928_v37  ;;  %v7195_v19 = vadd.f32 %v14668_v51, %v7124_v49  ;;  %v16752_v21 = vld [vmem:[#allocation123_spill] sm:$0xff]  ;;  %v14874_v52 = vpop.f32.mrf.mxu0 }
 0x6a3   : > { %v10326_v8 = vpop.f32.mrf.mxu1  ;;  %v7261_v13 = vmax.f32 %v7197_v18, 0.0  ;;  %v6389_v61 = vadd.f32 %v14709_v48, %v16752_v21  ;;  %v6387_v31 = vadd.f32 %v14720_v42, %v16753_v0 }
 0x6a4   : > { %v7125_v5 = vmul.f32 %v14659_v3, %v6926_v29  ;;  %v6931_v63 = vadd.f32 %v10326_v8, %v6385_v56  ;;  %7516 = vmatmul.mubr.bf16.gmra.mxu0 %v14764_v45  ;;  %v7198_v53 = vadd.f32 %v14668_v51, %v7127_v11  ;;  %v7259_v47 = vmax.f32 %v7195_v19, 0.0  ;;  %v16754_v8 = vld [vmem:[#allocation128_spill] sm:$0xff]  ;;  %v14886_v2 = vpop.f32.mrf.mxu0 }
 0x6a5   : > { %v6706_v12 = vpop.f32.mrf.mxu1  ;;  %7525 = vmatprep.mubr.bf16.mxu0 %v16734_v9  ;;  %v6390_v48 = vadd.f32 %v14731_v44, %v16754_v8 }
 0x6a6   : > { %v7196_v55 = vadd.f32 %v14668_v51, %v7125_v5  ;;  %v7130_v10 = vmul.f32 %v14659_v3, %v6931_v63  ;;  %v6929_v34 = vadd.f32 %v6706_v12, %v6383_v26  ;;  %v7262_v45 = vmax.f32 %v7198_v53, 0.0 }
 0x6a7   : > { %v10327_v15 = vpop.f32.mrf.mxu1 }
 0x6a8   : > { %v7260_v17 = vmax.f32 %v7196_v55, 0.0  ;;  %v6932_v60 = vadd.f32 %v10327_v15, %v6386_v6  ;;  %v14863_v23 = vpack.c.bf16 %v7262_v45, %v7261_v13  ;;  %v7128_v38 = vmul.f32 %v14659_v3, %v6929_v34  ;;  %v16755_v55 = vld [vmem:[#allocation147_spill] sm:$0xff]  ;;  %v16756_v45 = vld [vmem:[#allocation132_spill] sm:$0xff] }
 0x6a9   : > { %v6709_v54 = vpop.f32.mrf.mxu1  ;;  %v7201_v46 = vadd.f32 %v14668_v51, %v7130_v10  ;;  %v6388_v44 = vadd.f32 %v14743_v36, %v16755_v55  ;;  %v6393_v15 = vadd.f32 %v14754_v4, %v16756_v45  ;;  %v16762_v45 = vld [vmem:[#allocation59_spill] sm:$0xff] }
 0x6aa   : > { %v14868_v32 = vpack.c.bf16 %v7260_v17, %v7259_v47  ;;  %v7131_v27 = vmul.f32 %v14659_v3, %v6932_v60  ;;  %v6930_v49 = vadd.f32 %v6709_v54, %v6384_v43  ;;  %v7199_v56 = vadd.f32 %v14668_v51, %v7128_v38  ;;  %v14898_v47 = vpop.f32.mrf.mxu0  ;;  %v16757_v38 = vld [vmem:[#allocation216_spill] sm:$0xff] }
 0x6ab   : > { %v10330_v37 = vpop.f32.mrf.mxu1  ;;  %v7265_v19 = vmax.f32 %v7201_v46, 0.0  ;;  %v6391_v35 = vadd.f32 %v14768_v33, %v16757_v38 }
 0x6ac   : > { %v7202_v7 = vadd.f32 %v14668_v51, %v7131_v27  ;;  %v6935_v29 = vadd.f32 %v10330_v37, %v6389_v61  ;;  %7526 = vmatmul.mubr.bf16.gmra.mxu0 %v14761_v59  ;;  %v7129_v18 = vmul.f32 %v14659_v3, %v6930_v49  ;;  %v7263_v10 = vmax.f32 %v7199_v56, 0.0  ;;  %v14910_v37 = vpop.f32.mrf.mxu0 }
 0x6ad   : > { %v6722_v11 = vpop.f32.mrf.mxu1  ;;  %7535 = vmatprep.mubr.bf16.mxu0 %v16734_v9 }
 0x6ae   : > { %v7266_v5 = vmax.f32 %v7202_v7, 0.0  ;;  %v7134_v63 = vmul.f32 %v14659_v3, %v6935_v29  ;;  %v6933_v41 = vadd.f32 %v6722_v11, %v6387_v31  ;;  %v7200_v59 = vadd.f32 %v14668_v51, %v7129_v18  ;;  %v16758_v7 = vld [vmem:[#allocation217_spill] sm:$0xff] }
 0x6af   : > { %v10331_v42 = vpop.f32.mrf.mxu1  ;;  %v6394_v29 = vadd.f32 %v14783_v30, %v16758_v7  ;;  %v16759_v31 = vld [vmem:[#allocation53_spill] sm:$0xff] }
 0x6b0   : > { %v14889_v26 = vpack.c.bf16 %v7266_v5, %v7265_v19  ;;  %v7132_v53 = vmul.f32 %v14659_v3, %v6933_v41  ;;  %v6936_v12 = vadd.f32 %v10331_v42, %v6390_v48  ;;  %v7264_v34 = vmax.f32 %v7200_v59, 0.0  ;;  %v16760_v41 = vld [vmem:[#allocation54_spill] sm:$0xff]  ;;  %v14924_v42 = vpop.f32.mrf.mxu0 }
 0x6b1   : > { %v6725_v16 = vpop.f32.mrf.mxu1  ;;  %v7205_v24 = vadd.f32 %v14668_v51, %v7134_v63  ;;  %v6392_v56 = vadd.f32 %v14796_v14, %v16759_v31  ;;  %v6397_v59 = vadd.f32 %v14808_v62, %v16760_v41  ;;  %v16766_v41 = vld [vmem:[#allocation67_spill] sm:$0xff] }
 0x6b2   : > { %v7135_v6 = vmul.f32 %v14659_v3, %v6936_v12  ;;  %v6934_v13 = vadd.f32 %v6725_v16, %v6388_v44  ;;  %v14900_v17 = vpack.c.bf16 %v7264_v34, %v7263_v10  ;;  %v7203_v36 = vadd.f32 %v14668_v51, %v7132_v53  ;;  %v16761_v10 = vld [vmem:[#allocation58_spill] sm:$0xff] }
 0x6b3   : > { %v10334_v60 = vpop.f32.mrf.mxu1  ;;  %v7269_v4 = vmax.f32 %v7205_v24, 0.0  ;;  %v6395_v34 = vadd.f32 %v14820_v22, %v16761_v10  ;;  %v16767_v10 = vld [vmem:[#allocation70_spill] sm:$0xff] }
 0x6b4   : > { %v7206_v43 = vadd.f32 %v14668_v51, %v7135_v6  ;;  %v7133_v54 = vmul.f32 %v14659_v3, %v6934_v13  ;;  %v6939_v46 = vadd.f32 %v10334_v60, %v6393_v15  ;;  %7536 = vmatmul.mubr.bf16.gmra.mxu0 %v14790_v25  ;;  %v7267_v25 = vmax.f32 %v7203_v36, 0.0  ;;  %v10267_v60 = vpop.f32.mrf.mxu0 }
 0x6b5   : > { %v6738_v27 = vpop.f32.mrf.mxu1  ;;  %7545 = vmatprep.mubr.bf16.mxu0 %v16734_v9  ;;  %v6398_v15 = vadd.f32 %v14832_v28, %v16762_v45 }
 0x6b6   : > { %v7270_v21 = vmax.f32 %v7206_v43, 0.0  ;;  %v7204_v61 = vadd.f32 %v14668_v51, %v7133_v54  ;;  %v6937_v49 = vadd.f32 %v6738_v27, %v6391_v35  ;;  %v7138_v33 = vmul.f32 %v14659_v3, %v6939_v46  ;;  %v16763_v27 = vld [vmem:[#allocation62_spill] sm:$0xff] }
 0x6b7   : > { %v10335_v0 = vpop.f32.mrf.mxu1 }
 0x6b8   : > { %v14917_v18 = vpack.c.bf16 %v7270_v21, %v7269_v4  ;;  %v7268_v11 = vmax.f32 %v7204_v61, 0.0  ;;  %v7136_v8 = vmul.f32 %v14659_v3, %v6937_v49  ;;  %v6940_v48 = vadd.f32 %v10335_v0, %v6394_v29  ;;  %v6243_v29 = vpop.f32.mrf.mxu0 }
 0x6b9   : > { %v6741_v19 = vpop.f32.mrf.mxu1  ;;  %v7209_v30 = vadd.f32 %v14668_v51, %v7138_v33  ;;  %v6396_v4 = vadd.f32 %v14846_v57, %v16763_v27  ;;  %v16764_v33 = vld [vmem:[#allocation63_spill] sm:$0xff] }
 0x6ba   : > { %v14920_v5 = vpack.c.bf16 %v7268_v11, %v7267_v25  ;;  %v6938_v63 = vadd.f32 %v6741_v19, %v6392_v56  ;;  %v7139_v14 = vmul.f32 %v14659_v3, %v6940_v48  ;;  %v7207_v12 = vadd.f32 %v14668_v51, %v7136_v8  ;;  %v16765_v11 = vld [vmem:[#allocation66_spill] sm:$0xff]  ;;  %v10270_v8 = vpop.f32.mrf.mxu0 }
 0x6bb   : > { %v10338_v53 = vpop.f32.mrf.mxu1  ;;  %v7273_v38 = vmax.f32 %v7209_v30, 0.0  ;;  %v6401_v7 = vadd.f32 %v14861_v20, %v16764_v33  ;;  %v6399_v57 = vadd.f32 %v14874_v52, %v16765_v11  ;;  %v6402_v20 = vadd.f32 %v14886_v2, %v16766_v41 }
 0x6bc   : > { %v7137_v55 = vmul.f32 %v14659_v3, %v6938_v63  ;;  %v6943_v44 = vadd.f32 %v10338_v53, %v6397_v59  ;;  %7546 = vmatmul.mubr.bf16.gmra.mxu0 %v14785_v58  ;;  %v7210_v16 = vadd.f32 %v14668_v51, %v7139_v14  ;;  %v7271_v36 = vmax.f32 %v7207_v12, 0.0 }
 0x6bd   : > { %v6754_v62 = vpop.f32.mrf.mxu1  ;;  %7555 = vmatprep.mubr.bf16.mxu0 %v16734_v9 }
 0x6be   : > { %v7208_v24 = vadd.f32 %v14668_v51, %v7137_v55  ;;  %v7142_v6 = vmul.f32 %v14659_v3, %v6943_v44  ;;  %v6941_v13 = vadd.f32 %v6754_v62, %v6395_v34  ;;  %v7274_v35 = vmax.f32 %v7210_v16, 0.0  ;;  %v6256_v16 = vpop.f32.mrf.mxu0 }
 0x6bf   : > { %v10339_v58 = vpop.f32.mrf.mxu1  ;;  %v6400_v34 = vadd.f32 %v14898_v47, %v16767_v10  ;;  %v16773_v10 = vld [vmem:[#allocation89_spill] sm:$0xff] }
 0x6c0   : > { %v7272_v43 = vmax.f32 %v7208_v24, 0.0  ;;  %v6944_v22 = vadd.f32 %v10339_v58, %v6398_v15  ;;  %v14939_v54 = vpack.c.bf16 %v7274_v35, %v7273_v38  ;;  %v7140_v46 = vmul.f32 %v14659_v3, %v6941_v13  ;;  %v16768_v15 = vld [vmem:[#allocation71_spill] sm:$0xff] }
 0x6c1   : > { %v6757_v21 = vpop.f32.mrf.mxu1  ;;  %v7213_v49 = vadd.f32 %v14668_v51, %v7142_v6  ;;  %v6405_v38 = vadd.f32 %v14910_v37, %v16768_v15 }
 0x6c2   : > { %v14944_v61 = vpack.c.bf16 %v7272_v43, %v7271_v36  ;;  %v7143_v28 = vmul.f32 %v14659_v3, %v6944_v22  ;;  %v6942_v0 = vadd.f32 %v6757_v21, %v6396_v4  ;;  %v7211_v48 = vadd.f32 %v14668_v51, %v7140_v46  ;;  %v16769_v36 = vld [vmem:[#allocation75_spill] sm:$0xff]  ;;  %v10271_v4 = vpop.f32.mrf.mxu0 }
 0x6c3   : > { %v10342_v31 = vpop.f32.mrf.mxu1  ;;  %v7277_v59 = vmax.f32 %v7213_v49, 0.0  ;;  %v6403_v43 = vadd.f32 %v14924_v42, %v16769_v36 }
 0x6c4   : > { %v7214_v56 = vadd.f32 %v14668_v51, %v7143_v28  ;;  %v6947_v25 = vadd.f32 %v10342_v31, %v6401_v7  ;;  %7556 = vmatmul.mubr.bf16.gmra.mxu0 %v14822_v1  ;;  %v7141_v19 = vmul.f32 %v14659_v3, %v6942_v0  ;;  %v7275_v2 = vmax.f32 %v7211_v48, 0.0  ;;  %v16770_v7 = vld [vmem:[#allocation76_spill] sm:$0xff] }
 0x6c5   : > { %v6770_v63 = vpop.f32.mrf.mxu1  ;;  %7565 = vmatprep.mubr.bf16.mxu0 %v16734_v9  ;;  %v6406_v0 = vadd.f32 %v10267_v60, %v16770_v7 }
 0x6c6   : > { %v7278_v30 = vmax.f32 %v7214_v56, 0.0  ;;  %v7146_v14 = vmul.f32 %v14659_v3, %v6947_v25  ;;  %v6945_v53 = vadd.f32 %v6770_v63, %v6399_v57  ;;  %v7212_v1 = vadd.f32 %v14668_v51, %v7141_v19  ;;  %v16771_v56 = vld [vmem:[#allocation81_spill] sm:$0xff]  ;;  %v6259_v19 = vpop.f32.mrf.mxu0 }
 0x6c7   : > { %v10343_v12 = vpop.f32.mrf.mxu1  ;;  %v6404_v25 = vadd.f32 %v6243_v29, %v16771_v56 }
 0x6c8   : > { %v14961_v52 = vpack.c.bf16 %v7278_v30, %v7277_v59  ;;  %v7144_v55 = vmul.f32 %v14659_v3, %v6945_v53  ;;  %v6948_v44 = vadd.f32 %v10343_v12, %v6402_v20  ;;  %v7276_v62 = vmax.f32 %v7212_v1, 0.0  ;;  %v16772_v30 = vld [vmem:[#allocation82_spill] sm:$0xff]  ;;  %v10274_v53 = vpop.f32.mrf.mxu0 }
 0x6c9   : > { %v6773_v24 = vpop.f32.mrf.mxu1  ;;  %v7217_v6 = vadd.f32 %v14668_v51, %v7146_v14  ;;  %v6409_v14 = vadd.f32 %v10270_v8, %v16772_v30 }
 0x6ca   : > { %v7147_v13 = vmul.f32 %v14659_v3, %v6948_v44  ;;  %v6946_v45 = vadd.f32 %v6773_v24, %v6400_v34  ;;  %v14970_v35 = vpack.c.bf16 %v7276_v62, %v7275_v2  ;;  %v7215_v47 = vadd.f32 %v14668_v51, %v7144_v55  ;;  %v6272_v15 = vpop.f32.mrf.mxu0 }
 0x6cb   : > { %v10346_v58 = vpop.f32.mrf.mxu1  ;;  %v7281_v37 = vmax.f32 %v7217_v6, 0.0  ;;  %v6407_v34 = vadd.f32 %v6256_v16, %v16773_v10 }
 0x6cc   : > { %v7218_v22 = vadd.f32 %v14668_v51, %v7147_v13  ;;  %v7145_v46 = vmul.f32 %v14659_v3, %v6946_v45  ;;  %v6951_v27 = vadd.f32 %v10346_v58, %v6405_v38  ;;  %7566 = vmatmul.mubr.bf16.gmra.mxu0 %v14811_v40  ;;  %v7279_v11 = vmax.f32 %v7215_v47, 0.0  ;;  %v16774_v13 = vld [vmem:[#allocation158_spill] sm:$0xff] }
 0x6cd   : > { %v6786_v21 = vpop.f32.mrf.mxu1  ;;  %7575 = vmatprep.mubr.bf16.mxu0 %v16734_v9  ;;  %v6410_v45 = vadd.f32 %v10271_v4, %v16774_v13 }
 0x6ce   : > { %v7282_v49 = vmax.f32 %v7218_v22, 0.0  ;;  %v7216_v28 = vadd.f32 %v14668_v51, %v7145_v46  ;;  %v6949_v33 = vadd.f32 %v6786_v21, %v6403_v43  ;;  %v7150_v42 = vmul.f32 %v14659_v3, %v6951_v27  ;;  %v16775_v46 = vld [vmem:[#allocation219_spill] sm:$0xff] }
 0x6cf   : > { %v10347_v31 = vpop.f32.mrf.mxu1  ;;  %v6408_v27 = vadd.f32 %v6259_v19, %v16775_v46 }
 0x6d0   : > { %v14983_v57 = vpack.c.bf16 %v7282_v49, %v7281_v37  ;;  %v7280_v40 = vmax.f32 %v7216_v28, 0.0  ;;  %v7148_v48 = vmul.f32 %v14659_v3, %v6949_v33  ;;  %v6952_v63 = vadd.f32 %v10347_v31, %v6406_v0  ;;  %v16776_v28 = vld [vmem:[#allocation90_spill] sm:$0xff] }
 0x6d1   : > { %v6789_v41 = vpop.f32.mrf.mxu1  ;;  %v7221_v60 = vadd.f32 %v14668_v51, %v7150_v42  ;;  %v6413_v33 = vadd.f32 %v10274_v53, %v16776_v28  ;;  %v10275_v42 = vpop.f32.mrf.mxu0 }
 0x6d2   : > { %v14986_v20 = vpack.c.bf16 %v7280_v40, %v7279_v11  ;;  %v6950_v59 = vadd.f32 %v6789_v41, %v6404_v25  ;;  %v7151_v1 = vmul.f32 %v14659_v3, %v6952_v63  ;;  %v7219_v12 = vadd.f32 %v14668_v51, %v7148_v48  ;;  %v16777_v25 = vld [vmem:[#allocation97_spill] sm:$0xff]  ;;  %v16778_v63 = vld [vmem:[#allocation220_spill] sm:$0xff] }
 0x6d3   : > { %v10350_v29 = vpop.f32.mrf.mxu1  ;;  %v7285_v38 = vmax.f32 %v7221_v60, 0.0  ;;  %v6411_v11 = vadd.f32 %v6272_v15, %v16777_v25  ;;  %v6414_v41 = vadd.f32 %v10275_v42, %v16778_v63  ;;  %v6275_v60 = vpop.f32.mrf.mxu0 }
 0x6d4   : > { %v7149_v55 = vmul.f32 %v14659_v3, %v6950_v59  ;;  %v6955_v44 = vadd.f32 %v10350_v29, %v6409_v14  ;;  %7576 = vmatmul.mubr.bf16.gmra.mxu0 %v14842_v39  ;;  %v7222_v2 = vadd.f32 %v14668_v51, %v7151_v1  ;;  %v7283_v43 = vmax.f32 %v7219_v12, 0.0 }
 0x6d5   : > { %v6802_v62 = vpop.f32.mrf.mxu1  ;;  %7585 = vmatprep.mubr.bf16.mxu0 %v16734_v9 }
 0x6d6   : > { %v7220_v8 = vadd.f32 %v14668_v51, %v7149_v55  ;;  %v7154_v24 = vmul.f32 %v14659_v3, %v6955_v44  ;;  %v6953_v6 = vadd.f32 %v6802_v62, %v6407_v34  ;;  %v7286_v58 = vmax.f32 %v7222_v2, 0.0  ;;  %v16779_v44 = vld [vmem:[#allocation126_spill] sm:$0xff] }
 0x6d7   : > { %v10351_v36 = vpop.f32.mrf.mxu1  ;;  %v6412_v10 = vadd.f32 %v6275_v60, %v16779_v44 }
 0x6d8   : > { %v7284_v39 = vmax.f32 %v7220_v8, 0.0  ;;  %v6956_v47 = vadd.f32 %v10351_v36, %v6410_v45  ;;  %v15000_v16 = vpack.c.bf16 %v7286_v58, %v7285_v38  ;;  %v7152_v22 = vmul.f32 %v14659_v3, %v6953_v6 }
 0x6d9   : > { %v6805_v21 = vpop.f32.mrf.mxu1  ;;  %v7225_v49 = vadd.f32 %v14668_v51, %v7154_v24 }
 0x6da   : > { %v15004_v37 = vpack.c.bf16 %v7284_v39, %v7283_v43  ;;  %v7155_v4 = vmul.f32 %v14659_v3, %v6956_v47  ;;  %v6954_v7 = vadd.f32 %v6805_v21, %v6408_v27  ;;  %v7223_v40 = vadd.f32 %v14668_v51, %v7152_v22 }
 0x6db   : > { %v10354_v0 = vpop.f32.mrf.mxu1  ;;  %v7289_v59 = vmax.f32 %v7225_v49, 0.0 }
 0x6dc   : > { %v7226_v31 = vadd.f32 %v14668_v51, %v7155_v4  ;;  %v6959_v56 = vadd.f32 %v10354_v0, %v6413_v33  ;;  %7586 = vmatmul.mubr.bf16.gmra.mxu0 %v14839_v50  ;;  %v7153_v48 = vmul.f32 %v14659_v3, %v6954_v7  ;;  %v7287_v34 = vmax.f32 %v7223_v40, 0.0  ;;  %v8057_v4 = vld [vmem:[%s11672_s26 + $0x8] sm:$0xff]  ;;  %v8058_v7 = vld [vmem:[%s11672_s26 + $0x10] sm:$0xff]  ;;  %v8059_v40 = vld [vmem:[%s11672_s26 + $0x18] sm:$0xff] }
 0x6dd   : > { %v6818_v19 = vpop.f32.mrf.mxu1  ;;  %7595 = vmatprep.mubr.bf16.mxu0 %v16734_v9 }
 0x6de   : > { %v7290_v30 = vmax.f32 %v7226_v31, 0.0  ;;  %v7158_v14 = vmul.f32 %v14659_v3, %v6959_v56  ;;  %v6957_v53 = vadd.f32 %v6818_v19, %v6411_v11  ;;  %v7224_v1 = vadd.f32 %v14668_v51, %v7153_v48 }
 0x6df   : > { %v10355_v50 = vpop.f32.mrf.mxu1 }
 0x6e0   : > { %v15018_v29 = vpack.c.bf16 %v7290_v30, %v7289_v59  ;;  %v7156_v12 = vmul.f32 %v14659_v3, %v6957_v53  ;;  %v6960_v55 = vadd.f32 %v10355_v50, %v6414_v41  ;;  %v7288_v2 = vmax.f32 %v7224_v1, 0.0  ;;  %v8060_v30 = vld [vmem:[%s11672_s26 + $0x20] sm:$0xff]  ;;  %v8061_v50 = vld [vmem:[%s11672_s26 + $0x28] sm:$0xff] }
 0x6e1   : > { %v6821_v62 = vpop.f32.mrf.mxu1  ;;  %v7229_v8 = vadd.f32 %v14668_v51, %v7158_v14 }
 0x6e2   : > { %v7159_v24 = vmul.f32 %v14659_v3, %v6960_v55  ;;  %v6958_v6 = vadd.f32 %v6821_v62, %v6412_v10  ;;  %v15024_v13 = vpack.c.bf16 %v7288_v2, %v7287_v34  ;;  %v7227_v45 = vadd.f32 %v14668_v51, %v7156_v12  ;;  %v8062_v2 = vld [vmem:[%s11672_s26 + $0x30] sm:$0xff] }
 0x6e3   : > { %v7293_v58 = vmax.f32 %v7229_v8, 0.0 }
 0x6e4   : > { %v7230_v15 = vadd.f32 %v14668_v51, %v7159_v24  ;;  %v7157_v38 = vmul.f32 %v14659_v3, %v6958_v6  ;;  %7596 = vmatmul.mubr.bf16.gmra.mxu0 %v14868_v32  ;;  %v7291_v39 = vmax.f32 %v7227_v45, 0.0  ;;  %v16780_v3 = vld [vmem:[#allocation47_spill] sm:$0xff] }
 0x6e5   : > { %7605 = vmatprep.mubr.bf16.mxu0 %v16734_v9  ;;  %v7784_v32 = vsub.s32 1, %v16780_v3 }
 0x6e6   : > { %v7294_v36 = vmax.f32 %v7230_v15, 0.0  ;;  %v7228_v43 = vadd.f32 %v14668_v51, %v7157_v38  ;;  %v7780_v51 = vsub.s32 0, %v16780_v3  ;;  %v8063_v15 = vld [vmem:[%s11672_s26 + $0x38] sm:$0xff] }
 0x6e8   : > { %v15032_v47 = vpack.c.bf16 %v7294_v36, %v7293_v58  ;;  %v7292_v22 = vmax.f32 %v7228_v43, 0.0 }
 0x6ea   : > { %v15034_v46 = vpack.c.bf16 %v7292_v22, %v7291_v39  ;;  %v8064_v22 = vld [vmem:[%s11672_s26 + $0x40] sm:$0xff] }
 0x6ec   : > { %7606 = vmatmul.mubr.bf16.gmra.mxu0 %v14863_v23  ;;  %v7776_v23 = vld [vmem:[#allocation20] sm:$0x3] }
 0x6ed   : > { %7615 = vmatprep.mubr.bf16.mxu0 %v16734_v9 }
 0x6f4   : > { %7616 = vmatmul.mubr.bf16.gmra.mxu0 %v14900_v17  ;;  %v15056_v17 = vrot.slane %v7776_v23, %v7780_v51 }
 0x6f5   : > { %7625 = vmatprep.mubr.bf16.mxu0 %v16734_v9 }
 0x6fc   : > { %7626 = vmatmul.mubr.bf16.gmra.mxu0 %v14889_v26  ;;  %v7916_v26 = vld [vmem:[#allocation21] sm:$0x3] }
 0x6fd   : > { %7635 = vmatprep.mubr.bf16.mxu0 %v16734_v9 }
 0x704   : > { %7636 = vmatmul.mubr.bf16.gmra.mxu0 %v14920_v5  ;;  %v15060_v5 = vrot.slane %v7916_v26, %v7780_v51 }
 0x705   : > { %7645 = vmatprep.mubr.bf16.mxu0 %v16734_v9 }
 0x70c   : > { %7646 = vmatmul.mubr.bf16.gmra.mxu0 %v14917_v18  ;;  %v15058_v18 = vrot.slane %v7776_v23, %v7784_v32 }
 0x70d   : > { %7655 = vmatprep.mubr.bf16.mxu0 %v16734_v9 }
 0x714   : > { %7656 = vmatmul.mubr.bf16.gmra.mxu0 %v14944_v61  ;;  %v15063_v61 = vrot.slane %v7916_v26, %v7784_v32  ;;  %v8065_v26 = vld [vmem:[%s11672_s26 + $0x48] sm:$0xff] }
 0x715   : > { %7665 = vmatprep.mubr.bf16.mxu0 %v16734_v9 }
 0x71c   : > { %7666 = vmatmul.mubr.bf16.gmra.mxu0 %v14939_v54 }
 0x71d   : > { %7675 = vmatprep.mubr.bf16.mxu0 %v16734_v9 }
 0x724   : > { %7676 = vmatmul.mubr.bf16.gmra.mxu0 %v14970_v35  ;;  %v8056_v35 = vld [vmem:[%s11672_s26] sm:$0xff] }
 0x725   : > { %7685 = vmatprep.mubr.bf16.mxu0 %v16734_v9 }
 0x72c   : > { %7686 = vmatmul.mubr.bf16.gmra.mxu0 %v14961_v52 }
 0x72d   : > { %7695 = vmatprep.mubr.bf16.mxu0 %v16734_v9 }
 0x734   : > { %v7457_v54 = vpop.f32.mrf.mxu0  ;;  %7696 = vmatmul.mubr.bf16.gmra.mxu0 %v14986_v20 }
 0x735   : > { %v7788_v52 = vmul.f32 %v15056_v17, %v7457_v54  ;;  %7705 = vmatprep.mubr.bf16.mxu0 %v16734_v9 }
 0x736   : > { %v7459_v27 = vpop.f32.mrf.mxu0 }
 0x737   : > { %v7928_v21 = vadd.f32 %v15060_v5, %v7788_v52  ;;  %v7789_v49 = vmul.f32 %v15058_v18, %v7459_v27 }
 0x738   : > { %v7461_v28 = vpop.f32.mrf.mxu0 }
 0x739   : > { %v8184_v33 = vadd.f32 %v8056_v35, %v7928_v21  ;;  %v7929_v42 = vadd.f32 %v15063_v61, %v7789_v49  ;;  %v7790_v20 = vmul.f32 %v15056_v17, %v7461_v28  ;;  %v8066_v49 = vld [vmem:[%s11672_s26 + $0x50] sm:$0xff] }
 0x73a   : > { %v7463_v0 = vpop.f32.mrf.mxu0 }
 0x73b   : > { %v8312_v31 = vmax.f32 %v8184_v33, 0.0  ;;  %v8185_v56 = vadd.f32 %v8057_v4, %v7929_v42  ;;  %v7930_v25 = vadd.f32 %v15060_v5, %v7790_v20  ;;  %v7791_v11 = vmul.f32 %v15058_v18, %v7463_v0 }
 0x73c   : > { %v7467_v48 = vpop.f32.mrf.mxu0  ;;  %7706 = vmatmul.mubr.bf16.gmra.mxu0 %v14983_v57 }
 0x73d   : > { %8440 = vst [vmem:[%s15079_s9] sm:$0xff] %v8312_v31  ;;  %v8313_v19 = vmax.f32 %v8185_v56, 0.0  ;;  %v8186_v63 = vadd.f32 %v8058_v7, %v7930_v25  ;;  %v7931_v41 = vadd.f32 %v15063_v61, %v7791_v11  ;;  %v7792_v59 = vmul.f32 %v15056_v17, %v7467_v48  ;;  %7715 = vmatprep.mubr.bf16.mxu0 %v16734_v9  ;;  %v8067_v7 = vld [vmem:[%s11672_s26 + $0x58] sm:$0xff] }
 0x73e   : > { %v7469_v14 = vpop.f32.mrf.mxu0 }
 0x73f   : > { %8441 = vst [vmem:[%s15079_s9 + $0x8] sm:$0xff] %v8313_v19  ;;  %v8314_v57 = vmax.f32 %v8186_v63, 0.0  ;;  %v8187_v53 = vadd.f32 %v8059_v40, %v7931_v41  ;;  %v7932_v60 = vadd.f32 %v15060_v5, %v7792_v59  ;;  %v7793_v1 = vmul.f32 %v15058_v18, %v7469_v14  ;;  %v8068_v40 = vld [vmem:[%s11672_s26 + $0x60] sm:$0xff]  ;;  %v8069_v59 = vld [vmem:[%s11672_s26 + $0x68] sm:$0xff] }
 0x740   : > { %v7471_v12 = vpop.f32.mrf.mxu0 }
 0x741   : > { %8442 = vst [vmem:[%s15079_s9 + $0x10] sm:$0xff] %v8314_v57  ;;  %v8315_v55 = vmax.f32 %v8187_v53, 0.0  ;;  %v8188_v44 = vadd.f32 %v8060_v30, %v7932_v60  ;;  %v7933_v10 = vadd.f32 %v15063_v61, %v7793_v1  ;;  %v7794_v34 = vmul.f32 %v15056_v17, %v7471_v12  ;;  %v8070_v1 = vld [vmem:[%s11672_s26 + $0x70] sm:$0xff] }
 0x742   : > { %v7473_v62 = vpop.f32.mrf.mxu0 }
 0x743   : > { %8443 = vst [vmem:[%s15079_s9 + $0x18] sm:$0xff] %v8315_v55  ;;  %v8316_v8 = vmax.f32 %v8188_v44, 0.0  ;;  %v8189_v24 = vadd.f32 %v8061_v50, %v7933_v10  ;;  %v7934_v6 = vadd.f32 %v15060_v5, %v7794_v34  ;;  %v7795_v45 = vmul.f32 %v15058_v18, %v7473_v62  ;;  %v8071_v34 = vld [vmem:[%s11672_s26 + $0x78] sm:$0xff] }
 0x744   : > { %v7477_v38 = vpop.f32.mrf.mxu0  ;;  %7716 = vmatmul.mubr.bf16.gmra.mxu0 %v15004_v37 }
 0x745   : > { %8444 = vst [vmem:[%s15079_s9 + $0x20] sm:$0xff] %v8316_v8  ;;  %v8317_v58 = vmax.f32 %v8189_v24, 0.0  ;;  %v8190_v36 = vadd.f32 %v8062_v2, %v7934_v6  ;;  %v7935_v43 = vadd.f32 %v15063_v61, %v7795_v45  ;;  %v7796_v39 = vmul.f32 %v15056_v17, %v7477_v38  ;;  %7725 = vmatprep.mubr.bf16.mxu0 %v16734_v9  ;;  %v8072_v45 = vld [vmem:[%s11672_s26 + $0x80] sm:$0xff] }
 0x746   : > { %v7479_v3 = vpop.f32.mrf.mxu0 }
 0x747   : > { %8445 = vst [vmem:[%s15079_s9 + $0x28] sm:$0xff] %v8317_v58  ;;  %v8318_v51 = vmax.f32 %v8190_v36, 0.0  ;;  %v8191_v23 = vadd.f32 %v8063_v15, %v7935_v43  ;;  %v7936_v32 = vadd.f32 %v15060_v5, %v7796_v39  ;;  %v7797_v37 = vmul.f32 %v15058_v18, %v7479_v3  ;;  %v8073_v43 = vld [vmem:[%s11672_s26 + $0x88] sm:$0xff] }
 0x748   : > { %v7481_v54 = vpop.f32.mrf.mxu0 }
 0x749   : > { %8446 = vst [vmem:[%s15079_s9 + $0x30] sm:$0xff] %v8318_v51  ;;  %v8319_v52 = vmax.f32 %v8191_v23, 0.0  ;;  %v8192_v35 = vadd.f32 %v8064_v22, %v7936_v32  ;;  %v7937_v27 = vadd.f32 %v15063_v61, %v7797_v37  ;;  %v7798_v21 = vmul.f32 %v15056_v17, %v7481_v54  ;;  %v8074_v32 = vld [vmem:[%s11672_s26 + $0x90] sm:$0xff] }
 0x74a   : > { %v7483_v4 = vpop.f32.mrf.mxu0 }
 0x74b   : > { %8447 = vst [vmem:[%s15079_s9 + $0x38] sm:$0xff] %v8319_v52  ;;  %v8320_v28 = vmax.f32 %v8192_v35, 0.0  ;;  %v8193_v33 = vadd.f32 %v8065_v26, %v7937_v27  ;;  %v7938_v42 = vadd.f32 %v15060_v5, %v7798_v21  ;;  %v7799_v20 = vmul.f32 %v15058_v18, %v7483_v4  ;;  %v8075_v27 = vld [vmem:[%s11672_s26 + $0x98] sm:$0xff] }
 0x74c   : > { %v7487_v0 = vpop.f32.mrf.mxu0  ;;  %7726 = vmatmul.mubr.bf16.gmra.mxu0 %v15000_v16 }
 0x74d   : > { %8448 = vst [vmem:[%s15079_s9 + $0x40] sm:$0xff] %v8320_v28  ;;  %v8321_v31 = vmax.f32 %v8193_v33, 0.0  ;;  %v8194_v56 = vadd.f32 %v8066_v49, %v7938_v42  ;;  %v7939_v25 = vadd.f32 %v15063_v61, %v7799_v20  ;;  %v7800_v11 = vmul.f32 %v15056_v17, %v7487_v0  ;;  %7735 = vmatprep.mubr.bf16.mxu0 %v16734_v9  ;;  %v8076_v42 = vld [vmem:[%s11672_s26 + $0xa0] sm:$0xff] }
 0x74e   : > { %v7489_v48 = vpop.f32.mrf.mxu0 }
 0x74f   : > { %8449 = vst [vmem:[%s15079_s9 + $0x48] sm:$0xff] %v8321_v31  ;;  %v8322_v19 = vmax.f32 %v8194_v56, 0.0  ;;  %v8195_v63 = vadd.f32 %v8067_v7, %v7939_v25  ;;  %v7940_v41 = vadd.f32 %v15060_v5, %v7800_v11  ;;  %v7801_v16 = vmul.f32 %v15058_v18, %v7489_v48  ;;  %v8077_v56 = vld [vmem:[%s11672_s26 + $0xa8] sm:$0xff] }
 0x750   : > { %v7491_v30 = vpop.f32.mrf.mxu0 }
 0x751   : > { %8450 = vst [vmem:[%s15079_s9 + $0x50] sm:$0xff] %v8322_v19  ;;  %v8323_v14 = vmax.f32 %v8195_v63, 0.0  ;;  %v8196_v57 = vadd.f32 %v8068_v40, %v7940_v41  ;;  %v7941_v53 = vadd.f32 %v15063_v61, %v7801_v16  ;;  %v7802_v60 = vmul.f32 %v15056_v17, %v7491_v30  ;;  %v8078_v63 = vld [vmem:[%s11672_s26 + $0xb0] sm:$0xff] }
 0x752   : > { %v7493_v50 = vpop.f32.mrf.mxu0 }
 0x753   : > { %8451 = vst [vmem:[%s15079_s9 + $0x58] sm:$0xff] %v8323_v14  ;;  %v8324_v12 = vmax.f32 %v8196_v57, 0.0  ;;  %v8197_v55 = vadd.f32 %v8069_v59, %v7941_v53  ;;  %v7942_v44 = vadd.f32 %v15060_v5, %v7802_v60  ;;  %v7803_v10 = vmul.f32 %v15058_v18, %v7493_v50  ;;  %v8079_v57 = vld [vmem:[%s11672_s26 + $0xb8] sm:$0xff] }
 0x754   : > { %v7497_v2 = vpop.f32.mrf.mxu0  ;;  %7736 = vmatmul.mubr.bf16.gmra.mxu0 %v15024_v13 }
 0x755   : > { %8452 = vst [vmem:[%s15079_s9 + $0x60] sm:$0xff] %v8324_v12  ;;  %v8325_v62 = vmax.f32 %v8197_v55, 0.0  ;;  %v8198_v8 = vadd.f32 %v8070_v1, %v7942_v44  ;;  %v7943_v24 = vadd.f32 %v15063_v61, %v7803_v10  ;;  %v7804_v6 = vmul.f32 %v15056_v17, %v7497_v2  ;;  %7745 = vmatprep.mubr.bf16.mxu0 %v16734_v9  ;;  %v8080_v55 = vld [vmem:[%s11672_s26 + $0xc0] sm:$0xff] }
 0x756   : > { %v7499_v15 = vpop.f32.mrf.mxu0 }
 0x757   : > { %8453 = vst [vmem:[%s15079_s9 + $0x68] sm:$0xff] %v8325_v62  ;;  %v8326_v38 = vmax.f32 %v8198_v8, 0.0  ;;  %v8199_v58 = vadd.f32 %v8071_v34, %v7943_v24  ;;  %v7944_v36 = vadd.f32 %v15060_v5, %v7804_v6  ;;  %v7805_v13 = vmul.f32 %v15058_v18, %v7499_v15  ;;  %v8081_v62 = vld [vmem:[%s11672_s26 + $0xc8] sm:$0xff]  ;;  %v8082_v15 = vld [vmem:[%s11672_s26 + $0xd0] sm:$0xff] }
 0x758   : > { %v7501_v39 = vpop.f32.mrf.mxu0 }
 0x759   : > { %8454 = vst [vmem:[%s15079_s9 + $0x70] sm:$0xff] %v8326_v38  ;;  %v8327_v22 = vmax.f32 %v8199_v58, 0.0  ;;  %v8200_v3 = vadd.f32 %v8072_v45, %v7944_v36  ;;  %v7945_v51 = vadd.f32 %v15063_v61, %v7805_v13  ;;  %v7806_v23 = vmul.f32 %v15056_v17, %v7501_v39  ;;  %v8083_v39 = vld [vmem:[%s11672_s26 + $0xd8] sm:$0xff] }
 0x75a   : > { %v7503_v37 = vpop.f32.mrf.mxu0 }
 0x75b   : > { %8455 = vst [vmem:[%s15079_s9 + $0x78] sm:$0xff] %v8327_v22  ;;  %v8328_v26 = vmax.f32 %v8200_v3, 0.0  ;;  %v8201_v54 = vadd.f32 %v8073_v43, %v7945_v51  ;;  %v7946_v52 = vadd.f32 %v15060_v5, %v7806_v23  ;;  %v7807_v35 = vmul.f32 %v15058_v18, %v7503_v37  ;;  %v8084_v37 = vld [vmem:[%s11672_s26 + $0xe0] sm:$0xff] }
 0x75c   : > { %v7507_v21 = vpop.f32.mrf.mxu0  ;;  %7746 = vmatmul.mubr.bf16.gmra.mxu0 %v15018_v29 }
 0x75d   : > { %8456 = vst [vmem:[%s15079_s9 + $0x80] sm:$0xff] %v8328_v26  ;;  %v8329_v49 = vmax.f32 %v8201_v54, 0.0  ;;  %v8202_v4 = vadd.f32 %v8074_v32, %v7946_v52  ;;  %v7947_v28 = vadd.f32 %v15063_v61, %v7807_v35  ;;  %v7808_v33 = vmul.f32 %v15056_v17, %v7507_v21  ;;  %7755 = vmatprep.mubr.bf16.mxu0 %v16734_v9 }
 0x75e   : > { %v7509_v20 = vpop.f32.mrf.mxu0 }
 0x75f   : > { %8457 = vst [vmem:[%s15079_s9 + $0x88] sm:$0xff] %v8329_v49  ;;  %v8330_v7 = vmax.f32 %v8202_v4, 0.0  ;;  %v8203_v0 = vadd.f32 %v8075_v27, %v7947_v28  ;;  %v7948_v31 = vadd.f32 %v15060_v5, %v7808_v33  ;;  %v7809_v29 = vmul.f32 %v15058_v18, %v7509_v20 }
 0x760   : > { %v7511_v25 = vpop.f32.mrf.mxu0 }
 0x761   : > { %8458 = vst [vmem:[%s15079_s9 + $0x90] sm:$0xff] %v8330_v7  ;;  %v8331_v11 = vmax.f32 %v8203_v0, 0.0  ;;  %v8204_v40 = vadd.f32 %v8076_v42, %v7948_v31  ;;  %v7949_v48 = vadd.f32 %v15063_v61, %v7809_v29  ;;  %v7810_v19 = vmul.f32 %v15056_v17, %v7511_v25  ;;  %v8086_v42 = vld [vmem:[%s11672_s26 + $0xf0] sm:$0xff] }
 0x762   : > { %v7513_v41 = vpop.f32.mrf.mxu0 }
 0x763   : > { %8459 = vst [vmem:[%s15079_s9 + $0x98] sm:$0xff] %v8331_v11  ;;  %v8332_v16 = vmax.f32 %v8204_v40, 0.0  ;;  %v8205_v59 = vadd.f32 %v8077_v56, %v7949_v48  ;;  %v7950_v30 = vadd.f32 %v15060_v5, %v7810_v19  ;;  %v7811_v14 = vmul.f32 %v15058_v18, %v7513_v41  ;;  %v8087_v56 = vld [vmem:[%s11672_s26 + $0xf8] sm:$0xff] }
 0x764   : > { %v7517_v53 = vpop.f32.mrf.mxu0  ;;  %7756 = vmatmul.mubr.bf16.gmra.mxu0 %v15034_v46 }
 0x765   : > { %8460 = vst [vmem:[%s15079_s9 + $0xa0] sm:$0xff] %v8332_v16  ;;  %v8333_v60 = vmax.f32 %v8205_v59, 0.0  ;;  %v8206_v1 = vadd.f32 %v8078_v63, %v7950_v30  ;;  %v7951_v50 = vadd.f32 %v15063_v61, %v7811_v14  ;;  %v7812_v12 = vmul.f32 %v15056_v17, %v7517_v53  ;;  %7765 = vmatprep.mubr.bf16.mxu0 %v16734_v9  ;;  %v8088_v63 = vld [vmem:[%s11672_s26 + $0x100] sm:$0xff] }
 0x766   : > { %v7519_v44 = vpop.f32.mrf.mxu0 }
 0x767   : > { %8461 = vst [vmem:[%s15079_s9 + $0xa8] sm:$0xff] %v8333_v60  ;;  %v8334_v10 = vmax.f32 %v8206_v1, 0.0  ;;  %v8207_v34 = vadd.f32 %v8079_v57, %v7951_v50  ;;  %v7952_v2 = vadd.f32 %v15060_v5, %v7812_v12  ;;  %v7813_v46 = vmul.f32 %v15058_v18, %v7519_v44  ;;  %v8089_v57 = vld [vmem:[%s11672_s26 + $0x108] sm:$0xff] }
 0x768   : > { %v7521_v8 = vpop.f32.mrf.mxu0 }
 0x769   : > { %8462 = vst [vmem:[%s15079_s9 + $0xb0] sm:$0xff] %v8334_v10  ;;  %v8335_v24 = vmax.f32 %v8207_v34, 0.0  ;;  %v8208_v6 = vadd.f32 %v8080_v55, %v7952_v2  ;;  %v7953_v45 = vadd.f32 %v15063_v61, %v7813_v46  ;;  %v7814_v9 = vmul.f32 %v15056_v17, %v7521_v8  ;;  %v8090_v55 = vld [vmem:[%s11672_s26 + $0x110] sm:$0xff] }
 0x76a   : > { %v7523_v38 = vpop.f32.mrf.mxu0 }
 0x76b   : > { %8463 = vst [vmem:[%s15079_s9 + $0xb8] sm:$0xff] %v8335_v24  ;;  %v8336_v58 = vmax.f32 %v8208_v6, 0.0  ;;  %v8209_v36 = vadd.f32 %v8081_v62, %v7953_v45  ;;  %v7954_v13 = vadd.f32 %v15060_v5, %v7814_v9  ;;  %v7815_v43 = vmul.f32 %v15058_v18, %v7523_v38  ;;  %v8091_v62 = vld [vmem:[%s11672_s26 + $0x118] sm:$0xff] }
 0x76c   : > { %v7527_v22 = vpop.f32.mrf.mxu0  ;;  %7766 = vmatmul.mubr.bf16.gmra.mxu0 %v15032_v47  ;;  %v8085_v47 = vld [vmem:[%s11672_s26 + $0xe8] sm:$0xff] }
 0x76d   : > { %8464 = vst [vmem:[%s15079_s9 + $0xc0] sm:$0xff] %v8336_v58  ;;  %v8337_v3 = vmax.f32 %v8209_v36, 0.0  ;;  %v8210_v51 = vadd.f32 %v8082_v15, %v7954_v13  ;;  %v7955_v23 = vadd.f32 %v15063_v61, %v7815_v43  ;;  %v7816_v32 = vmul.f32 %v15056_v17, %v7527_v22  ;;  %v8092_v15 = vld [vmem:[%s11672_s26 + $0x120] sm:$0xff] }
 0x76e   : > { %v7529_v26 = vpop.f32.mrf.mxu0 }
 0x76f   : > { %8465 = vst [vmem:[%s15079_s9 + $0xc8] sm:$0xff] %v8337_v3  ;;  %v8338_v54 = vmax.f32 %v8210_v51, 0.0  ;;  %v8211_v52 = vadd.f32 %v8083_v39, %v7955_v23  ;;  %v7956_v35 = vadd.f32 %v15060_v5, %v7816_v32  ;;  %v7817_v27 = vmul.f32 %v15058_v18, %v7529_v26  ;;  %v8093_v39 = vld [vmem:[%s11672_s26 + $0x128] sm:$0xff] }
 0x770   : > { %v7531_v21 = vpop.f32.mrf.mxu0 }
 0x771   : > { %8466 = vst [vmem:[%s15079_s9 + $0xd0] sm:$0xff] %v8338_v54  ;;  %v8339_v49 = vmax.f32 %v8211_v52, 0.0  ;;  %v8212_v4 = vadd.f32 %v8084_v37, %v7956_v35  ;;  %v7957_v28 = vadd.f32 %v15063_v61, %v7817_v27  ;;  %v7818_v33 = vmul.f32 %v15056_v17, %v7531_v21  ;;  %v8094_v37 = vld [vmem:[%s11672_s26 + $0x130] sm:$0xff] }
 0x772   : > { %v7533_v20 = vpop.f32.mrf.mxu0 }
 0x773   : > { %8467 = vst [vmem:[%s15079_s9 + $0xd8] sm:$0xff] %v8339_v49  ;;  %v8340_v7 = vmax.f32 %v8212_v4, 0.0  ;;  %v8213_v0 = vadd.f32 %v8085_v47, %v7957_v28  ;;  %v7958_v31 = vadd.f32 %v15060_v5, %v7818_v33  ;;  %v7819_v29 = vmul.f32 %v15058_v18, %v7533_v20  ;;  %v8095_v47 = vld [vmem:[%s11672_s26 + $0x138] sm:$0xff] }
 0x774   : > { %v7537_v25 = vpop.f32.mrf.mxu0 }
 0x775   : > { %8468 = vst [vmem:[%s15079_s9 + $0xe0] sm:$0xff] %v8340_v7  ;;  %v8341_v11 = vmax.f32 %v8213_v0, 0.0  ;;  %v8214_v40 = vadd.f32 %v8086_v42, %v7958_v31  ;;  %v7959_v48 = vadd.f32 %v15063_v61, %v7819_v29  ;;  %v7820_v19 = vmul.f32 %v15056_v17, %v7537_v25  ;;  %v8096_v42 = vld [vmem:[%s11672_s26 + $0x140] sm:$0xff] }
 0x776   : > { %v7539_v41 = vpop.f32.mrf.mxu0 }
 0x777   : > { %8469 = vst [vmem:[%s15079_s9 + $0xe8] sm:$0xff] %v8341_v11  ;;  %v8342_v16 = vmax.f32 %v8214_v40, 0.0  ;;  %v8215_v59 = vadd.f32 %v8087_v56, %v7959_v48  ;;  %v7960_v30 = vadd.f32 %v15060_v5, %v7820_v19  ;;  %v7821_v14 = vmul.f32 %v15058_v18, %v7539_v41  ;;  %v8097_v56 = vld [vmem:[%s11672_s26 + $0x148] sm:$0xff] }
 0x778   : > { %v7541_v53 = vpop.f32.mrf.mxu0 }
 0x779   : > { %8470 = vst [vmem:[%s15079_s9 + $0xf0] sm:$0xff] %v8342_v16  ;;  %v8343_v60 = vmax.f32 %v8215_v59, 0.0  ;;  %v8216_v1 = vadd.f32 %v8088_v63, %v7960_v30  ;;  %v7961_v50 = vadd.f32 %v15063_v61, %v7821_v14  ;;  %v7822_v12 = vmul.f32 %v15056_v17, %v7541_v53  ;;  %v8098_v63 = vld [vmem:[%s11672_s26 + $0x150] sm:$0xff] }
 0x77a   : > { %v7543_v44 = vpop.f32.mrf.mxu0 }
 0x77b   : > { %8471 = vst [vmem:[%s15079_s9 + $0xf8] sm:$0xff] %v8343_v60  ;;  %v8344_v10 = vmax.f32 %v8216_v1, 0.0  ;;  %v8217_v34 = vadd.f32 %v8089_v57, %v7961_v50  ;;  %v7962_v2 = vadd.f32 %v15060_v5, %v7822_v12  ;;  %v7823_v46 = vmul.f32 %v15058_v18, %v7543_v44  ;;  %v8099_v57 = vld [vmem:[%s11672_s26 + $0x158] sm:$0xff] }
 0x77c   : > { %v7547_v8 = vpop.f32.mrf.mxu0 }
 0x77d   : > { %8472 = vst [vmem:[%s15079_s9 + $0x100] sm:$0xff] %v8344_v10  ;;  %v8345_v24 = vmax.f32 %v8217_v34, 0.0  ;;  %v8218_v6 = vadd.f32 %v8090_v55, %v7962_v2  ;;  %v7963_v45 = vadd.f32 %v15063_v61, %v7823_v46  ;;  %v7824_v9 = vmul.f32 %v15056_v17, %v7547_v8  ;;  %v8100_v55 = vld [vmem:[%s11672_s26 + $0x160] sm:$0xff] }
 0x77e   : > { %v7549_v38 = vpop.f32.mrf.mxu0 }
 0x77f   : > { %8473 = vst [vmem:[%s15079_s9 + $0x108] sm:$0xff] %v8345_v24  ;;  %v8346_v58 = vmax.f32 %v8218_v6, 0.0  ;;  %v8219_v36 = vadd.f32 %v8091_v62, %v7963_v45  ;;  %v7964_v13 = vadd.f32 %v15060_v5, %v7824_v9  ;;  %v7825_v43 = vmul.f32 %v15058_v18, %v7549_v38  ;;  %v8101_v62 = vld [vmem:[%s11672_s26 + $0x168] sm:$0xff] }
 0x780   : > { %v7551_v22 = vpop.f32.mrf.mxu0 }
 0x781   : > { %8474 = vst [vmem:[%s15079_s9 + $0x110] sm:$0xff] %v8346_v58  ;;  %v8347_v3 = vmax.f32 %v8219_v36, 0.0  ;;  %v8220_v51 = vadd.f32 %v8092_v15, %v7964_v13  ;;  %v7965_v23 = vadd.f32 %v15063_v61, %v7825_v43  ;;  %v7826_v32 = vmul.f32 %v15056_v17, %v7551_v22  ;;  %v8102_v15 = vld [vmem:[%s11672_s26 + $0x170] sm:$0xff] }
 0x782   : > { %v7553_v26 = vpop.f32.mrf.mxu0 }
 0x783   : > { %8475 = vst [vmem:[%s15079_s9 + $0x118] sm:$0xff] %v8347_v3  ;;  %v8348_v54 = vmax.f32 %v8220_v51, 0.0  ;;  %v8221_v52 = vadd.f32 %v8093_v39, %v7965_v23  ;;  %v7966_v35 = vadd.f32 %v15060_v5, %v7826_v32  ;;  %v7827_v27 = vmul.f32 %v15058_v18, %v7553_v26  ;;  %v8103_v39 = vld [vmem:[%s11672_s26 + $0x178] sm:$0xff] }
 0x784   : > { %v7557_v21 = vpop.f32.mrf.mxu0 }
 0x785   : > { %8476 = vst [vmem:[%s15079_s9 + $0x120] sm:$0xff] %v8348_v54  ;;  %v8349_v49 = vmax.f32 %v8221_v52, 0.0  ;;  %v8222_v4 = vadd.f32 %v8094_v37, %v7966_v35  ;;  %v7967_v28 = vadd.f32 %v15063_v61, %v7827_v27  ;;  %v7828_v33 = vmul.f32 %v15056_v17, %v7557_v21  ;;  %v8104_v37 = vld [vmem:[%s11672_s26 + $0x180] sm:$0xff] }
 0x786   : > { %v7559_v20 = vpop.f32.mrf.mxu0 }
 0x787   : > { %8477 = vst [vmem:[%s15079_s9 + $0x128] sm:$0xff] %v8349_v49  ;;  %v8350_v7 = vmax.f32 %v8222_v4, 0.0  ;;  %v8223_v0 = vadd.f32 %v8095_v47, %v7967_v28  ;;  %v7968_v31 = vadd.f32 %v15060_v5, %v7828_v33  ;;  %v7829_v29 = vmul.f32 %v15058_v18, %v7559_v20  ;;  %v8105_v47 = vld [vmem:[%s11672_s26 + $0x188] sm:$0xff] }
 0x788   : > { %v7561_v25 = vpop.f32.mrf.mxu0 }
 0x789   : > { %8478 = vst [vmem:[%s15079_s9 + $0x130] sm:$0xff] %v8350_v7  ;;  %v8351_v11 = vmax.f32 %v8223_v0, 0.0  ;;  %v8224_v40 = vadd.f32 %v8096_v42, %v7968_v31  ;;  %v7969_v48 = vadd.f32 %v15063_v61, %v7829_v29  ;;  %v7830_v19 = vmul.f32 %v15056_v17, %v7561_v25  ;;  %v8106_v42 = vld [vmem:[%s11672_s26 + $0x190] sm:$0xff] }
 0x78a   : > { %v7563_v41 = vpop.f32.mrf.mxu0 }
 0x78b   : > { %8479 = vst [vmem:[%s15079_s9 + $0x138] sm:$0xff] %v8351_v11  ;;  %v8352_v16 = vmax.f32 %v8224_v40, 0.0  ;;  %v8225_v59 = vadd.f32 %v8097_v56, %v7969_v48  ;;  %v7970_v30 = vadd.f32 %v15060_v5, %v7830_v19  ;;  %v7831_v14 = vmul.f32 %v15058_v18, %v7563_v41  ;;  %v8107_v56 = vld [vmem:[%s11672_s26 + $0x198] sm:$0xff] }
 0x78c   : > { %v7567_v53 = vpop.f32.mrf.mxu0 }
 0x78d   : > { %8480 = vst [vmem:[%s15079_s9 + $0x140] sm:$0xff] %v8352_v16  ;;  %v8353_v60 = vmax.f32 %v8225_v59, 0.0  ;;  %v8226_v1 = vadd.f32 %v8098_v63, %v7970_v30  ;;  %v7971_v50 = vadd.f32 %v15063_v61, %v7831_v14  ;;  %v7832_v12 = vmul.f32 %v15056_v17, %v7567_v53  ;;  %v8108_v63 = vld [vmem:[%s11672_s26 + $0x1a0] sm:$0xff] }
 0x78e   : > { %v7569_v44 = vpop.f32.mrf.mxu0 }
 0x78f   : > { %8481 = vst [vmem:[%s15079_s9 + $0x148] sm:$0xff] %v8353_v60  ;;  %v8354_v10 = vmax.f32 %v8226_v1, 0.0  ;;  %v8227_v34 = vadd.f32 %v8099_v57, %v7971_v50  ;;  %v7972_v2 = vadd.f32 %v15060_v5, %v7832_v12  ;;  %v7833_v46 = vmul.f32 %v15058_v18, %v7569_v44  ;;  %v8109_v57 = vld [vmem:[%s11672_s26 + $0x1a8] sm:$0xff] }
 0x790   : > { %v7571_v8 = vpop.f32.mrf.mxu0 }
 0x791   : > { %8482 = vst [vmem:[%s15079_s9 + $0x150] sm:$0xff] %v8354_v10  ;;  %v8355_v24 = vmax.f32 %v8227_v34, 0.0  ;;  %v8228_v6 = vadd.f32 %v8100_v55, %v7972_v2  ;;  %v7973_v45 = vadd.f32 %v15063_v61, %v7833_v46  ;;  %v7834_v9 = vmul.f32 %v15056_v17, %v7571_v8  ;;  %v8110_v55 = vld [vmem:[%s11672_s26 + $0x1b0] sm:$0xff] }
 0x792   : > { %v7573_v38 = vpop.f32.mrf.mxu0 }
 0x793   : > { %8483 = vst [vmem:[%s15079_s9 + $0x158] sm:$0xff] %v8355_v24  ;;  %v8356_v58 = vmax.f32 %v8228_v6, 0.0  ;;  %v8229_v36 = vadd.f32 %v8101_v62, %v7973_v45  ;;  %v7974_v13 = vadd.f32 %v15060_v5, %v7834_v9  ;;  %v7835_v43 = vmul.f32 %v15058_v18, %v7573_v38  ;;  %v8111_v62 = vld [vmem:[%s11672_s26 + $0x1b8] sm:$0xff] }
 0x794   : > { %v7577_v22 = vpop.f32.mrf.mxu0 }
 0x795   : > { %8484 = vst [vmem:[%s15079_s9 + $0x160] sm:$0xff] %v8356_v58  ;;  %v8357_v3 = vmax.f32 %v8229_v36, 0.0  ;;  %v8230_v51 = vadd.f32 %v8102_v15, %v7974_v13  ;;  %v7975_v23 = vadd.f32 %v15063_v61, %v7835_v43  ;;  %v7836_v32 = vmul.f32 %v15056_v17, %v7577_v22  ;;  %v8112_v15 = vld [vmem:[%s11672_s26 + $0x1c0] sm:$0xff] }
 0x796   : > { %v7579_v26 = vpop.f32.mrf.mxu0 }
 0x797   : > { %8485 = vst [vmem:[%s15079_s9 + $0x168] sm:$0xff] %v8357_v3  ;;  %v8358_v54 = vmax.f32 %v8230_v51, 0.0  ;;  %v8231_v52 = vadd.f32 %v8103_v39, %v7975_v23  ;;  %v7976_v35 = vadd.f32 %v15060_v5, %v7836_v32  ;;  %v7837_v27 = vmul.f32 %v15058_v18, %v7579_v26  ;;  %v8113_v39 = vld [vmem:[%s11672_s26 + $0x1c8] sm:$0xff] }
 0x798   : > { %v7581_v21 = vpop.f32.mrf.mxu0 }
 0x799   : > { %8486 = vst [vmem:[%s15079_s9 + $0x170] sm:$0xff] %v8358_v54  ;;  %v8359_v49 = vmax.f32 %v8231_v52, 0.0  ;;  %v8232_v4 = vadd.f32 %v8104_v37, %v7976_v35  ;;  %v7977_v28 = vadd.f32 %v15063_v61, %v7837_v27  ;;  %v7838_v33 = vmul.f32 %v15056_v17, %v7581_v21  ;;  %v8114_v37 = vld [vmem:[%s11672_s26 + $0x1d0] sm:$0xff] }
 0x79a   : > { %v7583_v20 = vpop.f32.mrf.mxu0 }
 0x79b   : > { %8487 = vst [vmem:[%s15079_s9 + $0x178] sm:$0xff] %v8359_v49  ;;  %v8360_v7 = vmax.f32 %v8232_v4, 0.0  ;;  %v8233_v0 = vadd.f32 %v8105_v47, %v7977_v28  ;;  %v7978_v31 = vadd.f32 %v15060_v5, %v7838_v33  ;;  %v7839_v29 = vmul.f32 %v15058_v18, %v7583_v20  ;;  %v8115_v47 = vld [vmem:[%s11672_s26 + $0x1d8] sm:$0xff] }
 0x79c   : > { %v7587_v25 = vpop.f32.mrf.mxu0 }
 0x79d   : > { %8488 = vst [vmem:[%s15079_s9 + $0x180] sm:$0xff] %v8360_v7  ;;  %v8361_v11 = vmax.f32 %v8233_v0, 0.0  ;;  %v8234_v40 = vadd.f32 %v8106_v42, %v7978_v31  ;;  %v7979_v48 = vadd.f32 %v15063_v61, %v7839_v29  ;;  %v7840_v19 = vmul.f32 %v15056_v17, %v7587_v25  ;;  %v8116_v42 = vld [vmem:[%s11672_s26 + $0x1e0] sm:$0xff] }
 0x79e   : > { %v7589_v41 = vpop.f32.mrf.mxu0 }
 0x79f   : > { %8489 = vst [vmem:[%s15079_s9 + $0x188] sm:$0xff] %v8361_v11  ;;  %v8362_v16 = vmax.f32 %v8234_v40, 0.0  ;;  %v8235_v59 = vadd.f32 %v8107_v56, %v7979_v48  ;;  %v7980_v30 = vadd.f32 %v15060_v5, %v7840_v19  ;;  %v7841_v14 = vmul.f32 %v15058_v18, %v7589_v41  ;;  %v8117_v56 = vld [vmem:[%s11672_s26 + $0x1e8] sm:$0xff] }
 0x7a0   : > { %v7591_v53 = vpop.f32.mrf.mxu0 }
 0x7a1   : > { %8490 = vst [vmem:[%s15079_s9 + $0x190] sm:$0xff] %v8362_v16  ;;  %v8363_v60 = vmax.f32 %v8235_v59, 0.0  ;;  %v8236_v1 = vadd.f32 %v8108_v63, %v7980_v30  ;;  %v7981_v50 = vadd.f32 %v15063_v61, %v7841_v14  ;;  %v7842_v12 = vmul.f32 %v15056_v17, %v7591_v53  ;;  %v8118_v63 = vld [vmem:[%s11672_s26 + $0x1f0] sm:$0xff] }
 0x7a2   : > { %v7593_v44 = vpop.f32.mrf.mxu0 }
 0x7a3   : > { %8491 = vst [vmem:[%s15079_s9 + $0x198] sm:$0xff] %v8363_v60  ;;  %v8364_v10 = vmax.f32 %v8236_v1, 0.0  ;;  %v8237_v34 = vadd.f32 %v8109_v57, %v7981_v50  ;;  %v7982_v2 = vadd.f32 %v15060_v5, %v7842_v12  ;;  %v7843_v46 = vmul.f32 %v15058_v18, %v7593_v44  ;;  %v8119_v57 = vld [vmem:[%s11672_s26 + $0x1f8] sm:$0xff] }
 0x7a4   : > { %v7597_v8 = vpop.f32.mrf.mxu0 }
 0x7a5   : > { %8492 = vst [vmem:[%s15079_s9 + $0x1a0] sm:$0xff] %v8364_v10  ;;  %v8365_v24 = vmax.f32 %v8237_v34, 0.0  ;;  %v8238_v6 = vadd.f32 %v8110_v55, %v7982_v2  ;;  %v7983_v45 = vadd.f32 %v15063_v61, %v7843_v46  ;;  %v7844_v9 = vmul.f32 %v15056_v17, %v7597_v8  ;;  %v8120_v55 = vld [vmem:[%s11672_s26 + $0x200] sm:$0xff] }
 0x7a6   : > { %v7599_v38 = vpop.f32.mrf.mxu0 }
 0x7a7   : > { %8493 = vst [vmem:[%s15079_s9 + $0x1a8] sm:$0xff] %v8365_v24  ;;  %v8366_v58 = vmax.f32 %v8238_v6, 0.0  ;;  %v8239_v36 = vadd.f32 %v8111_v62, %v7983_v45  ;;  %v7984_v13 = vadd.f32 %v15060_v5, %v7844_v9  ;;  %v7845_v43 = vmul.f32 %v15058_v18, %v7599_v38  ;;  %v8121_v62 = vld [vmem:[%s11672_s26 + $0x208] sm:$0xff] }
 0x7a8   : > { %v7601_v22 = vpop.f32.mrf.mxu0 }
 0x7a9   : > { %8494 = vst [vmem:[%s15079_s9 + $0x1b0] sm:$0xff] %v8366_v58  ;;  %v8367_v3 = vmax.f32 %v8239_v36, 0.0  ;;  %v8240_v51 = vadd.f32 %v8112_v15, %v7984_v13  ;;  %v7985_v23 = vadd.f32 %v15063_v61, %v7845_v43  ;;  %v7846_v32 = vmul.f32 %v15056_v17, %v7601_v22  ;;  %v8122_v15 = vld [vmem:[%s11672_s26 + $0x210] sm:$0xff] }
 0x7aa   : > { %v7603_v26 = vpop.f32.mrf.mxu0 }
 0x7ab   : > { %8495 = vst [vmem:[%s15079_s9 + $0x1b8] sm:$0xff] %v8367_v3  ;;  %v8368_v54 = vmax.f32 %v8240_v51, 0.0  ;;  %v8241_v52 = vadd.f32 %v8113_v39, %v7985_v23  ;;  %v7986_v35 = vadd.f32 %v15060_v5, %v7846_v32  ;;  %v7847_v27 = vmul.f32 %v15058_v18, %v7603_v26  ;;  %v8123_v39 = vld [vmem:[%s11672_s26 + $0x218] sm:$0xff] }
 0x7ac   : > { %v7607_v21 = vpop.f32.mrf.mxu0 }
 0x7ad   : > { %8496 = vst [vmem:[%s15079_s9 + $0x1c0] sm:$0xff] %v8368_v54  ;;  %v8369_v49 = vmax.f32 %v8241_v52, 0.0  ;;  %v8242_v4 = vadd.f32 %v8114_v37, %v7986_v35  ;;  %v7987_v28 = vadd.f32 %v15063_v61, %v7847_v27  ;;  %v7848_v33 = vmul.f32 %v15056_v17, %v7607_v21  ;;  %v8124_v37 = vld [vmem:[%s11672_s26 + $0x220] sm:$0xff] }
 0x7ae   : > { %v7609_v20 = vpop.f32.mrf.mxu0 }
 0x7af   : > { %8497 = vst [vmem:[%s15079_s9 + $0x1c8] sm:$0xff] %v8369_v49  ;;  %v8370_v7 = vmax.f32 %v8242_v4, 0.0  ;;  %v8243_v0 = vadd.f32 %v8115_v47, %v7987_v28  ;;  %v7988_v31 = vadd.f32 %v15060_v5, %v7848_v33  ;;  %v7849_v29 = vmul.f32 %v15058_v18, %v7609_v20  ;;  %v8125_v47 = vld [vmem:[%s11672_s26 + $0x228] sm:$0xff] }
 0x7b0   : > { %v7611_v25 = vpop.f32.mrf.mxu0 }
 0x7b1   : > { %8498 = vst [vmem:[%s15079_s9 + $0x1d0] sm:$0xff] %v8370_v7  ;;  %v8371_v11 = vmax.f32 %v8243_v0, 0.0  ;;  %v8244_v40 = vadd.f32 %v8116_v42, %v7988_v31  ;;  %v7989_v48 = vadd.f32 %v15063_v61, %v7849_v29  ;;  %v7850_v19 = vmul.f32 %v15056_v17, %v7611_v25  ;;  %v8126_v42 = vld [vmem:[%s11672_s26 + $0x230] sm:$0xff] }
 0x7b2   : > { %v7613_v41 = vpop.f32.mrf.mxu0 }
 0x7b3   : > { %8499 = vst [vmem:[%s15079_s9 + $0x1d8] sm:$0xff] %v8371_v11  ;;  %v8372_v16 = vmax.f32 %v8244_v40, 0.0  ;;  %v8245_v59 = vadd.f32 %v8117_v56, %v7989_v48  ;;  %v7990_v30 = vadd.f32 %v15060_v5, %v7850_v19  ;;  %v7851_v14 = vmul.f32 %v15058_v18, %v7613_v41  ;;  %v8127_v56 = vld [vmem:[%s11672_s26 + $0x238] sm:$0xff] }
 0x7b4   : > { %v7617_v53 = vpop.f32.mrf.mxu0 }
 0x7b5   : > { %8500 = vst [vmem:[%s15079_s9 + $0x1e0] sm:$0xff] %v8372_v16  ;;  %v8373_v60 = vmax.f32 %v8245_v59, 0.0  ;;  %v8246_v1 = vadd.f32 %v8118_v63, %v7990_v30  ;;  %v7991_v50 = vadd.f32 %v15063_v61, %v7851_v14  ;;  %v7852_v12 = vmul.f32 %v15056_v17, %v7617_v53  ;;  %v8128_v63 = vld [vmem:[%s11672_s26 + $0x240] sm:$0xff] }
 0x7b6   : > { %v7619_v44 = vpop.f32.mrf.mxu0 }
 0x7b7   : > { %8501 = vst [vmem:[%s15079_s9 + $0x1e8] sm:$0xff] %v8373_v60  ;;  %v8374_v10 = vmax.f32 %v8246_v1, 0.0  ;;  %v8247_v34 = vadd.f32 %v8119_v57, %v7991_v50  ;;  %v7992_v2 = vadd.f32 %v15060_v5, %v7852_v12  ;;  %v7853_v46 = vmul.f32 %v15058_v18, %v7619_v44  ;;  %v8129_v57 = vld [vmem:[%s11672_s26 + $0x248] sm:$0xff] }
 0x7b8   : > { %v7621_v8 = vpop.f32.mrf.mxu0 }
 0x7b9   : > { %8502 = vst [vmem:[%s15079_s9 + $0x1f0] sm:$0xff] %v8374_v10  ;;  %v8375_v24 = vmax.f32 %v8247_v34, 0.0  ;;  %v8248_v6 = vadd.f32 %v8120_v55, %v7992_v2  ;;  %v7993_v45 = vadd.f32 %v15063_v61, %v7853_v46  ;;  %v7854_v9 = vmul.f32 %v15056_v17, %v7621_v8  ;;  %v8130_v55 = vld [vmem:[%s11672_s26 + $0x250] sm:$0xff] }
 0x7ba   : > { %v7623_v38 = vpop.f32.mrf.mxu0 }
 0x7bb   : > { %8503 = vst [vmem:[%s15079_s9 + $0x1f8] sm:$0xff] %v8375_v24  ;;  %v8376_v58 = vmax.f32 %v8248_v6, 0.0  ;;  %v8249_v36 = vadd.f32 %v8121_v62, %v7993_v45  ;;  %v7994_v13 = vadd.f32 %v15060_v5, %v7854_v9  ;;  %v7855_v43 = vmul.f32 %v15058_v18, %v7623_v38  ;;  %v8131_v62 = vld [vmem:[%s11672_s26 + $0x258] sm:$0xff] }
 0x7bc   : > { %v7627_v22 = vpop.f32.mrf.mxu0 }
 0x7bd   : > { %8504 = vst [vmem:[%s15079_s9 + $0x200] sm:$0xff] %v8376_v58  ;;  %v8377_v3 = vmax.f32 %v8249_v36, 0.0  ;;  %v8250_v51 = vadd.f32 %v8122_v15, %v7994_v13  ;;  %v7995_v23 = vadd.f32 %v15063_v61, %v7855_v43  ;;  %v7856_v32 = vmul.f32 %v15056_v17, %v7627_v22  ;;  %v8132_v15 = vld [vmem:[%s11672_s26 + $0x260] sm:$0xff] }
 0x7be   : > { %v7629_v26 = vpop.f32.mrf.mxu0 }
 0x7bf   : > { %8505 = vst [vmem:[%s15079_s9 + $0x208] sm:$0xff] %v8377_v3  ;;  %v8378_v54 = vmax.f32 %v8250_v51, 0.0  ;;  %v8251_v52 = vadd.f32 %v8123_v39, %v7995_v23  ;;  %v7996_v35 = vadd.f32 %v15060_v5, %v7856_v32  ;;  %v7857_v27 = vmul.f32 %v15058_v18, %v7629_v26  ;;  %v8133_v39 = vld [vmem:[%s11672_s26 + $0x268] sm:$0xff] }
 0x7c0   : > { %v7631_v21 = vpop.f32.mrf.mxu0 }
 0x7c1   : > { %8506 = vst [vmem:[%s15079_s9 + $0x210] sm:$0xff] %v8378_v54  ;;  %v8379_v49 = vmax.f32 %v8251_v52, 0.0  ;;  %v8252_v4 = vadd.f32 %v8124_v37, %v7996_v35  ;;  %v7997_v28 = vadd.f32 %v15063_v61, %v7857_v27  ;;  %v7858_v33 = vmul.f32 %v15056_v17, %v7631_v21  ;;  %v8134_v37 = vld [vmem:[%s11672_s26 + $0x270] sm:$0xff] }
 0x7c2   : > { %v7633_v20 = vpop.f32.mrf.mxu0 }
 0x7c3   : > { %8507 = vst [vmem:[%s15079_s9 + $0x218] sm:$0xff] %v8379_v49  ;;  %v8380_v7 = vmax.f32 %v8252_v4, 0.0  ;;  %v8253_v0 = vadd.f32 %v8125_v47, %v7997_v28  ;;  %v7998_v31 = vadd.f32 %v15060_v5, %v7858_v33  ;;  %v7859_v29 = vmul.f32 %v15058_v18, %v7633_v20  ;;  %v8135_v47 = vld [vmem:[%s11672_s26 + $0x278] sm:$0xff] }
 0x7c4   : > { %v7637_v25 = vpop.f32.mrf.mxu0 }
 0x7c5   : > { %8508 = vst [vmem:[%s15079_s9 + $0x220] sm:$0xff] %v8380_v7  ;;  %v8381_v11 = vmax.f32 %v8253_v0, 0.0  ;;  %v8254_v40 = vadd.f32 %v8126_v42, %v7998_v31  ;;  %v7999_v48 = vadd.f32 %v15063_v61, %v7859_v29  ;;  %v7860_v19 = vmul.f32 %v15056_v17, %v7637_v25  ;;  %v8136_v42 = vld [vmem:[%s11672_s26 + $0x280] sm:$0xff] }
 0x7c6   : > { %v7639_v41 = vpop.f32.mrf.mxu0 }
 0x7c7   : > { %8509 = vst [vmem:[%s15079_s9 + $0x228] sm:$0xff] %v8381_v11  ;;  %v8382_v16 = vmax.f32 %v8254_v40, 0.0  ;;  %v8255_v59 = vadd.f32 %v8127_v56, %v7999_v48  ;;  %v8000_v30 = vadd.f32 %v15060_v5, %v7860_v19  ;;  %v7861_v14 = vmul.f32 %v15058_v18, %v7639_v41  ;;  %v8137_v56 = vld [vmem:[%s11672_s26 + $0x288] sm:$0xff] }
 0x7c8   : > { %v7641_v53 = vpop.f32.mrf.mxu0 }
 0x7c9   : > { %8510 = vst [vmem:[%s15079_s9 + $0x230] sm:$0xff] %v8382_v16  ;;  %v8383_v60 = vmax.f32 %v8255_v59, 0.0  ;;  %v8256_v1 = vadd.f32 %v8128_v63, %v8000_v30  ;;  %v8001_v50 = vadd.f32 %v15063_v61, %v7861_v14  ;;  %v7862_v12 = vmul.f32 %v15056_v17, %v7641_v53  ;;  %v8138_v63 = vld [vmem:[%s11672_s26 + $0x290] sm:$0xff] }
 0x7ca   : > { %v7643_v44 = vpop.f32.mrf.mxu0 }
 0x7cb   : > { %8511 = vst [vmem:[%s15079_s9 + $0x238] sm:$0xff] %v8383_v60  ;;  %v8384_v10 = vmax.f32 %v8256_v1, 0.0  ;;  %v8257_v34 = vadd.f32 %v8129_v57, %v8001_v50  ;;  %v8002_v2 = vadd.f32 %v15060_v5, %v7862_v12  ;;  %v7863_v46 = vmul.f32 %v15058_v18, %v7643_v44  ;;  %v8139_v57 = vld [vmem:[%s11672_s26 + $0x298] sm:$0xff] }
 0x7cc   : > { %v7647_v8 = vpop.f32.mrf.mxu0 }
 0x7cd   : > { %8512 = vst [vmem:[%s15079_s9 + $0x240] sm:$0xff] %v8384_v10  ;;  %v8385_v24 = vmax.f32 %v8257_v34, 0.0  ;;  %v8258_v6 = vadd.f32 %v8130_v55, %v8002_v2  ;;  %v8003_v45 = vadd.f32 %v15063_v61, %v7863_v46  ;;  %v7864_v9 = vmul.f32 %v15056_v17, %v7647_v8  ;;  %v8140_v55 = vld [vmem:[%s11672_s26 + $0x2a0] sm:$0xff] }
 0x7ce   : > { %v7649_v38 = vpop.f32.mrf.mxu0 }
 0x7cf   : > { %8513 = vst [vmem:[%s15079_s9 + $0x248] sm:$0xff] %v8385_v24  ;;  %v8386_v58 = vmax.f32 %v8258_v6, 0.0  ;;  %v8259_v36 = vadd.f32 %v8131_v62, %v8003_v45  ;;  %v8004_v13 = vadd.f32 %v15060_v5, %v7864_v9  ;;  %v7865_v43 = vmul.f32 %v15058_v18, %v7649_v38  ;;  %v8141_v62 = vld [vmem:[%s11672_s26 + $0x2a8] sm:$0xff] }
 0x7d0   : > { %v7651_v22 = vpop.f32.mrf.mxu0 }
 0x7d1   : > { %8514 = vst [vmem:[%s15079_s9 + $0x250] sm:$0xff] %v8386_v58  ;;  %v8387_v3 = vmax.f32 %v8259_v36, 0.0  ;;  %v8260_v51 = vadd.f32 %v8132_v15, %v8004_v13  ;;  %v8005_v23 = vadd.f32 %v15063_v61, %v7865_v43  ;;  %v7866_v32 = vmul.f32 %v15056_v17, %v7651_v22  ;;  %v8142_v15 = vld [vmem:[%s11672_s26 + $0x2b0] sm:$0xff] }
 0x7d2   : > { %v7653_v26 = vpop.f32.mrf.mxu0 }
 0x7d3   : > { %8515 = vst [vmem:[%s15079_s9 + $0x258] sm:$0xff] %v8387_v3  ;;  %v8388_v54 = vmax.f32 %v8260_v51, 0.0  ;;  %v8261_v52 = vadd.f32 %v8133_v39, %v8005_v23  ;;  %v8006_v35 = vadd.f32 %v15060_v5, %v7866_v32  ;;  %v7867_v27 = vmul.f32 %v15058_v18, %v7653_v26  ;;  %v8143_v39 = vld [vmem:[%s11672_s26 + $0x2b8] sm:$0xff] }
 0x7d4   : > { %v7657_v21 = vpop.f32.mrf.mxu0 }
 0x7d5   : > { %8516 = vst [vmem:[%s15079_s9 + $0x260] sm:$0xff] %v8388_v54  ;;  %v8389_v49 = vmax.f32 %v8261_v52, 0.0  ;;  %v8262_v4 = vadd.f32 %v8134_v37, %v8006_v35  ;;  %v8007_v28 = vadd.f32 %v15063_v61, %v7867_v27  ;;  %v7868_v33 = vmul.f32 %v15056_v17, %v7657_v21  ;;  %v8144_v37 = vld [vmem:[%s11672_s26 + $0x2c0] sm:$0xff] }
 0x7d6   : > { %v7659_v20 = vpop.f32.mrf.mxu0 }
 0x7d7   : > { %8517 = vst [vmem:[%s15079_s9 + $0x268] sm:$0xff] %v8389_v49  ;;  %v8390_v7 = vmax.f32 %v8262_v4, 0.0  ;;  %v8263_v0 = vadd.f32 %v8135_v47, %v8007_v28  ;;  %v8008_v31 = vadd.f32 %v15060_v5, %v7868_v33  ;;  %v7869_v29 = vmul.f32 %v15058_v18, %v7659_v20  ;;  %v8145_v47 = vld [vmem:[%s11672_s26 + $0x2c8] sm:$0xff] }
 0x7d8   : > { %v7661_v25 = vpop.f32.mrf.mxu0 }
 0x7d9   : > { %8518 = vst [vmem:[%s15079_s9 + $0x270] sm:$0xff] %v8390_v7  ;;  %v8391_v11 = vmax.f32 %v8263_v0, 0.0  ;;  %v8264_v40 = vadd.f32 %v8136_v42, %v8008_v31  ;;  %v8009_v48 = vadd.f32 %v15063_v61, %v7869_v29  ;;  %v7870_v19 = vmul.f32 %v15056_v17, %v7661_v25  ;;  %v8146_v42 = vld [vmem:[%s11672_s26 + $0x2d0] sm:$0xff] }
 0x7da   : > { %v7663_v41 = vpop.f32.mrf.mxu0 }
 0x7db   : > { %8519 = vst [vmem:[%s15079_s9 + $0x278] sm:$0xff] %v8391_v11  ;;  %v8392_v16 = vmax.f32 %v8264_v40, 0.0  ;;  %v8265_v59 = vadd.f32 %v8137_v56, %v8009_v48  ;;  %v8010_v30 = vadd.f32 %v15060_v5, %v7870_v19  ;;  %v7871_v14 = vmul.f32 %v15058_v18, %v7663_v41  ;;  %v8147_v56 = vld [vmem:[%s11672_s26 + $0x2d8] sm:$0xff] }
 0x7dc   : > { %v7667_v53 = vpop.f32.mrf.mxu0 }
 0x7dd   : > { %8520 = vst [vmem:[%s15079_s9 + $0x280] sm:$0xff] %v8392_v16  ;;  %v8393_v60 = vmax.f32 %v8265_v59, 0.0  ;;  %v8266_v1 = vadd.f32 %v8138_v63, %v8010_v30  ;;  %v8011_v50 = vadd.f32 %v15063_v61, %v7871_v14  ;;  %v7872_v12 = vmul.f32 %v15056_v17, %v7667_v53  ;;  %v8148_v63 = vld [vmem:[%s11672_s26 + $0x2e0] sm:$0xff] }
 0x7de   : > { %v7669_v44 = vpop.f32.mrf.mxu0 }
 0x7df   : > { %8521 = vst [vmem:[%s15079_s9 + $0x288] sm:$0xff] %v8393_v60  ;;  %v8394_v10 = vmax.f32 %v8266_v1, 0.0  ;;  %v8267_v34 = vadd.f32 %v8139_v57, %v8011_v50  ;;  %v8012_v2 = vadd.f32 %v15060_v5, %v7872_v12  ;;  %v7873_v46 = vmul.f32 %v15058_v18, %v7669_v44  ;;  %v8149_v57 = vld [vmem:[%s11672_s26 + $0x2e8] sm:$0xff] }
 0x7e0   : > { %v7671_v8 = vpop.f32.mrf.mxu0 }
 0x7e1   : > { %8522 = vst [vmem:[%s15079_s9 + $0x290] sm:$0xff] %v8394_v10  ;;  %v8395_v24 = vmax.f32 %v8267_v34, 0.0  ;;  %v8268_v6 = vadd.f32 %v8140_v55, %v8012_v2  ;;  %v8013_v45 = vadd.f32 %v15063_v61, %v7873_v46  ;;  %v7874_v9 = vmul.f32 %v15056_v17, %v7671_v8  ;;  %v8150_v55 = vld [vmem:[%s11672_s26 + $0x2f0] sm:$0xff] }
 0x7e2   : > { %v7673_v38 = vpop.f32.mrf.mxu0 }
 0x7e3   : > { %8523 = vst [vmem:[%s15079_s9 + $0x298] sm:$0xff] %v8395_v24  ;;  %v8396_v58 = vmax.f32 %v8268_v6, 0.0  ;;  %v8269_v36 = vadd.f32 %v8141_v62, %v8013_v45  ;;  %v8014_v13 = vadd.f32 %v15060_v5, %v7874_v9  ;;  %v7875_v43 = vmul.f32 %v15058_v18, %v7673_v38  ;;  %v8151_v62 = vld [vmem:[%s11672_s26 + $0x2f8] sm:$0xff] }
 0x7e4   : > { %v7677_v22 = vpop.f32.mrf.mxu0 }
 0x7e5   : > { %8524 = vst [vmem:[%s15079_s9 + $0x2a0] sm:$0xff] %v8396_v58  ;;  %v8397_v3 = vmax.f32 %v8269_v36, 0.0  ;;  %v8270_v51 = vadd.f32 %v8142_v15, %v8014_v13  ;;  %v8015_v23 = vadd.f32 %v15063_v61, %v7875_v43  ;;  %v7876_v32 = vmul.f32 %v15056_v17, %v7677_v22  ;;  %v8152_v15 = vld [vmem:[%s11672_s26 + $0x300] sm:$0xff] }
 0x7e6   : > { %v7679_v26 = vpop.f32.mrf.mxu0 }
 0x7e7   : > { %8525 = vst [vmem:[%s15079_s9 + $0x2a8] sm:$0xff] %v8397_v3  ;;  %v8398_v54 = vmax.f32 %v8270_v51, 0.0  ;;  %v8271_v52 = vadd.f32 %v8143_v39, %v8015_v23  ;;  %v8016_v35 = vadd.f32 %v15060_v5, %v7876_v32  ;;  %v7877_v27 = vmul.f32 %v15058_v18, %v7679_v26  ;;  %v8153_v39 = vld [vmem:[%s11672_s26 + $0x308] sm:$0xff] }
 0x7e8   : > { %v7681_v21 = vpop.f32.mrf.mxu0 }
 0x7e9   : > { %8526 = vst [vmem:[%s15079_s9 + $0x2b0] sm:$0xff] %v8398_v54  ;;  %v8399_v49 = vmax.f32 %v8271_v52, 0.0  ;;  %v8272_v4 = vadd.f32 %v8144_v37, %v8016_v35  ;;  %v8017_v28 = vadd.f32 %v15063_v61, %v7877_v27  ;;  %v7878_v33 = vmul.f32 %v15056_v17, %v7681_v21  ;;  %v8154_v37 = vld [vmem:[%s11672_s26 + $0x310] sm:$0xff] }
 0x7ea   : > { %v7683_v20 = vpop.f32.mrf.mxu0 }
 0x7eb   : > { %8527 = vst [vmem:[%s15079_s9 + $0x2b8] sm:$0xff] %v8399_v49  ;;  %v8400_v7 = vmax.f32 %v8272_v4, 0.0  ;;  %v8273_v0 = vadd.f32 %v8145_v47, %v8017_v28  ;;  %v8018_v31 = vadd.f32 %v15060_v5, %v7878_v33  ;;  %v7879_v29 = vmul.f32 %v15058_v18, %v7683_v20  ;;  %v8155_v47 = vld [vmem:[%s11672_s26 + $0x318] sm:$0xff] }
 0x7ec   : > { %v7687_v25 = vpop.f32.mrf.mxu0 }
 0x7ed   : > { %8528 = vst [vmem:[%s15079_s9 + $0x2c0] sm:$0xff] %v8400_v7  ;;  %v8401_v11 = vmax.f32 %v8273_v0, 0.0  ;;  %v8274_v40 = vadd.f32 %v8146_v42, %v8018_v31  ;;  %v8019_v48 = vadd.f32 %v15063_v61, %v7879_v29  ;;  %v7880_v19 = vmul.f32 %v15056_v17, %v7687_v25  ;;  %v8156_v42 = vld [vmem:[%s11672_s26 + $0x320] sm:$0xff] }
 0x7ee   : > { %v7689_v41 = vpop.f32.mrf.mxu0 }
 0x7ef   : > { %8529 = vst [vmem:[%s15079_s9 + $0x2c8] sm:$0xff] %v8401_v11  ;;  %v8402_v16 = vmax.f32 %v8274_v40, 0.0  ;;  %v8275_v59 = vadd.f32 %v8147_v56, %v8019_v48  ;;  %v8020_v30 = vadd.f32 %v15060_v5, %v7880_v19  ;;  %v7881_v14 = vmul.f32 %v15058_v18, %v7689_v41  ;;  %v8157_v56 = vld [vmem:[%s11672_s26 + $0x328] sm:$0xff] }
 0x7f0   : > { %v7691_v53 = vpop.f32.mrf.mxu0 }
 0x7f1   : > { %8530 = vst [vmem:[%s15079_s9 + $0x2d0] sm:$0xff] %v8402_v16  ;;  %v8403_v60 = vmax.f32 %v8275_v59, 0.0  ;;  %v8276_v1 = vadd.f32 %v8148_v63, %v8020_v30  ;;  %v8021_v50 = vadd.f32 %v15063_v61, %v7881_v14  ;;  %v7882_v12 = vmul.f32 %v15056_v17, %v7691_v53  ;;  %v8158_v63 = vld [vmem:[%s11672_s26 + $0x330] sm:$0xff] }
 0x7f2   : > { %v7693_v44 = vpop.f32.mrf.mxu0 }
 0x7f3   : > { %8531 = vst [vmem:[%s15079_s9 + $0x2d8] sm:$0xff] %v8403_v60  ;;  %v8404_v10 = vmax.f32 %v8276_v1, 0.0  ;;  %v8277_v34 = vadd.f32 %v8149_v57, %v8021_v50  ;;  %v8022_v2 = vadd.f32 %v15060_v5, %v7882_v12  ;;  %v7883_v46 = vmul.f32 %v15058_v18, %v7693_v44  ;;  %v8159_v57 = vld [vmem:[%s11672_s26 + $0x338] sm:$0xff] }
 0x7f4   : > { %v7697_v8 = vpop.f32.mrf.mxu0 }
 0x7f5   : > { %8532 = vst [vmem:[%s15079_s9 + $0x2e0] sm:$0xff] %v8404_v10  ;;  %v8405_v24 = vmax.f32 %v8277_v34, 0.0  ;;  %v8278_v6 = vadd.f32 %v8150_v55, %v8022_v2  ;;  %v8023_v45 = vadd.f32 %v15063_v61, %v7883_v46  ;;  %v7884_v9 = vmul.f32 %v15056_v17, %v7697_v8  ;;  %v8160_v55 = vld [vmem:[%s11672_s26 + $0x340] sm:$0xff] }
 0x7f6   : > { %v7699_v38 = vpop.f32.mrf.mxu0 }
 0x7f7   : > { %8533 = vst [vmem:[%s15079_s9 + $0x2e8] sm:$0xff] %v8405_v24  ;;  %v8406_v58 = vmax.f32 %v8278_v6, 0.0  ;;  %v8279_v36 = vadd.f32 %v8151_v62, %v8023_v45  ;;  %v8024_v13 = vadd.f32 %v15060_v5, %v7884_v9  ;;  %v7885_v43 = vmul.f32 %v15058_v18, %v7699_v38  ;;  %v8161_v62 = vld [vmem:[%s11672_s26 + $0x348] sm:$0xff] }
 0x7f8   : > { %v7701_v22 = vpop.f32.mrf.mxu0 }
 0x7f9   : > { %8534 = vst [vmem:[%s15079_s9 + $0x2f0] sm:$0xff] %v8406_v58  ;;  %v8407_v3 = vmax.f32 %v8279_v36, 0.0  ;;  %v8280_v51 = vadd.f32 %v8152_v15, %v8024_v13  ;;  %v8025_v23 = vadd.f32 %v15063_v61, %v7885_v43  ;;  %v7886_v32 = vmul.f32 %v15056_v17, %v7701_v22  ;;  %v8162_v15 = vld [vmem:[%s11672_s26 + $0x350] sm:$0xff] }
 0x7fa   : > { %v7703_v26 = vpop.f32.mrf.mxu0 }
 0x7fb   : > { %8535 = vst [vmem:[%s15079_s9 + $0x2f8] sm:$0xff] %v8407_v3  ;;  %v8408_v54 = vmax.f32 %v8280_v51, 0.0  ;;  %v8281_v52 = vadd.f32 %v8153_v39, %v8025_v23  ;;  %v8026_v35 = vadd.f32 %v15060_v5, %v7886_v32  ;;  %v7887_v27 = vmul.f32 %v15058_v18, %v7703_v26  ;;  %v8163_v39 = vld [vmem:[%s11672_s26 + $0x358] sm:$0xff] }
 0x7fc   : > { %v7707_v21 = vpop.f32.mrf.mxu0 }
 0x7fd   : > { %8536 = vst [vmem:[%s15079_s9 + $0x300] sm:$0xff] %v8408_v54  ;;  %v8409_v49 = vmax.f32 %v8281_v52, 0.0  ;;  %v8282_v4 = vadd.f32 %v8154_v37, %v8026_v35  ;;  %v8027_v28 = vadd.f32 %v15063_v61, %v7887_v27  ;;  %v7888_v33 = vmul.f32 %v15056_v17, %v7707_v21  ;;  %v8164_v37 = vld [vmem:[%s11672_s26 + $0x360] sm:$0xff] }
 0x7fe   : > { %v7709_v20 = vpop.f32.mrf.mxu0 }
 0x7ff   : > { %8537 = vst [vmem:[%s15079_s9 + $0x308] sm:$0xff] %v8409_v49  ;;  %v8410_v7 = vmax.f32 %v8282_v4, 0.0  ;;  %v8283_v0 = vadd.f32 %v8155_v47, %v8027_v28  ;;  %v8028_v31 = vadd.f32 %v15060_v5, %v7888_v33  ;;  %v7889_v29 = vmul.f32 %v15058_v18, %v7709_v20  ;;  %v8165_v47 = vld [vmem:[%s11672_s26 + $0x368] sm:$0xff] }
 0x800   : > { %v7711_v25 = vpop.f32.mrf.mxu0 }
 0x801   : > { %8538 = vst [vmem:[%s15079_s9 + $0x310] sm:$0xff] %v8410_v7  ;;  %v8411_v11 = vmax.f32 %v8283_v0, 0.0  ;;  %v8284_v40 = vadd.f32 %v8156_v42, %v8028_v31  ;;  %v8029_v48 = vadd.f32 %v15063_v61, %v7889_v29  ;;  %v7890_v19 = vmul.f32 %v15056_v17, %v7711_v25  ;;  %v8166_v42 = vld [vmem:[%s11672_s26 + $0x370] sm:$0xff] }
 0x802   : > { %v7713_v41 = vpop.f32.mrf.mxu0 }
 0x803   : > { %8539 = vst [vmem:[%s15079_s9 + $0x318] sm:$0xff] %v8411_v11  ;;  %v8412_v16 = vmax.f32 %v8284_v40, 0.0  ;;  %v8285_v59 = vadd.f32 %v8157_v56, %v8029_v48  ;;  %v8030_v30 = vadd.f32 %v15060_v5, %v7890_v19  ;;  %v7891_v14 = vmul.f32 %v15058_v18, %v7713_v41  ;;  %v8167_v56 = vld [vmem:[%s11672_s26 + $0x378] sm:$0xff] }
 0x804   : > { %v7717_v53 = vpop.f32.mrf.mxu0 }
 0x805   : > { %8540 = vst [vmem:[%s15079_s9 + $0x320] sm:$0xff] %v8412_v16  ;;  %v8413_v60 = vmax.f32 %v8285_v59, 0.0  ;;  %v8286_v1 = vadd.f32 %v8158_v63, %v8030_v30  ;;  %v8031_v50 = vadd.f32 %v15063_v61, %v7891_v14  ;;  %v7892_v12 = vmul.f32 %v15056_v17, %v7717_v53  ;;  %v8168_v63 = vld [vmem:[%s11672_s26 + $0x380] sm:$0xff] }
 0x806   : > { %v7719_v44 = vpop.f32.mrf.mxu0 }
 0x807   : > { %8541 = vst [vmem:[%s15079_s9 + $0x328] sm:$0xff] %v8413_v60  ;;  %v8414_v10 = vmax.f32 %v8286_v1, 0.0  ;;  %v8287_v34 = vadd.f32 %v8159_v57, %v8031_v50  ;;  %v8032_v2 = vadd.f32 %v15060_v5, %v7892_v12  ;;  %v7893_v46 = vmul.f32 %v15058_v18, %v7719_v44  ;;  %v8169_v57 = vld [vmem:[%s11672_s26 + $0x388] sm:$0xff] }
 0x808   : > { %v7721_v8 = vpop.f32.mrf.mxu0 }
 0x809   : > { %8542 = vst [vmem:[%s15079_s9 + $0x330] sm:$0xff] %v8414_v10  ;;  %v8415_v24 = vmax.f32 %v8287_v34, 0.0  ;;  %v8288_v6 = vadd.f32 %v8160_v55, %v8032_v2  ;;  %v8033_v45 = vadd.f32 %v15063_v61, %v7893_v46  ;;  %v7894_v9 = vmul.f32 %v15056_v17, %v7721_v8  ;;  %v8170_v55 = vld [vmem:[%s11672_s26 + $0x390] sm:$0xff] }
 0x80a   : > { %v7723_v38 = vpop.f32.mrf.mxu0 }
 0x80b   : > { %8543 = vst [vmem:[%s15079_s9 + $0x338] sm:$0xff] %v8415_v24  ;;  %v8416_v58 = vmax.f32 %v8288_v6, 0.0  ;;  %v8289_v36 = vadd.f32 %v8161_v62, %v8033_v45  ;;  %v8034_v13 = vadd.f32 %v15060_v5, %v7894_v9  ;;  %v7895_v43 = vmul.f32 %v15058_v18, %v7723_v38  ;;  %v8171_v62 = vld [vmem:[%s11672_s26 + $0x398] sm:$0xff] }
 0x80c   : > { %v7727_v22 = vpop.f32.mrf.mxu0 }
 0x80d   : > { %8544 = vst [vmem:[%s15079_s9 + $0x340] sm:$0xff] %v8416_v58  ;;  %v8417_v3 = vmax.f32 %v8289_v36, 0.0  ;;  %v8290_v51 = vadd.f32 %v8162_v15, %v8034_v13  ;;  %v8035_v23 = vadd.f32 %v15063_v61, %v7895_v43  ;;  %v7896_v32 = vmul.f32 %v15056_v17, %v7727_v22  ;;  %v8172_v15 = vld [vmem:[%s11672_s26 + $0x3a0] sm:$0xff] }
 0x80e   : > { %v7729_v26 = vpop.f32.mrf.mxu0 }
 0x80f   : > { %8545 = vst [vmem:[%s15079_s9 + $0x348] sm:$0xff] %v8417_v3  ;;  %v8418_v54 = vmax.f32 %v8290_v51, 0.0  ;;  %v8291_v52 = vadd.f32 %v8163_v39, %v8035_v23  ;;  %v8036_v35 = vadd.f32 %v15060_v5, %v7896_v32  ;;  %v7897_v27 = vmul.f32 %v15058_v18, %v7729_v26  ;;  %v8173_v39 = vld [vmem:[%s11672_s26 + $0x3a8] sm:$0xff] }
 0x810   : > { %v7731_v21 = vpop.f32.mrf.mxu0 }
 0x811   : > { %8546 = vst [vmem:[%s15079_s9 + $0x350] sm:$0xff] %v8418_v54  ;;  %v8419_v49 = vmax.f32 %v8291_v52, 0.0  ;;  %v8292_v4 = vadd.f32 %v8164_v37, %v8036_v35  ;;  %v8037_v28 = vadd.f32 %v15063_v61, %v7897_v27  ;;  %v7898_v33 = vmul.f32 %v15056_v17, %v7731_v21  ;;  %v8174_v37 = vld [vmem:[%s11672_s26 + $0x3b0] sm:$0xff] }
 0x812   : > { %v7733_v20 = vpop.f32.mrf.mxu0 }
 0x813   : > { %8547 = vst [vmem:[%s15079_s9 + $0x358] sm:$0xff] %v8419_v49  ;;  %v8420_v7 = vmax.f32 %v8292_v4, 0.0  ;;  %v8293_v0 = vadd.f32 %v8165_v47, %v8037_v28  ;;  %v8038_v31 = vadd.f32 %v15060_v5, %v7898_v33  ;;  %v7899_v29 = vmul.f32 %v15058_v18, %v7733_v20  ;;  %v8175_v47 = vld [vmem:[%s11672_s26 + $0x3b8] sm:$0xff] }
 0x814   : > { %v7737_v25 = vpop.f32.mrf.mxu0 }
 0x815   : > { %8548 = vst [vmem:[%s15079_s9 + $0x360] sm:$0xff] %v8420_v7  ;;  %v8421_v11 = vmax.f32 %v8293_v0, 0.0  ;;  %v8294_v40 = vadd.f32 %v8166_v42, %v8038_v31  ;;  %v8039_v48 = vadd.f32 %v15063_v61, %v7899_v29  ;;  %v7900_v19 = vmul.f32 %v15056_v17, %v7737_v25  ;;  %v8176_v42 = vld [vmem:[%s11672_s26 + $0x3c0] sm:$0xff] }
 0x816   : > { %v7739_v41 = vpop.f32.mrf.mxu0 }
 0x817   : > { %8549 = vst [vmem:[%s15079_s9 + $0x368] sm:$0xff] %v8421_v11  ;;  %v8422_v16 = vmax.f32 %v8294_v40, 0.0  ;;  %v8295_v59 = vadd.f32 %v8167_v56, %v8039_v48  ;;  %v8040_v30 = vadd.f32 %v15060_v5, %v7900_v19  ;;  %v7901_v14 = vmul.f32 %v15058_v18, %v7739_v41  ;;  %v8177_v56 = vld [vmem:[%s11672_s26 + $0x3c8] sm:$0xff] }
 0x818   : > { %v7741_v53 = vpop.f32.mrf.mxu0 }
 0x819   : > { %8550 = vst [vmem:[%s15079_s9 + $0x370] sm:$0xff] %v8422_v16  ;;  %v8423_v60 = vmax.f32 %v8295_v59, 0.0  ;;  %v8296_v1 = vadd.f32 %v8168_v63, %v8040_v30  ;;  %v8041_v50 = vadd.f32 %v15063_v61, %v7901_v14  ;;  %v7902_v12 = vmul.f32 %v15056_v17, %v7741_v53  ;;  %v8178_v63 = vld [vmem:[%s11672_s26 + $0x3d0] sm:$0xff] }
 0x81a   : > { %v7743_v44 = vpop.f32.mrf.mxu0 }
 0x81b   : > { %8551 = vst [vmem:[%s15079_s9 + $0x378] sm:$0xff] %v8423_v60  ;;  %v8424_v10 = vmax.f32 %v8296_v1, 0.0  ;;  %v8297_v34 = vadd.f32 %v8169_v57, %v8041_v50  ;;  %v8042_v2 = vadd.f32 %v15060_v5, %v7902_v12  ;;  %v7903_v46 = vmul.f32 %v15058_v18, %v7743_v44  ;;  %v8179_v57 = vld [vmem:[%s11672_s26 + $0x3d8] sm:$0xff] }
 0x81c   : > { %v7747_v8 = vpop.f32.mrf.mxu0 }
 0x81d   : > { %8552 = vst [vmem:[%s15079_s9 + $0x380] sm:$0xff] %v8424_v10  ;;  %v8425_v24 = vmax.f32 %v8297_v34, 0.0  ;;  %v8298_v6 = vadd.f32 %v8170_v55, %v8042_v2  ;;  %v8043_v45 = vadd.f32 %v15063_v61, %v7903_v46  ;;  %v7904_v9 = vmul.f32 %v15056_v17, %v7747_v8  ;;  %v8180_v55 = vld [vmem:[%s11672_s26 + $0x3e0] sm:$0xff] }
 0x81e   : > { %v7749_v38 = vpop.f32.mrf.mxu0 }
 0x81f   : > { %8553 = vst [vmem:[%s15079_s9 + $0x388] sm:$0xff] %v8425_v24  ;;  %v8426_v58 = vmax.f32 %v8298_v6, 0.0  ;;  %v8299_v36 = vadd.f32 %v8171_v62, %v8043_v45  ;;  %v8044_v13 = vadd.f32 %v15060_v5, %v7904_v9  ;;  %v7905_v43 = vmul.f32 %v15058_v18, %v7749_v38  ;;  %v8181_v62 = vld [vmem:[%s11672_s26 + $0x3e8] sm:$0xff] }
 0x820   : > { %v7751_v22 = vpop.f32.mrf.mxu0 }
 0x821   : > { %8554 = vst [vmem:[%s15079_s9 + $0x390] sm:$0xff] %v8426_v58  ;;  %v8427_v3 = vmax.f32 %v8299_v36, 0.0  ;;  %v8300_v51 = vadd.f32 %v8172_v15, %v8044_v13  ;;  %v8045_v23 = vadd.f32 %v15063_v61, %v7905_v43  ;;  %v7906_v32 = vmul.f32 %v15056_v17, %v7751_v22  ;;  %v8182_v15 = vld [vmem:[%s11672_s26 + $0x3f0] sm:$0xff] }
 0x822   : > { %v7753_v26 = vpop.f32.mrf.mxu0 }
 0x823   : > { %8555 = vst [vmem:[%s15079_s9 + $0x398] sm:$0xff] %v8427_v3  ;;  %v8428_v54 = vmax.f32 %v8300_v51, 0.0  ;;  %v8301_v52 = vadd.f32 %v8173_v39, %v8045_v23  ;;  %v8046_v35 = vadd.f32 %v15060_v5, %v7906_v32  ;;  %v7907_v27 = vmul.f32 %v15058_v18, %v7753_v26  ;;  %v8183_v39 = vld [vmem:[%s11672_s26 + $0x3f8] sm:$0xff]  ;;  %s15606_s26 = scalar_lea.sflag [#allocation5], %s581_s6 }
 0x824   : > { %v7757_v21 = vpop.f32.mrf.mxu0 }
 0x825   : > { %8556 = vst [vmem:[%s15079_s9 + $0x3a0] sm:$0xff] %v8428_v54  ;;  %v8429_v49 = vmax.f32 %v8301_v52, 0.0  ;;  %v8302_v4 = vadd.f32 %v8174_v37, %v8046_v35  ;;  %v8047_v28 = vadd.f32 %v15063_v61, %v7907_v27  ;;  %v7908_v33 = vmul.f32 %v15056_v17, %v7757_v21 }
 0x826   : > { %v7759_v20 = vpop.f32.mrf.mxu0 }
 0x827   : > { %8557 = vst [vmem:[%s15079_s9 + $0x3a8] sm:$0xff] %v8429_v49  ;;  %v8430_v7 = vmax.f32 %v8302_v4, 0.0  ;;  %v8303_v0 = vadd.f32 %v8175_v47, %v8047_v28  ;;  %v8048_v31 = vadd.f32 %v15060_v5, %v7908_v33  ;;  %v7909_v29 = vmul.f32 %v15058_v18, %v7759_v20 }
 0x828   : > { %v7761_v25 = vpop.f32.mrf.mxu0 }
 0x829   : > { %8558 = vst [vmem:[%s15079_s9 + $0x3b0] sm:$0xff] %v8430_v7  ;;  %v8431_v11 = vmax.f32 %v8303_v0, 0.0  ;;  %v8304_v40 = vadd.f32 %v8176_v42, %v8048_v31  ;;  %v8049_v48 = vadd.f32 %v15063_v61, %v7909_v29  ;;  %v7910_v19 = vmul.f32 %v15056_v17, %v7761_v25 }
 0x82a   : > { %v7763_v41 = vpop.f32.mrf.mxu0 }
 0x82b   : > { %8559 = vst [vmem:[%s15079_s9 + $0x3b8] sm:$0xff] %v8431_v11  ;;  %v8432_v16 = vmax.f32 %v8304_v40, 0.0  ;;  %v8305_v59 = vadd.f32 %v8177_v56, %v8049_v48  ;;  %v8050_v30 = vadd.f32 %v15060_v5, %v7910_v19  ;;  %v7911_v14 = vmul.f32 %v15058_v18, %v7763_v41 }
 0x82c   : > { %v7767_v53 = vpop.f32.mrf.mxu0 }
 0x82d   : > { %8560 = vst [vmem:[%s15079_s9 + $0x3c0] sm:$0xff] %v8432_v16  ;;  %v8433_v60 = vmax.f32 %v8305_v59, 0.0  ;;  %v8306_v1 = vadd.f32 %v8178_v63, %v8050_v30  ;;  %v8051_v50 = vadd.f32 %v15063_v61, %v7911_v14  ;;  %v7912_v12 = vmul.f32 %v15056_v17, %v7767_v53 }
 0x82e   : > { %v7769_v44 = vpop.f32.mrf.mxu0 }
 0x82f   : > { %8561 = vst [vmem:[%s15079_s9 + $0x3c8] sm:$0xff] %v8433_v60  ;;  %v8434_v10 = vmax.f32 %v8306_v1, 0.0  ;;  %v8307_v34 = vadd.f32 %v8179_v57, %v8051_v50  ;;  %v8052_v2 = vadd.f32 %v15060_v5, %v7912_v12  ;;  %v7913_v46 = vmul.f32 %v15058_v18, %v7769_v44 }
 0x830   : > { %v7771_v8 = vpop.f32.mrf.mxu0 }
 0x831   : > { %8562 = vst [vmem:[%s15079_s9 + $0x3d0] sm:$0xff] %v8434_v10  ;;  %v8435_v24 = vmax.f32 %v8307_v34, 0.0  ;;  %v8308_v6 = vadd.f32 %v8180_v55, %v8052_v2  ;;  %v8053_v45 = vadd.f32 %v15063_v61, %v7913_v46  ;;  %v7914_v9 = vmul.f32 %v15056_v17, %v7771_v8 }
 0x832   : > { %v7773_v38 = vpop.f32.mrf.mxu0 }
 0x833   : > { %8563 = vst [vmem:[%s15079_s9 + $0x3d8] sm:$0xff] %v8435_v24  ;;  %v8436_v58 = vmax.f32 %v8308_v6, 0.0  ;;  %v8309_v36 = vadd.f32 %v8181_v62, %v8053_v45  ;;  %v8054_v13 = vadd.f32 %v15060_v5, %v7914_v9  ;;  %v7915_v43 = vmul.f32 %v15058_v18, %v7773_v38 }
 0x835   : > { %8564 = vst [vmem:[%s15079_s9 + $0x3e0] sm:$0xff] %v8436_v58  ;;  %v8437_v22 = vmax.f32 %v8309_v36, 0.0  ;;  %v8310_v3 = vadd.f32 %v8182_v15, %v8054_v13  ;;  %v8055_v17 = vadd.f32 %v15063_v61, %v7915_v43 }
 0x837   : > { %8565 = vst [vmem:[%s15079_s9 + $0x3e8] sm:$0xff] %v8437_v22  ;;  %v8438_v51 = vmax.f32 %v8310_v3, 0.0  ;;  %v8311_v23 = vadd.f32 %v8183_v39, %v8055_v17 }
 0x839   : > { %8566 = vst [vmem:[%s15079_s9 + $0x3f0] sm:$0xff] %v8438_v51  ;;  %v8439_v18 = vmax.f32 %v8311_v23, 0.0 }
 0x83b   : > { %8567 = vst [vmem:[%s15079_s9 + $0x3f8] sm:$0xff] %v8439_v18 }
 0x83c   : > { %11062 = shalt.err (!%p11059_p8)
}
 0x83d   : > { %s11063_s28 = scalar_lea.hbm %s15598_s30, 16384  ;;  %s11067_s1 = scalar_lea.hbm %s16783_s8, 65536 }
 0x83e   : > { %p11064_p9 = scmp.ne.s32.totalorder %s15598_s30, %s11063_s28  ;;  %p11068_p4 = scmp.lt.s32.totalorder %s15598_s30, %s16783_s8 }
 0x83f   : > { %p11069_p3 = scmp.lt.s32.totalorder %s11067_s1, %s11063_s28 }
 0x840   : > { %p11065_p13 = pnand %p11064_p9, %p16784_p12 }
 0x841   : > { %p11070_p5 = por %p11069_p3, %p11068_p4 }
 0x842   : > { %p11066_p10 = pneg %p11065_p13 }
 0x844   : > { %p11071_p11 = pnand %p11070_p5, %p11066_p10 }
 0x846   : > { %11074 = shalt.err (!%p11071_p11)
}
 0x847   : > { %s11244_s0 = smov 256   ;;  %s11245_s11 = smov 16  }
 0x848   : > { %10414 = dma.vmem_to_hbm [thread:$0]  (%p16784_p12), %s15600_s13, 16384, %s15598_s30, %s15606_s26, %s11244_s0, %s11244_s0, %s11245_s11  }
 0x849 PF: > { %s16785_s21 = sld [smem:[#allocation36_spill]]  ;;  %p10477_p7 = scmp.ge.s32.totalorder %s11221_s16, 2 }
 0x84a   : > { %s16786_s4 = sld [smem:[#allocation46_spill]] }
 0x84f   : > { %s8600_s12 = sand.u32 1, %s16785_s21  }
 0x850   : > { %p16787_p0 = scmp.ne.s32.totalorder %s16786_s4, 0  ;;  %s8601_s3 = scalar_lea.sflag [#allocation5], %s8600_s12 }
 0x852   : > { %p10455_p1 = pnand %p10477_p7, %p16787_p0 }
 0x854   : > { %p10456_p6 = pneg %p10455_p1 }
 0x856   : > { %11164 = dma.done.wait (%p10456_p6), %s8601_s3, 16384  }
 0x857   : > { %11166 = vsyncadd (%p10456_p6), %s8601_s3, 4294950912  ;;  %s36_s16 = sadd.s32 1, %s11221_s16   ;;  %s16789_s21 = sld [smem:[#allocation34_spill]] }
 0x858   : > { %p15634_p2 = scmp.ge.s32.totalorder %s36_s16, 6   ;;  %s16790_s10 = sld [smem:[#allocation35_spill]] }
 0x859   : > { %s16791_s24 = sld [smem:[#allocation37_spill]]  ;;  %s16794_s30 = smov %s11583_s22 }
 0x85a   : > { %s16792_s25 = sld [smem:[#allocation38_spill]]  ;;  %s16795_s7 = smov %s16811_s27 }
 0x85b   : > { %s16793_s13 = sld [smem:[#allocation40_spill]]  ;;  %s16797_s23 = smov %s16823_s19 }
 0x85c   : > { %s16798_s26 = smov %s16817_s5  ;;  %s16800_s28 = smov %s11201_s29 }
 0x85d   : > { %s16801_s29 = smov %s16794_s30  ;;  %s16802_s30 = smov %s11213_s14 }
 0x85e   : > { %s16796_s22 = smov %s16790_s10  ;;  %s16804_s14 = smov %s16807_s20 }
 0x85f   :  { %35 = sbr.rel (!%p15634_p2) target bundleno = 31 (0x1f), region = 181 }
 0x861   : > { %s16799_s27 = smov %s16793_s13  ;;  %s16803_s13 = smov %s11217_s15 }
 0x862   : > { %s16805_s15 = smov %s16795_s7 }
 0x864   :  { %8606 = vsyncpa [#allocation4], 1 }
 0x865   :  { %8608 = vsyncpa [#allocation4 + $0x1], 1 }
 0x866   :  { %8609 = vsyncpa [#allocation7], 1 }
 0x867   :  { %8611 = vsyncpa [#allocation7 + $0x1], 1 }
 0x868   :  { %8612 = vsyncpa [#allocation10], 1 }
 0x869   :  { %8613 = vsyncpa [#allocation13], 1 }
 0x86a   :  { %8614 = vsyncpa [#allocation16], 1 }
 0x86b   :  { %8615 = vsyncpa [#allocation19], 1 }
 0x86c   :  { %8616 = vsyncpa [#allocation22], 1 }
 0x86d   :  { %8617 = vsyncpa [#allocation5], 1 }
 0x86e   :  { %8619 = vsyncpa [#allocation5 + $0x1], 1 }

</bundles_post_ra>
